<compile_context>
chip_gen: v5e
topology: v5e:2x2
jax: 0.10.0
libtpu: 0.0.40
codegen_flags: <defaults>
</compile_context>

<pallas_src>
import functools

import jax
import jax.numpy as jnp
from jax import lax
from jax.experimental import pallas as pl
from jax.experimental.pallas import tpu as pltpu


def _round_up(x, m):
    return (x + m - 1) // m * m


def _pick_tile_t(T, Bp, Hp, budget_bytes=8 << 20):
    """Largest divisor of T whose tile_t-dependent pipelined VMEM fits the budget."""
    # per unit of tile_t: 2 directions * (gx bf16 + out bf16), double-buffered
    per_t = 2 * (Bp * 4 * Hp * 2 + Bp * Hp * 2) * 2
    for t in (128, 64, 32, 16, 8, 4, 2, 1):
        if T % t == 0 and t * per_t <= budget_bytes:
            return t
    return 1


# ----------------------------------------------------------------------------
# Pallas kernel: fused bidirectional LSTM recurrence, both directions per step
# ----------------------------------------------------------------------------
def bilstm_recurrence_kernel(gxf_ref, gxb_ref, whh_ref, of_ref, ob_ref,
                             hf_sc, cf_sc, hb_sc, cb_sc):
    """Grid = (time_block,).  Both directions advance one block per grid step.

    gxf_ref: (1, TILE_T, Bp, 4Hp) bf16  forward  x@W_ih^T + b block (time ascending)
    gxb_ref: (1, TILE_T, Bp, 4Hp) bf16  backward block (block order reversed by index_map)
    whh_ref: (2, Hp, 4Hp)         bf16  recurrent weights for both directions
    of_ref : (TILE_T, Bp, Hp)     bf16  forward per-step hidden states
    ob_ref : (TILE_T, Bp, Hp)     bf16  backward per-step hidden states
    h*_sc, c*_sc: (Bp, Hp) f32 scratch carrying state across time blocks.
    """
    tt = pl.program_id(0)

    @pl.when(tt == 0)
    def _():
        for r in (hf_sc, cf_sc, hb_sc, cb_sc):
            r[...] = jnp.zeros_like(r)

    whh_f = whh_ref[0]            # (Hp, 4Hp) bf16
    whh_b = whh_ref[1]
    hp = hf_sc.shape[-1]
    tile_t = of_ref.shape[0]

    def cell(gx_row, h, c, whh):
        gates = gx_row.astype(jnp.float32) + jnp.dot(
            h.astype(jnp.bfloat16), whh, preferred_element_type=jnp.float32)
        # PyTorch gate order i, f, g, o; each gate occupies whole 128-lane tiles.
        i = jax.nn.sigmoid(gates[:, 0 * hp:1 * hp])
        f = jax.nn.sigmoid(gates[:, 1 * hp:2 * hp])
        g = jnp.tanh(gates[:, 2 * hp:3 * hp])
        o = jax.nn.sigmoid(gates[:, 3 * hp:4 * hp])
        c_new = f * c + i * g
        h_new = o * jnp.tanh(c_new)
        return h_new, c_new

    def step(s, carry):
        hf, cf, hb, cb = carry
        sb = tile_t - 1 - s       # backward walks its block in reverse time order
        # Two independent chains issued back-to-back -> MXU/EUP/VPU overlap.
        hf, cf = cell(gxf_ref[0, s], hf, cf, whh_f)
        hb, cb = cell(gxb_ref[0, sb], hb, cb, whh_b)
        of_ref[s] = hf.astype(of_ref.dtype)
        ob_ref[sb] = hb.astype(ob_ref.dtype)
        return hf, cf, hb, cb

    carry0 = (hf_sc[...], cf_sc[...], hb_sc[...], cb_sc[...])
    # Cap unroll so large-Hp live sets don't spill the 64-vreg file.
    hf, cf, hb, cb = lax.fori_loop(0, tile_t, step, carry0,
                                   unroll=min(tile_t, 8))
    hf_sc[...] = hf
    cf_sc[...] = cf
    hb_sc[...] = hb
    cb_sc[...] = cb


def bilstm_layer(gates_x, whh_s, tile_t):
    """gates_x: (2,T,Bp,4Hp) bf16; whh_s: (2,Hp,4Hp) bf16
    -> (out_f, out_b) each (T,Bp,Hp) bf16."""
    _, T, Bp, four_hp = gates_x.shape
    Hp = four_hp // 4
    nT = T // tile_t

    in_specs = [
        # forward gate-slab blocks walk time blocks 0..nT-1
        pl.BlockSpec((1, tile_t, Bp, four_hp), lambda tt: (0, tt, 0, 0)),
        # backward blocks walk nT-1..0 (time reversal = DMA addressing)
        pl.BlockSpec((1, tile_t, Bp, four_hp), lambda tt: (1, nT - 1 - tt, 0, 0)),
        # recurrent weights: constant block across the grid (fetched once).
        # TODO(synk): for very large Hp on v7x, pipeline_mode=pl.Buffered(1)
        # here would save one Whh-sized VMEM buffer.
        pl.BlockSpec((2, Hp, four_hp), lambda tt: (0, 0, 0)),
    ]
    out_specs = [
        pl.BlockSpec((tile_t, Bp, Hp), lambda tt: (tt, 0, 0)),
        pl.BlockSpec((tile_t, Bp, Hp), lambda tt: (nT - 1 - tt, 0, 0)),
    ]

    # Explicit VMEM budget: tile-dependent double-buffered blocks + constants.
    tile_bytes = 2 * 2 * (tile_t * Bp * four_hp * 2 + tile_t * Bp * Hp * 2)
    const_bytes = 2 * 2 * Hp * four_hp * 2 + 4 * Bp * Hp * 4
    vmem_limit = int(min(64 << 20, max(32 << 20, 2 * (tile_bytes + const_bytes))))

    grid_spec = pltpu.PrefetchScalarGridSpec(
        num_scalar_prefetch=0,
        grid=(nT,),
        in_specs=in_specs,
        out_specs=out_specs,
        scratch_shapes=[pltpu.VMEM((Bp, Hp), jnp.float32) for _ in range(4)],
    )
    return pl.pallas_call(
        bilstm_recurrence_kernel,
        out_shape=(jax.ShapeDtypeStruct((T, Bp, Hp), jnp.bfloat16),
                   jax.ShapeDtypeStruct((T, Bp, Hp), jnp.bfloat16)),
        grid_spec=grid_spec,
        compiler_params=pltpu.CompilerParams(
            dimension_semantics=("arbitrary",),
            vmem_limit_bytes=vmem_limit),
    )(gates_x, gates_x, whh_s)


# ----------------------------------------------------------------------------
# Parameter construction (raw PyTorch-shaped weights + padded kernel layouts)
# ----------------------------------------------------------------------------
def init_raw_params(key, vocab_size, E, H, O, n_layers, pad_idx):
    params = {}
    k_emb, k_lstm, k_fc = jax.random.split(key, 3)

    emb = jax.random.normal(k_emb, (vocab_size, E), jnp.float32) * 0.1
    emb = emb.at[pad_idx].set(0.0)          # padding_idx row is zero
    params["embedding"] = emb

    lstm = []
    keys = jax.random.split(k_lstm, n_layers * 2)
    scale = 1.0 / jnp.sqrt(H)
    for l in range(n_layers):
        in_dim = E if l == 0 else 2 * H
        layer = []
        for d in range(2):
            kk = jax.random.split(keys[l * 2 + d], 4)
            w_ih = jax.random.uniform(kk[0], (4 * H, in_dim), jnp.float32, -scale, scale)
            w_hh = jax.random.uniform(kk[1], (4 * H, H), jnp.float32, -scale, scale)
            b_ih = jax.random.uniform(kk[2], (4 * H,), jnp.float32, -scale, scale)
            b_hh = jax.random.uniform(kk[3], (4 * H,), jnp.float32, -scale, scale)
            layer.append({"w_ih": w_ih, "w_hh": w_hh, "b": b_ih + b_hh})
        lstm.append(layer)
    params["lstm"] = lstm

    kw, kb = jax.random.split(k_fc)
    params["fc_w"] = jax.random.normal(kw, (O, 2 * H), jnp.float32) * 0.1
    params["fc_b"] = jax.random.normal(kb, (O,), jnp.float32) * 0.1
    return params


def _pad_gate_cols_T(w, H, Hp):
    """w: (4H, in_dim) -> transposed, gate-blocked & lane-padded (in_dim, 4*Hp)."""
    in_dim = w.shape[1]
    out = jnp.zeros((in_dim, 4 * Hp), jnp.float32)
    for k in range(4):
        out = out.at[:, k * Hp:k * Hp + H].set(w[k * H:(k + 1) * H, :].T)
    return out


def _pad_gate_bias(b, H, Hp):
    out = jnp.zeros((4 * Hp,), jnp.float32)
    for k in range(4):
        out = out.at[k * Hp:k * Hp + H].set(b[k * H:(k + 1) * H])
    return out


def prepare_kernel_params(raw, H, Hp):
    """Pad H->Hp (multiple of 128), transpose weights, cast matmul weights to bf16.
    Zero-padding keeps the padded hidden units exactly zero through the recurrence."""
    kp = {"embedding": raw["embedding"]}
    layers = []
    for l, layer in enumerate(raw["lstm"]):
        whh = jnp.stack([
            jnp.pad(_pad_gate_cols_T(layer[d]["w_hh"], H, Hp), ((0, Hp - H), (0, 0)))
            for d in range(2)]).astype(jnp.bfloat16)                      # (2, Hp, 4Hp)
        bias = jnp.stack([_pad_gate_bias(layer[d]["b"], H, Hp)
                          for d in range(2)])[:, None, None, :]           # (2,1,1,4Hp) f32
        if l == 0:
            wih = jnp.stack([_pad_gate_cols_T(layer[d]["w_ih"], H, Hp)
                             for d in range(2)]).astype(jnp.bfloat16)     # (2, E, 4Hp)
        else:
            # Split the 2H input features into per-source-direction Hp halves so
            # the next layer consumes (out_f, out_b) directly (no concatenate).
            per_dir = []
            for d in range(2):
                wt = _pad_gate_cols_T(layer[d]["w_ih"], H, Hp)            # (2H, 4Hp)
                halves = []
                for s in range(2):
                    blk = jnp.zeros((Hp, 4 * Hp), jnp.float32)
                    blk = blk.at[:H, :].set(wt[s * H:(s + 1) * H, :])
                    halves.append(blk)
                per_dir.append(jnp.stack(halves))                         # (2, Hp, 4Hp)
            wih = jnp.stack(per_dir).astype(jnp.bfloat16)                 # (2, 2, Hp, 4Hp)
        layers.append({"wih": wih, "whh": whh, "b": bias})
    kp["layers"] = layers
    kp["fc_w_t"] = raw["fc_w"].T           # (2H, O) f32
    kp["fc_b"] = raw["fc_b"][None, :]      # (1, O)
    return kp


# ----------------------------------------------------------------------------
# Full forward (matches the PyTorch RNN.forward semantics, inference mode)
# ----------------------------------------------------------------------------
def rnn_forward(kp, text, H):
    # TODO(synk): dropout layers are identity here (inference); training dropout is stochastic.
    B, T = text.shape
    Bp = _round_up(max(B, 8), 8)
    Hp = kp["layers"][0]["whh"].shape[1]
    tile_t = _pick_tile_t(T, Bp, Hp)

    emb = jnp.take(kp["embedding"], text, axis=0)          # (B, T, E) f32
    x = jnp.transpose(emb, (1, 0, 2))                      # (T, B, E) time-major
    x = jnp.pad(x, ((0, 0), (0, Bp - B), (0, 0)))          # pad batch to sublanes
    x_bf = x.astype(jnp.bfloat16)

    out_f = out_b = None
    for l, layer in enumerate(kp["layers"]):
        if l == 0:
            gx = jnp.einsum("tbe,deh->dtbh", x_bf, layer["wih"],
                            preferred_element_type=jnp.float32)
        else:
            gx = (jnp.einsum("tbh,dhf->dtbf", out_f, layer["wih"][:, 0],
                             preferred_element_type=jnp.float32)
                  + jnp.einsum("tbh,dhf->dtbf", out_b, layer["wih"][:, 1],
                               preferred_element_type=jnp.float32))
        # Gate slab stored bf16: halves the dominant HBM stream into the recurrence.
        gx = (gx + layer["b"]).astype(jnp.bfloat16)
        out_f, out_b = bilstm_layer(gx, layer["whh"], tile_t)   # each (T, Bp, Hp) bf16

    # hidden[-2] = forward final h = output at time T-1; hidden[-1] = backward final h at time 0
    h_f = out_f[T - 1, :B, :H].astype(jnp.float32)
    h_b = out_b[0, :B, :H].astype(jnp.float32)
    hidden = jnp.concatenate([h_f, h_b], axis=-1)           # (B, 2H)
    # Final (B,2H)x(2H,O) GEMM is tiny: a grid=(1,) pallas_call is pure overhead.
    return hidden @ kp["fc_w_t"] + kp["fc_b"]


# ----------------------------------------------------------------------------
# Pure-JAX reference (same math / same bf16 matmul cast points) for sanity check
# ----------------------------------------------------------------------------
def _ref_lstm_dir(x, w_ih, w_hh, b, reverse):
    T, B, _ = x.shape
    H = w_hh.shape[1]
    wih_t = w_ih.T.astype(jnp.bfloat16)
    whh_t = w_hh.T.astype(jnp.bfloat16)
    h = jnp.zeros((B, H), jnp.float32)
    c = jnp.zeros((B, H), jnp.float32)
    outs = [None] * T
    order = range(T - 1, -1, -1) if reverse else range(T)
    for t in order:
        g = (jnp.dot(x[t].astype(jnp.bfloat16), wih_t, preferred_element_type=jnp.float32)
             + jnp.dot(h.astype(jnp.bfloat16), whh_t, preferred_element_type=jnp.float32)
             + b)
        i = jax.nn.sigmoid(g[:, :H])
        f = jax.nn.sigmoid(g[:, H:2 * H])
        gg = jnp.tanh(g[:, 2 * H:3 * H])
        o = jax.nn.sigmoid(g[:, 3 * H:])
        c = f * c + i * gg
        h = o * jnp.tanh(c)
        outs[t] = h
    return jnp.stack(outs), h


def rnn_forward_ref(raw, text):
    emb = jnp.take(raw["embedding"], text, axis=0)
    x = jnp.transpose(emb, (1, 0, 2))
    inp = x
    h_f = h_b = None
    for layer in raw["lstm"]:
        out_f, h_f = _ref_lstm_dir(inp, layer[0]["w_ih"], layer[0]["w_hh"],
                                   layer[0]["b"], reverse=False)
        out_b, h_b = _ref_lstm_dir(inp, layer[1]["w_ih"], layer[1]["w_hh"],
                                   layer[1]["b"], reverse=True)
        inp = jnp.concatenate([out_f, out_b], axis=-1)
    hidden = jnp.concatenate([h_f, h_b], axis=-1)
    return hidden @ raw["fc_w"].T + raw["fc_b"][None, :]


# ----------------------------------------------------------------------------
if __name__ == "__main__":
    vocab_size, embedding_dim, hidden_dim, output_dim = 50, 16, 32, 4
    n_layers, pad_idx = 2, 0
    B, T = 2, 8
    Hp = _round_up(hidden_dim, 128)

    key = jax.random.PRNGKey(0)
    k_param, k_text = jax.random.split(key)
    raw = init_raw_params(k_param, vocab_size, embedding_dim, hidden_dim,
                          output_dim, n_layers, pad_idx)
    kp = prepare_kernel_params(raw, hidden_dim, Hp)
    text = jax.random.randint(k_text, (B, T), 0, vocab_size, dtype=jnp.int32)

    fwd = jax.jit(functools.partial(rnn_forward, H=hidden_dim))
    out = fwd(kp, text)
    out = jax.block_until_ready(out)

    ref = rnn_forward_ref(raw, text)
    assert out.shape == (B, output_dim)
    assert jnp.allclose(out, ref, rtol=2e-2, atol=2e-2), (out, ref)

    print("KERNEL_OK")
</pallas_src>

<mosaic_0001>
module attributes {stable_mosaic.version = 11 : i64} {
  func.func @bilstm_recurrence_kernel(%arg0: i32, %arg1: memref<1x8x8x512xbf16, #tpu.memory_space<vmem>>, %arg2: memref<1x8x8x512xbf16, #tpu.memory_space<vmem>>, %arg3: memref<2x128x512xbf16, #tpu.memory_space<vmem>>, %arg4: memref<8x8x128xbf16, #tpu.memory_space<vmem>>, %arg5: memref<8x8x128xbf16, #tpu.memory_space<vmem>>, %arg6: memref<8x128xf32, #tpu.memory_space<vmem>>, %arg7: memref<8x128xf32, #tpu.memory_space<vmem>>, %arg8: memref<8x128xf32, #tpu.memory_space<vmem>>, %arg9: memref<8x128xf32, #tpu.memory_space<vmem>>) attributes {dimension_semantics = [#tpu.dimension_semantics<arbitrary>], iteration_bounds = array<i64: 1>, scalar_prefetch = 0 : i64, scratch_operands = 4 : i64, tpu.core_type = #tpu.core_type<tc>, window_params = [{transform_indices = @transform_0, window_bounds = array<i64: 1, 8, 8, 512>}, {transform_indices = @transform_1, window_bounds = array<i64: 1, 8, 8, 512>}, {pipeline_mode = #tpu.pipeline_mode<synchronous>, transform_indices = @transform_2, window_bounds = array<i64: 2, 128, 512>}, {transform_indices = @transform_3, window_bounds = array<i64: 8, 8, 128>}, {transform_indices = @transform_4, window_bounds = array<i64: 8, 8, 128>}]} {
    %c0_i32 = arith.constant 0 : i32
    %0 = arith.cmpi eq, %arg0, %c0_i32 : i32
    %1 = arith.extui %0 : i1 to i32
    %c0_i32_0 = arith.constant 0 : i32
    %2 = arith.cmpi ne, %1, %c0_i32_0 : i32
    scf.if %2 {
      %cst_173 = arith.constant 0.000000e+00 : f32
      %615 = vector.broadcast %cst_173 : f32 to vector<8x128xf32>
      %c0_174 = arith.constant 0 : index
      %c0_175 = arith.constant 0 : index
      %616 = vector.load %arg6[%c0_174, %c0_175] : memref<8x128xf32, #tpu.memory_space<vmem>>, vector<8x128xf32>
      tpu.vector_store %arg6[%c0_174, %c0_175], %615 {strides = array<i32>} : memref<8x128xf32, #tpu.memory_space<vmem>>, vector<8x128xf32>,
      %cst_176 = arith.constant 0.000000e+00 : f32
      %617 = vector.broadcast %cst_176 : f32 to vector<8x128xf32>
      %c0_177 = arith.constant 0 : index
      %c0_178 = arith.constant 0 : index
      %618 = vector.load %arg7[%c0_177, %c0_178] : memref<8x128xf32, #tpu.memory_space<vmem>>, vector<8x128xf32>
      tpu.vector_store %arg7[%c0_177, %c0_178], %617 {strides = array<i32>} : memref<8x128xf32, #tpu.memory_space<vmem>>, vector<8x128xf32>,
      %cst_179 = arith.constant 0.000000e+00 : f32
      %619 = vector.broadcast %cst_179 : f32 to vector<8x128xf32>
      %c0_180 = arith.constant 0 : index
      %c0_181 = arith.constant 0 : index
      %620 = vector.load %arg8[%c0_180, %c0_181] : memref<8x128xf32, #tpu.memory_space<vmem>>, vector<8x128xf32>
      tpu.vector_store %arg8[%c0_180, %c0_181], %619 {strides = array<i32>} : memref<8x128xf32, #tpu.memory_space<vmem>>, vector<8x128xf32>,
      %cst_182 = arith.constant 0.000000e+00 : f32
      %621 = vector.broadcast %cst_182 : f32 to vector<8x128xf32>
      %c0_183 = arith.constant 0 : index
      %c0_184 = arith.constant 0 : index
      %622 = vector.load %arg9[%c0_183, %c0_184] : memref<8x128xf32, #tpu.memory_space<vmem>>, vector<8x128xf32>
      tpu.vector_store %arg9[%c0_183, %c0_184], %621 {strides = array<i32>} : memref<8x128xf32, #tpu.memory_space<vmem>>, vector<8x128xf32>,
    } else {
    }
    %c0 = arith.constant 0 : index
    %c0_1 = arith.constant 0 : index
    %c0_2 = arith.constant 0 : index
    %3 = vector.load %arg3[%c0, %c0_1, %c0_2] : memref<2x128x512xbf16, #tpu.memory_space<vmem>>, vector<1x128x512xbf16>
    %4 = vector.shape_cast %3 : vector<1x128x512xbf16> to vector<128x512xbf16>
    %c1 = arith.constant 1 : index
    %c0_3 = arith.constant 0 : index
    %c0_4 = arith.constant 0 : index
    %5 = vector.load %arg3[%c1, %c0_3, %c0_4] : memref<2x128x512xbf16, #tpu.memory_space<vmem>>, vector<1x128x512xbf16>
    %6 = vector.shape_cast %5 : vector<1x128x512xbf16> to vector<128x512xbf16>
    %c0_5 = arith.constant 0 : index
    %c0_6 = arith.constant 0 : index
    %7 = vector.load %arg6[%c0_5, %c0_6] : memref<8x128xf32, #tpu.memory_space<vmem>>, vector<8x128xf32>
    %c0_7 = arith.constant 0 : index
    %c0_8 = arith.constant 0 : index
    %8 = vector.load %arg7[%c0_7, %c0_8] : memref<8x128xf32, #tpu.memory_space<vmem>>, vector<8x128xf32>
    %c0_9 = arith.constant 0 : index
    %c0_10 = arith.constant 0 : index
    %9 = vector.load %arg8[%c0_9, %c0_10] : memref<8x128xf32, #tpu.memory_space<vmem>>, vector<8x128xf32>
    %c0_11 = arith.constant 0 : index
    %c0_12 = arith.constant 0 : index
    %10 = vector.load %arg9[%c0_11, %c0_12] : memref<8x128xf32, #tpu.memory_space<vmem>>, vector<8x128xf32>
    %c0_i32_13 = arith.constant 0 : i32
    %c7_i32 = arith.constant 7 : i32
    %11 = arith.subi %c7_i32, %c0_i32_13 : i32
    %c0_14 = arith.constant 0 : index
    %12 = arith.index_cast %c0_i32_13 : i32 to index
    %c0_15 = arith.constant 0 : index
    %c0_16 = arith.constant 0 : index
    %13 = vector.load %arg1[%c0_14, %12, %c0_15, %c0_16] : memref<1x8x8x512xbf16, #tpu.memory_space<vmem>>, vector<1x1x8x512xbf16>
    %14 = vector.shape_cast %13 : vector<1x1x8x512xbf16> to vector<8x512xbf16>
    %15 = arith.extf %14 : vector<8x512xbf16> to vector<8x512xf32>
    %16 = arith.truncf %7 : vector<8x128xf32> to vector<8x128xbf16>
    %cst = arith.constant dense<0.000000e+00> : vector<8x512xf32>
    %17 = tpu.matmul %16, %4, %cst {dimension_numbers = #tpu.dot_dimension_numbers<[1], [0], [0], [1], [0, 0, 1, 1], [], []>} : vector<8x128xbf16>, vector<128x512xbf16>, vector<8x512xf32> -> vector<8x512xf32>
    %18 = arith.addf %15, %17 : vector<8x512xf32>
    %19 = vector.extract_strided_slice %18 {offsets = [0, 0], sizes = [8, 128], strides = [1, 1]} : vector<8x512xf32> to vector<8x128xf32>
    %20 = arith.negf %19 : vector<8x128xf32>
    %21 = math.exp %20 : vector<8x128xf32>
    %cst_17 = arith.constant 1.000000e+00 : f32
    %22 = vector.broadcast %cst_17 : f32 to vector<8x128xf32>
    %23 = arith.addf %22, %21 : vector<8x128xf32>
    %24 = arith.divf %22, %23 : vector<8x128xf32>
    %25 = vector.extract_strided_slice %18 {offsets = [0, 128], sizes = [8, 128], strides = [1, 1]} : vector<8x512xf32> to vector<8x128xf32>
    %26 = arith.negf %25 : vector<8x128xf32>
    %27 = math.exp %26 : vector<8x128xf32>
    %cst_18 = arith.constant 1.000000e+00 : f32
    %28 = vector.broadcast %cst_18 : f32 to vector<8x128xf32>
    %29 = arith.addf %28, %27 : vector<8x128xf32>
    %30 = arith.divf %28, %29 : vector<8x128xf32>
    %31 = vector.extract_strided_slice %18 {offsets = [0, 256], sizes = [8, 128], strides = [1, 1]} : vector<8x512xf32> to vector<8x128xf32>
    %32 = math.tanh %31 : vector<8x128xf32>
    %33 = vector.extract_strided_slice %18 {offsets = [0, 384], sizes = [8, 128], strides = [1, 1]} : vector<8x512xf32> to vector<8x128xf32>
    %34 = arith.negf %33 : vector<8x128xf32>
    %35 = math.exp %34 : vector<8x128xf32>
    %cst_19 = arith.constant 1.000000e+00 : f32
    %36 = vector.broadcast %cst_19 : f32 to vector<8x128xf32>
    %37 = arith.addf %36, %35 : vector<8x128xf32>
    %38 = arith.divf %36, %37 : vector<8x128xf32>
    %39 = arith.mulf %30, %8 : vector<8x128xf32>
    %40 = arith.mulf %24, %32 : vector<8x128xf32>
    %41 = arith.addf %39, %40 : vector<8x128xf32>
    %42 = math.tanh %41 : vector<8x128xf32>
    %43 = arith.mulf %38, %42 : vector<8x128xf32>
    %c0_20 = arith.constant 0 : index
    %44 = arith.index_cast %11 : i32 to index
    %c0_21 = arith.constant 0 : index
    %c0_22 = arith.constant 0 : index
    %45 = vector.load %arg2[%c0_20, %44, %c0_21, %c0_22] : memref<1x8x8x512xbf16, #tpu.memory_space<vmem>>, vector<1x1x8x512xbf16>
    %46 = vector.shape_cast %45 : vector<1x1x8x512xbf16> to vector<8x512xbf16>
    %47 = arith.extf %46 : vector<8x512xbf16> to vector<8x512xf32>
    %48 = arith.truncf %9 : vector<8x128xf32> to vector<8x128xbf16>
    %cst_23 = arith.constant dense<0.000000e+00> : vector<8x512xf32>
    %49 = tpu.matmul %48, %6, %cst_23 {dimension_numbers = #tpu.dot_dimension_numbers<[1], [0], [0], [1], [0, 0, 1, 1], [], []>} : vector<8x128xbf16>, vector<128x512xbf16>, vector<8x512xf32> -> vector<8x512xf32>
    %50 = arith.addf %47, %49 : vector<8x512xf32>
    %51 = vector.extract_strided_slice %50 {offsets = [0, 0], sizes = [8, 128], strides = [1, 1]} : vector<8x512xf32> to vector<8x128xf32>
    %52 = arith.negf %51 : vector<8x128xf32>
    %53 = math.exp %52 : vector<8x128xf32>
    %cst_24 = arith.constant 1.000000e+00 : f32
    %54 = vector.broadcast %cst_24 : f32 to vector<8x128xf32>
    %55 = arith.addf %54, %53 : vector<8x128xf32>
    %56 = arith.divf %54, %55 : vector<8x128xf32>
    %57 = vector.extract_strided_slice %50 {offsets = [0, 128], sizes = [8, 128], strides = [1, 1]} : vector<8x512xf32> to vector<8x128xf32>
    %58 = arith.negf %57 : vector<8x128xf32>
    %59 = math.exp %58 : vector<8x128xf32>
    %cst_25 = arith.constant 1.000000e+00 : f32
    %60 = vector.broadcast %cst_25 : f32 to vector<8x128xf32>
    %61 = arith.addf %60, %59 : vector<8x128xf32>
    %62 = arith.divf %60, %61 : vector<8x128xf32>
    %63 = vector.extract_strided_slice %50 {offsets = [0, 256], sizes = [8, 128], strides = [1, 1]} : vector<8x512xf32> to vector<8x128xf32>
    %64 = math.tanh %63 : vector<8x128xf32>
    %65 = vector.extract_strided_slice %50 {offsets = [0, 384], sizes = [8, 128], strides = [1, 1]} : vector<8x512xf32> to vector<8x128xf32>
    %66 = arith.negf %65 : vector<8x128xf32>
    %67 = math.exp %66 : vector<8x128xf32>
    %cst_26 = arith.constant 1.000000e+00 : f32
    %68 = vector.broadcast %cst_26 : f32 to vector<8x128xf32>
    %69 = arith.addf %68, %67 : vector<8x128xf32>
    %70 = arith.divf %68, %69 : vector<8x128xf32>
    %71 = arith.mulf %62, %10 : vector<8x128xf32>
    %72 = arith.mulf %56, %64 : vector<8x128xf32>
    %73 = arith.addf %71, %72 : vector<8x128xf32>
    %74 = math.tanh %73 : vector<8x128xf32>
    %75 = arith.mulf %70, %74 : vector<8x128xf32>
    %76 = arith.truncf %43 : vector<8x128xf32> to vector<8x128xbf16>
    %77 = arith.index_cast %c0_i32_13 : i32 to index
    %c0_27 = arith.constant 0 : index
    %c0_28 = arith.constant 0 : index
    %78 = vector.load %arg4[%77, %c0_27, %c0_28] : memref<8x8x128xbf16, #tpu.memory_space<vmem>>, vector<1x8x128xbf16>
    %79 = vector.shape_cast %78 : vector<1x8x128xbf16> to vector<8x128xbf16>
    %80 = vector.shape_cast %76 : vector<8x128xbf16> to vector<1x8x128xbf16>
    tpu.vector_store %arg4[%77, %c0_27, %c0_28], %80 {strides = array<i32>} : memref<8x8x128xbf16, #tpu.memory_space<vmem>>, vector<1x8x128xbf16>,
    %81 = arith.truncf %75 : vector<8x128xf32> to vector<8x128xbf16>
    %82 = arith.index_cast %11 : i32 to index
    %c0_29 = arith.constant 0 : index
    %c0_30 = arith.constant 0 : index
    %83 = vector.load %arg5[%82, %c0_29, %c0_30] : memref<8x8x128xbf16, #tpu.memory_space<vmem>>, vector<1x8x128xbf16>
    %84 = vector.shape_cast %83 : vector<1x8x128xbf16> to vector<8x128xbf16>
    %85 = vector.shape_cast %81 : vector<8x128xbf16> to vector<1x8x128xbf16>
    tpu.vector_store %arg5[%82, %c0_29, %c0_30], %85 {strides = array<i32>} : memref<8x8x128xbf16, #tpu.memory_space<vmem>>, vector<1x8x128xbf16>,
    %c1_i32 = arith.constant 1 : i32
    %c7_i32_31 = arith.constant 7 : i32
    %86 = arith.subi %c7_i32_31, %c1_i32 : i32
    %c0_32 = arith.constant 0 : index
    %87 = arith.index_cast %c1_i32 : i32 to index
    %c0_33 = arith.constant 0 : index
    %c0_34 = arith.constant 0 : index
    %88 = vector.load %arg1[%c0_32, %87, %c0_33, %c0_34] : memref<1x8x8x512xbf16, #tpu.memory_space<vmem>>, vector<1x1x8x512xbf16>
    %89 = vector.shape_cast %88 : vector<1x1x8x512xbf16> to vector<8x512xbf16>
    %90 = arith.extf %89 : vector<8x512xbf16> to vector<8x512xf32>
    %91 = arith.truncf %43 : vector<8x128xf32> to vector<8x128xbf16>
    %cst_35 = arith.constant dense<0.000000e+00> : vector<8x512xf32>
    %92 = tpu.matmul %91, %4, %cst_35 {dimension_numbers = #tpu.dot_dimension_numbers<[1], [0], [0], [1], [0, 0, 1, 1], [], []>} : vector<8x128xbf16>, vector<128x512xbf16>, vector<8x512xf32> -> vector<8x512xf32>
    %93 = arith.addf %90, %92 : vector<8x512xf32>
    %94 = vector.extract_strided_slice %93 {offsets = [0, 0], sizes = [8, 128], strides = [1, 1]} : vector<8x512xf32> to vector<8x128xf32>
    %95 = arith.negf %94 : vector<8x128xf32>
    %96 = math.exp %95 : vector<8x128xf32>
    %cst_36 = arith.constant 1.000000e+00 : f32
    %97 = vector.broadcast %cst_36 : f32 to vector<8x128xf32>
    %98 = arith.addf %97, %96 : vector<8x128xf32>
    %99 = arith.divf %97, %98 : vector<8x128xf32>
    %100 = vector.extract_strided_slice %93 {offsets = [0, 128], sizes = [8, 128], strides = [1, 1]} : vector<8x512xf32> to vector<8x128xf32>
    %101 = arith.negf %100 : vector<8x128xf32>
    %102 = math.exp %101 : vector<8x128xf32>
    %cst_37 = arith.constant 1.000000e+00 : f32
    %103 = vector.broadcast %cst_37 : f32 to vector<8x128xf32>
    %104 = arith.addf %103, %102 : vector<8x128xf32>
    %105 = arith.divf %103, %104 : vector<8x128xf32>
    %106 = vector.extract_strided_slice %93 {offsets = [0, 256], sizes = [8, 128], strides = [1, 1]} : vector<8x512xf32> to vector<8x128xf32>
    %107 = math.tanh %106 : vector<8x128xf32>
    %108 = vector.extract_strided_slice %93 {offsets = [0, 384], sizes = [8, 128], strides = [1, 1]} : vector<8x512xf32> to vector<8x128xf32>
    %109 = arith.negf %108 : vector<8x128xf32>
    %110 = math.exp %109 : vector<8x128xf32>
    %cst_38 = arith.constant 1.000000e+00 : f32
    %111 = vector.broadcast %cst_38 : f32 to vector<8x128xf32>
    %112 = arith.addf %111, %110 : vector<8x128xf32>
    %113 = arith.divf %111, %112 : vector<8x128xf32>
    %114 = arith.mulf %105, %41 : vector<8x128xf32>
    %115 = arith.mulf %99, %107 : vector<8x128xf32>
    %116 = arith.addf %114, %115 : vector<8x128xf32>
    %117 = math.tanh %116 : vector<8x128xf32>
    %118 = arith.mulf %113, %117 : vector<8x128xf32>
    %c0_39 = arith.constant 0 : index
    %119 = arith.index_cast %86 : i32 to index
    %c0_40 = arith.constant 0 : index
    %c0_41 = arith.constant 0 : index
    %120 = vector.load %arg2[%c0_39, %119, %c0_40, %c0_41] : memref<1x8x8x512xbf16, #tpu.memory_space<vmem>>, vector<1x1x8x512xbf16>
    %121 = vector.shape_cast %120 : vector<1x1x8x512xbf16> to vector<8x512xbf16>
    %122 = arith.extf %121 : vector<8x512xbf16> to vector<8x512xf32>
    %123 = arith.truncf %75 : vector<8x128xf32> to vector<8x128xbf16>
    %cst_42 = arith.constant dense<0.000000e+00> : vector<8x512xf32>
    %124 = tpu.matmul %123, %6, %cst_42 {dimension_numbers = #tpu.dot_dimension_numbers<[1], [0], [0], [1], [0, 0, 1, 1], [], []>} : vector<8x128xbf16>, vector<128x512xbf16>, vector<8x512xf32> -> vector<8x512xf32>
    %125 = arith.addf %122, %124 : vector<8x512xf32>
    %126 = vector.extract_strided_slice %125 {offsets = [0, 0], sizes = [8, 128], strides = [1, 1]} : vector<8x512xf32> to vector<8x128xf32>
    %127 = arith.negf %126 : vector<8x128xf32>
    %128 = math.exp %127 : vector<8x128xf32>
    %cst_43 = arith.constant 1.000000e+00 : f32
    %129 = vector.broadcast %cst_43 : f32 to vector<8x128xf32>
    %130 = arith.addf %129, %128 : vector<8x128xf32>
    %131 = arith.divf %129, %130 : vector<8x128xf32>
    %132 = vector.extract_strided_slice %125 {offsets = [0, 128], sizes = [8, 128], strides = [1, 1]} : vector<8x512xf32> to vector<8x128xf32>
    %133 = arith.negf %132 : vector<8x128xf32>
    %134 = math.exp %133 : vector<8x128xf32>
    %cst_44 = arith.constant 1.000000e+00 : f32
    %135 = vector.broadcast %cst_44 : f32 to vector<8x128xf32>
    %136 = arith.addf %135, %134 : vector<8x128xf32>
    %137 = arith.divf %135, %136 : vector<8x128xf32>
    %138 = vector.extract_strided_slice %125 {offsets = [0, 256], sizes = [8, 128], strides = [1, 1]} : vector<8x512xf32> to vector<8x128xf32>
    %139 = math.tanh %138 : vector<8x128xf32>
    %140 = vector.extract_strided_slice %125 {offsets = [0, 384], sizes = [8, 128], strides = [1, 1]} : vector<8x512xf32> to vector<8x128xf32>
    %141 = arith.negf %140 : vector<8x128xf32>
    %142 = math.exp %141 : vector<8x128xf32>
    %cst_45 = arith.constant 1.000000e+00 : f32
    %143 = vector.broadcast %cst_45 : f32 to vector<8x128xf32>
    %144 = arith.addf %143, %142 : vector<8x128xf32>
    %145 = arith.divf %143, %144 : vector<8x128xf32>
    %146 = arith.mulf %137, %73 : vector<8x128xf32>
    %147 = arith.mulf %131, %139 : vector<8x128xf32>
    %148 = arith.addf %146, %147 : vector<8x128xf32>
    %149 = math.tanh %148 : vector<8x128xf32>
    %150 = arith.mulf %145, %149 : vector<8x128xf32>
    %151 = arith.truncf %118 : vector<8x128xf32> to vector<8x128xbf16>
    %152 = arith.index_cast %c1_i32 : i32 to index
    %c0_46 = arith.constant 0 : index
    %c0_47 = arith.constant 0 : index
    %153 = vector.load %arg4[%152, %c0_46, %c0_47] : memref<8x8x128xbf16, #tpu.memory_space<vmem>>, vector<1x8x128xbf16>
    %154 = vector.shape_cast %153 : vector<1x8x128xbf16> to vector<8x128xbf16>
    %155 = vector.shape_cast %151 : vector<8x128xbf16> to vector<1x8x128xbf16>
    tpu.vector_store %arg4[%152, %c0_46, %c0_47], %155 {strides = array<i32>} : memref<8x8x128xbf16, #tpu.memory_space<vmem>>, vector<1x8x128xbf16>,
    %156 = arith.truncf %150 : vector<8x128xf32> to vector<8x128xbf16>
    %157 = arith.index_cast %86 : i32 to index
    %c0_48 = arith.constant 0 : index
    %c0_49 = arith.constant 0 : index
    %158 = vector.load %arg5[%157, %c0_48, %c0_49] : memref<8x8x128xbf16, #tpu.memory_space<vmem>>, vector<1x8x128xbf16>
    %159 = vector.shape_cast %158 : vector<1x8x128xbf16> to vector<8x128xbf16>
    %160 = vector.shape_cast %156 : vector<8x128xbf16> to vector<1x8x128xbf16>
    tpu.vector_store %arg5[%157, %c0_48, %c0_49], %160 {strides = array<i32>} : memref<8x8x128xbf16, #tpu.memory_space<vmem>>, vector<1x8x128xbf16>,
    %c2_i32 = arith.constant 2 : i32
    %c7_i32_50 = arith.constant 7 : i32
    %161 = arith.subi %c7_i32_50, %c2_i32 : i32
    %c0_51 = arith.constant 0 : index
    %162 = arith.index_cast %c2_i32 : i32 to index
    %c0_52 = arith.constant 0 : index
    %c0_53 = arith.constant 0 : index
    %163 = vector.load %arg1[%c0_51, %162, %c0_52, %c0_53] : memref<1x8x8x512xbf16, #tpu.memory_space<vmem>>, vector<1x1x8x512xbf16>
    %164 = vector.shape_cast %163 : vector<1x1x8x512xbf16> to vector<8x512xbf16>
    %165 = arith.extf %164 : vector<8x512xbf16> to vector<8x512xf32>
    %166 = arith.truncf %118 : vector<8x128xf32> to vector<8x128xbf16>
    %cst_54 = arith.constant dense<0.000000e+00> : vector<8x512xf32>
    %167 = tpu.matmul %166, %4, %cst_54 {dimension_numbers = #tpu.dot_dimension_numbers<[1], [0], [0], [1], [0, 0, 1, 1], [], []>} : vector<8x128xbf16>, vector<128x512xbf16>, vector<8x512xf32> -> vector<8x512xf32>
    %168 = arith.addf %165, %167 : vector<8x512xf32>
    %169 = vector.extract_strided_slice %168 {offsets = [0, 0], sizes = [8, 128], strides = [1, 1]} : vector<8x512xf32> to vector<8x128xf32>
    %170 = arith.negf %169 : vector<8x128xf32>
    %171 = math.exp %170 : vector<8x128xf32>
    %cst_55 = arith.constant 1.000000e+00 : f32
    %172 = vector.broadcast %cst_55 : f32 to vector<8x128xf32>
    %173 = arith.addf %172, %171 : vector<8x128xf32>
    %174 = arith.divf %172, %173 : vector<8x128xf32>
    %175 = vector.extract_strided_slice %168 {offsets = [0, 128], sizes = [8, 128], strides = [1, 1]} : vector<8x512xf32> to vector<8x128xf32>
    %176 = arith.negf %175 : vector<8x128xf32>
    %177 = math.exp %176 : vector<8x128xf32>
    %cst_56 = arith.constant 1.000000e+00 : f32
    %178 = vector.broadcast %cst_56 : f32 to vector<8x128xf32>
    %179 = arith.addf %178, %177 : vector<8x128xf32>
    %180 = arith.divf %178, %179 : vector<8x128xf32>
    %181 = vector.extract_strided_slice %168 {offsets = [0, 256], sizes = [8, 128], strides = [1, 1]} : vector<8x512xf32> to vector<8x128xf32>
    %182 = math.tanh %181 : vector<8x128xf32>
    %183 = vector.extract_strided_slice %168 {offsets = [0, 384], sizes = [8, 128], strides = [1, 1]} : vector<8x512xf32> to vector<8x128xf32>
    %184 = arith.negf %183 : vector<8x128xf32>
    %185 = math.exp %184 : vector<8x128xf32>
    %cst_57 = arith.constant 1.000000e+00 : f32
    %186 = vector.broadcast %cst_57 : f32 to vector<8x128xf32>
    %187 = arith.addf %186, %185 : vector<8x128xf32>
    %188 = arith.divf %186, %187 : vector<8x128xf32>
    %189 = arith.mulf %180, %116 : vector<8x128xf32>
    %190 = arith.mulf %174, %182 : vector<8x128xf32>
    %191 = arith.addf %189, %190 : vector<8x128xf32>
    %192 = math.tanh %191 : vector<8x128xf32>
    %193 = arith.mulf %188, %192 : vector<8x128xf32>
    %c0_58 = arith.constant 0 : index
    %194 = arith.index_cast %161 : i32 to index
    %c0_59 = arith.constant 0 : index
    %c0_60 = arith.constant 0 : index
    %195 = vector.load %arg2[%c0_58, %194, %c0_59, %c0_60] : memref<1x8x8x512xbf16, #tpu.memory_space<vmem>>, vector<1x1x8x512xbf16>
    %196 = vector.shape_cast %195 : vector<1x1x8x512xbf16> to vector<8x512xbf16>
    %197 = arith.extf %196 : vector<8x512xbf16> to vector<8x512xf32>
    %198 = arith.truncf %150 : vector<8x128xf32> to vector<8x128xbf16>
    %cst_61 = arith.constant dense<0.000000e+00> : vector<8x512xf32>
    %199 = tpu.matmul %198, %6, %cst_61 {dimension_numbers = #tpu.dot_dimension_numbers<[1], [0], [0], [1], [0, 0, 1, 1], [], []>} : vector<8x128xbf16>, vector<128x512xbf16>, vector<8x512xf32> -> vector<8x512xf32>
    %200 = arith.addf %197, %199 : vector<8x512xf32>
    %201 = vector.extract_strided_slice %200 {offsets = [0, 0], sizes = [8, 128], strides = [1, 1]} : vector<8x512xf32> to vector<8x128xf32>
    %202 = arith.negf %201 : vector<8x128xf32>
    %203 = math.exp %202 : vector<8x128xf32>
    %cst_62 = arith.constant 1.000000e+00 : f32
    %204 = vector.broadcast %cst_62 : f32 to vector<8x128xf32>
    %205 = arith.addf %204, %203 : vector<8x128xf32>
    %206 = arith.divf %204, %205 : vector<8x128xf32>
    %207 = vector.extract_strided_slice %200 {offsets = [0, 128], sizes = [8, 128], strides = [1, 1]} : vector<8x512xf32> to vector<8x128xf32>
    %208 = arith.negf %207 : vector<8x128xf32>
    %209 = math.exp %208 : vector<8x128xf32>
    %cst_63 = arith.constant 1.000000e+00 : f32
    %210 = vector.broadcast %cst_63 : f32 to vector<8x128xf32>
    %211 = arith.addf %210, %209 : vector<8x128xf32>
    %212 = arith.divf %210, %211 : vector<8x128xf32>
    %213 = vector.extract_strided_slice %200 {offsets = [0, 256], sizes = [8, 128], strides = [1, 1]} : vector<8x512xf32> to vector<8x128xf32>
    %214 = math.tanh %213 : vector<8x128xf32>
    %215 = vector.extract_strided_slice %200 {offsets = [0, 384], sizes = [8, 128], strides = [1, 1]} : vector<8x512xf32> to vector<8x128xf32>
    %216 = arith.negf %215 : vector<8x128xf32>
    %217 = math.exp %216 : vector<8x128xf32>
    %cst_64 = arith.constant 1.000000e+00 : f32
    %218 = vector.broadcast %cst_64 : f32 to vector<8x128xf32>
    %219 = arith.addf %218, %217 : vector<8x128xf32>
    %220 = arith.divf %218, %219 : vector<8x128xf32>
    %221 = arith.mulf %212, %148 : vector<8x128xf32>
    %222 = arith.mulf %206, %214 : vector<8x128xf32>
    %223 = arith.addf %221, %222 : vector<8x128xf32>
    %224 = math.tanh %223 : vector<8x128xf32>
    %225 = arith.mulf %220, %224 : vector<8x128xf32>
    %226 = arith.truncf %193 : vector<8x128xf32> to vector<8x128xbf16>
    %227 = arith.index_cast %c2_i32 : i32 to index
    %c0_65 = arith.constant 0 : index
    %c0_66 = arith.constant 0 : index
    %228 = vector.load %arg4[%227, %c0_65, %c0_66] : memref<8x8x128xbf16, #tpu.memory_space<vmem>>, vector<1x8x128xbf16>
    %229 = vector.shape_cast %228 : vector<1x8x128xbf16> to vector<8x128xbf16>
    %230 = vector.shape_cast %226 : vector<8x128xbf16> to vector<1x8x128xbf16>
    tpu.vector_store %arg4[%227, %c0_65, %c0_66], %230 {strides = array<i32>} : memref<8x8x128xbf16, #tpu.memory_space<vmem>>, vector<1x8x128xbf16>,
    %231 = arith.truncf %225 : vector<8x128xf32> to vector<8x128xbf16>
    %232 = arith.index_cast %161 : i32 to index
    %c0_67 = arith.constant 0 : index
    %c0_68 = arith.constant 0 : index
    %233 = vector.load %arg5[%232, %c0_67, %c0_68] : memref<8x8x128xbf16, #tpu.memory_space<vmem>>, vector<1x8x128xbf16>
    %234 = vector.shape_cast %233 : vector<1x8x128xbf16> to vector<8x128xbf16>
    %235 = vector.shape_cast %231 : vector<8x128xbf16> to vector<1x8x128xbf16>
    tpu.vector_store %arg5[%232, %c0_67, %c0_68], %235 {strides = array<i32>} : memref<8x8x128xbf16, #tpu.memory_space<vmem>>, vector<1x8x128xbf16>,
    %c3_i32 = arith.constant 3 : i32
    %c7_i32_69 = arith.constant 7 : i32
    %236 = arith.subi %c7_i32_69, %c3_i32 : i32
    %c0_70 = arith.constant 0 : index
    %237 = arith.index_cast %c3_i32 : i32 to index
    %c0_71 = arith.constant 0 : index
    %c0_72 = arith.constant 0 : index
    %238 = vector.load %arg1[%c0_70, %237, %c0_71, %c0_72] : memref<1x8x8x512xbf16, #tpu.memory_space<vmem>>, vector<1x1x8x512xbf16>
    %239 = vector.shape_cast %238 : vector<1x1x8x512xbf16> to vector<8x512xbf16>
    %240 = arith.extf %239 : vector<8x512xbf16> to vector<8x512xf32>
    %241 = arith.truncf %193 : vector<8x128xf32> to vector<8x128xbf16>
    %cst_73 = arith.constant dense<0.000000e+00> : vector<8x512xf32>
    %242 = tpu.matmul %241, %4, %cst_73 {dimension_numbers = #tpu.dot_dimension_numbers<[1], [0], [0], [1], [0, 0, 1, 1], [], []>} : vector<8x128xbf16>, vector<128x512xbf16>, vector<8x512xf32> -> vector<8x512xf32>
    %243 = arith.addf %240, %242 : vector<8x512xf32>
    %244 = vector.extract_strided_slice %243 {offsets = [0, 0], sizes = [8, 128], strides = [1, 1]} : vector<8x512xf32> to vector<8x128xf32>
    %245 = arith.negf %244 : vector<8x128xf32>
    %246 = math.exp %245 : vector<8x128xf32>
    %cst_74 = arith.constant 1.000000e+00 : f32
    %247 = vector.broadcast %cst_74 : f32 to vector<8x128xf32>
    %248 = arith.addf %247, %246 : vector<8x128xf32>
    %249 = arith.divf %247, %248 : vector<8x128xf32>
    %250 = vector.extract_strided_slice %243 {offsets = [0, 128], sizes = [8, 128], strides = [1, 1]} : vector<8x512xf32> to vector<8x128xf32>
    %251 = arith.negf %250 : vector<8x128xf32>
    %252 = math.exp %251 : vector<8x128xf32>
    %cst_75 = arith.constant 1.000000e+00 : f32
    %253 = vector.broadcast %cst_75 : f32 to vector<8x128xf32>
    %254 = arith.addf %253, %252 : vector<8x128xf32>
    %255 = arith.divf %253, %254 : vector<8x128xf32>
    %256 = vector.extract_strided_slice %243 {offsets = [0, 256], sizes = [8, 128], strides = [1, 1]} : vector<8x512xf32> to vector<8x128xf32>
    %257 = math.tanh %256 : vector<8x128xf32>
    %258 = vector.extract_strided_slice %243 {offsets = [0, 384], sizes = [8, 128], strides = [1, 1]} : vector<8x512xf32> to vector<8x128xf32>
    %259 = arith.negf %258 : vector<8x128xf32>
    %260 = math.exp %259 : vector<8x128xf32>
    %cst_76 = arith.constant 1.000000e+00 : f32
    %261 = vector.broadcast %cst_76 : f32 to vector<8x128xf32>
    %262 = arith.addf %261, %260 : vector<8x128xf32>
    %263 = arith.divf %261, %262 : vector<8x128xf32>
    %264 = arith.mulf %255, %191 : vector<8x128xf32>
    %265 = arith.mulf %249, %257 : vector<8x128xf32>
    %266 = arith.addf %264, %265 : vector<8x128xf32>
    %267 = math.tanh %266 : vector<8x128xf32>
    %268 = arith.mulf %263, %267 : vector<8x128xf32>
    %c0_77 = arith.constant 0 : index
    %269 = arith.index_cast %236 : i32 to index
    %c0_78 = arith.constant 0 : index
    %c0_79 = arith.constant 0 : index
    %270 = vector.load %arg2[%c0_77, %269, %c0_78, %c0_79] : memref<1x8x8x512xbf16, #tpu.memory_space<vmem>>, vector<1x1x8x512xbf16>
    %271 = vector.shape_cast %270 : vector<1x1x8x512xbf16> to vector<8x512xbf16>
    %272 = arith.extf %271 : vector<8x512xbf16> to vector<8x512xf32>
    %273 = arith.truncf %225 : vector<8x128xf32> to vector<8x128xbf16>
    %cst_80 = arith.constant dense<0.000000e+00> : vector<8x512xf32>
    %274 = tpu.matmul %273, %6, %cst_80 {dimension_numbers = #tpu.dot_dimension_numbers<[1], [0], [0], [1], [0, 0, 1, 1], [], []>} : vector<8x128xbf16>, vector<128x512xbf16>, vector<8x512xf32> -> vector<8x512xf32>
    %275 = arith.addf %272, %274 : vector<8x512xf32>
    %276 = vector.extract_strided_slice %275 {offsets = [0, 0], sizes = [8, 128], strides = [1, 1]} : vector<8x512xf32> to vector<8x128xf32>
    %277 = arith.negf %276 : vector<8x128xf32>
    %278 = math.exp %277 : vector<8x128xf32>
    %cst_81 = arith.constant 1.000000e+00 : f32
    %279 = vector.broadcast %cst_81 : f32 to vector<8x128xf32>
    %280 = arith.addf %279, %278 : vector<8x128xf32>
    %281 = arith.divf %279, %280 : vector<8x128xf32>
    %282 = vector.extract_strided_slice %275 {offsets = [0, 128], sizes = [8, 128], strides = [1, 1]} : vector<8x512xf32> to vector<8x128xf32>
    %283 = arith.negf %282 : vector<8x128xf32>
    %284 = math.exp %283 : vector<8x128xf32>
    %cst_82 = arith.constant 1.000000e+00 : f32
    %285 = vector.broadcast %cst_82 : f32 to vector<8x128xf32>
    %286 = arith.addf %285, %284 : vector<8x128xf32>
    %287 = arith.divf %285, %286 : vector<8x128xf32>
    %288 = vector.extract_strided_slice %275 {offsets = [0, 256], sizes = [8, 128], strides = [1, 1]} : vector<8x512xf32> to vector<8x128xf32>
    %289 = math.tanh %288 : vector<8x128xf32>
    %290 = vector.extract_strided_slice %275 {offsets = [0, 384], sizes = [8, 128], strides = [1, 1]} : vector<8x512xf32> to vector<8x128xf32>
    %291 = arith.negf %290 : vector<8x128xf32>
    %292 = math.exp %291 : vector<8x128xf32>
    %cst_83 = arith.constant 1.000000e+00 : f32
    %293 = vector.broadcast %cst_83 : f32 to vector<8x128xf32>
    %294 = arith.addf %293, %292 : vector<8x128xf32>
    %295 = arith.divf %293, %294 : vector<8x128xf32>
    %296 = arith.mulf %287, %223 : vector<8x128xf32>
    %297 = arith.mulf %281, %289 : vector<8x128xf32>
    %298 = arith.addf %296, %297 : vector<8x128xf32>
    %299 = math.tanh %298 : vector<8x128xf32>
    %300 = arith.mulf %295, %299 : vector<8x128xf32>
    %301 = arith.truncf %268 : vector<8x128xf32> to vector<8x128xbf16>
    %302 = arith.index_cast %c3_i32 : i32 to index
    %c0_84 = arith.constant 0 : index
    %c0_85 = arith.constant 0 : index
    %303 = vector.load %arg4[%302, %c0_84, %c0_85] : memref<8x8x128xbf16, #tpu.memory_space<vmem>>, vector<1x8x128xbf16>
    %304 = vector.shape_cast %303 : vector<1x8x128xbf16> to vector<8x128xbf16>
    %305 = vector.shape_cast %301 : vector<8x128xbf16> to vector<1x8x128xbf16>
    tpu.vector_store %arg4[%302, %c0_84, %c0_85], %305 {strides = array<i32>} : memref<8x8x128xbf16, #tpu.memory_space<vmem>>, vector<1x8x128xbf16>,
    %306 = arith.truncf %300 : vector<8x128xf32> to vector<8x128xbf16>
    %307 = arith.index_cast %236 : i32 to index
    %c0_86 = arith.constant 0 : index
    %c0_87 = arith.constant 0 : index
    %308 = vector.load %arg5[%307, %c0_86, %c0_87] : memref<8x8x128xbf16, #tpu.memory_space<vmem>>, vector<1x8x128xbf16>
    %309 = vector.shape_cast %308 : vector<1x8x128xbf16> to vector<8x128xbf16>
    %310 = vector.shape_cast %306 : vector<8x128xbf16> to vector<1x8x128xbf16>
    tpu.vector_store %arg5[%307, %c0_86, %c0_87], %310 {strides = array<i32>} : memref<8x8x128xbf16, #tpu.memory_space<vmem>>, vector<1x8x128xbf16>,
    %c4_i32 = arith.constant 4 : i32
    %c7_i32_88 = arith.constant 7 : i32
    %311 = arith.subi %c7_i32_88, %c4_i32 : i32
    %c0_89 = arith.constant 0 : index
    %312 = arith.index_cast %c4_i32 : i32 to index
    %c0_90 = arith.constant 0 : index
    %c0_91 = arith.constant 0 : index
    %313 = vector.load %arg1[%c0_89, %312, %c0_90, %c0_91] : memref<1x8x8x512xbf16, #tpu.memory_space<vmem>>, vector<1x1x8x512xbf16>
    %314 = vector.shape_cast %313 : vector<1x1x8x512xbf16> to vector<8x512xbf16>
    %315 = arith.extf %314 : vector<8x512xbf16> to vector<8x512xf32>
    %316 = arith.truncf %268 : vector<8x128xf32> to vector<8x128xbf16>
    %cst_92 = arith.constant dense<0.000000e+00> : vector<8x512xf32>
    %317 = tpu.matmul %316, %4, %cst_92 {dimension_numbers = #tpu.dot_dimension_numbers<[1], [0], [0], [1], [0, 0, 1, 1], [], []>} : vector<8x128xbf16>, vector<128x512xbf16>, vector<8x512xf32> -> vector<8x512xf32>
    %318 = arith.addf %315, %317 : vector<8x512xf32>
    %319 = vector.extract_strided_slice %318 {offsets = [0, 0], sizes = [8, 128], strides = [1, 1]} : vector<8x512xf32> to vector<8x128xf32>
    %320 = arith.negf %319 : vector<8x128xf32>
    %321 = math.exp %320 : vector<8x128xf32>
    %cst_93 = arith.constant 1.000000e+00 : f32
    %322 = vector.broadcast %cst_93 : f32 to vector<8x128xf32>
    %323 = arith.addf %322, %321 : vector<8x128xf32>
    %324 = arith.divf %322, %323 : vector<8x128xf32>
    %325 = vector.extract_strided_slice %318 {offsets = [0, 128], sizes = [8, 128], strides = [1, 1]} : vector<8x512xf32> to vector<8x128xf32>
    %326 = arith.negf %325 : vector<8x128xf32>
    %327 = math.exp %326 : vector<8x128xf32>
    %cst_94 = arith.constant 1.000000e+00 : f32
    %328 = vector.broadcast %cst_94 : f32 to vector<8x128xf32>
    %329 = arith.addf %328, %327 : vector<8x128xf32>
    %330 = arith.divf %328, %329 : vector<8x128xf32>
    %331 = vector.extract_strided_slice %318 {offsets = [0, 256], sizes = [8, 128], strides = [1, 1]} : vector<8x512xf32> to vector<8x128xf32>
    %332 = math.tanh %331 : vector<8x128xf32>
    %333 = vector.extract_strided_slice %318 {offsets = [0, 384], sizes = [8, 128], strides = [1, 1]} : vector<8x512xf32> to vector<8x128xf32>
    %334 = arith.negf %333 : vector<8x128xf32>
    %335 = math.exp %334 : vector<8x128xf32>
    %cst_95 = arith.constant 1.000000e+00 : f32
    %336 = vector.broadcast %cst_95 : f32 to vector<8x128xf32>
    %337 = arith.addf %336, %335 : vector<8x128xf32>
    %338 = arith.divf %336, %337 : vector<8x128xf32>
    %339 = arith.mulf %330, %266 : vector<8x128xf32>
    %340 = arith.mulf %324, %332 : vector<8x128xf32>
    %341 = arith.addf %339, %340 : vector<8x128xf32>
    %342 = math.tanh %341 : vector<8x128xf32>
    %343 = arith.mulf %338, %342 : vector<8x128xf32>
    %c0_96 = arith.constant 0 : index
    %344 = arith.index_cast %311 : i32 to index
    %c0_97 = arith.constant 0 : index
    %c0_98 = arith.constant 0 : index
    %345 = vector.load %arg2[%c0_96, %344, %c0_97, %c0_98] : memref<1x8x8x512xbf16, #tpu.memory_space<vmem>>, vector<1x1x8x512xbf16>
    %346 = vector.shape_cast %345 : vector<1x1x8x512xbf16> to vector<8x512xbf16>
    %347 = arith.extf %346 : vector<8x512xbf16> to vector<8x512xf32>
    %348 = arith.truncf %300 : vector<8x128xf32> to vector<8x128xbf16>
    %cst_99 = arith.constant dense<0.000000e+00> : vector<8x512xf32>
    %349 = tpu.matmul %348, %6, %cst_99 {dimension_numbers = #tpu.dot_dimension_numbers<[1], [0], [0], [1], [0, 0, 1, 1], [], []>} : vector<8x128xbf16>, vector<128x512xbf16>, vector<8x512xf32> -> vector<8x512xf32>
    %350 = arith.addf %347, %349 : vector<8x512xf32>
    %351 = vector.extract_strided_slice %350 {offsets = [0, 0], sizes = [8, 128], strides = [1, 1]} : vector<8x512xf32> to vector<8x128xf32>
    %352 = arith.negf %351 : vector<8x128xf32>
    %353 = math.exp %352 : vector<8x128xf32>
    %cst_100 = arith.constant 1.000000e+00 : f32
    %354 = vector.broadcast %cst_100 : f32 to vector<8x128xf32>
    %355 = arith.addf %354, %353 : vector<8x128xf32>
    %356 = arith.divf %354, %355 : vector<8x128xf32>
    %357 = vector.extract_strided_slice %350 {offsets = [0, 128], sizes = [8, 128], strides = [1, 1]} : vector<8x512xf32> to vector<8x128xf32>
    %358 = arith.negf %357 : vector<8x128xf32>
    %359 = math.exp %358 : vector<8x128xf32>
    %cst_101 = arith.constant 1.000000e+00 : f32
    %360 = vector.broadcast %cst_101 : f32 to vector<8x128xf32>
    %361 = arith.addf %360, %359 : vector<8x128xf32>
    %362 = arith.divf %360, %361 : vector<8x128xf32>
    %363 = vector.extract_strided_slice %350 {offsets = [0, 256], sizes = [8, 128], strides = [1, 1]} : vector<8x512xf32> to vector<8x128xf32>
    %364 = math.tanh %363 : vector<8x128xf32>
    %365 = vector.extract_strided_slice %350 {offsets = [0, 384], sizes = [8, 128], strides = [1, 1]} : vector<8x512xf32> to vector<8x128xf32>
    %366 = arith.negf %365 : vector<8x128xf32>
    %367 = math.exp %366 : vector<8x128xf32>
    %cst_102 = arith.constant 1.000000e+00 : f32
    %368 = vector.broadcast %cst_102 : f32 to vector<8x128xf32>
    %369 = arith.addf %368, %367 : vector<8x128xf32>
    %370 = arith.divf %368, %369 : vector<8x128xf32>
    %371 = arith.mulf %362, %298 : vector<8x128xf32>
    %372 = arith.mulf %356, %364 : vector<8x128xf32>
    %373 = arith.addf %371, %372 : vector<8x128xf32>
    %374 = math.tanh %373 : vector<8x128xf32>
    %375 = arith.mulf %370, %374 : vector<8x128xf32>
    %376 = arith.truncf %343 : vector<8x128xf32> to vector<8x128xbf16>
    %377 = arith.index_cast %c4_i32 : i32 to index
    %c0_103 = arith.constant 0 : index
    %c0_104 = arith.constant 0 : index
    %378 = vector.load %arg4[%377, %c0_103, %c0_104] : memref<8x8x128xbf16, #tpu.memory_space<vmem>>, vector<1x8x128xbf16>
    %379 = vector.shape_cast %378 : vector<1x8x128xbf16> to vector<8x128xbf16>
    %380 = vector.shape_cast %376 : vector<8x128xbf16> to vector<1x8x128xbf16>
    tpu.vector_store %arg4[%377, %c0_103, %c0_104], %380 {strides = array<i32>} : memref<8x8x128xbf16, #tpu.memory_space<vmem>>, vector<1x8x128xbf16>,
    %381 = arith.truncf %375 : vector<8x128xf32> to vector<8x128xbf16>
    %382 = arith.index_cast %311 : i32 to index
    %c0_105 = arith.constant 0 : index
    %c0_106 = arith.constant 0 : index
    %383 = vector.load %arg5[%382, %c0_105, %c0_106] : memref<8x8x128xbf16, #tpu.memory_space<vmem>>, vector<1x8x128xbf16>
    %384 = vector.shape_cast %383 : vector<1x8x128xbf16> to vector<8x128xbf16>
    %385 = vector.shape_cast %381 : vector<8x128xbf16> to vector<1x8x128xbf16>
    tpu.vector_store %arg5[%382, %c0_105, %c0_106], %385 {strides = array<i32>} : memref<8x8x128xbf16, #tpu.memory_space<vmem>>, vector<1x8x128xbf16>,
    %c5_i32 = arith.constant 5 : i32
    %c7_i32_107 = arith.constant 7 : i32
    %386 = arith.subi %c7_i32_107, %c5_i32 : i32
    %c0_108 = arith.constant 0 : index
    %387 = arith.index_cast %c5_i32 : i32 to index
    %c0_109 = arith.constant 0 : index
    %c0_110 = arith.constant 0 : index
    %388 = vector.load %arg1[%c0_108, %387, %c0_109, %c0_110] : memref<1x8x8x512xbf16, #tpu.memory_space<vmem>>, vector<1x1x8x512xbf16>
    %389 = vector.shape_cast %388 : vector<1x1x8x512xbf16> to vector<8x512xbf16>
    %390 = arith.extf %389 : vector<8x512xbf16> to vector<8x512xf32>
    %391 = arith.truncf %343 : vector<8x128xf32> to vector<8x128xbf16>
    %cst_111 = arith.constant dense<0.000000e+00> : vector<8x512xf32>
    %392 = tpu.matmul %391, %4, %cst_111 {dimension_numbers = #tpu.dot_dimension_numbers<[1], [0], [0], [1], [0, 0, 1, 1], [], []>} : vector<8x128xbf16>, vector<128x512xbf16>, vector<8x512xf32> -> vector<8x512xf32>
    %393 = arith.addf %390, %392 : vector<8x512xf32>
    %394 = vector.extract_strided_slice %393 {offsets = [0, 0], sizes = [8, 128], strides = [1, 1]} : vector<8x512xf32> to vector<8x128xf32>
    %395 = arith.negf %394 : vector<8x128xf32>
    %396 = math.exp %395 : vector<8x128xf32>
    %cst_112 = arith.constant 1.000000e+00 : f32
    %397 = vector.broadcast %cst_112 : f32 to vector<8x128xf32>
    %398 = arith.addf %397, %396 : vector<8x128xf32>
    %399 = arith.divf %397, %398 : vector<8x128xf32>
    %400 = vector.extract_strided_slice %393 {offsets = [0, 128], sizes = [8, 128], strides = [1, 1]} : vector<8x512xf32> to vector<8x128xf32>
    %401 = arith.negf %400 : vector<8x128xf32>
    %402 = math.exp %401 : vector<8x128xf32>
    %cst_113 = arith.constant 1.000000e+00 : f32
    %403 = vector.broadcast %cst_113 : f32 to vector<8x128xf32>
    %404 = arith.addf %403, %402 : vector<8x128xf32>
    %405 = arith.divf %403, %404 : vector<8x128xf32>
    %406 = vector.extract_strided_slice %393 {offsets = [0, 256], sizes = [8, 128], strides = [1, 1]} : vector<8x512xf32> to vector<8x128xf32>
    %407 = math.tanh %406 : vector<8x128xf32>
    %408 = vector.extract_strided_slice %393 {offsets = [0, 384], sizes = [8, 128], strides = [1, 1]} : vector<8x512xf32> to vector<8x128xf32>
    %409 = arith.negf %408 : vector<8x128xf32>
    %410 = math.exp %409 : vector<8x128xf32>
    %cst_114 = arith.constant 1.000000e+00 : f32
    %411 = vector.broadcast %cst_114 : f32 to vector<8x128xf32>
    %412 = arith.addf %411, %410 : vector<8x128xf32>
    %413 = arith.divf %411, %412 : vector<8x128xf32>
    %414 = arith.mulf %405, %341 : vector<8x128xf32>
    %415 = arith.mulf %399, %407 : vector<8x128xf32>
    %416 = arith.addf %414, %415 : vector<8x128xf32>
    %417 = math.tanh %416 : vector<8x128xf32>
    %418 = arith.mulf %413, %417 : vector<8x128xf32>
    %c0_115 = arith.constant 0 : index
    %419 = arith.index_cast %386 : i32 to index
    %c0_116 = arith.constant 0 : index
    %c0_117 = arith.constant 0 : index
    %420 = vector.load %arg2[%c0_115, %419, %c0_116, %c0_117] : memref<1x8x8x512xbf16, #tpu.memory_space<vmem>>, vector<1x1x8x512xbf16>
    %421 = vector.shape_cast %420 : vector<1x1x8x512xbf16> to vector<8x512xbf16>
    %422 = arith.extf %421 : vector<8x512xbf16> to vector<8x512xf32>
    %423 = arith.truncf %375 : vector<8x128xf32> to vector<8x128xbf16>
    %cst_118 = arith.constant dense<0.000000e+00> : vector<8x512xf32>
    %424 = tpu.matmul %423, %6, %cst_118 {dimension_numbers = #tpu.dot_dimension_numbers<[1], [0], [0], [1], [0, 0, 1, 1], [], []>} : vector<8x128xbf16>, vector<128x512xbf16>, vector<8x512xf32> -> vector<8x512xf32>
    %425 = arith.addf %422, %424 : vector<8x512xf32>
    %426 = vector.extract_strided_slice %425 {offsets = [0, 0], sizes = [8, 128], strides = [1, 1]} : vector<8x512xf32> to vector<8x128xf32>
    %427 = arith.negf %426 : vector<8x128xf32>
    %428 = math.exp %427 : vector<8x128xf32>
    %cst_119 = arith.constant 1.000000e+00 : f32
    %429 = vector.broadcast %cst_119 : f32 to vector<8x128xf32>
    %430 = arith.addf %429, %428 : vector<8x128xf32>
    %431 = arith.divf %429, %430 : vector<8x128xf32>
    %432 = vector.extract_strided_slice %425 {offsets = [0, 128], sizes = [8, 128], strides = [1, 1]} : vector<8x512xf32> to vector<8x128xf32>
    %433 = arith.negf %432 : vector<8x128xf32>
    %434 = math.exp %433 : vector<8x128xf32>
    %cst_120 = arith.constant 1.000000e+00 : f32
    %435 = vector.broadcast %cst_120 : f32 to vector<8x128xf32>
    %436 = arith.addf %435, %434 : vector<8x128xf32>
    %437 = arith.divf %435, %436 : vector<8x128xf32>
    %438 = vector.extract_strided_slice %425 {offsets = [0, 256], sizes = [8, 128], strides = [1, 1]} : vector<8x512xf32> to vector<8x128xf32>
    %439 = math.tanh %438 : vector<8x128xf32>
    %440 = vector.extract_strided_slice %425 {offsets = [0, 384], sizes = [8, 128], strides = [1, 1]} : vector<8x512xf32> to vector<8x128xf32>
    %441 = arith.negf %440 : vector<8x128xf32>
    %442 = math.exp %441 : vector<8x128xf32>
    %cst_121 = arith.constant 1.000000e+00 : f32
    %443 = vector.broadcast %cst_121 : f32 to vector<8x128xf32>
    %444 = arith.addf %443, %442 : vector<8x128xf32>
    %445 = arith.divf %443, %444 : vector<8x128xf32>
    %446 = arith.mulf %437, %373 : vector<8x128xf32>
    %447 = arith.mulf %431, %439 : vector<8x128xf32>
    %448 = arith.addf %446, %447 : vector<8x128xf32>
    %449 = math.tanh %448 : vector<8x128xf32>
    %450 = arith.mulf %445, %449 : vector<8x128xf32>
    %451 = arith.truncf %418 : vector<8x128xf32> to vector<8x128xbf16>
    %452 = arith.index_cast %c5_i32 : i32 to index
    %c0_122 = arith.constant 0 : index
    %c0_123 = arith.constant 0 : index
    %453 = vector.load %arg4[%452, %c0_122, %c0_123] : memref<8x8x128xbf16, #tpu.memory_space<vmem>>, vector<1x8x128xbf16>
    %454 = vector.shape_cast %453 : vector<1x8x128xbf16> to vector<8x128xbf16>
    %455 = vector.shape_cast %451 : vector<8x128xbf16> to vector<1x8x128xbf16>
    tpu.vector_store %arg4[%452, %c0_122, %c0_123], %455 {strides = array<i32>} : memref<8x8x128xbf16, #tpu.memory_space<vmem>>, vector<1x8x128xbf16>,
    %456 = arith.truncf %450 : vector<8x128xf32> to vector<8x128xbf16>
    %457 = arith.index_cast %386 : i32 to index
    %c0_124 = arith.constant 0 : index
    %c0_125 = arith.constant 0 : index
    %458 = vector.load %arg5[%457, %c0_124, %c0_125] : memref<8x8x128xbf16, #tpu.memory_space<vmem>>, vector<1x8x128xbf16>
    %459 = vector.shape_cast %458 : vector<1x8x128xbf16> to vector<8x128xbf16>
    %460 = vector.shape_cast %456 : vector<8x128xbf16> to vector<1x8x128xbf16>
    tpu.vector_store %arg5[%457, %c0_124, %c0_125], %460 {strides = array<i32>} : memref<8x8x128xbf16, #tpu.memory_space<vmem>>, vector<1x8x128xbf16>,
    %c6_i32 = arith.constant 6 : i32
    %c7_i32_126 = arith.constant 7 : i32
    %461 = arith.subi %c7_i32_126, %c6_i32 : i32
    %c0_127 = arith.constant 0 : index
    %462 = arith.index_cast %c6_i32 : i32 to index
    %c0_128 = arith.constant 0 : index
    %c0_129 = arith.constant 0 : index
    %463 = vector.load %arg1[%c0_127, %462, %c0_128, %c0_129] : memref<1x8x8x512xbf16, #tpu.memory_space<vmem>>, vector<1x1x8x512xbf16>
    %464 = vector.shape_cast %463 : vector<1x1x8x512xbf16> to vector<8x512xbf16>
    %465 = arith.extf %464 : vector<8x512xbf16> to vector<8x512xf32>
    %466 = arith.truncf %418 : vector<8x128xf32> to vector<8x128xbf16>
    %cst_130 = arith.constant dense<0.000000e+00> : vector<8x512xf32>
    %467 = tpu.matmul %466, %4, %cst_130 {dimension_numbers = #tpu.dot_dimension_numbers<[1], [0], [0], [1], [0, 0, 1, 1], [], []>} : vector<8x128xbf16>, vector<128x512xbf16>, vector<8x512xf32> -> vector<8x512xf32>
    %468 = arith.addf %465, %467 : vector<8x512xf32>
    %469 = vector.extract_strided_slice %468 {offsets = [0, 0], sizes = [8, 128], strides = [1, 1]} : vector<8x512xf32> to vector<8x128xf32>
    %470 = arith.negf %469 : vector<8x128xf32>
    %471 = math.exp %470 : vector<8x128xf32>
    %cst_131 = arith.constant 1.000000e+00 : f32
    %472 = vector.broadcast %cst_131 : f32 to vector<8x128xf32>
    %473 = arith.addf %472, %471 : vector<8x128xf32>
    %474 = arith.divf %472, %473 : vector<8x128xf32>
    %475 = vector.extract_strided_slice %468 {offsets = [0, 128], sizes = [8, 128], strides = [1, 1]} : vector<8x512xf32> to vector<8x128xf32>
    %476 = arith.negf %475 : vector<8x128xf32>
    %477 = math.exp %476 : vector<8x128xf32>
    %cst_132 = arith.constant 1.000000e+00 : f32
    %478 = vector.broadcast %cst_132 : f32 to vector<8x128xf32>
    %479 = arith.addf %478, %477 : vector<8x128xf32>
    %480 = arith.divf %478, %479 : vector<8x128xf32>
    %481 = vector.extract_strided_slice %468 {offsets = [0, 256], sizes = [8, 128], strides = [1, 1]} : vector<8x512xf32> to vector<8x128xf32>
    %482 = math.tanh %481 : vector<8x128xf32>
    %483 = vector.extract_strided_slice %468 {offsets = [0, 384], sizes = [8, 128], strides = [1, 1]} : vector<8x512xf32> to vector<8x128xf32>
    %484 = arith.negf %483 : vector<8x128xf32>
    %485 = math.exp %484 : vector<8x128xf32>
    %cst_133 = arith.constant 1.000000e+00 : f32
    %486 = vector.broadcast %cst_133 : f32 to vector<8x128xf32>
    %487 = arith.addf %486, %485 : vector<8x128xf32>
    %488 = arith.divf %486, %487 : vector<8x128xf32>
    %489 = arith.mulf %480, %416 : vector<8x128xf32>
    %490 = arith.mulf %474, %482 : vector<8x128xf32>
    %491 = arith.addf %489, %490 : vector<8x128xf32>
    %492 = math.tanh %491 : vector<8x128xf32>
    %493 = arith.mulf %488, %492 : vector<8x128xf32>
    %c0_134 = arith.constant 0 : index
    %494 = arith.index_cast %461 : i32 to index
    %c0_135 = arith.constant 0 : index
    %c0_136 = arith.constant 0 : index
    %495 = vector.load %arg2[%c0_134, %494, %c0_135, %c0_136] : memref<1x8x8x512xbf16, #tpu.memory_space<vmem>>, vector<1x1x8x512xbf16>
    %496 = vector.shape_cast %495 : vector<1x1x8x512xbf16> to vector<8x512xbf16>
    %497 = arith.extf %496 : vector<8x512xbf16> to vector<8x512xf32>
    %498 = arith.truncf %450 : vector<8x128xf32> to vector<8x128xbf16>
    %cst_137 = arith.constant dense<0.000000e+00> : vector<8x512xf32>
    %499 = tpu.matmul %498, %6, %cst_137 {dimension_numbers = #tpu.dot_dimension_numbers<[1], [0], [0], [1], [0, 0, 1, 1], [], []>} : vector<8x128xbf16>, vector<128x512xbf16>, vector<8x512xf32> -> vector<8x512xf32>
    %500 = arith.addf %497, %499 : vector<8x512xf32>
    %501 = vector.extract_strided_slice %500 {offsets = [0, 0], sizes = [8, 128], strides = [1, 1]} : vector<8x512xf32> to vector<8x128xf32>
    %502 = arith.negf %501 : vector<8x128xf32>
    %503 = math.exp %502 : vector<8x128xf32>
    %cst_138 = arith.constant 1.000000e+00 : f32
    %504 = vector.broadcast %cst_138 : f32 to vector<8x128xf32>
    %505 = arith.addf %504, %503 : vector<8x128xf32>
    %506 = arith.divf %504, %505 : vector<8x128xf32>
    %507 = vector.extract_strided_slice %500 {offsets = [0, 128], sizes = [8, 128], strides = [1, 1]} : vector<8x512xf32> to vector<8x128xf32>
    %508 = arith.negf %507 : vector<8x128xf32>
    %509 = math.exp %508 : vector<8x128xf32>
    %cst_139 = arith.constant 1.000000e+00 : f32
    %510 = vector.broadcast %cst_139 : f32 to vector<8x128xf32>
    %511 = arith.addf %510, %509 : vector<8x128xf32>
    %512 = arith.divf %510, %511 : vector<8x128xf32>
    %513 = vector.extract_strided_slice %500 {offsets = [0, 256], sizes = [8, 128], strides = [1, 1]} : vector<8x512xf32> to vector<8x128xf32>
    %514 = math.tanh %513 : vector<8x128xf32>
    %515 = vector.extract_strided_slice %500 {offsets = [0, 384], sizes = [8, 128], strides = [1, 1]} : vector<8x512xf32> to vector<8x128xf32>
    %516 = arith.negf %515 : vector<8x128xf32>
    %517 = math.exp %516 : vector<8x128xf32>
    %cst_140 = arith.constant 1.000000e+00 : f32
    %518 = vector.broadcast %cst_140 : f32 to vector<8x128xf32>
    %519 = arith.addf %518, %517 : vector<8x128xf32>
    %520 = arith.divf %518, %519 : vector<8x128xf32>
    %521 = arith.mulf %512, %448 : vector<8x128xf32>
    %522 = arith.mulf %506, %514 : vector<8x128xf32>
    %523 = arith.addf %521, %522 : vector<8x128xf32>
    %524 = math.tanh %523 : vector<8x128xf32>
    %525 = arith.mulf %520, %524 : vector<8x128xf32>
    %526 = arith.truncf %493 : vector<8x128xf32> to vector<8x128xbf16>
    %527 = arith.index_cast %c6_i32 : i32 to index
    %c0_141 = arith.constant 0 : index
    %c0_142 = arith.constant 0 : index
    %528 = vector.load %arg4[%527, %c0_141, %c0_142] : memref<8x8x128xbf16, #tpu.memory_space<vmem>>, vector<1x8x128xbf16>
    %529 = vector.shape_cast %528 : vector<1x8x128xbf16> to vector<8x128xbf16>
    %530 = vector.shape_cast %526 : vector<8x128xbf16> to vector<1x8x128xbf16>
    tpu.vector_store %arg4[%527, %c0_141, %c0_142], %530 {strides = array<i32>} : memref<8x8x128xbf16, #tpu.memory_space<vmem>>, vector<1x8x128xbf16>,
    %531 = arith.truncf %525 : vector<8x128xf32> to vector<8x128xbf16>
    %532 = arith.index_cast %461 : i32 to index
    %c0_143 = arith.constant 0 : index
    %c0_144 = arith.constant 0 : index
    %533 = vector.load %arg5[%532, %c0_143, %c0_144] : memref<8x8x128xbf16, #tpu.memory_space<vmem>>, vector<1x8x128xbf16>
    %534 = vector.shape_cast %533 : vector<1x8x128xbf16> to vector<8x128xbf16>
    %535 = vector.shape_cast %531 : vector<8x128xbf16> to vector<1x8x128xbf16>
    tpu.vector_store %arg5[%532, %c0_143, %c0_144], %535 {strides = array<i32>} : memref<8x8x128xbf16, #tpu.memory_space<vmem>>, vector<1x8x128xbf16>,
    %c7_i32_145 = arith.constant 7 : i32
    %c7_i32_146 = arith.constant 7 : i32
    %536 = arith.subi %c7_i32_146, %c7_i32_145 : i32
    %c0_147 = arith.constant 0 : index
    %537 = arith.index_cast %c7_i32_145 : i32 to index
    %c0_148 = arith.constant 0 : index
    %c0_149 = arith.constant 0 : index
    %538 = vector.load %arg1[%c0_147, %537, %c0_148, %c0_149] : memref<1x8x8x512xbf16, #tpu.memory_space<vmem>>, vector<1x1x8x512xbf16>
    %539 = vector.shape_cast %538 : vector<1x1x8x512xbf16> to vector<8x512xbf16>
    %540 = arith.extf %539 : vector<8x512xbf16> to vector<8x512xf32>
    %541 = arith.truncf %493 : vector<8x128xf32> to vector<8x128xbf16>
    %cst_150 = arith.constant dense<0.000000e+00> : vector<8x512xf32>
    %542 = tpu.matmul %541, %4, %cst_150 {dimension_numbers = #tpu.dot_dimension_numbers<[1], [0], [0], [1], [0, 0, 1, 1], [], []>} : vector<8x128xbf16>, vector<128x512xbf16>, vector<8x512xf32> -> vector<8x512xf32>
    %543 = arith.addf %540, %542 : vector<8x512xf32>
    %544 = vector.extract_strided_slice %543 {offsets = [0, 0], sizes = [8, 128], strides = [1, 1]} : vector<8x512xf32> to vector<8x128xf32>
    %545 = arith.negf %544 : vector<8x128xf32>
    %546 = math.exp %545 : vector<8x128xf32>
    %cst_151 = arith.constant 1.000000e+00 : f32
    %547 = vector.broadcast %cst_151 : f32 to vector<8x128xf32>
    %548 = arith.addf %547, %546 : vector<8x128xf32>
    %549 = arith.divf %547, %548 : vector<8x128xf32>
    %550 = vector.extract_strided_slice %543 {offsets = [0, 128], sizes = [8, 128], strides = [1, 1]} : vector<8x512xf32> to vector<8x128xf32>
    %551 = arith.negf %550 : vector<8x128xf32>
    %552 = math.exp %551 : vector<8x128xf32>
    %cst_152 = arith.constant 1.000000e+00 : f32
    %553 = vector.broadcast %cst_152 : f32 to vector<8x128xf32>
    %554 = arith.addf %553, %552 : vector<8x128xf32>
    %555 = arith.divf %553, %554 : vector<8x128xf32>
    %556 = vector.extract_strided_slice %543 {offsets = [0, 256], sizes = [8, 128], strides = [1, 1]} : vector<8x512xf32> to vector<8x128xf32>
    %557 = math.tanh %556 : vector<8x128xf32>
    %558 = vector.extract_strided_slice %543 {offsets = [0, 384], sizes = [8, 128], strides = [1, 1]} : vector<8x512xf32> to vector<8x128xf32>
    %559 = arith.negf %558 : vector<8x128xf32>
    %560 = math.exp %559 : vector<8x128xf32>
    %cst_153 = arith.constant 1.000000e+00 : f32
    %561 = vector.broadcast %cst_153 : f32 to vector<8x128xf32>
    %562 = arith.addf %561, %560 : vector<8x128xf32>
    %563 = arith.divf %561, %562 : vector<8x128xf32>
    %564 = arith.mulf %555, %491 : vector<8x128xf32>
    %565 = arith.mulf %549, %557 : vector<8x128xf32>
    %566 = arith.addf %564, %565 : vector<8x128xf32>
    %567 = math.tanh %566 : vector<8x128xf32>
    %568 = arith.mulf %563, %567 : vector<8x128xf32>
    %c0_154 = arith.constant 0 : index
    %569 = arith.index_cast %536 : i32 to index
    %c0_155 = arith.constant 0 : index
    %c0_156 = arith.constant 0 : index
    %570 = vector.load %arg2[%c0_154, %569, %c0_155, %c0_156] : memref<1x8x8x512xbf16, #tpu.memory_space<vmem>>, vector<1x1x8x512xbf16>
    %571 = vector.shape_cast %570 : vector<1x1x8x512xbf16> to vector<8x512xbf16>
    %572 = arith.extf %571 : vector<8x512xbf16> to vector<8x512xf32>
    %573 = arith.truncf %525 : vector<8x128xf32> to vector<8x128xbf16>
    %cst_157 = arith.constant dense<0.000000e+00> : vector<8x512xf32>
    %574 = tpu.matmul %573, %6, %cst_157 {dimension_numbers = #tpu.dot_dimension_numbers<[1], [0], [0], [1], [0, 0, 1, 1], [], []>} : vector<8x128xbf16>, vector<128x512xbf16>, vector<8x512xf32> -> vector<8x512xf32>
    %575 = arith.addf %572, %574 : vector<8x512xf32>
    %576 = vector.extract_strided_slice %575 {offsets = [0, 0], sizes = [8, 128], strides = [1, 1]} : vector<8x512xf32> to vector<8x128xf32>
    %577 = arith.negf %576 : vector<8x128xf32>
    %578 = math.exp %577 : vector<8x128xf32>
    %cst_158 = arith.constant 1.000000e+00 : f32
    %579 = vector.broadcast %cst_158 : f32 to vector<8x128xf32>
    %580 = arith.addf %579, %578 : vector<8x128xf32>
    %581 = arith.divf %579, %580 : vector<8x128xf32>
    %582 = vector.extract_strided_slice %575 {offsets = [0, 128], sizes = [8, 128], strides = [1, 1]} : vector<8x512xf32> to vector<8x128xf32>
    %583 = arith.negf %582 : vector<8x128xf32>
    %584 = math.exp %583 : vector<8x128xf32>
    %cst_159 = arith.constant 1.000000e+00 : f32
    %585 = vector.broadcast %cst_159 : f32 to vector<8x128xf32>
    %586 = arith.addf %585, %584 : vector<8x128xf32>
    %587 = arith.divf %585, %586 : vector<8x128xf32>
    %588 = vector.extract_strided_slice %575 {offsets = [0, 256], sizes = [8, 128], strides = [1, 1]} : vector<8x512xf32> to vector<8x128xf32>
    %589 = math.tanh %588 : vector<8x128xf32>
    %590 = vector.extract_strided_slice %575 {offsets = [0, 384], sizes = [8, 128], strides = [1, 1]} : vector<8x512xf32> to vector<8x128xf32>
    %591 = arith.negf %590 : vector<8x128xf32>
    %592 = math.exp %591 : vector<8x128xf32>
    %cst_160 = arith.constant 1.000000e+00 : f32
    %593 = vector.broadcast %cst_160 : f32 to vector<8x128xf32>
    %594 = arith.addf %593, %592 : vector<8x128xf32>
    %595 = arith.divf %593, %594 : vector<8x128xf32>
    %596 = arith.mulf %587, %523 : vector<8x128xf32>
    %597 = arith.mulf %581, %589 : vector<8x128xf32>
    %598 = arith.addf %596, %597 : vector<8x128xf32>
    %599 = math.tanh %598 : vector<8x128xf32>
    %600 = arith.mulf %595, %599 : vector<8x128xf32>
    %601 = arith.truncf %568 : vector<8x128xf32> to vector<8x128xbf16>
    %602 = arith.index_cast %c7_i32_145 : i32 to index
    %c0_161 = arith.constant 0 : index
    %c0_162 = arith.constant 0 : index
    %603 = vector.load %arg4[%602, %c0_161, %c0_162] : memref<8x8x128xbf16, #tpu.memory_space<vmem>>, vector<1x8x128xbf16>
    %604 = vector.shape_cast %603 : vector<1x8x128xbf16> to vector<8x128xbf16>
    %605 = vector.shape_cast %601 : vector<8x128xbf16> to vector<1x8x128xbf16>
    tpu.vector_store %arg4[%602, %c0_161, %c0_162], %605 {strides = array<i32>} : memref<8x8x128xbf16, #tpu.memory_space<vmem>>, vector<1x8x128xbf16>,
    %606 = arith.truncf %600 : vector<8x128xf32> to vector<8x128xbf16>
    %607 = arith.index_cast %536 : i32 to index
    %c0_163 = arith.constant 0 : index
    %c0_164 = arith.constant 0 : index
    %608 = vector.load %arg5[%607, %c0_163, %c0_164] : memref<8x8x128xbf16, #tpu.memory_space<vmem>>, vector<1x8x128xbf16>
    %609 = vector.shape_cast %608 : vector<1x8x128xbf16> to vector<8x128xbf16>
    %610 = vector.shape_cast %606 : vector<8x128xbf16> to vector<1x8x128xbf16>
    tpu.vector_store %arg5[%607, %c0_163, %c0_164], %610 {strides = array<i32>} : memref<8x8x128xbf16, #tpu.memory_space<vmem>>, vector<1x8x128xbf16>,
    %c8_i32 = arith.constant 8 : i32
    %c0_165 = arith.constant 0 : index
    %c0_166 = arith.constant 0 : index
    %611 = vector.load %arg6[%c0_165, %c0_166] : memref<8x128xf32, #tpu.memory_space<vmem>>, vector<8x128xf32>
    tpu.vector_store %arg6[%c0_165, %c0_166], %568 {strides = array<i32>} : memref<8x128xf32, #tpu.memory_space<vmem>>, vector<8x128xf32>,
    %c0_167 = arith.constant 0 : index
    %c0_168 = arith.constant 0 : index
    %612 = vector.load %arg7[%c0_167, %c0_168] : memref<8x128xf32, #tpu.memory_space<vmem>>, vector<8x128xf32>
    tpu.vector_store %arg7[%c0_167, %c0_168], %566 {strides = array<i32>} : memref<8x128xf32, #tpu.memory_space<vmem>>, vector<8x128xf32>,
    %c0_169 = arith.constant 0 : index
    %c0_170 = arith.constant 0 : index
    %613 = vector.load %arg8[%c0_169, %c0_170] : memref<8x128xf32, #tpu.memory_space<vmem>>, vector<8x128xf32>
    tpu.vector_store %arg8[%c0_169, %c0_170], %600 {strides = array<i32>} : memref<8x128xf32, #tpu.memory_space<vmem>>, vector<8x128xf32>,
    %c0_171 = arith.constant 0 : index
    %c0_172 = arith.constant 0 : index
    %614 = vector.load %arg9[%c0_171, %c0_172] : memref<8x128xf32, #tpu.memory_space<vmem>>, vector<8x128xf32>
    tpu.vector_store %arg9[%c0_171, %c0_172], %598 {strides = array<i32>} : memref<8x128xf32, #tpu.memory_space<vmem>>, vector<8x128xf32>,
    return
  }
  func.func @transform_0(%arg0: i32) -> (i32, i32, i32, i32) {
    %c0_i32 = arith.constant 0 : i32
    %c0_i32_0 = arith.constant 0 : i32
    %c0_i32_1 = arith.constant 0 : i32
    %c0_i32_2 = arith.constant 0 : i32
    return %c0_i32, %arg0, %c0_i32_0, %c0_i32_1 : i32, i32, i32, i32
  }
  func.func @transform_1(%arg0: i32) -> (i32, i32, i32, i32) {
    %c0_i32 = arith.constant 0 : i32
    %0 = arith.subi %c0_i32, %arg0 : i32
    %c1_i32 = arith.constant 1 : i32
    %c0_i32_0 = arith.constant 0 : i32
    %c0_i32_1 = arith.constant 0 : i32
    %c0_i32_2 = arith.constant 0 : i32
    return %c1_i32, %0, %c0_i32_0, %c0_i32_1 : i32, i32, i32, i32
  }
  func.func @transform_2(%arg0: i32) -> (i32, i32, i32) {
    %c0_i32 = arith.constant 0 : i32
    %c0_i32_0 = arith.constant 0 : i32
    %c0_i32_1 = arith.constant 0 : i32
    %c0_i32_2 = arith.constant 0 : i32
    return %c0_i32, %c0_i32_0, %c0_i32_1 : i32, i32, i32
  }
  func.func @transform_3(%arg0: i32) -> (i32, i32, i32) {
    %c0_i32 = arith.constant 0 : i32
    %c0_i32_0 = arith.constant 0 : i32
    %c0_i32_1 = arith.constant 0 : i32
    return %arg0, %c0_i32, %c0_i32_0 : i32, i32, i32
  }
  func.func @transform_4(%arg0: i32) -> (i32, i32, i32) {
    %c0_i32 = arith.constant 0 : i32
    %0 = arith.subi %c0_i32, %arg0 : i32
    %c0_i32_0 = arith.constant 0 : i32
    %c0_i32_1 = arith.constant 0 : i32
    %c0_i32_2 = arith.constant 0 : i32
    return %0, %c0_i32_0, %c0_i32_1 : i32, i32, i32
  }
}

module attributes {stable_mosaic.version = 11 : i64} {
  func.func @bilstm_recurrence_kernel(%arg0: i32, %arg1: memref<1x8x8x512xbf16, #tpu.memory_space<vmem>>, %arg2: memref<1x8x8x512xbf16, #tpu.memory_space<vmem>>, %arg3: memref<2x128x512xbf16, #tpu.memory_space<vmem>>, %arg4: memref<8x8x128xbf16, #tpu.memory_space<vmem>>, %arg5: memref<8x8x128xbf16, #tpu.memory_space<vmem>>, %arg6: memref<8x128xf32, #tpu.memory_space<vmem>>, %arg7: memref<8x128xf32, #tpu.memory_space<vmem>>, %arg8: memref<8x128xf32, #tpu.memory_space<vmem>>, %arg9: memref<8x128xf32, #tpu.memory_space<vmem>>) attributes {dimension_semantics = [#tpu.dimension_semantics<arbitrary>], iteration_bounds = array<i64: 1>, scalar_prefetch = 0 : i64, scratch_operands = 4 : i64, tpu.core_type = #tpu.core_type<tc>, window_params = [{transform_indices = @transform_0, window_bounds = array<i64: 1, 8, 8, 512>}, {transform_indices = @transform_1, window_bounds = array<i64: 1, 8, 8, 512>}, {pipeline_mode = #tpu.pipeline_mode<synchronous>, transform_indices = @transform_2, window_bounds = array<i64: 2, 128, 512>}, {transform_indices = @transform_3, window_bounds = array<i64: 8, 8, 128>}, {transform_indices = @transform_4, window_bounds = array<i64: 8, 8, 128>}]} {
    %c0_i32 = arith.constant 0 : i32
    %0 = arith.cmpi eq, %arg0, %c0_i32 : i32
    %1 = arith.extui %0 : i1 to i32
    %c0_i32_0 = arith.constant 0 : i32
    %2 = arith.cmpi ne, %1, %c0_i32_0 : i32
    scf.if %2 {
      %cst_173 = arith.constant 0.000000e+00 : f32
      %615 = vector.broadcast %cst_173 : f32 to vector<8x128xf32>
      %c0_174 = arith.constant 0 : index
      %c0_175 = arith.constant 0 : index
      %616 = vector.load %arg6[%c0_174, %c0_175] : memref<8x128xf32, #tpu.memory_space<vmem>>, vector<8x128xf32>
      tpu.vector_store %arg6[%c0_174, %c0_175], %615 {strides = array<i32>} : memref<8x128xf32, #tpu.memory_space<vmem>>, vector<8x128xf32>,
      %cst_176 = arith.constant 0.000000e+00 : f32
      %617 = vector.broadcast %cst_176 : f32 to vector<8x128xf32>
      %c0_177 = arith.constant 0 : index
      %c0_178 = arith.constant 0 : index
      %618 = vector.load %arg7[%c0_177, %c0_178] : memref<8x128xf32, #tpu.memory_space<vmem>>, vector<8x128xf32>
      tpu.vector_store %arg7[%c0_177, %c0_178], %617 {strides = array<i32>} : memref<8x128xf32, #tpu.memory_space<vmem>>, vector<8x128xf32>,
      %cst_179 = arith.constant 0.000000e+00 : f32
      %619 = vector.broadcast %cst_179 : f32 to vector<8x128xf32>
      %c0_180 = arith.constant 0 : index
      %c0_181 = arith.constant 0 : index
      %620 = vector.load %arg8[%c0_180, %c0_181] : memref<8x128xf32, #tpu.memory_space<vmem>>, vector<8x128xf32>
      tpu.vector_store %arg8[%c0_180, %c0_181], %619 {strides = array<i32>} : memref<8x128xf32, #tpu.memory_space<vmem>>, vector<8x128xf32>,
      %cst_182 = arith.constant 0.000000e+00 : f32
      %621 = vector.broadcast %cst_182 : f32 to vector<8x128xf32>
      %c0_183 = arith.constant 0 : index
      %c0_184 = arith.constant 0 : index
      %622 = vector.load %arg9[%c0_183, %c0_184] : memref<8x128xf32, #tpu.memory_space<vmem>>, vector<8x128xf32>
      tpu.vector_store %arg9[%c0_183, %c0_184], %621 {strides = array<i32>} : memref<8x128xf32, #tpu.memory_space<vmem>>, vector<8x128xf32>,
    } else {
    }
    %c0 = arith.constant 0 : index
    %c0_1 = arith.constant 0 : index
    %c0_2 = arith.constant 0 : index
    %3 = vector.load %arg3[%c0, %c0_1, %c0_2] : memref<2x128x512xbf16, #tpu.memory_space<vmem>>, vector<1x128x512xbf16>
    %4 = vector.shape_cast %3 : vector<1x128x512xbf16> to vector<128x512xbf16>
    %c1 = arith.constant 1 : index
    %c0_3 = arith.constant 0 : index
    %c0_4 = arith.constant 0 : index
    %5 = vector.load %arg3[%c1, %c0_3, %c0_4] : memref<2x128x512xbf16, #tpu.memory_space<vmem>>, vector<1x128x512xbf16>
    %6 = vector.shape_cast %5 : vector<1x128x512xbf16> to vector<128x512xbf16>
    %c0_5 = arith.constant 0 : index
    %c0_6 = arith.constant 0 : index
    %7 = vector.load %arg6[%c0_5, %c0_6] : memref<8x128xf32, #tpu.memory_space<vmem>>, vector<8x128xf32>
    %c0_7 = arith.constant 0 : index
    %c0_8 = arith.constant 0 : index
    %8 = vector.load %arg7[%c0_7, %c0_8] : memref<8x128xf32, #tpu.memory_space<vmem>>, vector<8x128xf32>
    %c0_9 = arith.constant 0 : index
    %c0_10 = arith.constant 0 : index
    %9 = vector.load %arg8[%c0_9, %c0_10] : memref<8x128xf32, #tpu.memory_space<vmem>>, vector<8x128xf32>
    %c0_11 = arith.constant 0 : index
    %c0_12 = arith.constant 0 : index
    %10 = vector.load %arg9[%c0_11, %c0_12] : memref<8x128xf32, #tpu.memory_space<vmem>>, vector<8x128xf32>
    %c0_i32_13 = arith.constant 0 : i32
    %c7_i32 = arith.constant 7 : i32
    %11 = arith.subi %c7_i32, %c0_i32_13 : i32
    %c0_14 = arith.constant 0 : index
    %12 = arith.index_cast %c0_i32_13 : i32 to index
    %c0_15 = arith.constant 0 : index
    %c0_16 = arith.constant 0 : index
    %13 = vector.load %arg1[%c0_14, %12, %c0_15, %c0_16] : memref<1x8x8x512xbf16, #tpu.memory_space<vmem>>, vector<1x1x8x512xbf16>
    %14 = vector.shape_cast %13 : vector<1x1x8x512xbf16> to vector<8x512xbf16>
    %15 = arith.extf %14 : vector<8x512xbf16> to vector<8x512xf32>
    %16 = arith.truncf %7 : vector<8x128xf32> to vector<8x128xbf16>
    %cst = arith.constant dense<0.000000e+00> : vector<8x512xf32>
    %17 = tpu.matmul %16, %4, %cst {dimension_numbers = #tpu.dot_dimension_numbers<[1], [0], [0], [1], [0, 0, 1, 1], [], []>} : vector<8x128xbf16>, vector<128x512xbf16>, vector<8x512xf32> -> vector<8x512xf32>
    %18 = arith.addf %15, %17 : vector<8x512xf32>
    %19 = vector.extract_strided_slice %18 {offsets = [0, 0], sizes = [8, 128], strides = [1, 1]} : vector<8x512xf32> to vector<8x128xf32>
    %20 = arith.negf %19 : vector<8x128xf32>
    %21 = math.exp %20 : vector<8x128xf32>
    %cst_17 = arith.constant 1.000000e+00 : f32
    %22 = vector.broadcast %cst_17 : f32 to vector<8x128xf32>
    %23 = arith.addf %22, %21 : vector<8x128xf32>
    %24 = arith.divf %22, %23 : vector<8x128xf32>
    %25 = vector.extract_strided_slice %18 {offsets = [0, 128], sizes = [8, 128], strides = [1, 1]} : vector<8x512xf32> to vector<8x128xf32>
    %26 = arith.negf %25 : vector<8x128xf32>
    %27 = math.exp %26 : vector<8x128xf32>
    %cst_18 = arith.constant 1.000000e+00 : f32
    %28 = vector.broadcast %cst_18 : f32 to vector<8x128xf32>
    %29 = arith.addf %28, %27 : vector<8x128xf32>
    %30 = arith.divf %28, %29 : vector<8x128xf32>
    %31 = vector.extract_strided_slice %18 {offsets = [0, 256], sizes = [8, 128], strides = [1, 1]} : vector<8x512xf32> to vector<8x128xf32>
    %32 = math.tanh %31 : vector<8x128xf32>
    %33 = vector.extract_strided_slice %18 {offsets = [0, 384], sizes = [8, 128], strides = [1, 1]} : vector<8x512xf32> to vector<8x128xf32>
    %34 = arith.negf %33 : vector<8x128xf32>
    %35 = math.exp %34 : vector<8x128xf32>
    %cst_19 = arith.constant 1.000000e+00 : f32
    %36 = vector.broadcast %cst_19 : f32 to vector<8x128xf32>
    %37 = arith.addf %36, %35 : vector<8x128xf32>
    %38 = arith.divf %36, %37 : vector<8x128xf32>
    %39 = arith.mulf %30, %8 : vector<8x128xf32>
    %40 = arith.mulf %24, %32 : vector<8x128xf32>
    %41 = arith.addf %39, %40 : vector<8x128xf32>
    %42 = math.tanh %41 : vector<8x128xf32>
    %43 = arith.mulf %38, %42 : vector<8x128xf32>
    %c0_20 = arith.constant 0 : index
    %44 = arith.index_cast %11 : i32 to index
    %c0_21 = arith.constant 0 : index
    %c0_22 = arith.constant 0 : index
    %45 = vector.load %arg2[%c0_20, %44, %c0_21, %c0_22] : memref<1x8x8x512xbf16, #tpu.memory_space<vmem>>, vector<1x1x8x512xbf16>
    %46 = vector.shape_cast %45 : vector<1x1x8x512xbf16> to vector<8x512xbf16>
    %47 = arith.extf %46 : vector<8x512xbf16> to vector<8x512xf32>
    %48 = arith.truncf %9 : vector<8x128xf32> to vector<8x128xbf16>
    %cst_23 = arith.constant dense<0.000000e+00> : vector<8x512xf32>
    %49 = tpu.matmul %48, %6, %cst_23 {dimension_numbers = #tpu.dot_dimension_numbers<[1], [0], [0], [1], [0, 0, 1, 1], [], []>} : vector<8x128xbf16>, vector<128x512xbf16>, vector<8x512xf32> -> vector<8x512xf32>
    %50 = arith.addf %47, %49 : vector<8x512xf32>
    %51 = vector.extract_strided_slice %50 {offsets = [0, 0], sizes = [8, 128], strides = [1, 1]} : vector<8x512xf32> to vector<8x128xf32>
    %52 = arith.negf %51 : vector<8x128xf32>
    %53 = math.exp %52 : vector<8x128xf32>
    %cst_24 = arith.constant 1.000000e+00 : f32
    %54 = vector.broadcast %cst_24 : f32 to vector<8x128xf32>
    %55 = arith.addf %54, %53 : vector<8x128xf32>
    %56 = arith.divf %54, %55 : vector<8x128xf32>
    %57 = vector.extract_strided_slice %50 {offsets = [0, 128], sizes = [8, 128], strides = [1, 1]} : vector<8x512xf32> to vector<8x128xf32>
    %58 = arith.negf %57 : vector<8x128xf32>
    %59 = math.exp %58 : vector<8x128xf32>
    %cst_25 = arith.constant 1.000000e+00 : f32
    %60 = vector.broadcast %cst_25 : f32 to vector<8x128xf32>
    %61 = arith.addf %60, %59 : vector<8x128xf32>
    %62 = arith.divf %60, %61 : vector<8x128xf32>
    %63 = vector.extract_strided_slice %50 {offsets = [0, 256], sizes = [8, 128], strides = [1, 1]} : vector<8x512xf32> to vector<8x128xf32>
    %64 = math.tanh %63 : vector<8x128xf32>
    %65 = vector.extract_strided_slice %50 {offsets = [0, 384], sizes = [8, 128], strides = [1, 1]} : vector<8x512xf32> to vector<8x128xf32>
    %66 = arith.negf %65 : vector<8x128xf32>
    %67 = math.exp %66 : vector<8x128xf32>
    %cst_26 = arith.constant 1.000000e+00 : f32
    %68 = vector.broadcast %cst_26 : f32 to vector<8x128xf32>
    %69 = arith.addf %68, %67 : vector<8x128xf32>
    %70 = arith.divf %68, %69 : vector<8x128xf32>
    %71 = arith.mulf %62, %10 : vector<8x128xf32>
    %72 = arith.mulf %56, %64 : vector<8x128xf32>
    %73 = arith.addf %71, %72 : vector<8x128xf32>
    %74 = math.tanh %73 : vector<8x128xf32>
    %75 = arith.mulf %70, %74 : vector<8x128xf32>
    %76 = arith.truncf %43 : vector<8x128xf32> to vector<8x128xbf16>
    %77 = arith.index_cast %c0_i32_13 : i32 to index
    %c0_27 = arith.constant 0 : index
    %c0_28 = arith.constant 0 : index
    %78 = vector.load %arg4[%77, %c0_27, %c0_28] : memref<8x8x128xbf16, #tpu.memory_space<vmem>>, vector<1x8x128xbf16>
    %79 = vector.shape_cast %78 : vector<1x8x128xbf16> to vector<8x128xbf16>
    %80 = vector.shape_cast %76 : vector<8x128xbf16> to vector<1x8x128xbf16>
    tpu.vector_store %arg4[%77, %c0_27, %c0_28], %80 {strides = array<i32>} : memref<8x8x128xbf16, #tpu.memory_space<vmem>>, vector<1x8x128xbf16>,
    %81 = arith.truncf %75 : vector<8x128xf32> to vector<8x128xbf16>
    %82 = arith.index_cast %11 : i32 to index
    %c0_29 = arith.constant 0 : index
    %c0_30 = arith.constant 0 : index
    %83 = vector.load %arg5[%82, %c0_29, %c0_30] : memref<8x8x128xbf16, #tpu.memory_space<vmem>>, vector<1x8x128xbf16>
    %84 = vector.shape_cast %83 : vector<1x8x128xbf16> to vector<8x128xbf16>
    %85 = vector.shape_cast %81 : vector<8x128xbf16> to vector<1x8x128xbf16>
    tpu.vector_store %arg5[%82, %c0_29, %c0_30], %85 {strides = array<i32>} : memref<8x8x128xbf16, #tpu.memory_space<vmem>>, vector<1x8x128xbf16>,
    %c1_i32 = arith.constant 1 : i32
    %c7_i32_31 = arith.constant 7 : i32
    %86 = arith.subi %c7_i32_31, %c1_i32 : i32
    %c0_32 = arith.constant 0 : index
    %87 = arith.index_cast %c1_i32 : i32 to index
    %c0_33 = arith.constant 0 : index
    %c0_34 = arith.constant 0 : index
    %88 = vector.load %arg1[%c0_32, %87, %c0_33, %c0_34] : memref<1x8x8x512xbf16, #tpu.memory_space<vmem>>, vector<1x1x8x512xbf16>
    %89 = vector.shape_cast %88 : vector<1x1x8x512xbf16> to vector<8x512xbf16>
    %90 = arith.extf %89 : vector<8x512xbf16> to vector<8x512xf32>
    %91 = arith.truncf %43 : vector<8x128xf32> to vector<8x128xbf16>
    %cst_35 = arith.constant dense<0.000000e+00> : vector<8x512xf32>
    %92 = tpu.matmul %91, %4, %cst_35 {dimension_numbers = #tpu.dot_dimension_numbers<[1], [0], [0], [1], [0, 0, 1, 1], [], []>} : vector<8x128xbf16>, vector<128x512xbf16>, vector<8x512xf32> -> vector<8x512xf32>
    %93 = arith.addf %90, %92 : vector<8x512xf32>
    %94 = vector.extract_strided_slice %93 {offsets = [0, 0], sizes = [8, 128], strides = [1, 1]} : vector<8x512xf32> to vector<8x128xf32>
    %95 = arith.negf %94 : vector<8x128xf32>
    %96 = math.exp %95 : vector<8x128xf32>
    %cst_36 = arith.constant 1.000000e+00 : f32
    %97 = vector.broadcast %cst_36 : f32 to vector<8x128xf32>
    %98 = arith.addf %97, %96 : vector<8x128xf32>
    %99 = arith.divf %97, %98 : vector<8x128xf32>
    %100 = vector.extract_strided_slice %93 {offsets = [0, 128], sizes = [8, 128], strides = [1, 1]} : vector<8x512xf32> to vector<8x128xf32>
    %101 = arith.negf %100 : vector<8x128xf32>
    %102 = math.exp %101 : vector<8x128xf32>
    %cst_37 = arith.constant 1.000000e+00 : f32
    %103 = vector.broadcast %cst_37 : f32 to vector<8x128xf32>
    %104 = arith.addf %103, %102 : vector<8x128xf32>
    %105 = arith.divf %103, %104 : vector<8x128xf32>
    %106 = vector.extract_strided_slice %93 {offsets = [0, 256], sizes = [8, 128], strides = [1, 1]} : vector<8x512xf32> to vector<8x128xf32>
    %107 = math.tanh %106 : vector<8x128xf32>
    %108 = vector.extract_strided_slice %93 {offsets = [0, 384], sizes = [8, 128], strides = [1, 1]} : vector<8x512xf32> to vector<8x128xf32>
    %109 = arith.negf %108 : vector<8x128xf32>
    %110 = math.exp %109 : vector<8x128xf32>
    %cst_38 = arith.constant 1.000000e+00 : f32
    %111 = vector.broadcast %cst_38 : f32 to vector<8x128xf32>
    %112 = arith.addf %111, %110 : vector<8x128xf32>
    %113 = arith.divf %111, %112 : vector<8x128xf32>
    %114 = arith.mulf %105, %41 : vector<8x128xf32>
    %115 = arith.mulf %99, %107 : vector<8x128xf32>
    %116 = arith.addf %114, %115 : vector<8x128xf32>
    %117 = math.tanh %116 : vector<8x128xf32>
    %118 = arith.mulf %113, %117 : vector<8x128xf32>
    %c0_39 = arith.constant 0 : index
    %119 = arith.index_cast %86 : i32 to index
    %c0_40 = arith.constant 0 : index
    %c0_41 = arith.constant 0 : index
    %120 = vector.load %arg2[%c0_39, %119, %c0_40, %c0_41] : memref<1x8x8x512xbf16, #tpu.memory_space<vmem>>, vector<1x1x8x512xbf16>
    %121 = vector.shape_cast %120 : vector<1x1x8x512xbf16> to vector<8x512xbf16>
    %122 = arith.extf %121 : vector<8x512xbf16> to vector<8x512xf32>
    %123 = arith.truncf %75 : vector<8x128xf32> to vector<8x128xbf16>
    %cst_42 = arith.constant dense<0.000000e+00> : vector<8x512xf32>
    %124 = tpu.matmul %123, %6, %cst_42 {dimension_numbers = #tpu.dot_dimension_numbers<[1], [0], [0], [1], [0, 0, 1, 1], [], []>} : vector<8x128xbf16>, vector<128x512xbf16>, vector<8x512xf32> -> vector<8x512xf32>
    %125 = arith.addf %122, %124 : vector<8x512xf32>
    %126 = vector.extract_strided_slice %125 {offsets = [0, 0], sizes = [8, 128], strides = [1, 1]} : vector<8x512xf32> to vector<8x128xf32>
    %127 = arith.negf %126 : vector<8x128xf32>
    %128 = math.exp %127 : vector<8x128xf32>
    %cst_43 = arith.constant 1.000000e+00 : f32
    %129 = vector.broadcast %cst_43 : f32 to vector<8x128xf32>
    %130 = arith.addf %129, %128 : vector<8x128xf32>
    %131 = arith.divf %129, %130 : vector<8x128xf32>
    %132 = vector.extract_strided_slice %125 {offsets = [0, 128], sizes = [8, 128], strides = [1, 1]} : vector<8x512xf32> to vector<8x128xf32>
    %133 = arith.negf %132 : vector<8x128xf32>
    %134 = math.exp %133 : vector<8x128xf32>
    %cst_44 = arith.constant 1.000000e+00 : f32
    %135 = vector.broadcast %cst_44 : f32 to vector<8x128xf32>
    %136 = arith.addf %135, %134 : vector<8x128xf32>
    %137 = arith.divf %135, %136 : vector<8x128xf32>
    %138 = vector.extract_strided_slice %125 {offsets = [0, 256], sizes = [8, 128], strides = [1, 1]} : vector<8x512xf32> to vector<8x128xf32>
    %139 = math.tanh %138 : vector<8x128xf32>
    %140 = vector.extract_strided_slice %125 {offsets = [0, 384], sizes = [8, 128], strides = [1, 1]} : vector<8x512xf32> to vector<8x128xf32>
    %141 = arith.negf %140 : vector<8x128xf32>
    %142 = math.exp %141 : vector<8x128xf32>
    %cst_45 = arith.constant 1.000000e+00 : f32
    %143 = vector.broadcast %cst_45 : f32 to vector<8x128xf32>
    %144 = arith.addf %143, %142 : vector<8x128xf32>
    %145 = arith.divf %143, %144 : vector<8x128xf32>
    %146 = arith.mulf %137, %73 : vector<8x128xf32>
    %147 = arith.mulf %131, %139 : vector<8x128xf32>
    %148 = arith.addf %146, %147 : vector<8x128xf32>
    %149 = math.tanh %148 : vector<8x128xf32>
    %150 = arith.mulf %145, %149 : vector<8x128xf32>
    %151 = arith.truncf %118 : vector<8x128xf32> to vector<8x128xbf16>
    %152 = arith.index_cast %c1_i32 : i32 to index
    %c0_46 = arith.constant 0 : index
    %c0_47 = arith.constant 0 : index
    %153 = vector.load %arg4[%152, %c0_46, %c0_47] : memref<8x8x128xbf16, #tpu.memory_space<vmem>>, vector<1x8x128xbf16>
    %154 = vector.shape_cast %153 : vector<1x8x128xbf16> to vector<8x128xbf16>
    %155 = vector.shape_cast %151 : vector<8x128xbf16> to vector<1x8x128xbf16>
    tpu.vector_store %arg4[%152, %c0_46, %c0_47], %155 {strides = array<i32>} : memref<8x8x128xbf16, #tpu.memory_space<vmem>>, vector<1x8x128xbf16>,
    %156 = arith.truncf %150 : vector<8x128xf32> to vector<8x128xbf16>
    %157 = arith.index_cast %86 : i32 to index
    %c0_48 = arith.constant 0 : index
    %c0_49 = arith.constant 0 : index
    %158 = vector.load %arg5[%157, %c0_48, %c0_49] : memref<8x8x128xbf16, #tpu.memory_space<vmem>>, vector<1x8x128xbf16>
    %159 = vector.shape_cast %158 : vector<1x8x128xbf16> to vector<8x128xbf16>
    %160 = vector.shape_cast %156 : vector<8x128xbf16> to vector<1x8x128xbf16>
    tpu.vector_store %arg5[%157, %c0_48, %c0_49], %160 {strides = array<i32>} : memref<8x8x128xbf16, #tpu.memory_space<vmem>>, vector<1x8x128xbf16>,
    %c2_i32 = arith.constant 2 : i32
    %c7_i32_50 = arith.constant 7 : i32
    %161 = arith.subi %c7_i32_50, %c2_i32 : i32
    %c0_51 = arith.constant 0 : index
    %162 = arith.index_cast %c2_i32 : i32 to index
    %c0_52 = arith.constant 0 : index
    %c0_53 = arith.constant 0 : index
    %163 = vector.load %arg1[%c0_51, %162, %c0_52, %c0_53] : memref<1x8x8x512xbf16, #tpu.memory_space<vmem>>, vector<1x1x8x512xbf16>
    %164 = vector.shape_cast %163 : vector<1x1x8x512xbf16> to vector<8x512xbf16>
    %165 = arith.extf %164 : vector<8x512xbf16> to vector<8x512xf32>
    %166 = arith.truncf %118 : vector<8x128xf32> to vector<8x128xbf16>
    %cst_54 = arith.constant dense<0.000000e+00> : vector<8x512xf32>
    %167 = tpu.matmul %166, %4, %cst_54 {dimension_numbers = #tpu.dot_dimension_numbers<[1], [0], [0], [1], [0, 0, 1, 1], [], []>} : vector<8x128xbf16>, vector<128x512xbf16>, vector<8x512xf32> -> vector<8x512xf32>
    %168 = arith.addf %165, %167 : vector<8x512xf32>
    %169 = vector.extract_strided_slice %168 {offsets = [0, 0], sizes = [8, 128], strides = [1, 1]} : vector<8x512xf32> to vector<8x128xf32>
    %170 = arith.negf %169 : vector<8x128xf32>
    %171 = math.exp %170 : vector<8x128xf32>
    %cst_55 = arith.constant 1.000000e+00 : f32
    %172 = vector.broadcast %cst_55 : f32 to vector<8x128xf32>
    %173 = arith.addf %172, %171 : vector<8x128xf32>
    %174 = arith.divf %172, %173 : vector<8x128xf32>
    %175 = vector.extract_strided_slice %168 {offsets = [0, 128], sizes = [8, 128], strides = [1, 1]} : vector<8x512xf32> to vector<8x128xf32>
    %176 = arith.negf %175 : vector<8x128xf32>
    %177 = math.exp %176 : vector<8x128xf32>
    %cst_56 = arith.constant 1.000000e+00 : f32
    %178 = vector.broadcast %cst_56 : f32 to vector<8x128xf32>
    %179 = arith.addf %178, %177 : vector<8x128xf32>
    %180 = arith.divf %178, %179 : vector<8x128xf32>
    %181 = vector.extract_strided_slice %168 {offsets = [0, 256], sizes = [8, 128], strides = [1, 1]} : vector<8x512xf32> to vector<8x128xf32>
    %182 = math.tanh %181 : vector<8x128xf32>
    %183 = vector.extract_strided_slice %168 {offsets = [0, 384], sizes = [8, 128], strides = [1, 1]} : vector<8x512xf32> to vector<8x128xf32>
    %184 = arith.negf %183 : vector<8x128xf32>
    %185 = math.exp %184 : vector<8x128xf32>
    %cst_57 = arith.constant 1.000000e+00 : f32
    %186 = vector.broadcast %cst_57 : f32 to vector<8x128xf32>
    %187 = arith.addf %186, %185 : vector<8x128xf32>
    %188 = arith.divf %186, %187 : vector<8x128xf32>
    %189 = arith.mulf %180, %116 : vector<8x128xf32>
    %190 = arith.mulf %174, %182 : vector<8x128xf32>
    %191 = arith.addf %189, %190 : vector<8x128xf32>
    %192 = math.tanh %191 : vector<8x128xf32>
    %193 = arith.mulf %188, %192 : vector<8x128xf32>
    %c0_58 = arith.constant 0 : index
    %194 = arith.index_cast %161 : i32 to index
    %c0_59 = arith.constant 0 : index
    %c0_60 = arith.constant 0 : index
    %195 = vector.load %arg2[%c0_58, %194, %c0_59, %c0_60] : memref<1x8x8x512xbf16, #tpu.memory_space<vmem>>, vector<1x1x8x512xbf16>
    %196 = vector.shape_cast %195 : vector<1x1x8x512xbf16> to vector<8x512xbf16>
    %197 = arith.extf %196 : vector<8x512xbf16> to vector<8x512xf32>
    %198 = arith.truncf %150 : vector<8x128xf32> to vector<8x128xbf16>
    %cst_61 = arith.constant dense<0.000000e+00> : vector<8x512xf32>
    %199 = tpu.matmul %198, %6, %cst_61 {dimension_numbers = #tpu.dot_dimension_numbers<[1], [0], [0], [1], [0, 0, 1, 1], [], []>} : vector<8x128xbf16>, vector<128x512xbf16>, vector<8x512xf32> -> vector<8x512xf32>
    %200 = arith.addf %197, %199 : vector<8x512xf32>
    %201 = vector.extract_strided_slice %200 {offsets = [0, 0], sizes = [8, 128], strides = [1, 1]} : vector<8x512xf32> to vector<8x128xf32>
    %202 = arith.negf %201 : vector<8x128xf32>
    %203 = math.exp %202 : vector<8x128xf32>
    %cst_62 = arith.constant 1.000000e+00 : f32
    %204 = vector.broadcast %cst_62 : f32 to vector<8x128xf32>
    %205 = arith.addf %204, %203 : vector<8x128xf32>
    %206 = arith.divf %204, %205 : vector<8x128xf32>
    %207 = vector.extract_strided_slice %200 {offsets = [0, 128], sizes = [8, 128], strides = [1, 1]} : vector<8x512xf32> to vector<8x128xf32>
    %208 = arith.negf %207 : vector<8x128xf32>
    %209 = math.exp %208 : vector<8x128xf32>
    %cst_63 = arith.constant 1.000000e+00 : f32
    %210 = vector.broadcast %cst_63 : f32 to vector<8x128xf32>
    %211 = arith.addf %210, %209 : vector<8x128xf32>
    %212 = arith.divf %210, %211 : vector<8x128xf32>
    %213 = vector.extract_strided_slice %200 {offsets = [0, 256], sizes = [8, 128], strides = [1, 1]} : vector<8x512xf32> to vector<8x128xf32>
    %214 = math.tanh %213 : vector<8x128xf32>
    %215 = vector.extract_strided_slice %200 {offsets = [0, 384], sizes = [8, 128], strides = [1, 1]} : vector<8x512xf32> to vector<8x128xf32>
    %216 = arith.negf %215 : vector<8x128xf32>
    %217 = math.exp %216 : vector<8x128xf32>
    %cst_64 = arith.constant 1.000000e+00 : f32
    %218 = vector.broadcast %cst_64 : f32 to vector<8x128xf32>
    %219 = arith.addf %218, %217 : vector<8x128xf32>
    %220 = arith.divf %218, %219 : vector<8x128xf32>
    %221 = arith.mulf %212, %148 : vector<8x128xf32>
    %222 = arith.mulf %206, %214 : vector<8x128xf32>
    %223 = arith.addf %221, %222 : vector<8x128xf32>
    %224 = math.tanh %223 : vector<8x128xf32>
    %225 = arith.mulf %220, %224 : vector<8x128xf32>
    %226 = arith.truncf %193 : vector<8x128xf32> to vector<8x128xbf16>
    %227 = arith.index_cast %c2_i32 : i32 to index
    %c0_65 = arith.constant 0 : index
    %c0_66 = arith.constant 0 : index
    %228 = vector.load %arg4[%227, %c0_65, %c0_66] : memref<8x8x128xbf16, #tpu.memory_space<vmem>>, vector<1x8x128xbf16>
    %229 = vector.shape_cast %228 : vector<1x8x128xbf16> to vector<8x128xbf16>
    %230 = vector.shape_cast %226 : vector<8x128xbf16> to vector<1x8x128xbf16>
    tpu.vector_store %arg4[%227, %c0_65, %c0_66], %230 {strides = array<i32>} : memref<8x8x128xbf16, #tpu.memory_space<vmem>>, vector<1x8x128xbf16>,
    %231 = arith.truncf %225 : vector<8x128xf32> to vector<8x128xbf16>
    %232 = arith.index_cast %161 : i32 to index
    %c0_67 = arith.constant 0 : index
    %c0_68 = arith.constant 0 : index
    %233 = vector.load %arg5[%232, %c0_67, %c0_68] : memref<8x8x128xbf16, #tpu.memory_space<vmem>>, vector<1x8x128xbf16>
    %234 = vector.shape_cast %233 : vector<1x8x128xbf16> to vector<8x128xbf16>
    %235 = vector.shape_cast %231 : vector<8x128xbf16> to vector<1x8x128xbf16>
    tpu.vector_store %arg5[%232, %c0_67, %c0_68], %235 {strides = array<i32>} : memref<8x8x128xbf16, #tpu.memory_space<vmem>>, vector<1x8x128xbf16>,
    %c3_i32 = arith.constant 3 : i32
    %c7_i32_69 = arith.constant 7 : i32
    %236 = arith.subi %c7_i32_69, %c3_i32 : i32
    %c0_70 = arith.constant 0 : index
    %237 = arith.index_cast %c3_i32 : i32 to index
    %c0_71 = arith.constant 0 : index
    %c0_72 = arith.constant 0 : index
    %238 = vector.load %arg1[%c0_70, %237, %c0_71, %c0_72] : memref<1x8x8x512xbf16, #tpu.memory_space<vmem>>, vector<1x1x8x512xbf16>
    %239 = vector.shape_cast %238 : vector<1x1x8x512xbf16> to vector<8x512xbf16>
    %240 = arith.extf %239 : vector<8x512xbf16> to vector<8x512xf32>
    %241 = arith.truncf %193 : vector<8x128xf32> to vector<8x128xbf16>
    %cst_73 = arith.constant dense<0.000000e+00> : vector<8x512xf32>
    %242 = tpu.matmul %241, %4, %cst_73 {dimension_numbers = #tpu.dot_dimension_numbers<[1], [0], [0], [1], [0, 0, 1, 1], [], []>} : vector<8x128xbf16>, vector<128x512xbf16>, vector<8x512xf32> -> vector<8x512xf32>
    %243 = arith.addf %240, %242 : vector<8x512xf32>
    %244 = vector.extract_strided_slice %243 {offsets = [0, 0], sizes = [8, 128], strides = [1, 1]} : vector<8x512xf32> to vector<8x128xf32>
    %245 = arith.negf %244 : vector<8x128xf32>
    %246 = math.exp %245 : vector<8x128xf32>
    %cst_74 = arith.constant 1.000000e+00 : f32
    %247 = vector.broadcast %cst_74 : f32 to vector<8x128xf32>
    %248 = arith.addf %247, %246 : vector<8x128xf32>
    %249 = arith.divf %247, %248 : vector<8x128xf32>
    %250 = vector.extract_strided_slice %243 {offsets = [0, 128], sizes = [8, 128], strides = [1, 1]} : vector<8x512xf32> to vector<8x128xf32>
    %251 = arith.negf %250 : vector<8x128xf32>
    %252 = math.exp %251 : vector<8x128xf32>
    %cst_75 = arith.constant 1.000000e+00 : f32
    %253 = vector.broadcast %cst_75 : f32 to vector<8x128xf32>
    %254 = arith.addf %253, %252 : vector<8x128xf32>
    %255 = arith.divf %253, %254 : vector<8x128xf32>
    %256 = vector.extract_strided_slice %243 {offsets = [0, 256], sizes = [8, 128], strides = [1, 1]} : vector<8x512xf32> to vector<8x128xf32>
    %257 = math.tanh %256 : vector<8x128xf32>
    %258 = vector.extract_strided_slice %243 {offsets = [0, 384], sizes = [8, 128], strides = [1, 1]} : vector<8x512xf32> to vector<8x128xf32>
    %259 = arith.negf %258 : vector<8x128xf32>
    %260 = math.exp %259 : vector<8x128xf32>
    %cst_76 = arith.constant 1.000000e+00 : f32
    %261 = vector.broadcast %cst_76 : f32 to vector<8x128xf32>
    %262 = arith.addf %261, %260 : vector<8x128xf32>
    %263 = arith.divf %261, %262 : vector<8x128xf32>
    %264 = arith.mulf %255, %191 : vector<8x128xf32>
    %265 = arith.mulf %249, %257 : vector<8x128xf32>
    %266 = arith.addf %264, %265 : vector<8x128xf32>
    %267 = math.tanh %266 : vector<8x128xf32>
    %268 = arith.mulf %263, %267 : vector<8x128xf32>
    %c0_77 = arith.constant 0 : index
    %269 = arith.index_cast %236 : i32 to index
    %c0_78 = arith.constant 0 : index
    %c0_79 = arith.constant 0 : index
    %270 = vector.load %arg2[%c0_77, %269, %c0_78, %c0_79] : memref<1x8x8x512xbf16, #tpu.memory_space<vmem>>, vector<1x1x8x512xbf16>
    %271 = vector.shape_cast %270 : vector<1x1x8x512xbf16> to vector<8x512xbf16>
    %272 = arith.extf %271 : vector<8x512xbf16> to vector<8x512xf32>
    %273 = arith.truncf %225 : vector<8x128xf32> to vector<8x128xbf16>
    %cst_80 = arith.constant dense<0.000000e+00> : vector<8x512xf32>
    %274 = tpu.matmul %273, %6, %cst_80 {dimension_numbers = #tpu.dot_dimension_numbers<[1], [0], [0], [1], [0, 0, 1, 1], [], []>} : vector<8x128xbf16>, vector<128x512xbf16>, vector<8x512xf32> -> vector<8x512xf32>
    %275 = arith.addf %272, %274 : vector<8x512xf32>
    %276 = vector.extract_strided_slice %275 {offsets = [0, 0], sizes = [8, 128], strides = [1, 1]} : vector<8x512xf32> to vector<8x128xf32>
    %277 = arith.negf %276 : vector<8x128xf32>
    %278 = math.exp %277 : vector<8x128xf32>
    %cst_81 = arith.constant 1.000000e+00 : f32
    %279 = vector.broadcast %cst_81 : f32 to vector<8x128xf32>
    %280 = arith.addf %279, %278 : vector<8x128xf32>
    %281 = arith.divf %279, %280 : vector<8x128xf32>
    %282 = vector.extract_strided_slice %275 {offsets = [0, 128], sizes = [8, 128], strides = [1, 1]} : vector<8x512xf32> to vector<8x128xf32>
    %283 = arith.negf %282 : vector<8x128xf32>
    %284 = math.exp %283 : vector<8x128xf32>
    %cst_82 = arith.constant 1.000000e+00 : f32
    %285 = vector.broadcast %cst_82 : f32 to vector<8x128xf32>
    %286 = arith.addf %285, %284 : vector<8x128xf32>
    %287 = arith.divf %285, %286 : vector<8x128xf32>
    %288 = vector.extract_strided_slice %275 {offsets = [0, 256], sizes = [8, 128], strides = [1, 1]} : vector<8x512xf32> to vector<8x128xf32>
    %289 = math.tanh %288 : vector<8x128xf32>
    %290 = vector.extract_strided_slice %275 {offsets = [0, 384], sizes = [8, 128], strides = [1, 1]} : vector<8x512xf32> to vector<8x128xf32>
    %291 = arith.negf %290 : vector<8x128xf32>
    %292 = math.exp %291 : vector<8x128xf32>
    %cst_83 = arith.constant 1.000000e+00 : f32
    %293 = vector.broadcast %cst_83 : f32 to vector<8x128xf32>
    %294 = arith.addf %293, %292 : vector<8x128xf32>
    %295 = arith.divf %293, %294 : vector<8x128xf32>
    %296 = arith.mulf %287, %223 : vector<8x128xf32>
    %297 = arith.mulf %281, %289 : vector<8x128xf32>
    %298 = arith.addf %296, %297 : vector<8x128xf32>
    %299 = math.tanh %298 : vector<8x128xf32>
    %300 = arith.mulf %295, %299 : vector<8x128xf32>
    %301 = arith.truncf %268 : vector<8x128xf32> to vector<8x128xbf16>
    %302 = arith.index_cast %c3_i32 : i32 to index
    %c0_84 = arith.constant 0 : index
    %c0_85 = arith.constant 0 : index
    %303 = vector.load %arg4[%302, %c0_84, %c0_85] : memref<8x8x128xbf16, #tpu.memory_space<vmem>>, vector<1x8x128xbf16>
    %304 = vector.shape_cast %303 : vector<1x8x128xbf16> to vector<8x128xbf16>
    %305 = vector.shape_cast %301 : vector<8x128xbf16> to vector<1x8x128xbf16>
    tpu.vector_store %arg4[%302, %c0_84, %c0_85], %305 {strides = array<i32>} : memref<8x8x128xbf16, #tpu.memory_space<vmem>>, vector<1x8x128xbf16>,
    %306 = arith.truncf %300 : vector<8x128xf32> to vector<8x128xbf16>
    %307 = arith.index_cast %236 : i32 to index
    %c0_86 = arith.constant 0 : index
    %c0_87 = arith.constant 0 : index
    %308 = vector.load %arg5[%307, %c0_86, %c0_87] : memref<8x8x128xbf16, #tpu.memory_space<vmem>>, vector<1x8x128xbf16>
    %309 = vector.shape_cast %308 : vector<1x8x128xbf16> to vector<8x128xbf16>
    %310 = vector.shape_cast %306 : vector<8x128xbf16> to vector<1x8x128xbf16>
    tpu.vector_store %arg5[%307, %c0_86, %c0_87], %310 {strides = array<i32>} : memref<8x8x128xbf16, #tpu.memory_space<vmem>>, vector<1x8x128xbf16>,
    %c4_i32 = arith.constant 4 : i32
    %c7_i32_88 = arith.constant 7 : i32
    %311 = arith.subi %c7_i32_88, %c4_i32 : i32
    %c0_89 = arith.constant 0 : index
    %312 = arith.index_cast %c4_i32 : i32 to index
    %c0_90 = arith.constant 0 : index
    %c0_91 = arith.constant 0 : index
    %313 = vector.load %arg1[%c0_89, %312, %c0_90, %c0_91] : memref<1x8x8x512xbf16, #tpu.memory_space<vmem>>, vector<1x1x8x512xbf16>
    %314 = vector.shape_cast %313 : vector<1x1x8x512xbf16> to vector<8x512xbf16>
    %315 = arith.extf %314 : vector<8x512xbf16> to vector<8x512xf32>
    %316 = arith.truncf %268 : vector<8x128xf32> to vector<8x128xbf16>
    %cst_92 = arith.constant dense<0.000000e+00> : vector<8x512xf32>
    %317 = tpu.matmul %316, %4, %cst_92 {dimension_numbers = #tpu.dot_dimension_numbers<[1], [0], [0], [1], [0, 0, 1, 1], [], []>} : vector<8x128xbf16>, vector<128x512xbf16>, vector<8x512xf32> -> vector<8x512xf32>
    %318 = arith.addf %315, %317 : vector<8x512xf32>
    %319 = vector.extract_strided_slice %318 {offsets = [0, 0], sizes = [8, 128], strides = [1, 1]} : vector<8x512xf32> to vector<8x128xf32>
    %320 = arith.negf %319 : vector<8x128xf32>
    %321 = math.exp %320 : vector<8x128xf32>
    %cst_93 = arith.constant 1.000000e+00 : f32
    %322 = vector.broadcast %cst_93 : f32 to vector<8x128xf32>
    %323 = arith.addf %322, %321 : vector<8x128xf32>
    %324 = arith.divf %322, %323 : vector<8x128xf32>
    %325 = vector.extract_strided_slice %318 {offsets = [0, 128], sizes = [8, 128], strides = [1, 1]} : vector<8x512xf32> to vector<8x128xf32>
    %326 = arith.negf %325 : vector<8x128xf32>
    %327 = math.exp %326 : vector<8x128xf32>
    %cst_94 = arith.constant 1.000000e+00 : f32
    %328 = vector.broadcast %cst_94 : f32 to vector<8x128xf32>
    %329 = arith.addf %328, %327 : vector<8x128xf32>
    %330 = arith.divf %328, %329 : vector<8x128xf32>
    %331 = vector.extract_strided_slice %318 {offsets = [0, 256], sizes = [8, 128], strides = [1, 1]} : vector<8x512xf32> to vector<8x128xf32>
    %332 = math.tanh %331 : vector<8x128xf32>
    %333 = vector.extract_strided_slice %318 {offsets = [0, 384], sizes = [8, 128], strides = [1, 1]} : vector<8x512xf32> to vector<8x128xf32>
    %334 = arith.negf %333 : vector<8x128xf32>
    %335 = math.exp %334 : vector<8x128xf32>
    %cst_95 = arith.constant 1.000000e+00 : f32
    %336 = vector.broadcast %cst_95 : f32 to vector<8x128xf32>
    %337 = arith.addf %336, %335 : vector<8x128xf32>
    %338 = arith.divf %336, %337 : vector<8x128xf32>
    %339 = arith.mulf %330, %266 : vector<8x128xf32>
    %340 = arith.mulf %324, %332 : vector<8x128xf32>
    %341 = arith.addf %339, %340 : vector<8x128xf32>
    %342 = math.tanh %341 : vector<8x128xf32>
    %343 = arith.mulf %338, %342 : vector<8x128xf32>
    %c0_96 = arith.constant 0 : index
    %344 = arith.index_cast %311 : i32 to index
    %c0_97 = arith.constant 0 : index
    %c0_98 = arith.constant 0 : index
    %345 = vector.load %arg2[%c0_96, %344, %c0_97, %c0_98] : memref<1x8x8x512xbf16, #tpu.memory_space<vmem>>, vector<1x1x8x512xbf16>
    %346 = vector.shape_cast %345 : vector<1x1x8x512xbf16> to vector<8x512xbf16>
    %347 = arith.extf %346 : vector<8x512xbf16> to vector<8x512xf32>
    %348 = arith.truncf %300 : vector<8x128xf32> to vector<8x128xbf16>
    %cst_99 = arith.constant dense<0.000000e+00> : vector<8x512xf32>
    %349 = tpu.matmul %348, %6, %cst_99 {dimension_numbers = #tpu.dot_dimension_numbers<[1], [0], [0], [1], [0, 0, 1, 1], [], []>} : vector<8x128xbf16>, vector<128x512xbf16>, vector<8x512xf32> -> vector<8x512xf32>
    %350 = arith.addf %347, %349 : vector<8x512xf32>
    %351 = vector.extract_strided_slice %350 {offsets = [0, 0], sizes = [8, 128], strides = [1, 1]} : vector<8x512xf32> to vector<8x128xf32>
    %352 = arith.negf %351 : vector<8x128xf32>
    %353 = math.exp %352 : vector<8x128xf32>
    %cst_100 = arith.constant 1.000000e+00 : f32
    %354 = vector.broadcast %cst_100 : f32 to vector<8x128xf32>
    %355 = arith.addf %354, %353 : vector<8x128xf32>
    %356 = arith.divf %354, %355 : vector<8x128xf32>
    %357 = vector.extract_strided_slice %350 {offsets = [0, 128], sizes = [8, 128], strides = [1, 1]} : vector<8x512xf32> to vector<8x128xf32>
    %358 = arith.negf %357 : vector<8x128xf32>
    %359 = math.exp %358 : vector<8x128xf32>
    %cst_101 = arith.constant 1.000000e+00 : f32
    %360 = vector.broadcast %cst_101 : f32 to vector<8x128xf32>
    %361 = arith.addf %360, %359 : vector<8x128xf32>
    %362 = arith.divf %360, %361 : vector<8x128xf32>
    %363 = vector.extract_strided_slice %350 {offsets = [0, 256], sizes = [8, 128], strides = [1, 1]} : vector<8x512xf32> to vector<8x128xf32>
    %364 = math.tanh %363 : vector<8x128xf32>
    %365 = vector.extract_strided_slice %350 {offsets = [0, 384], sizes = [8, 128], strides = [1, 1]} : vector<8x512xf32> to vector<8x128xf32>
    %366 = arith.negf %365 : vector<8x128xf32>
    %367 = math.exp %366 : vector<8x128xf32>
    %cst_102 = arith.constant 1.000000e+00 : f32
    %368 = vector.broadcast %cst_102 : f32 to vector<8x128xf32>
    %369 = arith.addf %368, %367 : vector<8x128xf32>
    %370 = arith.divf %368, %369 : vector<8x128xf32>
    %371 = arith.mulf %362, %298 : vector<8x128xf32>
    %372 = arith.mulf %356, %364 : vector<8x128xf32>
    %373 = arith.addf %371, %372 : vector<8x128xf32>
    %374 = math.tanh %373 : vector<8x128xf32>
    %375 = arith.mulf %370, %374 : vector<8x128xf32>
    %376 = arith.truncf %343 : vector<8x128xf32> to vector<8x128xbf16>
    %377 = arith.index_cast %c4_i32 : i32 to index
    %c0_103 = arith.constant 0 : index
    %c0_104 = arith.constant 0 : index
    %378 = vector.load %arg4[%377, %c0_103, %c0_104] : memref<8x8x128xbf16, #tpu.memory_space<vmem>>, vector<1x8x128xbf16>
    %379 = vector.shape_cast %378 : vector<1x8x128xbf16> to vector<8x128xbf16>
    %380 = vector.shape_cast %376 : vector<8x128xbf16> to vector<1x8x128xbf16>
    tpu.vector_store %arg4[%377, %c0_103, %c0_104], %380 {strides = array<i32>} : memref<8x8x128xbf16, #tpu.memory_space<vmem>>, vector<1x8x128xbf16>,
    %381 = arith.truncf %375 : vector<8x128xf32> to vector<8x128xbf16>
    %382 = arith.index_cast %311 : i32 to index
    %c0_105 = arith.constant 0 : index
    %c0_106 = arith.constant 0 : index
    %383 = vector.load %arg5[%382, %c0_105, %c0_106] : memref<8x8x128xbf16, #tpu.memory_space<vmem>>, vector<1x8x128xbf16>
    %384 = vector.shape_cast %383 : vector<1x8x128xbf16> to vector<8x128xbf16>
    %385 = vector.shape_cast %381 : vector<8x128xbf16> to vector<1x8x128xbf16>
    tpu.vector_store %arg5[%382, %c0_105, %c0_106], %385 {strides = array<i32>} : memref<8x8x128xbf16, #tpu.memory_space<vmem>>, vector<1x8x128xbf16>,
    %c5_i32 = arith.constant 5 : i32
    %c7_i32_107 = arith.constant 7 : i32
    %386 = arith.subi %c7_i32_107, %c5_i32 : i32
    %c0_108 = arith.constant 0 : index
    %387 = arith.index_cast %c5_i32 : i32 to index
    %c0_109 = arith.constant 0 : index
    %c0_110 = arith.constant 0 : index
    %388 = vector.load %arg1[%c0_108, %387, %c0_109, %c0_110] : memref<1x8x8x512xbf16, #tpu.memory_space<vmem>>, vector<1x1x8x512xbf16>
    %389 = vector.shape_cast %388 : vector<1x1x8x512xbf16> to vector<8x512xbf16>
    %390 = arith.extf %389 : vector<8x512xbf16> to vector<8x512xf32>
    %391 = arith.truncf %343 : vector<8x128xf32> to vector<8x128xbf16>
    %cst_111 = arith.constant dense<0.000000e+00> : vector<8x512xf32>
    %392 = tpu.matmul %391, %4, %cst_111 {dimension_numbers = #tpu.dot_dimension_numbers<[1], [0], [0], [1], [0, 0, 1, 1], [], []>} : vector<8x128xbf16>, vector<128x512xbf16>, vector<8x512xf32> -> vector<8x512xf32>
    %393 = arith.addf %390, %392 : vector<8x512xf32>
    %394 = vector.extract_strided_slice %393 {offsets = [0, 0], sizes = [8, 128], strides = [1, 1]} : vector<8x512xf32> to vector<8x128xf32>
    %395 = arith.negf %394 : vector<8x128xf32>
    %396 = math.exp %395 : vector<8x128xf32>
    %cst_112 = arith.constant 1.000000e+00 : f32
    %397 = vector.broadcast %cst_112 : f32 to vector<8x128xf32>
    %398 = arith.addf %397, %396 : vector<8x128xf32>
    %399 = arith.divf %397, %398 : vector<8x128xf32>
    %400 = vector.extract_strided_slice %393 {offsets = [0, 128], sizes = [8, 128], strides = [1, 1]} : vector<8x512xf32> to vector<8x128xf32>
    %401 = arith.negf %400 : vector<8x128xf32>
    %402 = math.exp %401 : vector<8x128xf32>
    %cst_113 = arith.constant 1.000000e+00 : f32
    %403 = vector.broadcast %cst_113 : f32 to vector<8x128xf32>
    %404 = arith.addf %403, %402 : vector<8x128xf32>
    %405 = arith.divf %403, %404 : vector<8x128xf32>
    %406 = vector.extract_strided_slice %393 {offsets = [0, 256], sizes = [8, 128], strides = [1, 1]} : vector<8x512xf32> to vector<8x128xf32>
    %407 = math.tanh %406 : vector<8x128xf32>
    %408 = vector.extract_strided_slice %393 {offsets = [0, 384], sizes = [8, 128], strides = [1, 1]} : vector<8x512xf32> to vector<8x128xf32>
    %409 = arith.negf %408 : vector<8x128xf32>
    %410 = math.exp %409 : vector<8x128xf32>
    %cst_114 = arith.constant 1.000000e+00 : f32
    %411 = vector.broadcast %cst_114 : f32 to vector<8x128xf32>
    %412 = arith.addf %411, %410 : vector<8x128xf32>
    %413 = arith.divf %411, %412 : vector<8x128xf32>
    %414 = arith.mulf %405, %341 : vector<8x128xf32>
    %415 = arith.mulf %399, %407 : vector<8x128xf32>
    %416 = arith.addf %414, %415 : vector<8x128xf32>
    %417 = math.tanh %416 : vector<8x128xf32>
    %418 = arith.mulf %413, %417 : vector<8x128xf32>
    %c0_115 = arith.constant 0 : index
    %419 = arith.index_cast %386 : i32 to index
    %c0_116 = arith.constant 0 : index
    %c0_117 = arith.constant 0 : index
    %420 = vector.load %arg2[%c0_115, %419, %c0_116, %c0_117] : memref<1x8x8x512xbf16, #tpu.memory_space<vmem>>, vector<1x1x8x512xbf16>
    %421 = vector.shape_cast %420 : vector<1x1x8x512xbf16> to vector<8x512xbf16>
    %422 = arith.extf %421 : vector<8x512xbf16> to vector<8x512xf32>
    %423 = arith.truncf %375 : vector<8x128xf32> to vector<8x128xbf16>
    %cst_118 = arith.constant dense<0.000000e+00> : vector<8x512xf32>
    %424 = tpu.matmul %423, %6, %cst_118 {dimension_numbers = #tpu.dot_dimension_numbers<[1], [0], [0], [1], [0, 0, 1, 1], [], []>} : vector<8x128xbf16>, vector<128x512xbf16>, vector<8x512xf32> -> vector<8x512xf32>
    %425 = arith.addf %422, %424 : vector<8x512xf32>
    %426 = vector.extract_strided_slice %425 {offsets = [0, 0], sizes = [8, 128], strides = [1, 1]} : vector<8x512xf32> to vector<8x128xf32>
    %427 = arith.negf %426 : vector<8x128xf32>
    %428 = math.exp %427 : vector<8x128xf32>
    %cst_119 = arith.constant 1.000000e+00 : f32
    %429 = vector.broadcast %cst_119 : f32 to vector<8x128xf32>
    %430 = arith.addf %429, %428 : vector<8x128xf32>
    %431 = arith.divf %429, %430 : vector<8x128xf32>
    %432 = vector.extract_strided_slice %425 {offsets = [0, 128], sizes = [8, 128], strides = [1, 1]} : vector<8x512xf32> to vector<8x128xf32>
    %433 = arith.negf %432 : vector<8x128xf32>
    %434 = math.exp %433 : vector<8x128xf32>
    %cst_120 = arith.constant 1.000000e+00 : f32
    %435 = vector.broadcast %cst_120 : f32 to vector<8x128xf32>
    %436 = arith.addf %435, %434 : vector<8x128xf32>
    %437 = arith.divf %435, %436 : vector<8x128xf32>
    %438 = vector.extract_strided_slice %425 {offsets = [0, 256], sizes = [8, 128], strides = [1, 1]} : vector<8x512xf32> to vector<8x128xf32>
    %439 = math.tanh %438 : vector<8x128xf32>
    %440 = vector.extract_strided_slice %425 {offsets = [0, 384], sizes = [8, 128], strides = [1, 1]} : vector<8x512xf32> to vector<8x128xf32>
    %441 = arith.negf %440 : vector<8x128xf32>
    %442 = math.exp %441 : vector<8x128xf32>
    %cst_121 = arith.constant 1.000000e+00 : f32
    %443 = vector.broadcast %cst_121 : f32 to vector<8x128xf32>
    %444 = arith.addf %443, %442 : vector<8x128xf32>
    %445 = arith.divf %443, %444 : vector<8x128xf32>
    %446 = arith.mulf %437, %373 : vector<8x128xf32>
    %447 = arith.mulf %431, %439 : vector<8x128xf32>
    %448 = arith.addf %446, %447 : vector<8x128xf32>
    %449 = math.tanh %448 : vector<8x128xf32>
    %450 = arith.mulf %445, %449 : vector<8x128xf32>
    %451 = arith.truncf %418 : vector<8x128xf32> to vector<8x128xbf16>
    %452 = arith.index_cast %c5_i32 : i32 to index
    %c0_122 = arith.constant 0 : index
    %c0_123 = arith.constant 0 : index
    %453 = vector.load %arg4[%452, %c0_122, %c0_123] : memref<8x8x128xbf16, #tpu.memory_space<vmem>>, vector<1x8x128xbf16>
    %454 = vector.shape_cast %453 : vector<1x8x128xbf16> to vector<8x128xbf16>
    %455 = vector.shape_cast %451 : vector<8x128xbf16> to vector<1x8x128xbf16>
    tpu.vector_store %arg4[%452, %c0_122, %c0_123], %455 {strides = array<i32>} : memref<8x8x128xbf16, #tpu.memory_space<vmem>>, vector<1x8x128xbf16>,
    %456 = arith.truncf %450 : vector<8x128xf32> to vector<8x128xbf16>
    %457 = arith.index_cast %386 : i32 to index
    %c0_124 = arith.constant 0 : index
    %c0_125 = arith.constant 0 : index
    %458 = vector.load %arg5[%457, %c0_124, %c0_125] : memref<8x8x128xbf16, #tpu.memory_space<vmem>>, vector<1x8x128xbf16>
    %459 = vector.shape_cast %458 : vector<1x8x128xbf16> to vector<8x128xbf16>
    %460 = vector.shape_cast %456 : vector<8x128xbf16> to vector<1x8x128xbf16>
    tpu.vector_store %arg5[%457, %c0_124, %c0_125], %460 {strides = array<i32>} : memref<8x8x128xbf16, #tpu.memory_space<vmem>>, vector<1x8x128xbf16>,
    %c6_i32 = arith.constant 6 : i32
    %c7_i32_126 = arith.constant 7 : i32
    %461 = arith.subi %c7_i32_126, %c6_i32 : i32
    %c0_127 = arith.constant 0 : index
    %462 = arith.index_cast %c6_i32 : i32 to index
    %c0_128 = arith.constant 0 : index
    %c0_129 = arith.constant 0 : index
    %463 = vector.load %arg1[%c0_127, %462, %c0_128, %c0_129] : memref<1x8x8x512xbf16, #tpu.memory_space<vmem>>, vector<1x1x8x512xbf16>
    %464 = vector.shape_cast %463 : vector<1x1x8x512xbf16> to vector<8x512xbf16>
    %465 = arith.extf %464 : vector<8x512xbf16> to vector<8x512xf32>
    %466 = arith.truncf %418 : vector<8x128xf32> to vector<8x128xbf16>
    %cst_130 = arith.constant dense<0.000000e+00> : vector<8x512xf32>
    %467 = tpu.matmul %466, %4, %cst_130 {dimension_numbers = #tpu.dot_dimension_numbers<[1], [0], [0], [1], [0, 0, 1, 1], [], []>} : vector<8x128xbf16>, vector<128x512xbf16>, vector<8x512xf32> -> vector<8x512xf32>
    %468 = arith.addf %465, %467 : vector<8x512xf32>
    %469 = vector.extract_strided_slice %468 {offsets = [0, 0], sizes = [8, 128], strides = [1, 1]} : vector<8x512xf32> to vector<8x128xf32>
    %470 = arith.negf %469 : vector<8x128xf32>
    %471 = math.exp %470 : vector<8x128xf32>
    %cst_131 = arith.constant 1.000000e+00 : f32
    %472 = vector.broadcast %cst_131 : f32 to vector<8x128xf32>
    %473 = arith.addf %472, %471 : vector<8x128xf32>
    %474 = arith.divf %472, %473 : vector<8x128xf32>
    %475 = vector.extract_strided_slice %468 {offsets = [0, 128], sizes = [8, 128], strides = [1, 1]} : vector<8x512xf32> to vector<8x128xf32>
    %476 = arith.negf %475 : vector<8x128xf32>
    %477 = math.exp %476 : vector<8x128xf32>
    %cst_132 = arith.constant 1.000000e+00 : f32
    %478 = vector.broadcast %cst_132 : f32 to vector<8x128xf32>
    %479 = arith.addf %478, %477 : vector<8x128xf32>
    %480 = arith.divf %478, %479 : vector<8x128xf32>
    %481 = vector.extract_strided_slice %468 {offsets = [0, 256], sizes = [8, 128], strides = [1, 1]} : vector<8x512xf32> to vector<8x128xf32>
    %482 = math.tanh %481 : vector<8x128xf32>
    %483 = vector.extract_strided_slice %468 {offsets = [0, 384], sizes = [8, 128], strides = [1, 1]} : vector<8x512xf32> to vector<8x128xf32>
    %484 = arith.negf %483 : vector<8x128xf32>
    %485 = math.exp %484 : vector<8x128xf32>
    %cst_133 = arith.constant 1.000000e+00 : f32
    %486 = vector.broadcast %cst_133 : f32 to vector<8x128xf32>
    %487 = arith.addf %486, %485 : vector<8x128xf32>
    %488 = arith.divf %486, %487 : vector<8x128xf32>
    %489 = arith.mulf %480, %416 : vector<8x128xf32>
    %490 = arith.mulf %474, %482 : vector<8x128xf32>
    %491 = arith.addf %489, %490 : vector<8x128xf32>
    %492 = math.tanh %491 : vector<8x128xf32>
    %493 = arith.mulf %488, %492 : vector<8x128xf32>
    %c0_134 = arith.constant 0 : index
    %494 = arith.index_cast %461 : i32 to index
    %c0_135 = arith.constant 0 : index
    %c0_136 = arith.constant 0 : index
    %495 = vector.load %arg2[%c0_134, %494, %c0_135, %c0_136] : memref<1x8x8x512xbf16, #tpu.memory_space<vmem>>, vector<1x1x8x512xbf16>
    %496 = vector.shape_cast %495 : vector<1x1x8x512xbf16> to vector<8x512xbf16>
    %497 = arith.extf %496 : vector<8x512xbf16> to vector<8x512xf32>
    %498 = arith.truncf %450 : vector<8x128xf32> to vector<8x128xbf16>
    %cst_137 = arith.constant dense<0.000000e+00> : vector<8x512xf32>
    %499 = tpu.matmul %498, %6, %cst_137 {dimension_numbers = #tpu.dot_dimension_numbers<[1], [0], [0], [1], [0, 0, 1, 1], [], []>} : vector<8x128xbf16>, vector<128x512xbf16>, vector<8x512xf32> -> vector<8x512xf32>
    %500 = arith.addf %497, %499 : vector<8x512xf32>
    %501 = vector.extract_strided_slice %500 {offsets = [0, 0], sizes = [8, 128], strides = [1, 1]} : vector<8x512xf32> to vector<8x128xf32>
    %502 = arith.negf %501 : vector<8x128xf32>
    %503 = math.exp %502 : vector<8x128xf32>
    %cst_138 = arith.constant 1.000000e+00 : f32
    %504 = vector.broadcast %cst_138 : f32 to vector<8x128xf32>
    %505 = arith.addf %504, %503 : vector<8x128xf32>
    %506 = arith.divf %504, %505 : vector<8x128xf32>
    %507 = vector.extract_strided_slice %500 {offsets = [0, 128], sizes = [8, 128], strides = [1, 1]} : vector<8x512xf32> to vector<8x128xf32>
    %508 = arith.negf %507 : vector<8x128xf32>
    %509 = math.exp %508 : vector<8x128xf32>
    %cst_139 = arith.constant 1.000000e+00 : f32
    %510 = vector.broadcast %cst_139 : f32 to vector<8x128xf32>
    %511 = arith.addf %510, %509 : vector<8x128xf32>
    %512 = arith.divf %510, %511 : vector<8x128xf32>
    %513 = vector.extract_strided_slice %500 {offsets = [0, 256], sizes = [8, 128], strides = [1, 1]} : vector<8x512xf32> to vector<8x128xf32>
    %514 = math.tanh %513 : vector<8x128xf32>
    %515 = vector.extract_strided_slice %500 {offsets = [0, 384], sizes = [8, 128], strides = [1, 1]} : vector<8x512xf32> to vector<8x128xf32>
    %516 = arith.negf %515 : vector<8x128xf32>
    %517 = math.exp %516 : vector<8x128xf32>
    %cst_140 = arith.constant 1.000000e+00 : f32
    %518 = vector.broadcast %cst_140 : f32 to vector<8x128xf32>
    %519 = arith.addf %518, %517 : vector<8x128xf32>
    %520 = arith.divf %518, %519 : vector<8x128xf32>
    %521 = arith.mulf %512, %448 : vector<8x128xf32>
    %522 = arith.mulf %506, %514 : vector<8x128xf32>
    %523 = arith.addf %521, %522 : vector<8x128xf32>
    %524 = math.tanh %523 : vector<8x128xf32>
    %525 = arith.mulf %520, %524 : vector<8x128xf32>
    %526 = arith.truncf %493 : vector<8x128xf32> to vector<8x128xbf16>
    %527 = arith.index_cast %c6_i32 : i32 to index
    %c0_141 = arith.constant 0 : index
    %c0_142 = arith.constant 0 : index
    %528 = vector.load %arg4[%527, %c0_141, %c0_142] : memref<8x8x128xbf16, #tpu.memory_space<vmem>>, vector<1x8x128xbf16>
    %529 = vector.shape_cast %528 : vector<1x8x128xbf16> to vector<8x128xbf16>
    %530 = vector.shape_cast %526 : vector<8x128xbf16> to vector<1x8x128xbf16>
    tpu.vector_store %arg4[%527, %c0_141, %c0_142], %530 {strides = array<i32>} : memref<8x8x128xbf16, #tpu.memory_space<vmem>>, vector<1x8x128xbf16>,
    %531 = arith.truncf %525 : vector<8x128xf32> to vector<8x128xbf16>
    %532 = arith.index_cast %461 : i32 to index
    %c0_143 = arith.constant 0 : index
    %c0_144 = arith.constant 0 : index
    %533 = vector.load %arg5[%532, %c0_143, %c0_144] : memref<8x8x128xbf16, #tpu.memory_space<vmem>>, vector<1x8x128xbf16>
    %534 = vector.shape_cast %533 : vector<1x8x128xbf16> to vector<8x128xbf16>
    %535 = vector.shape_cast %531 : vector<8x128xbf16> to vector<1x8x128xbf16>
    tpu.vector_store %arg5[%532, %c0_143, %c0_144], %535 {strides = array<i32>} : memref<8x8x128xbf16, #tpu.memory_space<vmem>>, vector<1x8x128xbf16>,
    %c7_i32_145 = arith.constant 7 : i32
    %c7_i32_146 = arith.constant 7 : i32
    %536 = arith.subi %c7_i32_146, %c7_i32_145 : i32
    %c0_147 = arith.constant 0 : index
    %537 = arith.index_cast %c7_i32_145 : i32 to index
    %c0_148 = arith.constant 0 : index
    %c0_149 = arith.constant 0 : index
    %538 = vector.load %arg1[%c0_147, %537, %c0_148, %c0_149] : memref<1x8x8x512xbf16, #tpu.memory_space<vmem>>, vector<1x1x8x512xbf16>
    %539 = vector.shape_cast %538 : vector<1x1x8x512xbf16> to vector<8x512xbf16>
    %540 = arith.extf %539 : vector<8x512xbf16> to vector<8x512xf32>
    %541 = arith.truncf %493 : vector<8x128xf32> to vector<8x128xbf16>
    %cst_150 = arith.constant dense<0.000000e+00> : vector<8x512xf32>
    %542 = tpu.matmul %541, %4, %cst_150 {dimension_numbers = #tpu.dot_dimension_numbers<[1], [0], [0], [1], [0, 0, 1, 1], [], []>} : vector<8x128xbf16>, vector<128x512xbf16>, vector<8x512xf32> -> vector<8x512xf32>
    %543 = arith.addf %540, %542 : vector<8x512xf32>
    %544 = vector.extract_strided_slice %543 {offsets = [0, 0], sizes = [8, 128], strides = [1, 1]} : vector<8x512xf32> to vector<8x128xf32>
    %545 = arith.negf %544 : vector<8x128xf32>
    %546 = math.exp %545 : vector<8x128xf32>
    %cst_151 = arith.constant 1.000000e+00 : f32
    %547 = vector.broadcast %cst_151 : f32 to vector<8x128xf32>
    %548 = arith.addf %547, %546 : vector<8x128xf32>
    %549 = arith.divf %547, %548 : vector<8x128xf32>
    %550 = vector.extract_strided_slice %543 {offsets = [0, 128], sizes = [8, 128], strides = [1, 1]} : vector<8x512xf32> to vector<8x128xf32>
    %551 = arith.negf %550 : vector<8x128xf32>
    %552 = math.exp %551 : vector<8x128xf32>
    %cst_152 = arith.constant 1.000000e+00 : f32
    %553 = vector.broadcast %cst_152 : f32 to vector<8x128xf32>
    %554 = arith.addf %553, %552 : vector<8x128xf32>
    %555 = arith.divf %553, %554 : vector<8x128xf32>
    %556 = vector.extract_strided_slice %543 {offsets = [0, 256], sizes = [8, 128], strides = [1, 1]} : vector<8x512xf32> to vector<8x128xf32>
    %557 = math.tanh %556 : vector<8x128xf32>
    %558 = vector.extract_strided_slice %543 {offsets = [0, 384], sizes = [8, 128], strides = [1, 1]} : vector<8x512xf32> to vector<8x128xf32>
    %559 = arith.negf %558 : vector<8x128xf32>
    %560 = math.exp %559 : vector<8x128xf32>
    %cst_153 = arith.constant 1.000000e+00 : f32
    %561 = vector.broadcast %cst_153 : f32 to vector<8x128xf32>
    %562 = arith.addf %561, %560 : vector<8x128xf32>
    %563 = arith.divf %561, %562 : vector<8x128xf32>
    %564 = arith.mulf %555, %491 : vector<8x128xf32>
    %565 = arith.mulf %549, %557 : vector<8x128xf32>
    %566 = arith.addf %564, %565 : vector<8x128xf32>
    %567 = math.tanh %566 : vector<8x128xf32>
    %568 = arith.mulf %563, %567 : vector<8x128xf32>
    %c0_154 = arith.constant 0 : index
    %569 = arith.index_cast %536 : i32 to index
    %c0_155 = arith.constant 0 : index
    %c0_156 = arith.constant 0 : index
    %570 = vector.load %arg2[%c0_154, %569, %c0_155, %c0_156] : memref<1x8x8x512xbf16, #tpu.memory_space<vmem>>, vector<1x1x8x512xbf16>
    %571 = vector.shape_cast %570 : vector<1x1x8x512xbf16> to vector<8x512xbf16>
    %572 = arith.extf %571 : vector<8x512xbf16> to vector<8x512xf32>
    %573 = arith.truncf %525 : vector<8x128xf32> to vector<8x128xbf16>
    %cst_157 = arith.constant dense<0.000000e+00> : vector<8x512xf32>
    %574 = tpu.matmul %573, %6, %cst_157 {dimension_numbers = #tpu.dot_dimension_numbers<[1], [0], [0], [1], [0, 0, 1, 1], [], []>} : vector<8x128xbf16>, vector<128x512xbf16>, vector<8x512xf32> -> vector<8x512xf32>
    %575 = arith.addf %572, %574 : vector<8x512xf32>
    %576 = vector.extract_strided_slice %575 {offsets = [0, 0], sizes = [8, 128], strides = [1, 1]} : vector<8x512xf32> to vector<8x128xf32>
    %577 = arith.negf %576 : vector<8x128xf32>
    %578 = math.exp %577 : vector<8x128xf32>
    %cst_158 = arith.constant 1.000000e+00 : f32
    %579 = vector.broadcast %cst_158 : f32 to vector<8x128xf32>
    %580 = arith.addf %579, %578 : vector<8x128xf32>
    %581 = arith.divf %579, %580 : vector<8x128xf32>
    %582 = vector.extract_strided_slice %575 {offsets = [0, 128], sizes = [8, 128], strides = [1, 1]} : vector<8x512xf32> to vector<8x128xf32>
    %583 = arith.negf %582 : vector<8x128xf32>
    %584 = math.exp %583 : vector<8x128xf32>
    %cst_159 = arith.constant 1.000000e+00 : f32
    %585 = vector.broadcast %cst_159 : f32 to vector<8x128xf32>
    %586 = arith.addf %585, %584 : vector<8x128xf32>
    %587 = arith.divf %585, %586 : vector<8x128xf32>
    %588 = vector.extract_strided_slice %575 {offsets = [0, 256], sizes = [8, 128], strides = [1, 1]} : vector<8x512xf32> to vector<8x128xf32>
    %589 = math.tanh %588 : vector<8x128xf32>
    %590 = vector.extract_strided_slice %575 {offsets = [0, 384], sizes = [8, 128], strides = [1, 1]} : vector<8x512xf32> to vector<8x128xf32>
    %591 = arith.negf %590 : vector<8x128xf32>
    %592 = math.exp %591 : vector<8x128xf32>
    %cst_160 = arith.constant 1.000000e+00 : f32
    %593 = vector.broadcast %cst_160 : f32 to vector<8x128xf32>
    %594 = arith.addf %593, %592 : vector<8x128xf32>
    %595 = arith.divf %593, %594 : vector<8x128xf32>
    %596 = arith.mulf %587, %523 : vector<8x128xf32>
    %597 = arith.mulf %581, %589 : vector<8x128xf32>
    %598 = arith.addf %596, %597 : vector<8x128xf32>
    %599 = math.tanh %598 : vector<8x128xf32>
    %600 = arith.mulf %595, %599 : vector<8x128xf32>
    %601 = arith.truncf %568 : vector<8x128xf32> to vector<8x128xbf16>
    %602 = arith.index_cast %c7_i32_145 : i32 to index
    %c0_161 = arith.constant 0 : index
    %c0_162 = arith.constant 0 : index
    %603 = vector.load %arg4[%602, %c0_161, %c0_162] : memref<8x8x128xbf16, #tpu.memory_space<vmem>>, vector<1x8x128xbf16>
    %604 = vector.shape_cast %603 : vector<1x8x128xbf16> to vector<8x128xbf16>
    %605 = vector.shape_cast %601 : vector<8x128xbf16> to vector<1x8x128xbf16>
    tpu.vector_store %arg4[%602, %c0_161, %c0_162], %605 {strides = array<i32>} : memref<8x8x128xbf16, #tpu.memory_space<vmem>>, vector<1x8x128xbf16>,
    %606 = arith.truncf %600 : vector<8x128xf32> to vector<8x128xbf16>
    %607 = arith.index_cast %536 : i32 to index
    %c0_163 = arith.constant 0 : index
    %c0_164 = arith.constant 0 : index
    %608 = vector.load %arg5[%607, %c0_163, %c0_164] : memref<8x8x128xbf16, #tpu.memory_space<vmem>>, vector<1x8x128xbf16>
    %609 = vector.shape_cast %608 : vector<1x8x128xbf16> to vector<8x128xbf16>
    %610 = vector.shape_cast %606 : vector<8x128xbf16> to vector<1x8x128xbf16>
    tpu.vector_store %arg5[%607, %c0_163, %c0_164], %610 {strides = array<i32>} : memref<8x8x128xbf16, #tpu.memory_space<vmem>>, vector<1x8x128xbf16>,
    %c8_i32 = arith.constant 8 : i32
    %c0_165 = arith.constant 0 : index
    %c0_166 = arith.constant 0 : index
    %611 = vector.load %arg6[%c0_165, %c0_166] : memref<8x128xf32, #tpu.memory_space<vmem>>, vector<8x128xf32>
    tpu.vector_store %arg6[%c0_165, %c0_166], %568 {strides = array<i32>} : memref<8x128xf32, #tpu.memory_space<vmem>>, vector<8x128xf32>,
    %c0_167 = arith.constant 0 : index
    %c0_168 = arith.constant 0 : index
    %612 = vector.load %arg7[%c0_167, %c0_168] : memref<8x128xf32, #tpu.memory_space<vmem>>, vector<8x128xf32>
    tpu.vector_store %arg7[%c0_167, %c0_168], %566 {strides = array<i32>} : memref<8x128xf32, #tpu.memory_space<vmem>>, vector<8x128xf32>,
    %c0_169 = arith.constant 0 : index
    %c0_170 = arith.constant 0 : index
    %613 = vector.load %arg8[%c0_169, %c0_170] : memref<8x128xf32, #tpu.memory_space<vmem>>, vector<8x128xf32>
    tpu.vector_store %arg8[%c0_169, %c0_170], %600 {strides = array<i32>} : memref<8x128xf32, #tpu.memory_space<vmem>>, vector<8x128xf32>,
    %c0_171 = arith.constant 0 : index
    %c0_172 = arith.constant 0 : index
    %614 = vector.load %arg9[%c0_171, %c0_172] : memref<8x128xf32, #tpu.memory_space<vmem>>, vector<8x128xf32>
    tpu.vector_store %arg9[%c0_171, %c0_172], %598 {strides = array<i32>} : memref<8x128xf32, #tpu.memory_space<vmem>>, vector<8x128xf32>,
    return
  }
  func.func @transform_0(%arg0: i32) -> (i32, i32, i32, i32) {
    %c0_i32 = arith.constant 0 : i32
    %c0_i32_0 = arith.constant 0 : i32
    %c0_i32_1 = arith.constant 0 : i32
    %c0_i32_2 = arith.constant 0 : i32
    return %c0_i32, %arg0, %c0_i32_0, %c0_i32_1 : i32, i32, i32, i32
  }
  func.func @transform_1(%arg0: i32) -> (i32, i32, i32, i32) {
    %c0_i32 = arith.constant 0 : i32
    %0 = arith.subi %c0_i32, %arg0 : i32
    %c1_i32 = arith.constant 1 : i32
    %c0_i32_0 = arith.constant 0 : i32
    %c0_i32_1 = arith.constant 0 : i32
    %c0_i32_2 = arith.constant 0 : i32
    return %c1_i32, %0, %c0_i32_0, %c0_i32_1 : i32, i32, i32, i32
  }
  func.func @transform_2(%arg0: i32) -> (i32, i32, i32) {
    %c0_i32 = arith.constant 0 : i32
    %c0_i32_0 = arith.constant 0 : i32
    %c0_i32_1 = arith.constant 0 : i32
    %c0_i32_2 = arith.constant 0 : i32
    return %c0_i32, %c0_i32_0, %c0_i32_1 : i32, i32, i32
  }
  func.func @transform_3(%arg0: i32) -> (i32, i32, i32) {
    %c0_i32 = arith.constant 0 : i32
    %c0_i32_0 = arith.constant 0 : i32
    %c0_i32_1 = arith.constant 0 : i32
    return %arg0, %c0_i32, %c0_i32_0 : i32, i32, i32
  }
  func.func @transform_4(%arg0: i32) -> (i32, i32, i32) {
    %c0_i32 = arith.constant 0 : i32
    %0 = arith.subi %c0_i32, %arg0 : i32
    %c0_i32_0 = arith.constant 0 : i32
    %c0_i32_1 = arith.constant 0 : i32
    %c0_i32_2 = arith.constant 0 : i32
    return %0, %c0_i32_0, %c0_i32_1 : i32, i32, i32
  }
}

</mosaic_0001>

<bundles_post_ra>
// kernel: rnn_forward.2
= control target key start
LH: loop header
LB: loop body
LE: loop exit
PB: predicated region body
PF: predicated region fallthrough
CT: control target
= control target key end

     0   :  { %10 = vsyncpa [#allocation7], 0  ;;  %s3285_s18 = smov [#allocation6]   ;;  %s3286_s20 = smov 256   ;;  %s4277_s0 = inlined_call_operand.vmem [shape: bf16[2,8,8,512], index: 0, kind: input, shape index: {}, may-alias: {0,1}]   ;;  %s4278_s1 = inlined_call_operand.vmem [shape: bf16[2,8,8,512], index: 1, kind: input, shape index: {}, may-alias: {0,1}]   ;;  %s4279_s2 = inlined_call_operand.hbm [shape: bf16[2,128,512], index: 2, kind: input, shape index: {}]   ;;  %s4280_s3 = inlined_call_operand.vmem [shape: bf16[8,8,128], index: 3, kind: output, shape index: {0}]   ;;  %s4281_s4 = inlined_call_operand.vmem [shape: bf16[8,8,128], index: 4, kind: output, shape index: {1}]  }
   0x1   :  { %s29_s17 = sshll.u32 %s4279_s2, 4  ;;  %s31_s19 = sshll.u32 %s3285_s18, 4  ;;  %s30_s17 = int_to_ptr.hbm [resolvable:$true] %s29_s17  ;;  %s32_s19 = int_to_ptr.vmem [resolvable:$true] %s31_s19 }
   0x2   :  { %s3287_s21 = smov 16  }
   0x3   :  { %37 = dma.hbm_to_vmem [thread:$0]  %s30_s17, 8192, %s32_s19, [#allocation7], %s3286_s20, %s3286_s20, %s3287_s21  }
   0x4   :  { %3283 = dma.done.wait [#allocation7], 8192  }
   0x5   :  { %3284 = vsyncadd [#allocation7], 4294959104  ;;  %v2701_v0 = vld [vmem:[#allocation6 + $0xe0] sm:$0xf]  ;;  %v2965_v1 = vld [vmem:[#allocation6 + $0xec] sm:$0xf0] }
   0x6   :  { %v2963_v2 = vld [vmem:[#allocation6 + $0xe4] sm:$0xf]  ;;  %v3317_v3 = vor.u32 %v2965_v1, %v2701_v0  ;;  %v2703_v4 = vld [vmem:[#allocation6 + $0xf0] sm:$0xf0]  ;;  %v2964_v5 = vld [vmem:[#allocation6 + $0xec] sm:$0xf] }
   0x7   :  { %v2711_v6 = vld [vmem:[#allocation6 + $0xf8] sm:$0xf0]  ;;  %v3319_v7 = vor.u32 %v2963_v2, %v2703_v4  ;;  %v2685_v9 = vld [vmem:[#allocation6 + $0xc0] sm:$0xf]  ;;  %v2961_v10 = vld [vmem:[#allocation6 + $0xcc] sm:$0xf0] }
   0x8   :  { %v3321_v8 = vor.u32 %v2964_v5, %v2711_v6  ;;  %v2959_v11 = vld [vmem:[#allocation6 + $0xc4] sm:$0xf]  ;;  %318 = vmatpush.bf16.msra.mxu0 %v3317_v3  ;;  %v3324_v12 = vor.u32 %v2961_v10, %v2685_v9  ;;  %v2687_v13 = vld [vmem:[#allocation6 + $0xd0] sm:$0xf0]  ;;  %v2960_v14 = vld [vmem:[#allocation6 + $0xcc] sm:$0xf] }
   0x9   :  { %v2695_v15 = vld [vmem:[#allocation6 + $0xd8] sm:$0xf0]  ;;  %331 = vmatpush.bf16.msra.mxu1 %v3319_v7  ;;  %v3328_v16 = vor.u32 %v2959_v11, %v2687_v13  ;;  %v2709_v18 = vld [vmem:[#allocation6 + $0xe8] sm:$0xf]  ;;  %v2966_v19 = vld [vmem:[#allocation6 + $0xf4] sm:$0xf0] }
   0xa   :  { %357 = vmatpush.bf16.msra.mxu3 %v3321_v8  ;;  %v3330_v17 = vor.u32 %v2960_v14, %v2695_v15  ;;  %v2669_v20 = vld [vmem:[#allocation6 + $0xa0] sm:$0xf]  ;;  %v3332_v21 = vor.u32 %v2966_v19, %v2709_v18  ;;  %v2957_v22 = vld [vmem:[#allocation6 + $0xac] sm:$0xf0]  ;;  %v2955_v23 = vld [vmem:[#allocation6 + $0xa4] sm:$0xf] }
   0xb   :  { %v2671_v24 = vld [vmem:[#allocation6 + $0xb0] sm:$0xf0]  ;;  %v2956_v25 = vld [vmem:[#allocation6 + $0xac] sm:$0xf]  ;;  %v2679_v26 = vld [vmem:[#allocation6 + $0xb8] sm:$0xf0]  ;;  %v3336_v28 = vor.u32 %v2957_v22, %v2669_v20 }
   0xc   :  { %v2693_v27 = vld [vmem:[#allocation6 + $0xc8] sm:$0xf]  ;;  %319 = vmatpush.bf16.msra.mxu0 %v3324_v12  ;;  %344 = vmatpush.bf16.msra.mxu2 %v3332_v21  ;;  %v2962_v29 = vld [vmem:[#allocation6 + $0xd4] sm:$0xf0]  ;;  %v2653_v30 = vld [vmem:[#allocation6 + $0x80] sm:$0xf]  ;;  %v3340_v32 = vor.u32 %v2955_v23, %v2671_v24  ;;  %v3342_v33 = vor.u32 %v2956_v25, %v2679_v26 }
   0xd   :  { %v2953_v31 = vld [vmem:[#allocation6 + $0x8c] sm:$0xf0]  ;;  %332 = vmatpush.bf16.msra.mxu1 %v3328_v16  ;;  %v3344_v34 = vor.u32 %v2962_v29, %v2693_v27  ;;  %v2951_v35 = vld [vmem:[#allocation6 + $0x84] sm:$0xf]  ;;  %v2655_v36 = vld [vmem:[#allocation6 + $0x90] sm:$0xf0] }
   0xe   :  { %358 = vmatpush.bf16.msra.mxu3 %v3330_v17  ;;  %v2952_v37 = vld [vmem:[#allocation6 + $0x8c] sm:$0xf]  ;;  %v2663_v38 = vld [vmem:[#allocation6 + $0x98] sm:$0xf0]  ;;  %v2677_v39 = vld [vmem:[#allocation6 + $0xa8] sm:$0xf]  ;;  %v3348_v41 = vor.u32 %v2953_v31, %v2653_v30  ;;  %v3354_v45 = vor.u32 %v2951_v35, %v2655_v36 }
   0xf   :  { %v2958_v40 = vld [vmem:[#allocation6 + $0xb4] sm:$0xf0]  ;;  %v2637_v43 = vld [vmem:[#allocation6 + $0x60] sm:$0xf]  ;;  %v2949_v44 = vld [vmem:[#allocation6 + $0x6c] sm:$0xf0]  ;;  %v3356_v46 = vor.u32 %v2952_v37, %v2663_v38 }
  0x10   :  { %320 = vmatpush.bf16.msra.mxu0 %v3336_v28  ;;  %345 = vmatpush.bf16.msra.mxu2 %v3344_v34  ;;  %v3350_v42 = vor.u32 %v2958_v40, %v2677_v39  ;;  %v2947_v47 = vld [vmem:[#allocation6 + $0x64] sm:$0xf]  ;;  %v2661_v48 = vld [vmem:[#allocation6 + $0x88] sm:$0xf]  ;;  %v2954_v49 = vld [vmem:[#allocation6 + $0x94] sm:$0xf0]  ;;  %v3360_v53 = vor.u32 %v2949_v44, %v2637_v43 }
  0x11   :  { %333 = vmatpush.bf16.msra.mxu1 %v3340_v32  ;;  %v2639_v50 = vld [vmem:[#allocation6 + $0x70] sm:$0xf0]  ;;  %v2948_v51 = vld [vmem:[#allocation6 + $0x6c] sm:$0xf]  ;;  %v2647_v52 = vld [vmem:[#allocation6 + $0x78] sm:$0xf0]  ;;  %v3362_v54 = vor.u32 %v2954_v49, %v2661_v48 }
  0x12   :  { %359 = vmatpush.bf16.msra.mxu3 %v3342_v33  ;;  %v2621_v55 = vld [vmem:[#allocation6 + $0x40] sm:$0xf]  ;;  %v2945_v56 = vld [vmem:[#allocation6 + $0x4c] sm:$0xf0]  ;;  %v3366_v57 = vor.u32 %v2947_v47, %v2639_v50  ;;  %v3368_v58 = vor.u32 %v2948_v51, %v2647_v52  ;;  %v2943_v59 = vld [vmem:[#allocation6 + $0x44] sm:$0xf] }
  0x13   :  { %v2645_v60 = vld [vmem:[#allocation6 + $0x68] sm:$0xf]  ;;  %v2950_v61 = vld [vmem:[#allocation6 + $0x74] sm:$0xf0]  ;;  %v2623_v62 = vld [vmem:[#allocation6 + $0x50] sm:$0xf0]  ;;  %v3372_v1 = vor.u32 %v2945_v56, %v2621_v55 }
  0x14   :  { %321 = vmatpush.bf16.msra.mxu0 %v3348_v41  ;;  %346 = vmatpush.bf16.msra.mxu2 %v3350_v42  ;;  %v2944_v63 = vld [vmem:[#allocation6 + $0x4c] sm:$0xf]  ;;  %v2631_v0 = vld [vmem:[#allocation6 + $0x58] sm:$0xf0]  ;;  %v3374_v2 = vor.u32 %v2950_v61, %v2645_v60  ;;  %v2605_v4 = vld [vmem:[#allocation6 + $0x20] sm:$0xf]  ;;  %v3378_v6 = vor.u32 %v2943_v59, %v2623_v62 }
  0x15   :  { %334 = vmatpush.bf16.msra.mxu1 %v3354_v45  ;;  %v2941_v5 = vld [vmem:[#allocation6 + $0x2c] sm:$0xf0]  ;;  %v3380_v9 = vor.u32 %v2944_v63, %v2631_v0  ;;  %v2939_v10 = vld [vmem:[#allocation6 + $0x24] sm:$0xf]  ;;  %v2629_v11 = vld [vmem:[#allocation6 + $0x48] sm:$0xf] }
  0x16   :  { %360 = vmatpush.bf16.msra.mxu3 %v3356_v46  ;;  %v2946_v13 = vld [vmem:[#allocation6 + $0x54] sm:$0xf0]  ;;  %v2607_v14 = vld [vmem:[#allocation6 + $0x30] sm:$0xf0]  ;;  %v2940_v15 = vld [vmem:[#allocation6 + $0x2c] sm:$0xf]  ;;  %v3384_v19 = vor.u32 %v2941_v5, %v2605_v4 }
  0x17   :  { %v2615_v18 = vld [vmem:[#allocation6 + $0x38] sm:$0xf0]  ;;  %v3386_v20 = vor.u32 %v2946_v13, %v2629_v11  ;;  %v2589_v22 = vld [vmem:[#allocation6] sm:$0xf]  ;;  %v2937_v23 = vld [vmem:[#allocation6 + $0xc] sm:$0xf0]  ;;  %v3390_v25 = vor.u32 %v2939_v10, %v2607_v14 }
  0x18   :  { %322 = vmatpush.bf16.msra.mxu0 %v3360_v53  ;;  %347 = vmatpush.bf16.msra.mxu2 %v3362_v54  ;;  %v2935_v24 = vld [vmem:[#allocation6 + $0x4] sm:$0xf]  ;;  %v3392_v26 = vor.u32 %v2940_v15, %v2615_v18  ;;  %v2591_v27 = vld [vmem:[#allocation6 + $0x10] sm:$0xf0]  ;;  %v2613_v29 = vld [vmem:[#allocation6 + $0x28] sm:$0xf]  ;;  %v3396_v40 = vor.u32 %v2937_v23, %v2589_v22 }
  0x19   :  { %335 = vmatpush.bf16.msra.mxu1 %v3366_v57  ;;  %v2942_v30 = vld [vmem:[#allocation6 + $0x34] sm:$0xf0]  ;;  %v2936_v31 = vld [vmem:[#allocation6 + $0xc] sm:$0xf]  ;;  %v2599_v35 = vld [vmem:[#allocation6 + $0x18] sm:$0xf0]  ;;  %v3402_v48 = vor.u32 %v2935_v24, %v2591_v27 }
  0x1a   :  { %361 = vmatpush.bf16.msra.mxu3 %v3368_v58  ;;  %v2834_v36 = vld [vmem:[#allocation6 + $0x1e0] sm:$0xf]  ;;  %v2997_v37 = vld [vmem:[#allocation6 + $0x1ec] sm:$0xf0]  ;;  %v2995_v38 = vld [vmem:[#allocation6 + $0x1e4] sm:$0xf]  ;;  %v3398_v47 = vor.u32 %v2942_v30, %v2613_v29  ;;  %v3404_v49 = vor.u32 %v2936_v31, %v2599_v35 }
  0x1b   :  { %v2836_v39 = vld [vmem:[#allocation6 + $0x1f0] sm:$0xf0]  ;;  %v2996_v43 = vld [vmem:[#allocation6 + $0x1ec] sm:$0xf]  ;;  %v2844_v44 = vld [vmem:[#allocation6 + $0x1f8] sm:$0xf0]  ;;  %v3406_v52 = vor.u32 %v2997_v37, %v2834_v36 }
  0x1c   :  { %323 = vmatpush.bf16.msra.mxu0 %v3372_v1  ;;  %348 = vmatpush.bf16.msra.mxu2 %v3374_v2  ;;  %v2597_v50 = vld [vmem:[#allocation6 + $0x8] sm:$0xf]  ;;  %v2938_v51 = vld [vmem:[#allocation6 + $0x14] sm:$0xf0]  ;;  %v3408_v55 = vor.u32 %v2995_v38, %v2836_v39  ;;  %v2818_v56 = vld [vmem:[#allocation6 + $0x1c0] sm:$0xf]  ;;  %v3410_v61 = vor.u32 %v2996_v43, %v2844_v44 }
  0x1d   :  { %336 = vmatpush.bf16.msra.mxu1 %v3378_v6  ;;  %v2842_v59 = vld [vmem:[#allocation6 + $0x1e8] sm:$0xf]  ;;  %v2998_v60 = vld [vmem:[#allocation6 + $0x1f4] sm:$0xf0]  ;;  %v2993_v62 = vld [vmem:[#allocation6 + $0x1cc] sm:$0xf0]  ;;  %v3414_v10 = vor.u32 %v2938_v51, %v2597_v50 }
  0x1e   :  { %362 = vmatpush.bf16.msra.mxu3 %v3380_v9  ;;  %4344 = vst [vmem:[#allocation9_spill] sm:$0xff] %v3410_v61  ;;  %v2991_v63 = vld [vmem:[#allocation6 + $0x1c4] sm:$0xf]  ;;  %v2820_v0 = vld [vmem:[#allocation6 + $0x1d0] sm:$0xf0]  ;;  %v3418_v11 = vor.u32 %v2998_v60, %v2842_v59  ;;  %v3422_v13 = vor.u32 %v2993_v62, %v2818_v56  ;;  %v4282_v23 = vmov 0.0|0.0  }
  0x1f   :  { %v2992_v4 = vld [vmem:[#allocation6 + $0x1cc] sm:$0xf]  ;;  %v2828_v5 = vld [vmem:[#allocation6 + $0x1d8] sm:$0xf0]  ;;  %v3424_v14 = vor.u32 %v2991_v63, %v2820_v0  ;;  %v2802_v15 = vld [vmem:[#allocation6 + $0x1a0] sm:$0xf] }
  0x20   :  { %324 = vmatpush.bf16.msra.mxu0 %v3384_v19  ;;  %349 = vmatpush.bf16.msra.mxu2 %v3386_v20  ;;  %4345 = vst [vmem:[#allocation10_spill] sm:$0xff] %v3418_v11  ;;  %v2826_v18 = vld [vmem:[#allocation6 + $0x1c8] sm:$0xf]  ;;  %v2994_v22 = vld [vmem:[#allocation6 + $0x1d4] sm:$0xf0]  ;;  %v3428_v24 = vor.u32 %v2992_v4, %v2828_v5 }
  0x21   :  { %337 = vmatpush.bf16.msra.mxu1 %v3390_v25  ;;  %4346 = vst [vmem:[#allocation11_spill] sm:$0xff] %v3422_v13  ;;  %v2989_v27 = vld [vmem:[#allocation6 + $0x1ac] sm:$0xf0]  ;;  %v2987_v29 = vld [vmem:[#allocation6 + $0x1a4] sm:$0xf]  ;;  %v3434_v36 = vor.u32 %v2994_v22, %v2826_v18 }
  0x22   :  { %363 = vmatpush.bf16.msra.mxu3 %v3392_v26  ;;  %4347 = vst [vmem:[#allocation12_spill] sm:$0xff] %v3424_v14  ;;  %v2804_v30 = vld [vmem:[#allocation6 + $0x1b0] sm:$0xf0]  ;;  %v2988_v31 = vld [vmem:[#allocation6 + $0x1ac] sm:$0xf]  ;;  %v3438_v37 = vor.u32 %v2989_v27, %v2802_v15 }
  0x23   :  { %4348 = vst [vmem:[#allocation13_spill] sm:$0xff] %v3428_v24  ;;  %v2812_v35 = vld [vmem:[#allocation6 + $0x1b8] sm:$0xf0]  ;;  %v3440_v38 = vor.u32 %v2987_v29, %v2804_v30  ;;  %v2786_v39 = vld [vmem:[#allocation6 + $0x180] sm:$0xf] }
  0x24   :  { %325 = vmatpush.bf16.msra.mxu0 %v3396_v40  ;;  %350 = vmatpush.bf16.msra.mxu2 %v3398_v47  ;;  %4349 = vst [vmem:[#allocation14_spill] sm:$0xff] %v3434_v36  ;;  %v2810_v43 = vld [vmem:[#allocation6 + $0x1a8] sm:$0xf]  ;;  %v2990_v44 = vld [vmem:[#allocation6 + $0x1b4] sm:$0xf0]  ;;  %v3443_v50 = vor.u32 %v2988_v31, %v2812_v35 }
  0x25   :  { %338 = vmatpush.bf16.msra.mxu1 %v3402_v48  ;;  %4350 = vst [vmem:[#allocation15_spill] sm:$0xff] %v3438_v37  ;;  %v2985_v51 = vld [vmem:[#allocation6 + $0x18c] sm:$0xf0]  ;;  %v2983_v56 = vld [vmem:[#allocation6 + $0x184] sm:$0xf]  ;;  %v3447_v63 = vor.u32 %v2990_v44, %v2810_v43 }
  0x26   :  { %364 = vmatpush.bf16.msra.mxu3 %v3404_v49  ;;  %4351 = vst [vmem:[#allocation16_spill] sm:$0xff] %v3440_v38  ;;  %v2788_v59 = vld [vmem:[#allocation6 + $0x190] sm:$0xf0]  ;;  %v2984_v60 = vld [vmem:[#allocation6 + $0x18c] sm:$0xf]  ;;  %v3451_v0 = vor.u32 %v2985_v51, %v2786_v39 }
  0x27   :  { %326 = vmatmul.bf16.vlgmr.msra.gmra.mxu0 %v4282_v23  ;;  %4352 = vst [vmem:[#allocation17_spill] sm:$0xff] %v3443_v50  ;;  %v2796_v62 = vld [vmem:[#allocation6 + $0x198] sm:$0xf0]  ;;  %v3453_v4 = vor.u32 %v2983_v56, %v2788_v59  ;;  %v2770_v5 = vld [vmem:[#allocation6 + $0x160] sm:$0xf] }
  0x28   :  { %605 = vmatpush.bf16.msrb.mxu0 %v3406_v52  ;;  %339 = vmatmul.bf16.vlgmr.msra.gmra.mxu1 %v4282_v23  ;;  %4353 = vst [vmem:[#allocation18_spill] sm:$0xff] %v3447_v63  ;;  %v2794_v15 = vld [vmem:[#allocation6 + $0x188] sm:$0xf]  ;;  %v2986_v18 = vld [vmem:[#allocation6 + $0x194] sm:$0xf0]  ;;  %v3456_v22 = vor.u32 %v2984_v60, %v2796_v62 }
  0x29   :  { %618 = vmatpush.bf16.msrb.mxu1 %v3408_v55  ;;  %351 = vmatpush.bf16.msra.mxu2 %v3414_v10  ;;  %4354 = vst [vmem:[#allocation19_spill] sm:$0xff] %v3451_v0  ;;  %v2981_v27 = vld [vmem:[#allocation6 + $0x16c] sm:$0xf0]  ;;  %v2979_v29 = vld [vmem:[#allocation6 + $0x164] sm:$0xf]  ;;  %v3459_v43 = vor.u32 %v2986_v18, %v2794_v15 }
  0x2a   :  { %644 = vmatpush.bf16.msrb.mxu3 %v3410_v61  ;;  %4355 = vst [vmem:[#allocation20_spill] sm:$0xff] %v3453_v4  ;;  %v2772_v30 = vld [vmem:[#allocation6 + $0x170] sm:$0xf0]  ;;  %v2980_v31 = vld [vmem:[#allocation6 + $0x16c] sm:$0xf]  ;;  %v3463_v39 = vor.u32 %v2981_v27, %v2770_v5 }
  0x2b   :  { %365 = vmatmul.bf16.vlgmr.msra.gmra.mxu3 %v4282_v23  ;;  %4356 = vst [vmem:[#allocation21_spill] sm:$0xff] %v3456_v22  ;;  %v2780_v35 = vld [vmem:[#allocation6 + $0x178] sm:$0xf0]  ;;  %v3465_v44 = vor.u32 %v2979_v29, %v2772_v30  ;;  %v2754_v51 = vld [vmem:[#allocation6 + $0x140] sm:$0xf] }
  0x2c   :  { %606 = vmatpush.bf16.msrb.mxu0 %v3422_v13  ;;  %352 = vmatmul.bf16.vlgmr.msra.gmra.mxu2 %v4282_v23  ;;  %4357 = vst [vmem:[#allocation22_spill] sm:$0xff] %v3459_v43  ;;  %v2778_v56 = vld [vmem:[#allocation6 + $0x168] sm:$0xf]  ;;  %v2982_v59 = vld [vmem:[#allocation6 + $0x174] sm:$0xf0]  ;;  %v3468_v60 = vor.u32 %v2980_v31, %v2780_v35 }
  0x2d   :  { %631 = vmatpush.bf16.msrb.mxu2 %v3418_v11  ;;  %619 = vmatpush.bf16.msrb.mxu1 %v3424_v14  ;;  %4358 = vst [vmem:[#allocation23_spill] sm:$0xff] %v3463_v39  ;;  %v2977_v62 = vld [vmem:[#allocation6 + $0x14c] sm:$0xf0]  ;;  %v2975_v23 = vld [vmem:[#allocation6 + $0x144] sm:$0xf] }
  0x2e   :  { %645 = vmatpush.bf16.msrb.mxu3 %v3428_v24  ;;  %4359 = vst [vmem:[#allocation24_spill] sm:$0xff] %v3465_v44  ;;  %v2976_v15 = vld [vmem:[#allocation6 + $0x14c] sm:$0xf]  ;;  %v2764_v18 = vld [vmem:[#allocation6 + $0x158] sm:$0xf0]  ;;  %v3475_v5 = vor.u32 %v2977_v62, %v2754_v51 }
  0x2f   :  { %4360 = vst [vmem:[#allocation25_spill] sm:$0xff] %v3468_v60  ;;  %v2738_v29 = vld [vmem:[#allocation6 + $0x120] sm:$0xf]  ;;  %v2762_v30 = vld [vmem:[#allocation6 + $0x148] sm:$0xf]  ;;  %v3480_v35 = vor.u32 %v2976_v15, %v2764_v18 }
  0x30   :  { %607 = vmatpush.bf16.msrb.mxu0 %v3438_v37  ;;  %4362 = vst [vmem:[#allocation27_spill] sm:$0xff] %v3475_v5  ;;  %v2978_v31 = vld [vmem:[#allocation6 + $0x154] sm:$0xf0]  ;;  %v2722_v51 = vld [vmem:[#allocation6 + $0x100] sm:$0xf] }
  0x31   :  { %632 = vmatpush.bf16.msrb.mxu2 %v3434_v36  ;;  %620 = vmatpush.bf16.msrb.mxu1 %v3440_v38  ;;  %4364 = vst [vmem:[#allocation29_spill] sm:$0xff] %v3480_v35  ;;  %v2746_v62 = vld [vmem:[#allocation6 + $0x128] sm:$0xf]  ;;  %v2974_v15 = vld [vmem:[#allocation6 + $0x134] sm:$0xf0] }
  0x32   :  { %646 = vmatpush.bf16.msrb.mxu3 %v3443_v50 }
  0x34   :  { %608 = vmatpush.bf16.msrb.mxu0 %v3451_v0  ;;  %v3471_v0 = vor.u32 %v2982_v59, %v2778_v56  ;;  %v2972_v56 = vld [vmem:[#allocation6 + $0x12c] sm:$0xf]  ;;  %v2748_v59 = vld [vmem:[#allocation6 + $0x138] sm:$0xf0] }
  0x35   :  { %633 = vmatpush.bf16.msrb.mxu2 %v3447_v63  ;;  %621 = vmatpush.bf16.msrb.mxu1 %v3453_v4  ;;  %v2756_v63 = vld [vmem:[#allocation6 + $0x150] sm:$0xf0]  ;;  %v2971_v4 = vld [vmem:[#allocation6 + $0x124] sm:$0xf]  ;;  %v3492_v18 = vor.u32 %v2972_v56, %v2748_v59  ;;  %v2970_v56 = vld [vmem:[#allocation6 + $0x114] sm:$0xf0] }
  0x36   :  { %647 = vmatpush.bf16.msrb.mxu3 %v3456_v22  ;;  %4361 = vst [vmem:[#allocation26_spill] sm:$0xff] %v3471_v0  ;;  %v3477_v27 = vor.u32 %v2975_v23, %v2756_v63  ;;  %v2973_v22 = vld [vmem:[#allocation6 + $0x12c] sm:$0xf0] }
  0x37   :  { %v3487_v23 = vor.u32 %v2973_v22, %v2738_v29  ;;  %4368 = vst [vmem:[#allocation33_spill] sm:$0xff] %v3492_v18  ;;  %v2730_v29 = vld [vmem:[#allocation6 + $0x108] sm:$0xf] }
  0x38   :  { %609 = vmatpush.bf16.msrb.mxu0 %v3463_v39  ;;  %4363 = vst [vmem:[#allocation28_spill] sm:$0xff] %v3477_v27  ;;  %v3483_v39 = vor.u32 %v2978_v31, %v2762_v30  ;;  %v2968_v30 = vld [vmem:[#allocation6 + $0x10c] sm:$0xf]  ;;  %v2732_v31 = vld [vmem:[#allocation6 + $0x118] sm:$0xf0]  ;;  %v3509_v59 = vor.u32 %v2970_v56, %v2730_v29  ;;  %v4382_v29 = vld [vmem:[#allocation25_spill] sm:$0xff] }
  0x39   :  { %634 = vmatpush.bf16.msrb.mxu2 %v3459_v43  ;;  %622 = vmatpush.bf16.msrb.mxu1 %v3465_v44  ;;  %v2740_v43 = vld [vmem:[#allocation6 + $0x130] sm:$0xf0]  ;;  %4366 = vst [vmem:[#allocation31_spill] sm:$0xff] %v3487_v23  ;;  %v2967_v44 = vld [vmem:[#allocation6 + $0x104] sm:$0xf] }
  0x3a   :  { %648 = vmatpush.bf16.msrb.mxu3 %v3468_v60  ;;  %4365 = vst [vmem:[#allocation30_spill] sm:$0xff] %v3483_v39  ;;  %v3489_v63 = vor.u32 %v2971_v4, %v2740_v43  ;;  %v2969_v60 = vld [vmem:[#allocation6 + $0x10c] sm:$0xf0]  ;;  %v3504_v43 = vor.u32 %v2968_v30, %v2732_v31  ;;  %v4381_v31 = vld [vmem:[#allocation24_spill] sm:$0xff] }
  0x3b   :  { %v3499_v4 = vor.u32 %v2969_v60, %v2722_v51  ;;  %4373 = vst [vmem:[#allocation38_spill] sm:$0xff] %v3509_v59  ;;  %v4376_v60 = vld [vmem:[#allocation19_spill] sm:$0xff]  ;;  %v4377_v51 = vld [vmem:[#allocation20_spill] sm:$0xff] }
  0x3c   :  { %610 = vmatpush.bf16.msrb.mxu0 %v3475_v5  ;;  %4367 = vst [vmem:[#allocation32_spill] sm:$0xff] %v3489_v63  ;;  %v3495_v5 = vor.u32 %v2974_v15, %v2746_v62  ;;  %v4378_v62 = vld [vmem:[#allocation21_spill] sm:$0xff]  ;;  %v4379_v15 = vld [vmem:[#allocation22_spill] sm:$0xff]  ;;  %v4380_v30 = vld [vmem:[#allocation23_spill] sm:$0xff] }
  0x3d   :  { %635 = vmatpush.bf16.msrb.mxu2 %v3471_v0  ;;  %623 = vmatpush.bf16.msrb.mxu1 %v3477_v27  ;;  %v2724_v0 = vld [vmem:[#allocation6 + $0x110] sm:$0xf0]  ;;  %4370 = vst [vmem:[#allocation35_spill] sm:$0xff] %v3499_v4  ;;  %v4383_v56 = vld [vmem:[#allocation26_spill] sm:$0xff] }
  0x3e   :  { %649 = vmatpush.bf16.msrb.mxu3 %v3480_v35  ;;  %4369 = vst [vmem:[#allocation34_spill] sm:$0xff] %v3495_v5  ;;  %v3501_v22 = vor.u32 %v2967_v44, %v2724_v0  ;;  %v4374_v0 = vmov 0.0|0.0   ;;  %v4375_v44 = vld [vmem:[#allocation18_spill] sm:$0xff] }
  0x3f   :  { %4372 = vst [vmem:[#allocation37_spill] sm:$0xff] %v3504_v43 }
  0x40   :  { %611 = vmatpush.bf16.msrb.mxu0 %v3487_v23  ;;  %4371 = vst [vmem:[#allocation36_spill] sm:$0xff] %v3501_v22 }
  0x41   :  { %636 = vmatpush.bf16.msrb.mxu2 %v3483_v39  ;;  %624 = vmatpush.bf16.msrb.mxu1 %v3489_v63 }
  0x42   :  { %650 = vmatpush.bf16.msrb.mxu3 %v3492_v18 }
  0x44   :  { %612 = vmatpush.bf16.msrb.mxu0 %v3499_v4 }
  0x45   :  { %637 = vmatpush.bf16.msrb.mxu2 %v3495_v5  ;;  %625 = vmatpush.bf16.msrb.mxu1 %v3501_v22 }
  0x46   :  { %651 = vmatpush.bf16.msrb.mxu3 %v3504_v43 }
  0x47   :  { %613 = vmatmul.bf16.vlgmr.msrb.gmra.mxu0 %v4374_v0 }
  0x48   :  { %736 = vmatpush.bf16.msra.mxu0 %v3317_v3  ;;  %626 = vmatmul.bf16.vlgmr.msrb.gmra.mxu1 %v4374_v0 }
  0x49   :  { %749 = vmatpush.bf16.msra.mxu1 %v3319_v7  ;;  %652 = vmatmul.bf16.vlgmr.msrb.gmra.mxu3 %v4374_v0 }
  0x4a   :  { %775 = vmatpush.bf16.msra.mxu3 %v3321_v8  ;;  %638 = vmatpush.bf16.msrb.mxu2 %v3509_v59 }
  0x4c   :  { %737 = vmatpush.bf16.msra.mxu0 %v3324_v12 }
  0x4d   :  { %750 = vmatpush.bf16.msra.mxu1 %v3328_v16  ;;  %639 = vmatmul.bf16.vlgmr.msrb.gmra.mxu2 %v4374_v0  ;;  %v4384_v0 = vld [vmem:[#allocation27_spill] sm:$0xff] }
  0x4e   :  { %762 = vmatpush.bf16.msra.mxu2 %v3332_v21  ;;  %776 = vmatpush.bf16.msra.mxu3 %v3330_v17 }
  0x50   :  { %738 = vmatpush.bf16.msra.mxu0 %v3336_v28 }
  0x51   :  { %751 = vmatpush.bf16.msra.mxu1 %v3340_v32 }
  0x52   :  { %763 = vmatpush.bf16.msra.mxu2 %v3344_v34  ;;  %777 = vmatpush.bf16.msra.mxu3 %v3342_v33 }
  0x54   :  { %739 = vmatpush.bf16.msra.mxu0 %v3348_v41 }
  0x55   :  { %752 = vmatpush.bf16.msra.mxu1 %v3354_v45 }
  0x56   :  { %764 = vmatpush.bf16.msra.mxu2 %v3350_v42  ;;  %778 = vmatpush.bf16.msra.mxu3 %v3356_v46 }
  0x58   :  { %740 = vmatpush.bf16.msra.mxu0 %v3360_v53 }
  0x59   :  { %753 = vmatpush.bf16.msra.mxu1 %v3366_v57 }
  0x5a   :  { %765 = vmatpush.bf16.msra.mxu2 %v3362_v54  ;;  %779 = vmatpush.bf16.msra.mxu3 %v3368_v58 }
  0x5c   :  { %741 = vmatpush.bf16.msra.mxu0 %v3372_v1 }
  0x5d   :  { %754 = vmatpush.bf16.msra.mxu1 %v3378_v6 }
  0x5e   :  { %766 = vmatpush.bf16.msra.mxu2 %v3374_v2  ;;  %780 = vmatpush.bf16.msra.mxu3 %v3380_v9 }
  0x60   :  { %742 = vmatpush.bf16.msra.mxu0 %v3384_v19 }
  0x61   :  { %755 = vmatpush.bf16.msra.mxu1 %v3390_v25 }
  0x62   :  { %767 = vmatpush.bf16.msra.mxu2 %v3386_v20  ;;  %781 = vmatpush.bf16.msra.mxu3 %v3392_v26 }
  0x64   :  { %743 = vmatpush.bf16.msra.mxu0 %v3396_v40 }
  0x65   :  { %756 = vmatpush.bf16.msra.mxu1 %v3402_v48 }
  0x66   :  { %768 = vmatpush.bf16.msra.mxu2 %v3398_v47  ;;  %782 = vmatpush.bf16.msra.mxu3 %v3404_v49 }
  0x68   :  { %862 = vmatpush.bf16.msrb.mxu0 %v3406_v52 }
  0x69   :  { %875 = vmatpush.bf16.msrb.mxu1 %v3408_v55 }
  0x6a   :  { %901 = vmatpush.bf16.msrb.mxu3 %v3410_v61  ;;  %769 = vmatpush.bf16.msra.mxu2 %v3414_v10 }
  0x6c   :  { %863 = vmatpush.bf16.msrb.mxu0 %v3422_v13 }
  0x6d   :  { %876 = vmatpush.bf16.msrb.mxu1 %v3424_v14 }
  0x6e   :  { %888 = vmatpush.bf16.msrb.mxu2 %v3418_v11  ;;  %902 = vmatpush.bf16.msrb.mxu3 %v3428_v24 }
  0x70   :  { %864 = vmatpush.bf16.msrb.mxu0 %v3438_v37 }
  0x71   :  { %877 = vmatpush.bf16.msrb.mxu1 %v3440_v38 }
  0x72   :  { %889 = vmatpush.bf16.msrb.mxu2 %v3434_v36  ;;  %903 = vmatpush.bf16.msrb.mxu3 %v3443_v50 }
  0x74   :  { %865 = vmatpush.bf16.msrb.mxu0 %v4376_v60 }
  0x75   :  { %878 = vmatpush.bf16.msrb.mxu1 %v4377_v51 }
  0x76   :  { %890 = vmatpush.bf16.msrb.mxu2 %v4375_v44  ;;  %904 = vmatpush.bf16.msrb.mxu3 %v4378_v62 }
  0x78   :  { %866 = vmatpush.bf16.msrb.mxu0 %v4380_v30 }
  0x79   :  { %879 = vmatpush.bf16.msrb.mxu1 %v4381_v31 }
  0x7a   :  { %891 = vmatpush.bf16.msrb.mxu2 %v4379_v15  ;;  %905 = vmatpush.bf16.msrb.mxu3 %v4382_v29 }
  0x7c   :  { %867 = vmatpush.bf16.msrb.mxu0 %v4384_v0 }
  0x7d   :  { %880 = vmatpush.bf16.msrb.mxu1 %v3477_v27 }
  0x7e   :  { %892 = vmatpush.bf16.msrb.mxu2 %v4383_v56  ;;  %906 = vmatpush.bf16.msrb.mxu3 %v3480_v35  ;;  %v151_v35 = vld [vmem:[%s4277_s0] sm:$0xff] }
  0x80   :  { %868 = vmatpush.bf16.msrb.mxu0 %v3487_v23  ;;  %v154_v23 = vunpack.c.h.bf16 %v151_v35 }
  0x81   :  { %881 = vmatpush.bf16.msrb.mxu1 %v3489_v63 }
  0x82   :  { %893 = vmatpush.bf16.msrb.mxu2 %v3483_v39  ;;  %907 = vmatpush.bf16.msrb.mxu3 %v3492_v18  ;;  %v153_v39 = vunpack.c.l.bf16 %v151_v35 }
  0x84   :  { %869 = vmatpush.bf16.msrb.mxu0 %v3499_v4  ;;  %v152_v4 = vld [vmem:[%s4277_s0 + $0x8] sm:$0xff] }
  0x85   :  { %882 = vmatpush.bf16.msrb.mxu1 %v3501_v22 }
  0x86   :  { %894 = vmatpush.bf16.msrb.mxu2 %v3495_v5  ;;  %908 = vmatpush.bf16.msrb.mxu3 %v3504_v43  ;;  %v156_v43 = vunpack.c.h.bf16 %v152_v4 }
  0x8a   :  { %895 = vmatpush.bf16.msrb.mxu2 %v3509_v59 }
  0xa4   :  { %v327_v27 = vpop.f32.mrf.mxu0 }
  0xa5   :  { %v370_v63 = vadd.f32 %v327_v27, %v153_v39  ;;  %v340_v0 = vpop.f32.mrf.mxu1 }
  0xa6   :  { %v371_v18 = vadd.f32 %v340_v0, %v154_v23  ;;  %v155_v23 = vunpack.c.l.bf16 %v152_v4 }
  0xa7   :  { %v2715_v5 = vmul.f32 -1.442695, %v370_v63 }
  0xa8   :  { %v2716_v22 = vmul.f32 -1.442695, %v371_v18 }
  0xa9   :  { %3003 = vpow2.f32 %v2715_v5 }
  0xaa   :  { %3005 = vpow2.f32 %v2716_v22 }
  0xac   :  { %v329_v29 = vpop.f32.mrf.mxu0 }
  0xad   :  { %v342_v31 = vpop.f32.mrf.mxu1 }
  0xae   :  { %v366_v59 = vpop.f32.mrf.mxu3 }
  0xaf   :  { %v373_v56 = vadd.f32 %v366_v59, %v156_v43  ;;  %v353_v30 = vpop.f32.mrf.mxu2  ;;  %v3004_v62 = vpop.eup %3003 }
  0xb0   :  { %v3006_v15 = vpop.eup %3005  ;;  %v377_v39 = vadd.f32 1.0, %v3004_v62  ;;  %v372_v63 = vadd.f32 %v353_v30, %v155_v23  ;;  %v2718_v30 = vld [vmem:[%s4278_s1 + $0xf0] sm:$0xff] }
  0xb1   :  { %v2717_v35 = vmul.f32 -1.442695, %v373_v56  ;;  %v396_v27 = vadd.f32 1.0, %v3006_v15  ;;  %v441_v44 = vunpack.c.h.bf16 %v2718_v30 }
  0xb2   :  { %vm383_vm0 = vweird.f32 %v377_v39  ;;  %v389_v59 = vand.u32 2147483648, %v377_v39  ;;  %v387_v15 = vand.u32 2147483647, %v377_v39 }
  0xb3   :  { %3007 = vpow2.f32 %v2717_v35  ;;  %v408_v62 = vand.u32 2147483648, %v396_v27  ;;  %vm402_vm2 = vweird.f32 %v396_v27  ;;  %v406_v56 = vand.u32 2147483647, %v396_v27 }
  0xb4   :  { %3009 = vrcp.f32 %v377_v39  ;;  %vm388_vm5 = vcmp.eq.f32.partialorder %v387_v15, 8.507059e+37 }
  0xb5   :  { %3011 = vrcp.f32 %v396_v27  ;;  %vm407_vm7 = vcmp.eq.f32.partialorder %v406_v56, 8.507059e+37  ;;  %v2719_v56 = vld [vmem:[%s4278_s1 + $0xf8] sm:$0xff] }
  0xb6   :  { %v368_v0 = vpop.f32.mrf.mxu3  ;;  %3013 = vtanh.f32 %v372_v63  ;;  %v390_v63 = vor.u32 1.1754944e-38, %v389_v59 }
  0xb7   :  { %v355_v18 = vpop.f32.mrf.mxu2 }
  0xb9   :  { %v3008_v5 = vpop.eup %3007 }
  0xba   :  { %v3010_v51 = vpop.eup %3009  ;;  %v416_v22 = vadd.f32 1.0, %v3008_v5  ;;  %v409_v5 = vor.u32 1.1754944e-38, %v408_v62 }
  0xbb   :  { %v3012_v60 = vpop.eup %3011  ;;  %v379_v29 = vmul.f32 %v3010_v51, %v377_v39  ;;  %vm384_vm1 = vweird.f32 %v3010_v51 }
  0xbc   :  { %v398_v43 = vmul.f32 %v3012_v60, %v396_v27  ;;  %3015 = vrcp.f32 %v416_v22  ;;  %vm403_vm3 = vweird.f32 %v3012_v60  ;;  %vm3590_vm4 = vmor %vm383_vm0, %vm384_vm1  ;;  %v3014_v18 = vpop.eup %3013  ;;  %v440_v27 = vunpack.c.l.bf16 %v2718_v30 }
  0xbd   :  { %v380_v31 = vsub.f32 1.0, %v379_v29  ;;  %vm3594_vm6 = vmor %vm402_vm2, %vm403_vm3  ;;  %vm422_vm8 = vweird.f32 %v416_v22  ;;  %v428_v30 = vand.u32 2147483648, %v416_v22 }
  0xbe   :  { %v399_v4 = vsub.f32 1.0, %v398_v43 }
  0xbf   :  { %v381_v35 = vmul.f32 %v3010_v51, %v380_v31  ;;  %v429_v39 = vor.u32 1.1754944e-38, %v428_v30  ;;  %v442_v30 = vunpack.c.l.bf16 %v2719_v56 }
  0xc0   :  { %v400_v23 = vmul.f32 %v3012_v60, %v399_v4 }
  0xc1   :  { %v382_v29 = vadd.f32 %v3010_v51, %v381_v35 }
  0xc2   :  { %v3016_v43 = vpop.eup %3015  ;;  %v401_v50 = vadd.f32 %v3012_v60, %v400_v23 }
  0xc3   :  { %v418_v31 = vmul.f32 %v3016_v43, %v416_v22  ;;  %v386_v4 = vsel %vm3590_vm4, %v3010_v51, %v382_v29  ;;  %vm423_vm9 = vweird.f32 %v3016_v43  ;;  %v426_v29 = vand.u32 2147483647, %v416_v22 }
  0xc4   :  { %v391_v59 = vsel %vm388_vm5, %v390_v63, %v386_v4  ;;  %v405_v62 = vsel %vm3594_vm6, %v3012_v60, %v401_v50  ;;  %v614_v15 = vpop.f32.mrf.mxu0  ;;  %vm3607_vm10 = vmor %vm422_vm8, %vm423_vm9 }
  0xc5   :  { %v627_v35 = vpop.f32.mrf.mxu1  ;;  %v419_v38 = vsub.f32 1.0, %v418_v31  ;;  %v410_v37 = vsel %vm407_vm7, %v409_v5, %v405_v62  ;;  %v433_v24 = vmul.f32 %v3014_v18, %v391_v59  ;;  %v657_v36 = vadd.f32 %v614_v15, %v440_v27 }
  0xc6   :  { %v432_v23 = vmul.f32 0.0, %v410_v37  ;;  %v658_v0 = vadd.f32 %v627_v35, %v441_v44  ;;  %v443_v18 = vunpack.c.h.bf16 %v2719_v56  ;;  %vm427_vm11 = vcmp.eq.f32.partialorder %v426_v29, 8.507059e+37 }
  0xc7   :  { %v420_v51 = vmul.f32 %v3016_v43, %v419_v38  ;;  %v2848_v14 = vmul.f32 -1.442695, %v657_v36 }
  0xc8   :  { %v3611_v60 = vadd.f32 %v433_v24, %v432_v23  ;;  %v2849_v63 = vmul.f32 -1.442695, %v658_v0 }
  0xc9   :  { %3017 = vpow2.f32 %v2848_v14  ;;  %v421_v5 = vadd.f32 %v3016_v43, %v420_v51 }
  0xca   :  { %3019 = vtanh.f32 %v3611_v60 }
  0xcb   :  { %3021 = vpow2.f32 %v2849_v63  ;;  %v425_v36 = vsel %vm3607_vm10, %v3016_v43, %v421_v5 }
  0xcc   :  { %v653_v37 = vpop.f32.mrf.mxu3  ;;  %v616_v44 = vpop.f32.mrf.mxu0  ;;  %v430_v24 = vsel %vm427_vm11, %v429_v39, %v425_v36 }
  0xcd   :  { %v660_v38 = vadd.f32 %v653_v37, %v443_v18  ;;  %v629_v22 = vpop.f32.mrf.mxu1 }
  0xcf   :  { %v2850_v27 = vmul.f32 -1.442695, %v660_v38  ;;  %v3018_v4 = vpop.eup %3017 }
  0xd0   :  { %v640_v31 = vpop.f32.mrf.mxu2  ;;  %v3020_v59 = vpop.eup %3019  ;;  %v664_v62 = vadd.f32 1.0, %v3018_v4 }
  0xd1   :  { %3023 = vpow2.f32 %v2850_v27  ;;  %v3022_v14 = vpop.eup %3021  ;;  %v436_v15 = vmul.f32 %v3020_v59, %v430_v24  ;;  %v659_v51 = vadd.f32 %v640_v31, %v442_v30 }
  0xd2   :  { %3025 = vrcp.f32 %v664_v62  ;;  %v683_v35 = vadd.f32 1.0, %v3022_v14  ;;  %v676_v37 = vand.u32 2147483648, %v664_v62  ;;  %v674_v44 = vand.u32 2147483647, %v664_v62 }
  0xd3   :  { %v724_v0 = vpack.c.bf16 %v436_v15, %v436_v15  ;;  %vm670_vm13 = vweird.f32 %v664_v62 }
  0xd4   :  { %v655_v23 = vpop.f32.mrf.mxu3  ;;  %3027 = vrcp.f32 %v683_v35  ;;  %v695_v22 = vand.u32 2147483648, %v683_v35  ;;  %v693_v4 = vand.u32 2147483647, %v683_v35  ;;  %v677_v15 = vor.u32 1.1754944e-38, %v676_v37 }
  0xd5   :  { %725 = vst [vmem:[%s4280_s3] sm:$0xf] %v724_v0  ;;  %744 = vmatmul.bf16.vlgmr.msra.gmra.mxu0 %v724_v0  ;;  %757 = vmatmul.bf16.vlgmr.msra.gmra.mxu1 %v724_v0  ;;  %vm689_vm0 = vweird.f32 %v683_v35  ;;  %vm675_vm1 = vcmp.eq.f32.partialorder %v674_v44, 8.507059e+37 }
  0xd6   :  { %770 = vmatmul.bf16.vlgmr.msra.gmra.mxu2 %v724_v0  ;;  %783 = vmatmul.bf16.vlgmr.msra.gmra.mxu3 %v724_v0  ;;  %v696_v23 = vor.u32 1.1754944e-38, %v695_v22  ;;  %vm694_vm3 = vcmp.eq.f32.partialorder %v693_v4, 8.507059e+37  ;;  %v4393_v4 = vld [vmem:[#allocation13_spill] sm:$0xff] }
  0xd7   :  { %v3024_v43 = vpop.eup %3023  ;;  %994 = vmatpush.bf16.msra.mxu0 %v3317_v3  ;;  %1007 = vmatpush.bf16.msra.mxu1 %v3319_v7 }
  0xd8   :  { %v642_v29 = vpop.f32.mrf.mxu2  ;;  %v3619_v50 = vadd.f32 1.0, %v3024_v43  ;;  %v3026_v56 = vpop.eup %3025  ;;  %1020 = vmatpush.bf16.msra.mxu2 %v3332_v21  ;;  %1033 = vmatpush.bf16.msra.mxu3 %v3321_v8 }
  0xd9   :  { %v666_v63 = vmul.f32 %v3026_v56, %v664_v62  ;;  %vm671_vm12 = vweird.f32 %v3026_v56 }
  0xda   :  { %3029 = vrcp.f32 %v3619_v50  ;;  %v3028_v18 = vpop.eup %3027  ;;  %vm672_vm15 = vmor %vm670_vm13, %vm671_vm12  ;;  %vm709_vm5 = vweird.f32 %v3619_v50  ;;  %v713_v37 = vand.u32 2147483647, %v3619_v50 }
  0xdb   :  { %3031 = vtanh.f32 %v659_v51  ;;  %v667_v5 = vsub.f32 1.0, %v666_v63  ;;  %v685_v39 = vmul.f32 %v3028_v18, %v683_v35  ;;  %995 = vmatpush.bf16.msra.mxu0 %v3324_v12  ;;  %1008 = vmatpush.bf16.msra.mxu1 %v3328_v16  ;;  %vm690_vm14 = vweird.f32 %v3028_v18 }
  0xdc   :  { %1021 = vmatpush.bf16.msra.mxu2 %v3344_v34  ;;  %1034 = vmatpush.bf16.msra.mxu3 %v3330_v17  ;;  %vm691_vm2 = vmor %vm689_vm0, %vm690_vm14  ;;  %vm714_vm7 = vcmp.eq.f32.partialorder %v713_v37, 8.507059e+37  ;;  %v4409_v37 = vld [vmem:[#allocation29_spill] sm:$0xff] }
  0xdd   :  { %v686_v36 = vsub.f32 1.0, %v685_v39  ;;  %v668_v38 = vmul.f32 %v3026_v56, %v667_v5  ;;  %v715_v39 = vand.u32 2147483648, %v3619_v50 }
  0xdf   :  { %v687_v31 = vmul.f32 %v3028_v18, %v686_v36  ;;  %v669_v24 = vadd.f32 %v3026_v56, %v668_v38  ;;  %996 = vmatpush.bf16.msra.mxu0 %v3336_v28  ;;  %1009 = vmatpush.bf16.msra.mxu1 %v3340_v32  ;;  %v716_v38 = vor.u32 1.1754944e-38, %v715_v39  ;;  %v4408_v39 = vld [vmem:[#allocation30_spill] sm:$0xff] }
  0xe0   :  { %v3030_v27 = vpop.eup %3029  ;;  %1022 = vmatpush.bf16.msra.mxu2 %v3350_v42  ;;  %1035 = vmatpush.bf16.msra.mxu3 %v3342_v33 }
  0xe1   :  { %v3032_v59 = vpop.eup %3031  ;;  %v705_v14 = vmul.f32 %v3030_v27, %v3619_v50  ;;  %v673_v62 = vsel %vm672_vm15, %v3026_v56, %v669_v24  ;;  %v688_v30 = vadd.f32 %v3028_v18, %v687_v31  ;;  %vm710_vm4 = vweird.f32 %v3030_v27  ;;  %v4392_v24 = vld [vmem:[#allocation14_spill] sm:$0xff] }
  0xe2   :  { %v678_v43 = vsel %vm675_vm1, %v677_v15, %v673_v62  ;;  %vm711_vm6 = vmor %vm709_vm5, %vm710_vm4  ;;  %v4396_v15 = vld [vmem:[#allocation18_spill] sm:$0xff]  ;;  %v4397_v62 = vld [vmem:[#allocation17_spill] sm:$0xff] }
  0xe3   :  { %v706_v0 = vsub.f32 1.0, %v705_v14  ;;  %v692_v51 = vsel %vm691_vm2, %v3028_v18, %v688_v30  ;;  %v720_v29 = vmul.f32 %v3032_v59, %v678_v43  ;;  %997 = vmatpush.bf16.msra.mxu0 %v3348_v41  ;;  %1010 = vmatpush.bf16.msra.mxu1 %v3354_v45  ;;  %v4394_v59 = vld [vmem:[#allocation15_spill] sm:$0xff]  ;;  %v4395_v14 = vld [vmem:[#allocation16_spill] sm:$0xff]  ;;  %v4401_v43 = vld [vmem:[#allocation21_spill] sm:$0xff] }
  0xe4   :  { %v697_v5 = vsel %vm694_vm3, %v696_v23, %v692_v51  ;;  %1023 = vmatpush.bf16.msra.mxu2 %v3362_v54  ;;  %1036 = vmatpush.bf16.msra.mxu3 %v3356_v46  ;;  %v4398_v30 = vld [vmem:[#allocation19_spill] sm:$0xff]  ;;  %v4399_v23 = vld [vmem:[#allocation20_spill] sm:$0xff] }
  0xe5   :  { %v707_v63 = vmul.f32 %v3030_v27, %v706_v0  ;;  %v719_v35 = vmul.f32 0.0, %v697_v5  ;;  %v4400_v0 = vld [vmem:[#allocation22_spill] sm:$0xff]  ;;  %v4402_v51 = vld [vmem:[#allocation23_spill] sm:$0xff]  ;;  %v4405_v5 = vld [vmem:[#allocation25_spill] sm:$0xff] }
  0xe7   :  { %v3640_v56 = vadd.f32 %v720_v29, %v719_v35  ;;  %998 = vmatpush.bf16.msra.mxu0 %v3360_v53  ;;  %1011 = vmatpush.bf16.msra.mxu1 %v3366_v57  ;;  %v708_v18 = vadd.f32 %v3030_v27, %v707_v63  ;;  %v4403_v29 = vld [vmem:[#allocation24_spill] sm:$0xff]  ;;  %v4404_v63 = vld [vmem:[#allocation26_spill] sm:$0xff]  ;;  %v4406_v35 = vld [vmem:[#allocation27_spill] sm:$0xff] }
  0xe8   :  { %1024 = vmatpush.bf16.msra.mxu2 %v3374_v2  ;;  %1037 = vmatpush.bf16.msra.mxu3 %v3368_v58 }
  0xe9   :  { %3033 = vtanh.f32 %v3640_v56  ;;  %v712_v36 = vsel %vm711_vm6, %v3030_v27, %v708_v18  ;;  %v4391_v27 = vld [vmem:[#allocation12_spill] sm:$0xff] }
  0xea   :  { %v717_v22 = vsel %vm714_vm7, %v716_v38, %v712_v36  ;;  %v4407_v18 = vld [vmem:[#allocation28_spill] sm:$0xff]  ;;  %v4410_v36 = vld [vmem:[#allocation31_spill] sm:$0xff] }
  0xeb   :  { %999 = vmatpush.bf16.msra.mxu0 %v3372_v1  ;;  %1012 = vmatpush.bf16.msra.mxu1 %v3378_v6  ;;  %v4411_v38 = vld [vmem:[#allocation32_spill] sm:$0xff] }
  0xec   :  { %1025 = vmatpush.bf16.msra.mxu2 %v3386_v20  ;;  %1038 = vmatpush.bf16.msra.mxu3 %v3380_v9 }
  0xef   :  { %v3034_v44 = vpop.eup %3033  ;;  %1000 = vmatpush.bf16.msra.mxu0 %v3384_v19  ;;  %1013 = vmatpush.bf16.msra.mxu1 %v3390_v25 }
  0xf0   :  { %v723_v31 = vmul.f32 %v3034_v44, %v717_v22  ;;  %1026 = vmatpush.bf16.msra.mxu2 %v3398_v47  ;;  %1039 = vmatpush.bf16.msra.mxu3 %v3392_v26  ;;  %v4412_v44 = vld [vmem:[#allocation34_spill] sm:$0xff]  ;;  %v4413_v22 = vld [vmem:[#allocation33_spill] sm:$0xff] }
  0xf2   :  { %v726_v50 = vpack.c.bf16 %v723_v31, %v723_v31  ;;  %v4414_v31 = vld [vmem:[#allocation35_spill] sm:$0xff] }
  0xf3   :  { %1001 = vmatpush.bf16.msra.mxu0 %v3396_v40  ;;  %1014 = vmatpush.bf16.msra.mxu1 %v3402_v48 }
  0xf4   :  { %2851 = vst [vmem:[%s4281_s4 + $0x1c] sm:$0xf] %v726_v50  ;;  %870 = vmatmul.bf16.vlgmr.msrb.gmra.mxu0 %v726_v50  ;;  %883 = vmatmul.bf16.vlgmr.msrb.gmra.mxu1 %v726_v50 }
  0xf5   :  { %896 = vmatmul.bf16.vlgmr.msrb.gmra.mxu2 %v726_v50  ;;  %909 = vmatmul.bf16.vlgmr.msrb.gmra.mxu3 %v726_v50  ;;  %v4415_v50 = vld [vmem:[#allocation36_spill] sm:$0xff] }
  0xf6   :  { %1027 = vmatpush.bf16.msra.mxu2 %v3414_v10  ;;  %1040 = vmatpush.bf16.msra.mxu3 %v3404_v49 }
  0xf7   :  { %1120 = vmatpush.bf16.msrb.mxu0 %v3406_v52  ;;  %1133 = vmatpush.bf16.msrb.mxu1 %v3408_v55 }
  0xfa   :  { %1146 = vmatpush.bf16.msrb.mxu2 %v3418_v11  ;;  %1159 = vmatpush.bf16.msrb.mxu3 %v3410_v61 }
  0xfb   :  { %1121 = vmatpush.bf16.msrb.mxu0 %v3422_v13  ;;  %1134 = vmatpush.bf16.msrb.mxu1 %v4391_v27 }
  0xfe   :  { %1147 = vmatpush.bf16.msrb.mxu2 %v4392_v24  ;;  %1160 = vmatpush.bf16.msrb.mxu3 %v4393_v4 }
  0xff   :  { %1122 = vmatpush.bf16.msrb.mxu0 %v4394_v59  ;;  %1135 = vmatpush.bf16.msrb.mxu1 %v4395_v14 }
 0x102   :  { %1148 = vmatpush.bf16.msrb.mxu2 %v4396_v15  ;;  %1161 = vmatpush.bf16.msrb.mxu3 %v4397_v62 }
 0x103   :  { %1123 = vmatpush.bf16.msrb.mxu0 %v4398_v30  ;;  %1136 = vmatpush.bf16.msrb.mxu1 %v4399_v23 }
 0x106   :  { %1149 = vmatpush.bf16.msrb.mxu2 %v4400_v0  ;;  %1162 = vmatpush.bf16.msrb.mxu3 %v4401_v43 }
 0x107   :  { %1124 = vmatpush.bf16.msrb.mxu0 %v4402_v51  ;;  %1137 = vmatpush.bf16.msrb.mxu1 %v4403_v29 }
 0x10a   :  { %1150 = vmatpush.bf16.msrb.mxu2 %v4404_v63  ;;  %1163 = vmatpush.bf16.msrb.mxu3 %v4405_v5  ;;  %v4416_v5 = vld [vmem:[#allocation38_spill] sm:$0xff] }
 0x10b   :  { %1125 = vmatpush.bf16.msrb.mxu0 %v4406_v35  ;;  %1138 = vmatpush.bf16.msrb.mxu1 %v4407_v18  ;;  %v4417_v35 = vld [vmem:[#allocation37_spill] sm:$0xff] }
 0x10e   :  { %1151 = vmatpush.bf16.msrb.mxu2 %v4408_v39  ;;  %1164 = vmatpush.bf16.msrb.mxu3 %v4409_v37  ;;  %v2852_v37 = vld [vmem:[%s4277_s0 + $0x10] sm:$0xff] }
 0x10f   :  { %1126 = vmatpush.bf16.msrb.mxu0 %v4410_v36  ;;  %1139 = vmatpush.bf16.msrb.mxu1 %v4411_v38  ;;  %v732_v39 = vunpack.c.l.bf16 %v2852_v37  ;;  %v733_v36 = vunpack.c.h.bf16 %v2852_v37 }
 0x112   :  { %1152 = vmatpush.bf16.msrb.mxu2 %v4412_v44  ;;  %1165 = vmatpush.bf16.msrb.mxu3 %v4413_v22 }
 0x113   :  { %1127 = vmatpush.bf16.msrb.mxu0 %v4414_v31  ;;  %1140 = vmatpush.bf16.msrb.mxu1 %v4415_v50  ;;  %v2853_v31 = vld [vmem:[%s4277_s0 + $0x18] sm:$0xff] }
 0x114   :  { %v735_v29 = vunpack.c.h.bf16 %v2853_v31 }
 0x116   :  { %1153 = vmatpush.bf16.msrb.mxu2 %v4416_v5  ;;  %1166 = vmatpush.bf16.msrb.mxu3 %v4417_v35 }
 0x152   :  { %v745_v18 = vpop.f32.mrf.mxu0  ;;  %v758_v38 = vpop.f32.mrf.mxu1 }
 0x153   :  { %v788_v63 = vadd.f32 %v745_v18, %v732_v39  ;;  %v789_v44 = vadd.f32 %v758_v38, %v733_v36 }
 0x155   :  { %v2854_v22 = vmul.f32 -1.442695, %v788_v63  ;;  %v2855_v50 = vmul.f32 -1.442695, %v789_v44  ;;  %v734_v63 = vunpack.c.l.bf16 %v2853_v31 }
 0x157   :  { %3035 = vpow2.f32 %v2854_v22 }
 0x158   :  { %3037 = vpow2.f32 %v2855_v50 }
 0x159   :  { %v771_v35 = vpop.f32.mrf.mxu2  ;;  %v784_v5 = vpop.f32.mrf.mxu3 }
 0x15a   :  { %v791_v51 = vadd.f32 %v784_v5, %v735_v29  ;;  %v747_v43 = vpop.f32.mrf.mxu0  ;;  %v760_v0 = vpop.f32.mrf.mxu1  ;;  %v790_v50 = vadd.f32 %v771_v35, %v734_v63 }
 0x15c   :  { %v2856_v23 = vmul.f32 -1.442695, %v791_v51 }
 0x15d   :  { %v3036_v37 = vpop.eup %3035 }
 0x15e   :  { %v3038_v30 = vpop.eup %3037  ;;  %v795_v62 = vadd.f32 1.0, %v3036_v37  ;;  %3039 = vpow2.f32 %v2856_v23 }
 0x15f   :  { %v814_v18 = vadd.f32 1.0, %v3038_v30  ;;  %v2857_v30 = vld [vmem:[%s4278_s1 + $0xe0] sm:$0xff] }
 0x160   :  { %3041 = vrcp.f32 %v795_v62  ;;  %v807_v5 = vand.u32 2147483648, %v795_v62  ;;  %v805_v37 = vand.u32 2147483647, %v795_v62  ;;  %vm801_vm10 = vweird.f32 %v795_v62 }
 0x161   :  { %3043 = vrcp.f32 %v814_v18  ;;  %v773_v39 = vpop.f32.mrf.mxu2  ;;  %v786_v36 = vpop.f32.mrf.mxu3  ;;  %v826_v23 = vand.u32 2147483648, %v814_v18  ;;  %v824_v35 = vand.u32 2147483647, %v814_v18  ;;  %v859_v14 = vunpack.c.h.bf16 %v2857_v30 }
 0x162   :  { %vm820_vm11 = vweird.f32 %v814_v18  ;;  %vm806_vm14 = vcmp.eq.f32.partialorder %v805_v37, 8.507059e+37 }
 0x163   :  { %v827_v59 = vor.u32 1.1754944e-38, %v826_v23  ;;  %vm825_vm15 = vcmp.eq.f32.partialorder %v824_v35, 8.507059e+37  ;;  %v2858_v23 = vld [vmem:[%s4278_s1 + $0xe8] sm:$0xff] }
 0x164   :  { %v3040_v38 = vpop.eup %3039 }
 0x165   :  { %v3703_v44 = vadd.f32 1.0, %v3040_v38  ;;  %v858_v38 = vunpack.c.l.bf16 %v2857_v30 }
 0x166   :  { %v3042_v22 = vpop.eup %3041 }
 0x167   :  { %v3044_v15 = vpop.eup %3043  ;;  %v797_v29 = vmul.f32 %v3042_v22, %v795_v62  ;;  %3045 = vrcp.f32 %v3703_v44  ;;  %vm802_vm8 = vweird.f32 %v3042_v22  ;;  %vm840_vm1 = vweird.f32 %v3703_v44 }
 0x168   :  { %v816_v0 = vmul.f32 %v3044_v15, %v814_v18  ;;  %3047 = vtanh.f32 %v790_v50  ;;  %vm821_vm9 = vweird.f32 %v3044_v15  ;;  %vm803_vm12 = vmor %vm801_vm10, %vm802_vm8 }
 0x169   :  { %v798_v43 = vsub.f32 1.0, %v797_v29  ;;  %v808_v29 = vor.u32 1.1754944e-38, %v807_v5  ;;  %vm822_vm13 = vmor %vm820_vm11, %vm821_vm9 }
 0x16a   :  { %v817_v51 = vsub.f32 1.0, %v816_v0 }
 0x16b   :  { %v799_v31 = vmul.f32 %v3042_v22, %v798_v43 }
 0x16c   :  { %v818_v39 = vmul.f32 %v3044_v15, %v817_v51 }
 0x16d   :  { %v3046_v36 = vpop.eup %3045  ;;  %v800_v63 = vadd.f32 %v3042_v22, %v799_v31 }
 0x16e   :  { %v819_v50 = vadd.f32 %v3044_v15, %v818_v39  ;;  %v836_v0 = vmul.f32 %v3046_v36, %v3703_v44  ;;  %v3048_v43 = vpop.eup %3047  ;;  %vm841_vm0 = vweird.f32 %v3046_v36 }
 0x16f   :  { %v804_v4 = vsel %vm803_vm12, %v3042_v22, %v800_v63  ;;  %vm842_vm2 = vmor %vm840_vm1, %vm841_vm0 }
 0x170   :  { %v809_v24 = vsel %vm806_vm14, %v808_v29, %v804_v4  ;;  %v823_v51 = vsel %vm822_vm13, %v3044_v15, %v819_v50  ;;  %v837_v27 = vsub.f32 1.0, %v836_v0  ;;  %v861_v15 = vunpack.c.h.bf16 %v2858_v23 }
 0x171   :  { %v828_v13 = vsel %vm825_vm15, %v827_v59, %v823_v51  ;;  %v851_v31 = vmul.f32 %v3048_v43, %v809_v24  ;;  %v871_v62 = vpop.f32.mrf.mxu0  ;;  %v884_v61 = vpop.f32.mrf.mxu1  ;;  %v846_v24 = vand.u32 2147483648, %v3703_v44 }
 0x172   :  { %v850_v18 = vmul.f32 %v828_v13, %v3611_v60  ;;  %v838_v30 = vmul.f32 %v3046_v36, %v837_v27  ;;  %v914_v5 = vadd.f32 %v871_v62, %v858_v38  ;;  %v915_v39 = vadd.f32 %v884_v61, %v859_v14 }
 0x173   :  { %v844_v13 = vand.u32 2147483647, %v3703_v44  ;;  %v847_v38 = vor.u32 1.1754944e-38, %v846_v24 }
 0x174   :  { %v3714_v22 = vadd.f32 %v851_v31, %v850_v18  ;;  %v2859_v37 = vmul.f32 -1.442695, %v914_v5  ;;  %v2860_v4 = vmul.f32 -1.442695, %v915_v39  ;;  %v839_v35 = vadd.f32 %v3046_v36, %v838_v30 }
 0x175   :  { %vm845_vm3 = vcmp.eq.f32.partialorder %v844_v13, 8.507059e+37 }
 0x176   :  { %3049 = vtanh.f32 %v3714_v22  ;;  %v843_v63 = vsel %vm842_vm2, %v3046_v36, %v839_v35  ;;  %v860_v36 = vunpack.c.l.bf16 %v2858_v23 }
 0x177   :  { %3051 = vpow2.f32 %v2859_v37  ;;  %v848_v0 = vsel %vm845_vm3, %v847_v38, %v843_v63 }
 0x178   :  { %3053 = vpow2.f32 %v2860_v4  ;;  %v897_v61 = vpop.f32.mrf.mxu2  ;;  %v910_v60 = vpop.f32.mrf.mxu3 }
 0x179   :  { %v917_v27 = vadd.f32 %v910_v60, %v861_v15  ;;  %v873_v59 = vpop.f32.mrf.mxu0  ;;  %v886_v14 = vpop.f32.mrf.mxu1  ;;  %v916_v15 = vadd.f32 %v897_v61, %v860_v36 }
 0x17b   :  { %v2861_v29 = vmul.f32 -1.442695, %v917_v27 }
 0x17c   :  { %v3050_v50 = vpop.eup %3049 }
 0x17d   :  { %v3052_v43 = vpop.eup %3051  ;;  %3055 = vpow2.f32 %v2861_v29  ;;  %v854_v51 = vmul.f32 %v3050_v50, %v848_v0 }
 0x17e   :  { %v3054_v31 = vpop.eup %3053  ;;  %v921_v62 = vadd.f32 1.0, %v3052_v43 }
 0x17f   :  { %v940_v44 = vadd.f32 1.0, %v3054_v31  ;;  %v981_v18 = vpack.c.bf16 %v854_v51, %v854_v51 }
 0x180   :  { %3057 = vrcp.f32 %v921_v62  ;;  %v899_v30 = vpop.f32.mrf.mxu2  ;;  %v912_v5 = vpop.f32.mrf.mxu3  ;;  %v933_v27 = vand.u32 2147483648, %v921_v62  ;;  %v931_v61 = vand.u32 2147483647, %v921_v62  ;;  %vm927_vm6 = vweird.f32 %v921_v62 }
 0x181   :  { %3059 = vrcp.f32 %v940_v44  ;;  %2862 = vst [vmem:[%s4280_s3 + $0x4] sm:$0xf] %v981_v18  ;;  %1002 = vmatmul.bf16.vlgmr.msra.gmra.mxu0 %v981_v18  ;;  %1015 = vmatmul.bf16.vlgmr.msra.gmra.mxu1 %v981_v18  ;;  %v952_v59 = vand.u32 2147483648, %v940_v44  ;;  %v950_v29 = vand.u32 2147483647, %v940_v44  ;;  %vm946_vm7 = vweird.f32 %v940_v44 }
 0x182   :  { %1028 = vmatmul.bf16.vlgmr.msra.gmra.mxu2 %v981_v18  ;;  %1041 = vmatmul.bf16.vlgmr.msra.gmra.mxu3 %v981_v18  ;;  %v934_v43 = vor.u32 1.1754944e-38, %v933_v27  ;;  %vm932_vm10 = vcmp.eq.f32.partialorder %v931_v61, 8.507059e+37  ;;  %v4418_v61 = vld [vmem:[#allocation9_spill] sm:$0xff] }
 0x183   :  { %v3056_v39 = vpop.eup %3055  ;;  %1252 = vmatpush.bf16.msra.mxu0 %v3317_v3  ;;  %1265 = vmatpush.bf16.msra.mxu1 %v3319_v7  ;;  %v953_v31 = vor.u32 1.1754944e-38, %v952_v59  ;;  %vm951_vm11 = vcmp.eq.f32.partialorder %v950_v29, 8.507059e+37  ;;  %v4421_v29 = vld [vmem:[#allocation14_spill] sm:$0xff] }
 0x184   :  { %v3725_v37 = vadd.f32 1.0, %v3056_v39  ;;  %1278 = vmatpush.bf16.msra.mxu2 %v3332_v21  ;;  %1291 = vmatpush.bf16.msra.mxu3 %v3321_v8 }
 0x186   :  { %v3058_v4 = vpop.eup %3057  ;;  %3061 = vrcp.f32 %v3725_v37  ;;  %vm966_vm13 = vweird.f32 %v3725_v37 }
 0x187   :  { %v3060_v35 = vpop.eup %3059  ;;  %v923_v24 = vmul.f32 %v3058_v4, %v921_v62  ;;  %1253 = vmatpush.bf16.msra.mxu0 %v3324_v12  ;;  %1266 = vmatpush.bf16.msra.mxu1 %v3328_v16  ;;  %3063 = vtanh.f32 %v916_v15  ;;  %vm928_vm4 = vweird.f32 %v3058_v4 }
 0x188   :  { %v942_v23 = vmul.f32 %v3060_v35, %v940_v44  ;;  %1279 = vmatpush.bf16.msra.mxu2 %v3344_v34  ;;  %1292 = vmatpush.bf16.msra.mxu3 %v3330_v17  ;;  %vm947_vm5 = vweird.f32 %v3060_v35  ;;  %vm929_vm8 = vmor %vm927_vm6, %vm928_vm4 }
 0x189   :  { %v924_v13 = vsub.f32 1.0, %v923_v24  ;;  %vm948_vm9 = vmor %vm946_vm7, %vm947_vm5 }
 0x18a   :  { %v943_v60 = vsub.f32 1.0, %v942_v23  ;;  %v972_v23 = vand.u32 2147483648, %v3725_v37 }
 0x18b   :  { %v925_v14 = vmul.f32 %v3058_v4, %v924_v13  ;;  %1254 = vmatpush.bf16.msra.mxu0 %v3336_v28  ;;  %1267 = vmatpush.bf16.msra.mxu1 %v3340_v32 }
 0x18c   :  { %v3062_v63 = vpop.eup %3061  ;;  %v944_v38 = vmul.f32 %v3060_v35, %v943_v60  ;;  %1280 = vmatpush.bf16.msra.mxu2 %v3350_v42  ;;  %1293 = vmatpush.bf16.msra.mxu3 %v3342_v33  ;;  %v973_v60 = vor.u32 1.1754944e-38, %v972_v23  ;;  %v4437_v23 = vld [vmem:[#allocation30_spill] sm:$0xff] }
 0x18d   :  { %v926_v50 = vadd.f32 %v3058_v4, %v925_v14  ;;  %v962_v0 = vmul.f32 %v3062_v63, %v3725_v37  ;;  %v3064_v5 = vpop.eup %3063  ;;  %vm967_vm12 = vweird.f32 %v3062_v63 }
 0x18e   :  { %v945_v51 = vadd.f32 %v3060_v35, %v944_v38  ;;  %vm968_vm14 = vmor %vm966_vm13, %vm967_vm12  ;;  %v4420_v38 = vld [vmem:[#allocation12_spill] sm:$0xff] }
 0x18f   :  { %v930_v18 = vsel %vm929_vm8, %v3058_v4, %v926_v50  ;;  %v963_v30 = vsub.f32 1.0, %v962_v0  ;;  %1255 = vmatpush.bf16.msra.mxu0 %v3348_v41  ;;  %1268 = vmatpush.bf16.msra.mxu1 %v3354_v45  ;;  %v4422_v50 = vld [vmem:[#allocation13_spill] sm:$0xff]  ;;  %v4423_v0 = vld [vmem:[#allocation15_spill] sm:$0xff] }
 0x190   :  { %v935_v36 = vsel %vm932_vm10, %v934_v43, %v930_v18  ;;  %v949_v39 = vsel %vm948_vm9, %v3060_v35, %v945_v51  ;;  %1281 = vmatpush.bf16.msra.mxu2 %v3362_v54  ;;  %1294 = vmatpush.bf16.msra.mxu3 %v3356_v46  ;;  %v4424_v43 = vld [vmem:[#allocation16_spill] sm:$0xff]  ;;  %v4425_v51 = vld [vmem:[#allocation18_spill] sm:$0xff]  ;;  %v4427_v18 = vld [vmem:[#allocation19_spill] sm:$0xff] }
 0x191   :  { %v954_v62 = vsel %vm951_vm11, %v953_v31, %v949_v39  ;;  %v977_v44 = vmul.f32 %v3064_v5, %v935_v36  ;;  %v964_v15 = vmul.f32 %v3062_v63, %v963_v30  ;;  %v4426_v31 = vld [vmem:[#allocation17_spill] sm:$0xff]  ;;  %v4428_v30 = vld [vmem:[#allocation20_spill] sm:$0xff]  ;;  %v4429_v5 = vld [vmem:[#allocation22_spill] sm:$0xff] }
 0x192   :  { %v976_v24 = vmul.f32 %v954_v62, %v3640_v56  ;;  %v970_v56 = vand.u32 2147483647, %v3725_v37  ;;  %v4430_v36 = vld [vmem:[#allocation21_spill] sm:$0xff]  ;;  %v4431_v39 = vld [vmem:[#allocation23_spill] sm:$0xff]  ;;  %v4432_v62 = vld [vmem:[#allocation24_spill] sm:$0xff] }
 0x193   :  { %1256 = vmatpush.bf16.msra.mxu0 %v3360_v53  ;;  %1269 = vmatpush.bf16.msra.mxu1 %v3366_v57  ;;  %v965_v35 = vadd.f32 %v3062_v63, %v964_v15  ;;  %v4434_v15 = vld [vmem:[#allocation25_spill] sm:$0xff] }
 0x194   :  { %v3746_v4 = vadd.f32 %v977_v44, %v976_v24  ;;  %1282 = vmatpush.bf16.msra.mxu2 %v3374_v2  ;;  %1295 = vmatpush.bf16.msra.mxu3 %v3368_v58  ;;  %vm971_vm15 = vcmp.eq.f32.partialorder %v970_v56, 8.507059e+37  ;;  %v4433_v44 = vld [vmem:[#allocation26_spill] sm:$0xff]  ;;  %v4435_v24 = vld [vmem:[#allocation27_spill] sm:$0xff]  ;;  %v4438_v56 = vld [vmem:[#allocation29_spill] sm:$0xff] }
 0x195   :  { %v969_v13 = vsel %vm968_vm14, %v3062_v63, %v965_v35  ;;  %v4419_v63 = vld [vmem:[#allocation11_spill] sm:$0xff]  ;;  %v4436_v35 = vld [vmem:[#allocation28_spill] sm:$0xff] }
 0x196   :  { %3065 = vtanh.f32 %v3746_v4  ;;  %v974_v59 = vsel %vm971_vm15, %v973_v60, %v969_v13  ;;  %v4439_v13 = vld [vmem:[#allocation31_spill] sm:$0xff]  ;;  %v4440_v60 = vld [vmem:[#allocation32_spill] sm:$0xff] }
 0x197   :  { %1257 = vmatpush.bf16.msra.mxu0 %v3372_v1  ;;  %1270 = vmatpush.bf16.msra.mxu1 %v3378_v6 }
 0x198   :  { %1283 = vmatpush.bf16.msra.mxu2 %v3386_v20  ;;  %1296 = vmatpush.bf16.msra.mxu3 %v3380_v9 }
 0x19b   :  { %1258 = vmatpush.bf16.msra.mxu0 %v3384_v19  ;;  %1271 = vmatpush.bf16.msra.mxu1 %v3390_v25 }
 0x19c   :  { %v3066_v27 = vpop.eup %3065  ;;  %1284 = vmatpush.bf16.msra.mxu2 %v3398_v47  ;;  %1297 = vmatpush.bf16.msra.mxu3 %v3392_v26 }
 0x19d   :  { %v980_v37 = vmul.f32 %v3066_v27, %v974_v59  ;;  %v4441_v27 = vld [vmem:[#allocation34_spill] sm:$0xff]  ;;  %v4442_v59 = vld [vmem:[#allocation33_spill] sm:$0xff] }
 0x19f   :  { %v984_v14 = vpack.c.bf16 %v980_v37, %v980_v37  ;;  %1259 = vmatpush.bf16.msra.mxu0 %v3396_v40  ;;  %1272 = vmatpush.bf16.msra.mxu1 %v3402_v48  ;;  %v4443_v37 = vld [vmem:[#allocation35_spill] sm:$0xff] }
 0x1a0   :  { %1285 = vmatpush.bf16.msra.mxu2 %v3414_v10  ;;  %1298 = vmatpush.bf16.msra.mxu3 %v3404_v49 }
 0x1a1   :  { %2863 = vst [vmem:[%s4281_s4 + $0x18] sm:$0xf] %v984_v14  ;;  %1128 = vmatmul.bf16.vlgmr.msrb.gmra.mxu0 %v984_v14  ;;  %1141 = vmatmul.bf16.vlgmr.msrb.gmra.mxu1 %v984_v14 }
 0x1a2   :  { %1154 = vmatmul.bf16.vlgmr.msrb.gmra.mxu2 %v984_v14  ;;  %1167 = vmatmul.bf16.vlgmr.msrb.gmra.mxu3 %v984_v14  ;;  %v4444_v14 = vld [vmem:[#allocation36_spill] sm:$0xff] }
 0x1a3   :  { %1378 = vmatpush.bf16.msrb.mxu0 %v3406_v52  ;;  %1391 = vmatpush.bf16.msrb.mxu1 %v3408_v55 }
 0x1a4   :  { %1404 = vmatpush.bf16.msrb.mxu2 %v3418_v11  ;;  %1417 = vmatpush.bf16.msrb.mxu3 %v4418_v61 }
 0x1a7   :  { %1379 = vmatpush.bf16.msrb.mxu0 %v4419_v63  ;;  %1392 = vmatpush.bf16.msrb.mxu1 %v4420_v38 }
 0x1a8   :  { %1405 = vmatpush.bf16.msrb.mxu2 %v4421_v29  ;;  %1418 = vmatpush.bf16.msrb.mxu3 %v4422_v50 }
 0x1ab   :  { %1380 = vmatpush.bf16.msrb.mxu0 %v4423_v0  ;;  %1393 = vmatpush.bf16.msrb.mxu1 %v4424_v43 }
 0x1ac   :  { %1406 = vmatpush.bf16.msrb.mxu2 %v4425_v51  ;;  %1419 = vmatpush.bf16.msrb.mxu3 %v4426_v31 }
 0x1af   :  { %1381 = vmatpush.bf16.msrb.mxu0 %v4427_v18  ;;  %1394 = vmatpush.bf16.msrb.mxu1 %v4428_v30 }
 0x1b0   :  { %1407 = vmatpush.bf16.msrb.mxu2 %v4429_v5  ;;  %1420 = vmatpush.bf16.msrb.mxu3 %v4430_v36 }
 0x1b3   :  { %1382 = vmatpush.bf16.msrb.mxu0 %v4431_v39  ;;  %1395 = vmatpush.bf16.msrb.mxu1 %v4432_v62 }
 0x1b4   :  { %1408 = vmatpush.bf16.msrb.mxu2 %v4433_v44  ;;  %1421 = vmatpush.bf16.msrb.mxu3 %v4434_v15  ;;  %v4445_v15 = vld [vmem:[#allocation38_spill] sm:$0xff] }
 0x1b7   :  { %1383 = vmatpush.bf16.msrb.mxu0 %v4435_v24  ;;  %1396 = vmatpush.bf16.msrb.mxu1 %v4436_v35  ;;  %v4446_v24 = vld [vmem:[#allocation37_spill] sm:$0xff] }
 0x1b8   :  { %1409 = vmatpush.bf16.msrb.mxu2 %v4437_v23  ;;  %1422 = vmatpush.bf16.msrb.mxu3 %v4438_v56  ;;  %v2864_v56 = vld [vmem:[%s4277_s0 + $0x20] sm:$0xff] }
 0x1b9   :  { %v990_v23 = vunpack.c.l.bf16 %v2864_v56 }
 0x1bb   :  { %1384 = vmatpush.bf16.msrb.mxu0 %v4439_v13  ;;  %1397 = vmatpush.bf16.msrb.mxu1 %v4440_v60  ;;  %v991_v13 = vunpack.c.h.bf16 %v2864_v56 }
 0x1bc   :  { %1410 = vmatpush.bf16.msrb.mxu2 %v4441_v27  ;;  %1423 = vmatpush.bf16.msrb.mxu3 %v4442_v59 }
 0x1bf   :  { %1385 = vmatpush.bf16.msrb.mxu0 %v4443_v37  ;;  %1398 = vmatpush.bf16.msrb.mxu1 %v4444_v14  ;;  %v2865_v37 = vld [vmem:[%s4277_s0 + $0x28] sm:$0xff] }
 0x1c0   :  { %1411 = vmatpush.bf16.msrb.mxu2 %v4445_v15  ;;  %1424 = vmatpush.bf16.msrb.mxu3 %v4446_v24  ;;  %v993_v62 = vunpack.c.h.bf16 %v2865_v37 }
 0x1fe   :  { %v1003_v35 = vpop.f32.mrf.mxu0  ;;  %v1016_v60 = vpop.f32.mrf.mxu1 }
 0x1ff   :  { %v1046_v44 = vadd.f32 %v1003_v35, %v990_v23  ;;  %v1047_v27 = vadd.f32 %v1016_v60, %v991_v13 }
 0x201   :  { %v2866_v59 = vmul.f32 -1.442695, %v1046_v44  ;;  %v2867_v14 = vmul.f32 -1.442695, %v1047_v27  ;;  %v992_v44 = vunpack.c.l.bf16 %v2865_v37 }
 0x203   :  { %3067 = vpow2.f32 %v2866_v59 }
 0x204   :  { %3069 = vpow2.f32 %v2867_v14 }
 0x205   :  { %v1029_v24 = vpop.f32.mrf.mxu2  ;;  %v1042_v15 = vpop.f32.mrf.mxu3 }
 0x206   :  { %v1049_v39 = vadd.f32 %v1042_v15, %v993_v62  ;;  %v1005_v36 = vpop.f32.mrf.mxu0  ;;  %v1018_v5 = vpop.f32.mrf.mxu1  ;;  %v1048_v14 = vadd.f32 %v1029_v24, %v992_v44 }
 0x208   :  { %v2868_v30 = vmul.f32 -1.442695, %v1049_v39 }
 0x209   :  { %v3068_v56 = vpop.eup %3067 }
 0x20a   :  { %v3070_v18 = vpop.eup %3069  ;;  %v1053_v31 = vadd.f32 1.0, %v3068_v56  ;;  %3071 = vpow2.f32 %v2868_v30 }
 0x20b   :  { %v1072_v35 = vadd.f32 1.0, %v3070_v18  ;;  %v2869_v18 = vld [vmem:[%s4278_s1 + $0xd0] sm:$0xff] }
 0x20c   :  { %3073 = vrcp.f32 %v1053_v31  ;;  %v1065_v15 = vand.u32 2147483648, %v1053_v31  ;;  %v1063_v56 = vand.u32 2147483647, %v1053_v31  ;;  %vm1059_vm2 = vweird.f32 %v1053_v31 }
 0x20d   :  { %3075 = vrcp.f32 %v1072_v35  ;;  %v1031_v23 = vpop.f32.mrf.mxu2  ;;  %v1044_v13 = vpop.f32.mrf.mxu3  ;;  %v1084_v30 = vand.u32 2147483648, %v1072_v35  ;;  %v1082_v24 = vand.u32 2147483647, %v1072_v35  ;;  %vm1078_vm3 = vweird.f32 %v1072_v35 }
 0x20e   :  { %vm1064_vm6 = vcmp.eq.f32.partialorder %v1063_v56, 8.507059e+37 }
 0x20f   :  { %v1085_v43 = vor.u32 1.1754944e-38, %v1084_v30  ;;  %vm1083_vm7 = vcmp.eq.f32.partialorder %v1082_v24, 8.507059e+37 }
 0x210   :  { %v3072_v60 = vpop.eup %3071 }
 0x211   :  { %v3807_v27 = vadd.f32 1.0, %v3072_v60  ;;  %v1116_v60 = vunpack.c.l.bf16 %v2869_v18 }
 0x212   :  { %v3074_v59 = vpop.eup %3073 }
 0x213   :  { %v3076_v51 = vpop.eup %3075  ;;  %v1055_v62 = vmul.f32 %v3074_v59, %v1053_v31  ;;  %3077 = vrcp.f32 %v3807_v27  ;;  %vm1060_vm0 = vweird.f32 %v3074_v59  ;;  %vm1098_vm9 = vweird.f32 %v3807_v27 }
 0x214   :  { %v1074_v5 = vmul.f32 %v3076_v51, %v1072_v35  ;;  %3079 = vtanh.f32 %v1048_v14  ;;  %vm1079_vm1 = vweird.f32 %v3076_v51  ;;  %vm1061_vm4 = vmor %vm1059_vm2, %vm1060_vm0 }
 0x215   :  { %v1056_v36 = vsub.f32 1.0, %v1055_v62  ;;  %v1066_v62 = vor.u32 1.1754944e-38, %v1065_v15  ;;  %vm1080_vm5 = vmor %vm1078_vm3, %vm1079_vm1 }
 0x216   :  { %v1075_v39 = vsub.f32 1.0, %v1074_v5 }
 0x217   :  { %v1057_v37 = vmul.f32 %v3074_v59, %v1056_v36  ;;  %v1117_v36 = vunpack.c.h.bf16 %v2869_v18 }
 0x218   :  { %v1076_v23 = vmul.f32 %v3076_v51, %v1075_v39 }
 0x219   :  { %v3078_v13 = vpop.eup %3077  ;;  %v1058_v44 = vadd.f32 %v3074_v59, %v1057_v37 }
 0x21a   :  { %v1077_v5 = vadd.f32 %v3076_v51, %v1076_v23  ;;  %v1094_v14 = vmul.f32 %v3078_v13, %v3807_v27  ;;  %v3080_v50 = vpop.eup %3079  ;;  %vm1099_vm8 = vweird.f32 %v3078_v13 }
 0x21b   :  { %v1062_v0 = vsel %vm1061_vm4, %v3074_v59, %v1058_v44  ;;  %v2870_v59 = vld [vmem:[%s4278_s1 + $0xd8] sm:$0xff]  ;;  %vm1100_vm10 = vmor %vm1098_vm9, %vm1099_vm8 }
 0x21c   :  { %v1067_v29 = vsel %vm1064_vm6, %v1066_v62, %v1062_v0  ;;  %v1081_v39 = vsel %vm1080_vm5, %v3076_v51, %v1077_v5  ;;  %v1095_v38 = vsub.f32 1.0, %v1094_v14 }
 0x21d   :  { %v1086_v63 = vsel %vm1083_vm7, %v1085_v43, %v1081_v39  ;;  %v1109_v37 = vmul.f32 %v3080_v50, %v1067_v29  ;;  %v1104_v29 = vand.u32 2147483648, %v3807_v27 }
 0x21e   :  { %v1108_v31 = vmul.f32 %v1086_v63, %v3714_v22  ;;  %v1096_v35 = vmul.f32 %v3078_v13, %v1095_v38  ;;  %v1129_v61 = vpop.f32.mrf.mxu0  ;;  %v1142_v15 = vpop.f32.mrf.mxu1  ;;  %v1119_v22 = vunpack.c.h.bf16 %v2870_v59 }
 0x21f   :  { %v1172_v23 = vadd.f32 %v1129_v61, %v1116_v60  ;;  %v1173_v11 = vadd.f32 %v1142_v15, %v1117_v36  ;;  %v1102_v61 = vand.u32 2147483647, %v3807_v27  ;;  %v1105_v43 = vor.u32 1.1754944e-38, %v1104_v29 }
 0x220   :  { %v3818_v30 = vadd.f32 %v1109_v37, %v1108_v31  ;;  %v1097_v18 = vadd.f32 %v3078_v13, %v1096_v35 }
 0x221   :  { %v2871_v0 = vmul.f32 -1.442695, %v1172_v23  ;;  %v2872_v51 = vmul.f32 -1.442695, %v1173_v11  ;;  %vm1103_vm11 = vcmp.eq.f32.partialorder %v1102_v61, 8.507059e+37 }
 0x222   :  { %3081 = vtanh.f32 %v3818_v30  ;;  %v1101_v50 = vsel %vm1100_vm10, %v3078_v13, %v1097_v18  ;;  %v1118_v13 = vunpack.c.l.bf16 %v2870_v59 }
 0x223   :  { %3083 = vpow2.f32 %v2871_v0  ;;  %v1106_v62 = vsel %vm1103_vm11, %v1105_v43, %v1101_v50 }
 0x224   :  { %3085 = vpow2.f32 %v2872_v51 }
 0x225   :  { %v1155_v63 = vpop.f32.mrf.mxu2  ;;  %v1168_v38 = vpop.f32.mrf.mxu3 }
 0x226   :  { %v1175_v56 = vadd.f32 %v1168_v38, %v1119_v22  ;;  %v1131_v24 = vpop.f32.mrf.mxu0  ;;  %v1144_v11 = vpop.f32.mrf.mxu1  ;;  %v1174_v51 = vadd.f32 %v1155_v63, %v1118_v13 }
 0x228   :  { %v3082_v44 = vpop.eup %3081  ;;  %v2873_v60 = vmul.f32 -1.442695, %v1175_v56 }
 0x229   :  { %v3084_v5 = vpop.eup %3083  ;;  %v1112_v14 = vmul.f32 %v3082_v44, %v1106_v62 }
 0x22a   :  { %v3086_v36 = vpop.eup %3085  ;;  %v1179_v39 = vadd.f32 1.0, %v3084_v5  ;;  %3087 = vpow2.f32 %v2873_v60 }
 0x22b   :  { %v1198_v27 = vadd.f32 1.0, %v3086_v36  ;;  %v1239_v37 = vpack.c.bf16 %v1112_v14, %v1112_v14 }
 0x22c   :  { %3089 = vrcp.f32 %v1179_v39  ;;  %v1191_v38 = vand.u32 2147483648, %v1179_v39  ;;  %v1189_v63 = vand.u32 2147483647, %v1179_v39  ;;  %vm1185_vm14 = vweird.f32 %v1179_v39 }
 0x22d   :  { %3091 = vrcp.f32 %v1198_v27  ;;  %v1157_v31 = vpop.f32.mrf.mxu2  ;;  %v1170_v35 = vpop.f32.mrf.mxu3  ;;  %2874 = vst [vmem:[%s4280_s3 + $0x8] sm:$0xf] %v1239_v37  ;;  %1260 = vmatmul.bf16.vlgmr.msra.gmra.mxu0 %v1239_v37  ;;  %1273 = vmatmul.bf16.vlgmr.msra.gmra.mxu1 %v1239_v37  ;;  %v1210_v50 = vand.u32 2147483648, %v1198_v27  ;;  %v1208_v24 = vand.u32 2147483647, %v1198_v27  ;;  %vm1204_vm15 = vweird.f32 %v1198_v27 }
 0x22e   :  { %1286 = vmatmul.bf16.vlgmr.msra.gmra.mxu2 %v1239_v37  ;;  %1299 = vmatmul.bf16.vlgmr.msra.gmra.mxu3 %v1239_v37  ;;  %v1192_v60 = vor.u32 1.1754944e-38, %v1191_v38  ;;  %vm1190_vm2 = vcmp.eq.f32.partialorder %v1189_v63, 8.507059e+37  ;;  %v4448_v63 = vld [vmem:[#allocation9_spill] sm:$0xff] }
 0x22f   :  { %1510 = vmatpush.bf16.msra.mxu0 %v3317_v3  ;;  %1523 = vmatpush.bf16.msra.mxu1 %v3319_v7  ;;  %v1211_v14 = vor.u32 1.1754944e-38, %v1210_v50  ;;  %vm1209_vm3 = vcmp.eq.f32.partialorder %v1208_v24, 8.507059e+37  ;;  %v4450_v24 = vld [vmem:[#allocation12_spill] sm:$0xff] }
 0x230   :  { %v3088_v15 = vpop.eup %3087  ;;  %1536 = vmatpush.bf16.msra.mxu2 %v3332_v21  ;;  %1549 = vmatpush.bf16.msra.mxu3 %v3321_v8 }
 0x231   :  { %v3831_v23 = vadd.f32 1.0, %v3088_v15 }
 0x232   :  { %v3090_v0 = vpop.eup %3089 }
 0x233   :  { %v3092_v18 = vpop.eup %3091  ;;  %v1181_v29 = vmul.f32 %v3090_v0, %v1179_v39  ;;  %3093 = vrcp.f32 %v3831_v23  ;;  %1511 = vmatpush.bf16.msra.mxu0 %v3324_v12  ;;  %1524 = vmatpush.bf16.msra.mxu1 %v3328_v16  ;;  %vm1186_vm12 = vweird.f32 %v3090_v0  ;;  %vm1224_vm5 = vweird.f32 %v3831_v23 }
 0x234   :  { %v1200_v59 = vmul.f32 %v3092_v18, %v1198_v27  ;;  %1537 = vmatpush.bf16.msra.mxu2 %v3344_v34  ;;  %1550 = vmatpush.bf16.msra.mxu3 %v3330_v17  ;;  %3095 = vtanh.f32 %v1174_v51  ;;  %vm1205_vm13 = vweird.f32 %v3092_v18  ;;  %vm1187_vm0 = vmor %vm1185_vm14, %vm1186_vm12 }
 0x235   :  { %v1182_v22 = vsub.f32 1.0, %v1181_v29  ;;  %vm1206_vm1 = vmor %vm1204_vm15, %vm1205_vm13  ;;  %v1230_v29 = vand.u32 2147483648, %v3831_v23 }
 0x236   :  { %v1201_v61 = vsub.f32 1.0, %v1200_v59 }
 0x237   :  { %v1183_v43 = vmul.f32 %v3090_v0, %v1182_v22  ;;  %1512 = vmatpush.bf16.msra.mxu0 %v3336_v28  ;;  %1525 = vmatpush.bf16.msra.mxu1 %v3340_v32  ;;  %v1231_v22 = vor.u32 1.1754944e-38, %v1230_v29  ;;  %v4467_v29 = vld [vmem:[#allocation30_spill] sm:$0xff] }
 0x238   :  { %v1202_v56 = vmul.f32 %v3092_v18, %v1201_v61  ;;  %1538 = vmatpush.bf16.msra.mxu2 %v3350_v42  ;;  %1551 = vmatpush.bf16.msra.mxu3 %v3342_v33 }
 0x239   :  { %v3094_v11 = vpop.eup %3093  ;;  %v1184_v44 = vadd.f32 %v3090_v0, %v1183_v43  ;;  %v4447_v43 = vld [vmem:[#allocation10_spill] sm:$0xff] }
 0x23a   :  { %v1203_v62 = vadd.f32 %v3092_v18, %v1202_v56  ;;  %v1220_v5 = vmul.f32 %v3094_v11, %v3831_v23  ;;  %v3096_v37 = vpop.eup %3095  ;;  %vm1225_vm4 = vweird.f32 %v3094_v11  ;;  %v4449_v56 = vld [vmem:[#allocation11_spill] sm:$0xff] }
 0x23b   :  { %v1188_v36 = vsel %vm1187_vm0, %v3090_v0, %v1184_v44  ;;  %1513 = vmatpush.bf16.msra.mxu0 %v3348_v41  ;;  %1526 = vmatpush.bf16.msra.mxu1 %v3354_v45  ;;  %vm1226_vm6 = vmor %vm1224_vm5, %vm1225_vm4  ;;  %v4452_v44 = vld [vmem:[#allocation13_spill] sm:$0xff] }
 0x23c   :  { %v1193_v31 = vsel %vm1190_vm2, %v1192_v60, %v1188_v36  ;;  %v1207_v35 = vsel %vm1206_vm1, %v3092_v18, %v1203_v62  ;;  %v1221_v13 = vsub.f32 1.0, %v1220_v5  ;;  %1539 = vmatpush.bf16.msra.mxu2 %v3362_v54  ;;  %1552 = vmatpush.bf16.msra.mxu3 %v3356_v46  ;;  %v4453_v60 = vld [vmem:[#allocation15_spill] sm:$0xff]  ;;  %v4454_v62 = vld [vmem:[#allocation16_spill] sm:$0xff]  ;;  %v4455_v5 = vld [vmem:[#allocation18_spill] sm:$0xff] }
 0x23d   :  { %v1212_v39 = vsel %vm1209_vm3, %v1211_v14, %v1207_v35  ;;  %v1235_v27 = vmul.f32 %v3096_v37, %v1193_v31  ;;  %v4456_v14 = vld [vmem:[#allocation17_spill] sm:$0xff]  ;;  %v4457_v36 = vld [vmem:[#allocation19_spill] sm:$0xff]  ;;  %v4458_v37 = vld [vmem:[#allocation20_spill] sm:$0xff] }
 0x23e   :  { %v1234_v15 = vmul.f32 %v1212_v39, %v3746_v4  ;;  %v1222_v51 = vmul.f32 %v3094_v11, %v1221_v13  ;;  %v1228_v4 = vand.u32 2147483647, %v3831_v23  ;;  %v4459_v31 = vld [vmem:[#allocation22_spill] sm:$0xff]  ;;  %v4460_v35 = vld [vmem:[#allocation21_spill] sm:$0xff]  ;;  %v4461_v13 = vld [vmem:[#allocation23_spill] sm:$0xff] }
 0x23f   :  { %1514 = vmatpush.bf16.msra.mxu0 %v3360_v53  ;;  %1527 = vmatpush.bf16.msra.mxu1 %v3366_v57  ;;  %v4462_v39 = vld [vmem:[#allocation24_spill] sm:$0xff] }
 0x240   :  { %v3850_v0 = vadd.f32 %v1235_v27, %v1234_v15  ;;  %1540 = vmatpush.bf16.msra.mxu2 %v3374_v2  ;;  %1553 = vmatpush.bf16.msra.mxu3 %v3368_v58  ;;  %v1223_v18 = vadd.f32 %v3094_v11, %v1222_v51  ;;  %vm1229_vm7 = vcmp.eq.f32.partialorder %v1228_v4, 8.507059e+37  ;;  %v4463_v27 = vld [vmem:[#allocation26_spill] sm:$0xff]  ;;  %v4464_v15 = vld [vmem:[#allocation25_spill] sm:$0xff]  ;;  %v4465_v51 = vld [vmem:[#allocation27_spill] sm:$0xff] }
 0x241   :  { %v4468_v4 = vld [vmem:[#allocation29_spill] sm:$0xff] }
 0x242   :  { %3097 = vtanh.f32 %v3850_v0  ;;  %v1227_v59 = vsel %vm1226_vm6, %v3094_v11, %v1223_v18  ;;  %v4451_v11 = vld [vmem:[#allocation14_spill] sm:$0xff]  ;;  %v4466_v18 = vld [vmem:[#allocation28_spill] sm:$0xff] }
 0x243   :  { %1515 = vmatpush.bf16.msra.mxu0 %v3372_v1  ;;  %1528 = vmatpush.bf16.msra.mxu1 %v3378_v6  ;;  %v1232_v38 = vsel %vm1229_vm7, %v1231_v22, %v1227_v59  ;;  %v4469_v59 = vld [vmem:[#allocation31_spill] sm:$0xff]  ;;  %v4470_v22 = vld [vmem:[#allocation32_spill] sm:$0xff] }
 0x244   :  { %1541 = vmatpush.bf16.msra.mxu2 %v3386_v20  ;;  %1554 = vmatpush.bf16.msra.mxu3 %v3380_v9 }
 0x247   :  { %1516 = vmatpush.bf16.msra.mxu0 %v3384_v19  ;;  %1529 = vmatpush.bf16.msra.mxu1 %v3390_v25 }
 0x248   :  { %v3098_v61 = vpop.eup %3097  ;;  %1542 = vmatpush.bf16.msra.mxu2 %v3398_v47  ;;  %1555 = vmatpush.bf16.msra.mxu3 %v3392_v26 }
 0x249   :  { %v1238_v23 = vmul.f32 %v3098_v61, %v1232_v38  ;;  %v4471_v61 = vld [vmem:[#allocation34_spill] sm:$0xff]  ;;  %v4472_v38 = vld [vmem:[#allocation33_spill] sm:$0xff] }
 0x24b   :  { %v1242_v50 = vpack.c.bf16 %v1238_v23, %v1238_v23  ;;  %1517 = vmatpush.bf16.msra.mxu0 %v3396_v40  ;;  %1530 = vmatpush.bf16.msra.mxu1 %v3402_v48  ;;  %v4473_v23 = vld [vmem:[#allocation35_spill] sm:$0xff] }
 0x24c   :  { %1543 = vmatpush.bf16.msra.mxu2 %v3414_v10  ;;  %1556 = vmatpush.bf16.msra.mxu3 %v3404_v49 }
 0x24d   :  { %2875 = vst [vmem:[%s4281_s4 + $0x14] sm:$0xf] %v1242_v50  ;;  %1386 = vmatmul.bf16.vlgmr.msrb.gmra.mxu0 %v1242_v50  ;;  %1399 = vmatmul.bf16.vlgmr.msrb.gmra.mxu1 %v1242_v50 }
 0x24e   :  { %1412 = vmatmul.bf16.vlgmr.msrb.gmra.mxu2 %v1242_v50  ;;  %1425 = vmatmul.bf16.vlgmr.msrb.gmra.mxu3 %v1242_v50  ;;  %v4474_v50 = vld [vmem:[#allocation36_spill] sm:$0xff] }
 0x24f   :  { %1636 = vmatpush.bf16.msrb.mxu0 %v3406_v52  ;;  %1649 = vmatpush.bf16.msrb.mxu1 %v3408_v55 }
 0x250   :  { %1662 = vmatpush.bf16.msrb.mxu2 %v4447_v43  ;;  %1675 = vmatpush.bf16.msrb.mxu3 %v4448_v63 }
 0x253   :  { %1637 = vmatpush.bf16.msrb.mxu0 %v4449_v56  ;;  %1650 = vmatpush.bf16.msrb.mxu1 %v4450_v24 }
 0x254   :  { %1663 = vmatpush.bf16.msrb.mxu2 %v4451_v11  ;;  %1676 = vmatpush.bf16.msrb.mxu3 %v4452_v44 }
 0x257   :  { %1638 = vmatpush.bf16.msrb.mxu0 %v4453_v60  ;;  %1651 = vmatpush.bf16.msrb.mxu1 %v4454_v62 }
 0x258   :  { %1664 = vmatpush.bf16.msrb.mxu2 %v4455_v5  ;;  %1677 = vmatpush.bf16.msrb.mxu3 %v4456_v14 }
 0x25b   :  { %1639 = vmatpush.bf16.msrb.mxu0 %v4457_v36  ;;  %1652 = vmatpush.bf16.msrb.mxu1 %v4458_v37 }
 0x25c   :  { %1665 = vmatpush.bf16.msrb.mxu2 %v4459_v31  ;;  %1678 = vmatpush.bf16.msrb.mxu3 %v4460_v35 }
 0x25f   :  { %1640 = vmatpush.bf16.msrb.mxu0 %v4461_v13  ;;  %1653 = vmatpush.bf16.msrb.mxu1 %v4462_v39 }
 0x260   :  { %1666 = vmatpush.bf16.msrb.mxu2 %v4463_v27  ;;  %1679 = vmatpush.bf16.msrb.mxu3 %v4464_v15  ;;  %v4475_v15 = vld [vmem:[#allocation38_spill] sm:$0xff] }
 0x263   :  { %1641 = vmatpush.bf16.msrb.mxu0 %v4465_v51  ;;  %1654 = vmatpush.bf16.msrb.mxu1 %v4466_v18  ;;  %v4476_v51 = vld [vmem:[#allocation37_spill] sm:$0xff] }
 0x264   :  { %1667 = vmatpush.bf16.msrb.mxu2 %v4467_v29  ;;  %1680 = vmatpush.bf16.msrb.mxu3 %v4468_v4  ;;  %v2876_v4 = vld [vmem:[%s4277_s0 + $0x30] sm:$0xff] }
 0x265   :  { %v1248_v29 = vunpack.c.l.bf16 %v2876_v4 }
 0x267   :  { %1642 = vmatpush.bf16.msrb.mxu0 %v4469_v59  ;;  %1655 = vmatpush.bf16.msrb.mxu1 %v4470_v22  ;;  %v1249_v59 = vunpack.c.h.bf16 %v2876_v4 }
 0x268   :  { %1668 = vmatpush.bf16.msrb.mxu2 %v4471_v61  ;;  %1681 = vmatpush.bf16.msrb.mxu3 %v4472_v38 }
 0x26b   :  { %1643 = vmatpush.bf16.msrb.mxu0 %v4473_v23  ;;  %1656 = vmatpush.bf16.msrb.mxu1 %v4474_v50  ;;  %v2877_v23 = vld [vmem:[%s4277_s0 + $0x38] sm:$0xff] }
 0x26c   :  { %1669 = vmatpush.bf16.msrb.mxu2 %v4475_v15  ;;  %1682 = vmatpush.bf16.msrb.mxu3 %v4476_v51  ;;  %v1251_v39 = vunpack.c.h.bf16 %v2877_v23 }
 0x2aa   :  { %v1261_v18 = vpop.f32.mrf.mxu0  ;;  %v1274_v22 = vpop.f32.mrf.mxu1 }
 0x2ab   :  { %v1304_v27 = vadd.f32 %v1261_v18, %v1248_v29  ;;  %v1305_v61 = vadd.f32 %v1274_v22, %v1249_v59 }
 0x2ad   :  { %v2878_v38 = vmul.f32 -1.442695, %v1304_v27  ;;  %v2879_v50 = vmul.f32 -1.442695, %v1305_v61  ;;  %v1250_v27 = vunpack.c.l.bf16 %v2877_v23 }
 0x2af   :  { %3099 = vpow2.f32 %v2878_v38 }
 0x2b0   :  { %3101 = vpow2.f32 %v2879_v50 }
 0x2b1   :  { %v1287_v51 = vpop.f32.mrf.mxu2  ;;  %v1300_v15 = vpop.f32.mrf.mxu3 }
 0x2b2   :  { %v1307_v13 = vadd.f32 %v1300_v15, %v1251_v39  ;;  %v1263_v35 = vpop.f32.mrf.mxu0  ;;  %v1276_v31 = vpop.f32.mrf.mxu1  ;;  %v1306_v50 = vadd.f32 %v1287_v51, %v1250_v27 }
 0x2b4   :  { %v2880_v37 = vmul.f32 -1.442695, %v1307_v13 }
 0x2b5   :  { %v3100_v4 = vpop.eup %3099 }
 0x2b6   :  { %v3102_v36 = vpop.eup %3101  ;;  %v1311_v14 = vadd.f32 1.0, %v3100_v4  ;;  %3103 = vpow2.f32 %v2880_v37 }
 0x2b7   :  { %v1330_v18 = vadd.f32 1.0, %v3102_v36  ;;  %v2881_v36 = vld [vmem:[%s4278_s1 + $0xc0] sm:$0xff] }
 0x2b8   :  { %3105 = vrcp.f32 %v1311_v14  ;;  %v1323_v15 = vand.u32 2147483648, %v1311_v14  ;;  %v1321_v4 = vand.u32 2147483647, %v1311_v14  ;;  %vm1317_vm10 = vweird.f32 %v1311_v14 }
 0x2b9   :  { %3107 = vrcp.f32 %v1330_v18  ;;  %v1289_v29 = vpop.f32.mrf.mxu2  ;;  %v1302_v59 = vpop.f32.mrf.mxu3  ;;  %v1342_v37 = vand.u32 2147483648, %v1330_v18  ;;  %v1340_v51 = vand.u32 2147483647, %v1330_v18  ;;  %vm1336_vm11 = vweird.f32 %v1330_v18 }
 0x2ba   :  { %vm1322_vm14 = vcmp.eq.f32.partialorder %v1321_v4, 8.507059e+37 }
 0x2bb   :  { %v1343_v62 = vor.u32 1.1754944e-38, %v1342_v37  ;;  %vm1341_vm15 = vcmp.eq.f32.partialorder %v1340_v51, 8.507059e+37 }
 0x2bc   :  { %v3104_v22 = vpop.eup %3103 }
 0x2bd   :  { %v3911_v61 = vadd.f32 1.0, %v3104_v22  ;;  %v1374_v22 = vunpack.c.l.bf16 %v2881_v36 }
 0x2be   :  { %v3106_v38 = vpop.eup %3105 }
 0x2bf   :  { %v3108_v5 = vpop.eup %3107  ;;  %v1313_v39 = vmul.f32 %v3106_v38, %v1311_v14  ;;  %3109 = vrcp.f32 %v3911_v61  ;;  %vm1318_vm8 = vweird.f32 %v3106_v38  ;;  %vm1356_vm1 = vweird.f32 %v3911_v61 }
 0x2c0   :  { %v1332_v31 = vmul.f32 %v3108_v5, %v1330_v18  ;;  %3111 = vtanh.f32 %v1306_v50  ;;  %vm1337_vm9 = vweird.f32 %v3108_v5  ;;  %vm1319_vm12 = vmor %vm1317_vm10, %vm1318_vm8 }
 0x2c1   :  { %v1314_v35 = vsub.f32 1.0, %v1313_v39  ;;  %v1324_v39 = vor.u32 1.1754944e-38, %v1323_v15  ;;  %vm1338_vm13 = vmor %vm1336_vm11, %vm1337_vm9 }
 0x2c2   :  { %v1333_v13 = vsub.f32 1.0, %v1332_v31 }
 0x2c3   :  { %v1315_v23 = vmul.f32 %v3106_v38, %v1314_v35  ;;  %v1375_v35 = vunpack.c.h.bf16 %v2881_v36 }
 0x2c4   :  { %v1334_v29 = vmul.f32 %v3108_v5, %v1333_v13 }
 0x2c5   :  { %v3110_v59 = vpop.eup %3109  ;;  %v1316_v27 = vadd.f32 %v3106_v38, %v1315_v23 }
 0x2c6   :  { %v1335_v31 = vadd.f32 %v3108_v5, %v1334_v29  ;;  %v1352_v50 = vmul.f32 %v3110_v59, %v3911_v61  ;;  %v3112_v44 = vpop.eup %3111  ;;  %vm1357_vm0 = vweird.f32 %v3110_v59 }
 0x2c7   :  { %v1320_v60 = vsel %vm1319_vm12, %v3106_v38, %v1316_v27  ;;  %v2882_v38 = vld [vmem:[%s4278_s1 + $0xc8] sm:$0xff]  ;;  %vm1358_vm2 = vmor %vm1356_vm1, %vm1357_vm0 }
 0x2c8   :  { %v1325_v11 = vsel %vm1322_vm14, %v1324_v39, %v1320_v60  ;;  %v1339_v13 = vsel %vm1338_vm13, %v3108_v5, %v1335_v31  ;;  %v1353_v24 = vsub.f32 1.0, %v1352_v50 }
 0x2c9   :  { %v1344_v56 = vsel %vm1341_vm15, %v1343_v62, %v1339_v13  ;;  %v1367_v23 = vmul.f32 %v3112_v44, %v1325_v11  ;;  %v1362_v11 = vand.u32 2147483648, %v3911_v61 }
 0x2ca   :  { %v1366_v14 = vmul.f32 %v1344_v56, %v3818_v30  ;;  %v1354_v18 = vmul.f32 %v3110_v59, %v1353_v24  ;;  %v1387_v63 = vpop.f32.mrf.mxu0  ;;  %v1400_v15 = vpop.f32.mrf.mxu1  ;;  %v1377_v30 = vunpack.c.h.bf16 %v2882_v38 }
 0x2cb   :  { %v1430_v29 = vadd.f32 %v1387_v63, %v1374_v22  ;;  %v1431_v43 = vadd.f32 %v1400_v15, %v1375_v35  ;;  %v1360_v63 = vand.u32 2147483647, %v3911_v61  ;;  %v1363_v62 = vor.u32 1.1754944e-38, %v1362_v11 }
 0x2cc   :  { %v3922_v37 = vadd.f32 %v1367_v23, %v1366_v14  ;;  %v1355_v36 = vadd.f32 %v3110_v59, %v1354_v18 }
 0x2cd   :  { %v2883_v60 = vmul.f32 -1.442695, %v1430_v29  ;;  %v2884_v5 = vmul.f32 -1.442695, %v1431_v43  ;;  %vm1361_vm3 = vcmp.eq.f32.partialorder %v1360_v63, 8.507059e+37 }
 0x2ce   :  { %3113 = vtanh.f32 %v3922_v37  ;;  %v1359_v44 = vsel %vm1358_vm2, %v3110_v59, %v1355_v36  ;;  %v1376_v59 = vunpack.c.l.bf16 %v2882_v38 }
 0x2cf   :  { %3115 = vpow2.f32 %v2883_v60  ;;  %v1364_v39 = vsel %vm1361_vm3, %v1363_v62, %v1359_v44 }
 0x2d0   :  { %3117 = vpow2.f32 %v2884_v5 }
 0x2d1   :  { %v1413_v56 = vpop.f32.mrf.mxu2  ;;  %v1426_v24 = vpop.f32.mrf.mxu3 }
 0x2d2   :  { %v1433_v4 = vadd.f32 %v1426_v24, %v1377_v30  ;;  %v1389_v51 = vpop.f32.mrf.mxu0  ;;  %v1402_v43 = vpop.f32.mrf.mxu1  ;;  %v1432_v5 = vadd.f32 %v1413_v56, %v1376_v59 }
 0x2d4   :  { %v3114_v27 = vpop.eup %3113  ;;  %v2885_v22 = vmul.f32 -1.442695, %v1433_v4 }
 0x2d5   :  { %v3116_v31 = vpop.eup %3115  ;;  %v1370_v50 = vmul.f32 %v3114_v27, %v1364_v39 }
 0x2d6   :  { %v3118_v35 = vpop.eup %3117  ;;  %v1437_v13 = vadd.f32 1.0, %v3116_v31  ;;  %3119 = vpow2.f32 %v2885_v22 }
 0x2d7   :  { %v1456_v61 = vadd.f32 1.0, %v3118_v35  ;;  %v1497_v23 = vpack.c.bf16 %v1370_v50, %v1370_v50 }
 0x2d8   :  { %3121 = vrcp.f32 %v1437_v13  ;;  %v1449_v24 = vand.u32 2147483648, %v1437_v13  ;;  %v1447_v56 = vand.u32 2147483647, %v1437_v13  ;;  %vm1443_vm6 = vweird.f32 %v1437_v13 }
 0x2d9   :  { %3123 = vrcp.f32 %v1456_v61  ;;  %v1415_v14 = vpop.f32.mrf.mxu2  ;;  %v1428_v18 = vpop.f32.mrf.mxu3  ;;  %2886 = vst [vmem:[%s4280_s3 + $0xc] sm:$0xf] %v1497_v23  ;;  %1518 = vmatmul.bf16.vlgmr.msra.gmra.mxu0 %v1497_v23  ;;  %1531 = vmatmul.bf16.vlgmr.msra.gmra.mxu1 %v1497_v23  ;;  %v1468_v44 = vand.u32 2147483648, %v1456_v61  ;;  %v1466_v51 = vand.u32 2147483647, %v1456_v61  ;;  %vm1462_vm7 = vweird.f32 %v1456_v61 }
 0x2da   :  { %1544 = vmatmul.bf16.vlgmr.msra.gmra.mxu2 %v1497_v23  ;;  %1557 = vmatmul.bf16.vlgmr.msra.gmra.mxu3 %v1497_v23  ;;  %v1450_v22 = vor.u32 1.1754944e-38, %v1449_v24  ;;  %vm1448_vm10 = vcmp.eq.f32.partialorder %v1447_v56, 8.507059e+37  ;;  %v4478_v56 = vld [vmem:[#allocation9_spill] sm:$0xff] }
 0x2db   :  { %1768 = vmatpush.bf16.msra.mxu0 %v3317_v3  ;;  %1781 = vmatpush.bf16.msra.mxu1 %v3319_v7  ;;  %v1469_v50 = vor.u32 1.1754944e-38, %v1468_v44  ;;  %vm1467_vm11 = vcmp.eq.f32.partialorder %v1466_v51, 8.507059e+37  ;;  %v4480_v51 = vld [vmem:[#allocation12_spill] sm:$0xff] }
 0x2dc   :  { %v3120_v15 = vpop.eup %3119  ;;  %1794 = vmatpush.bf16.msra.mxu2 %v3332_v21  ;;  %1807 = vmatpush.bf16.msra.mxu3 %v3321_v8 }
 0x2dd   :  { %v3935_v29 = vadd.f32 1.0, %v3120_v15 }
 0x2de   :  { %v3122_v60 = vpop.eup %3121 }
 0x2df   :  { %v3124_v36 = vpop.eup %3123  ;;  %v1439_v11 = vmul.f32 %v3122_v60, %v1437_v13  ;;  %3125 = vrcp.f32 %v3935_v29  ;;  %1769 = vmatpush.bf16.msra.mxu0 %v3324_v12  ;;  %1782 = vmatpush.bf16.msra.mxu1 %v3328_v16  ;;  %vm1444_vm4 = vweird.f32 %v3122_v60  ;;  %vm1482_vm13 = vweird.f32 %v3935_v29 }
 0x2e0   :  { %v1458_v38 = vmul.f32 %v3124_v36, %v1456_v61  ;;  %1795 = vmatpush.bf16.msra.mxu2 %v3344_v34  ;;  %1808 = vmatpush.bf16.msra.mxu3 %v3330_v17  ;;  %3127 = vtanh.f32 %v1432_v5  ;;  %vm1463_vm5 = vweird.f32 %v3124_v36  ;;  %vm1445_vm8 = vmor %vm1443_vm6, %vm1444_vm4 }
 0x2e1   :  { %v1440_v30 = vsub.f32 1.0, %v1439_v11  ;;  %vm1464_vm9 = vmor %vm1462_vm7, %vm1463_vm5  ;;  %v1488_v11 = vand.u32 2147483648, %v3935_v29 }
 0x2e2   :  { %v1459_v63 = vsub.f32 1.0, %v1458_v38 }
 0x2e3   :  { %v1441_v62 = vmul.f32 %v3122_v60, %v1440_v30  ;;  %1770 = vmatpush.bf16.msra.mxu0 %v3336_v28  ;;  %1783 = vmatpush.bf16.msra.mxu1 %v3340_v32  ;;  %v1489_v30 = vor.u32 1.1754944e-38, %v1488_v11  ;;  %v4497_v11 = vld [vmem:[#allocation30_spill] sm:$0xff] }
 0x2e4   :  { %v1460_v4 = vmul.f32 %v3124_v36, %v1459_v63  ;;  %1796 = vmatpush.bf16.msra.mxu2 %v3350_v42  ;;  %1809 = vmatpush.bf16.msra.mxu3 %v3342_v33 }
 0x2e5   :  { %v3126_v43 = vpop.eup %3125  ;;  %v1442_v27 = vadd.f32 %v3122_v60, %v1441_v62  ;;  %v4477_v62 = vld [vmem:[#allocation10_spill] sm:$0xff] }
 0x2e6   :  { %v1461_v39 = vadd.f32 %v3124_v36, %v1460_v4  ;;  %v1478_v31 = vmul.f32 %v3126_v43, %v3935_v29  ;;  %v3128_v23 = vpop.eup %3127  ;;  %vm1483_vm12 = vweird.f32 %v3126_v43  ;;  %v4479_v4 = vld [vmem:[#allocation11_spill] sm:$0xff] }
 0x2e7   :  { %v1446_v35 = vsel %vm1445_vm8, %v3122_v60, %v1442_v27  ;;  %1771 = vmatpush.bf16.msra.mxu0 %v3348_v41  ;;  %1784 = vmatpush.bf16.msra.mxu1 %v3354_v45  ;;  %vm1484_vm14 = vmor %vm1482_vm13, %vm1483_vm12  ;;  %v4482_v27 = vld [vmem:[#allocation13_spill] sm:$0xff] }
 0x2e8   :  { %v1451_v14 = vsel %vm1448_vm10, %v1450_v22, %v1446_v35  ;;  %v1465_v18 = vsel %vm1464_vm9, %v3124_v36, %v1461_v39  ;;  %v1479_v59 = vsub.f32 1.0, %v1478_v31  ;;  %1797 = vmatpush.bf16.msra.mxu2 %v3362_v54  ;;  %1810 = vmatpush.bf16.msra.mxu3 %v3356_v46  ;;  %v4483_v22 = vld [vmem:[#allocation15_spill] sm:$0xff]  ;;  %v4484_v39 = vld [vmem:[#allocation16_spill] sm:$0xff]  ;;  %v4485_v31 = vld [vmem:[#allocation18_spill] sm:$0xff] }
 0x2e9   :  { %v1470_v13 = vsel %vm1467_vm11, %v1469_v50, %v1465_v18  ;;  %v1493_v61 = vmul.f32 %v3128_v23, %v1451_v14  ;;  %v4486_v50 = vld [vmem:[#allocation17_spill] sm:$0xff]  ;;  %v4487_v35 = vld [vmem:[#allocation19_spill] sm:$0xff]  ;;  %v4488_v23 = vld [vmem:[#allocation20_spill] sm:$0xff] }
 0x2ea   :  { %v1492_v15 = vmul.f32 %v1470_v13, %v3850_v0  ;;  %v1480_v5 = vmul.f32 %v3126_v43, %v1479_v59  ;;  %v1486_v0 = vand.u32 2147483647, %v3935_v29  ;;  %v4489_v14 = vld [vmem:[#allocation22_spill] sm:$0xff]  ;;  %v4490_v18 = vld [vmem:[#allocation21_spill] sm:$0xff]  ;;  %v4491_v59 = vld [vmem:[#allocation23_spill] sm:$0xff] }
 0x2eb   :  { %1772 = vmatpush.bf16.msra.mxu0 %v3360_v53  ;;  %1785 = vmatpush.bf16.msra.mxu1 %v3366_v57  ;;  %v4492_v13 = vld [vmem:[#allocation24_spill] sm:$0xff] }
 0x2ec   :  { %v3954_v60 = vadd.f32 %v1493_v61, %v1492_v15  ;;  %1798 = vmatpush.bf16.msra.mxu2 %v3374_v2  ;;  %1811 = vmatpush.bf16.msra.mxu3 %v3368_v58  ;;  %v1481_v36 = vadd.f32 %v3126_v43, %v1480_v5  ;;  %vm1487_vm15 = vcmp.eq.f32.partialorder %v1486_v0, 8.507059e+37  ;;  %v4493_v61 = vld [vmem:[#allocation26_spill] sm:$0xff]  ;;  %v4494_v15 = vld [vmem:[#allocation25_spill] sm:$0xff]  ;;  %v4495_v5 = vld [vmem:[#allocation27_spill] sm:$0xff] }
 0x2ed   :  { %v4498_v0 = vld [vmem:[#allocation29_spill] sm:$0xff] }
 0x2ee   :  { %3129 = vtanh.f32 %v3954_v60  ;;  %v1485_v38 = vsel %vm1484_vm14, %v3126_v43, %v1481_v36  ;;  %v4481_v43 = vld [vmem:[#allocation14_spill] sm:$0xff]  ;;  %v4496_v36 = vld [vmem:[#allocation28_spill] sm:$0xff] }
 0x2ef   :  { %1773 = vmatpush.bf16.msra.mxu0 %v3372_v1  ;;  %1786 = vmatpush.bf16.msra.mxu1 %v3378_v6  ;;  %v1490_v24 = vsel %vm1487_vm15, %v1489_v30, %v1485_v38  ;;  %v4499_v38 = vld [vmem:[#allocation31_spill] sm:$0xff]  ;;  %v4500_v30 = vld [vmem:[#allocation32_spill] sm:$0xff] }
 0x2f0   :  { %1799 = vmatpush.bf16.msra.mxu2 %v3386_v20  ;;  %1812 = vmatpush.bf16.msra.mxu3 %v3380_v9 }
 0x2f3   :  { %1774 = vmatpush.bf16.msra.mxu0 %v3384_v19  ;;  %1787 = vmatpush.bf16.msra.mxu1 %v3390_v25 }
 0x2f4   :  { %v3130_v63 = vpop.eup %3129  ;;  %1800 = vmatpush.bf16.msra.mxu2 %v3398_v47  ;;  %1813 = vmatpush.bf16.msra.mxu3 %v3392_v26 }
 0x2f5   :  { %v1496_v29 = vmul.f32 %v3130_v63, %v1490_v24  ;;  %v4501_v63 = vld [vmem:[#allocation34_spill] sm:$0xff]  ;;  %v4502_v24 = vld [vmem:[#allocation33_spill] sm:$0xff] }
 0x2f7   :  { %v1500_v44 = vpack.c.bf16 %v1496_v29, %v1496_v29  ;;  %1775 = vmatpush.bf16.msra.mxu0 %v3396_v40  ;;  %1788 = vmatpush.bf16.msra.mxu1 %v3402_v48  ;;  %v4503_v29 = vld [vmem:[#allocation35_spill] sm:$0xff] }
 0x2f8   :  { %1801 = vmatpush.bf16.msra.mxu2 %v3414_v10  ;;  %1814 = vmatpush.bf16.msra.mxu3 %v3404_v49 }
 0x2f9   :  { %2887 = vst [vmem:[%s4281_s4 + $0x10] sm:$0xf] %v1500_v44  ;;  %1644 = vmatmul.bf16.vlgmr.msrb.gmra.mxu0 %v1500_v44  ;;  %1657 = vmatmul.bf16.vlgmr.msrb.gmra.mxu1 %v1500_v44 }
 0x2fa   :  { %1670 = vmatmul.bf16.vlgmr.msrb.gmra.mxu2 %v1500_v44  ;;  %1683 = vmatmul.bf16.vlgmr.msrb.gmra.mxu3 %v1500_v44  ;;  %v4504_v44 = vld [vmem:[#allocation36_spill] sm:$0xff] }
 0x2fb   :  { %1894 = vmatpush.bf16.msrb.mxu0 %v3406_v52  ;;  %1907 = vmatpush.bf16.msrb.mxu1 %v3408_v55 }
 0x2fc   :  { %1920 = vmatpush.bf16.msrb.mxu2 %v4477_v62  ;;  %1933 = vmatpush.bf16.msrb.mxu3 %v4478_v56 }
 0x2ff   :  { %1895 = vmatpush.bf16.msrb.mxu0 %v4479_v4  ;;  %1908 = vmatpush.bf16.msrb.mxu1 %v4480_v51 }
 0x300   :  { %1921 = vmatpush.bf16.msrb.mxu2 %v4481_v43  ;;  %1934 = vmatpush.bf16.msrb.mxu3 %v4482_v27 }
 0x303   :  { %1896 = vmatpush.bf16.msrb.mxu0 %v4483_v22  ;;  %1909 = vmatpush.bf16.msrb.mxu1 %v4484_v39 }
 0x304   :  { %1922 = vmatpush.bf16.msrb.mxu2 %v4485_v31  ;;  %1935 = vmatpush.bf16.msrb.mxu3 %v4486_v50 }
 0x307   :  { %1897 = vmatpush.bf16.msrb.mxu0 %v4487_v35  ;;  %1910 = vmatpush.bf16.msrb.mxu1 %v4488_v23 }
 0x308   :  { %1923 = vmatpush.bf16.msrb.mxu2 %v4489_v14  ;;  %1936 = vmatpush.bf16.msrb.mxu3 %v4490_v18 }
 0x30b   :  { %1898 = vmatpush.bf16.msrb.mxu0 %v4491_v59  ;;  %1911 = vmatpush.bf16.msrb.mxu1 %v4492_v13 }
 0x30c   :  { %1924 = vmatpush.bf16.msrb.mxu2 %v4493_v61  ;;  %1937 = vmatpush.bf16.msrb.mxu3 %v4494_v15  ;;  %v4505_v15 = vld [vmem:[#allocation38_spill] sm:$0xff] }
 0x30f   :  { %1899 = vmatpush.bf16.msrb.mxu0 %v4495_v5  ;;  %1912 = vmatpush.bf16.msrb.mxu1 %v4496_v36  ;;  %v4506_v5 = vld [vmem:[#allocation37_spill] sm:$0xff] }
 0x310   :  { %1925 = vmatpush.bf16.msrb.mxu2 %v4497_v11  ;;  %1938 = vmatpush.bf16.msrb.mxu3 %v4498_v0  ;;  %v2888_v0 = vld [vmem:[%s4277_s0 + $0x40] sm:$0xff] }
 0x311   :  { %v1506_v11 = vunpack.c.l.bf16 %v2888_v0 }
 0x313   :  { %1900 = vmatpush.bf16.msrb.mxu0 %v4499_v38  ;;  %1913 = vmatpush.bf16.msrb.mxu1 %v4500_v30  ;;  %v1507_v38 = vunpack.c.h.bf16 %v2888_v0 }
 0x314   :  { %1926 = vmatpush.bf16.msrb.mxu2 %v4501_v63  ;;  %1939 = vmatpush.bf16.msrb.mxu3 %v4502_v24 }
 0x317   :  { %1901 = vmatpush.bf16.msrb.mxu0 %v4503_v29  ;;  %1914 = vmatpush.bf16.msrb.mxu1 %v4504_v44  ;;  %v2889_v29 = vld [vmem:[%s4277_s0 + $0x48] sm:$0xff] }
 0x318   :  { %1927 = vmatpush.bf16.msrb.mxu2 %v4505_v15  ;;  %1940 = vmatpush.bf16.msrb.mxu3 %v4506_v5  ;;  %v1509_v13 = vunpack.c.h.bf16 %v2889_v29 }
 0x356   :  { %v1519_v36 = vpop.f32.mrf.mxu0  ;;  %v1532_v30 = vpop.f32.mrf.mxu1 }
 0x357   :  { %v1562_v61 = vadd.f32 %v1519_v36, %v1506_v11  ;;  %v1563_v63 = vadd.f32 %v1532_v30, %v1507_v38 }
 0x359   :  { %v2890_v24 = vmul.f32 -1.442695, %v1562_v61  ;;  %v2891_v44 = vmul.f32 -1.442695, %v1563_v63  ;;  %v1508_v61 = vunpack.c.l.bf16 %v2889_v29 }
 0x35b   :  { %3131 = vpow2.f32 %v2890_v24 }
 0x35c   :  { %3133 = vpow2.f32 %v2891_v44 }
 0x35d   :  { %v1545_v5 = vpop.f32.mrf.mxu2  ;;  %v1558_v15 = vpop.f32.mrf.mxu3 }
 0x35e   :  { %v1565_v59 = vadd.f32 %v1558_v15, %v1509_v13  ;;  %v1521_v18 = vpop.f32.mrf.mxu0  ;;  %v1534_v14 = vpop.f32.mrf.mxu1  ;;  %v1564_v44 = vadd.f32 %v1545_v5, %v1508_v61 }
 0x360   :  { %v2892_v23 = vmul.f32 -1.442695, %v1565_v59 }
 0x361   :  { %v3132_v0 = vpop.eup %3131 }
 0x362   :  { %v3134_v35 = vpop.eup %3133  ;;  %v1569_v50 = vadd.f32 1.0, %v3132_v0  ;;  %3135 = vpow2.f32 %v2892_v23 }
 0x363   :  { %v1588_v36 = vadd.f32 1.0, %v3134_v35  ;;  %v2893_v35 = vld [vmem:[%s4278_s1 + $0xb0] sm:$0xff] }
 0x364   :  { %3137 = vrcp.f32 %v1569_v50  ;;  %v1581_v15 = vand.u32 2147483648, %v1569_v50  ;;  %v1579_v0 = vand.u32 2147483647, %v1569_v50  ;;  %vm1575_vm2 = vweird.f32 %v1569_v50 }
 0x365   :  { %3139 = vrcp.f32 %v1588_v36  ;;  %v1547_v11 = vpop.f32.mrf.mxu2  ;;  %v1560_v38 = vpop.f32.mrf.mxu3  ;;  %v1600_v23 = vand.u32 2147483648, %v1588_v36  ;;  %v1598_v5 = vand.u32 2147483647, %v1588_v36  ;;  %vm1594_vm3 = vweird.f32 %v1588_v36 }
 0x366   :  { %vm1580_vm6 = vcmp.eq.f32.partialorder %v1579_v0, 8.507059e+37 }
 0x367   :  { %v1601_v39 = vor.u32 1.1754944e-38, %v1600_v23  ;;  %vm1599_vm7 = vcmp.eq.f32.partialorder %v1598_v5, 8.507059e+37 }
 0x368   :  { %v3136_v30 = vpop.eup %3135 }
 0x369   :  { %v4015_v63 = vadd.f32 1.0, %v3136_v30  ;;  %v1632_v30 = vunpack.c.l.bf16 %v2893_v35 }
 0x36a   :  { %v3138_v24 = vpop.eup %3137 }
 0x36b   :  { %v3140_v31 = vpop.eup %3139  ;;  %v1571_v13 = vmul.f32 %v3138_v24, %v1569_v50  ;;  %3141 = vrcp.f32 %v4015_v63  ;;  %vm1576_vm0 = vweird.f32 %v3138_v24  ;;  %vm1614_vm9 = vweird.f32 %v4015_v63 }
 0x36c   :  { %v1590_v14 = vmul.f32 %v3140_v31, %v1588_v36  ;;  %3143 = vtanh.f32 %v1564_v44  ;;  %vm1595_vm1 = vweird.f32 %v3140_v31  ;;  %vm1577_vm4 = vmor %vm1575_vm2, %vm1576_vm0 }
 0x36d   :  { %v1572_v18 = vsub.f32 1.0, %v1571_v13  ;;  %v1582_v13 = vor.u32 1.1754944e-38, %v1581_v15  ;;  %vm1596_vm5 = vmor %vm1594_vm3, %vm1595_vm1 }
 0x36e   :  { %v1591_v59 = vsub.f32 1.0, %v1590_v14 }
 0x36f   :  { %v1573_v29 = vmul.f32 %v3138_v24, %v1572_v18  ;;  %v1633_v18 = vunpack.c.h.bf16 %v2893_v35 }
 0x370   :  { %v1592_v11 = vmul.f32 %v3140_v31, %v1591_v59 }
 0x371   :  { %v3142_v38 = vpop.eup %3141  ;;  %v1574_v61 = vadd.f32 %v3138_v24, %v1573_v29 }
 0x372   :  { %v1593_v14 = vadd.f32 %v3140_v31, %v1592_v11  ;;  %v1610_v44 = vmul.f32 %v3142_v38, %v4015_v63  ;;  %v3144_v27 = vpop.eup %3143  ;;  %vm1615_vm8 = vweird.f32 %v3142_v38 }
 0x373   :  { %v1578_v22 = vsel %vm1577_vm4, %v3138_v24, %v1574_v61  ;;  %v2894_v24 = vld [vmem:[%s4278_s1 + $0xb8] sm:$0xff]  ;;  %vm1616_vm10 = vmor %vm1614_vm9, %vm1615_vm8 }
 0x374   :  { %v1583_v43 = vsel %vm1580_vm6, %v1582_v13, %v1578_v22  ;;  %v1597_v59 = vsel %vm1596_vm5, %v3140_v31, %v1593_v14  ;;  %v1611_v51 = vsub.f32 1.0, %v1610_v44 }
 0x375   :  { %v1602_v4 = vsel %vm1599_vm7, %v1601_v39, %v1597_v59  ;;  %v1625_v29 = vmul.f32 %v3144_v27, %v1583_v43  ;;  %v1620_v43 = vand.u32 2147483648, %v4015_v63 }
 0x376   :  { %v1624_v50 = vmul.f32 %v1602_v4, %v3922_v37  ;;  %v1612_v36 = vmul.f32 %v3142_v38, %v1611_v51  ;;  %v1645_v56 = vpop.f32.mrf.mxu0  ;;  %v1658_v15 = vpop.f32.mrf.mxu1  ;;  %v1635_v37 = vunpack.c.h.bf16 %v2894_v24 }
 0x377   :  { %v1688_v11 = vadd.f32 %v1645_v56, %v1632_v30  ;;  %v1689_v62 = vadd.f32 %v1658_v15, %v1633_v18  ;;  %v1618_v56 = vand.u32 2147483647, %v4015_v63  ;;  %v1621_v39 = vor.u32 1.1754944e-38, %v1620_v43 }
 0x378   :  { %v4026_v23 = vadd.f32 %v1625_v29, %v1624_v50  ;;  %v1613_v35 = vadd.f32 %v3142_v38, %v1612_v36 }
 0x379   :  { %v2895_v22 = vmul.f32 -1.442695, %v1688_v11  ;;  %v2896_v31 = vmul.f32 -1.442695, %v1689_v62  ;;  %vm1619_vm11 = vcmp.eq.f32.partialorder %v1618_v56, 8.507059e+37 }
 0x37a   :  { %3145 = vtanh.f32 %v4026_v23  ;;  %v1617_v27 = vsel %vm1616_vm10, %v3142_v38, %v1613_v35  ;;  %v1634_v38 = vunpack.c.l.bf16 %v2894_v24 }
 0x37b   :  { %3147 = vpow2.f32 %v2895_v22  ;;  %v1622_v13 = vsel %vm1619_vm11, %v1621_v39, %v1617_v27 }
 0x37c   :  { %3149 = vpow2.f32 %v2896_v31 }
 0x37d   :  { %v1671_v4 = vpop.f32.mrf.mxu2  ;;  %v1684_v51 = vpop.f32.mrf.mxu3 }
 0x37e   :  { %v1691_v0 = vadd.f32 %v1684_v51, %v1635_v37  ;;  %v1647_v5 = vpop.f32.mrf.mxu0  ;;  %v1660_v62 = vpop.f32.mrf.mxu1  ;;  %v1690_v31 = vadd.f32 %v1671_v4, %v1634_v38 }
 0x380   :  { %v3146_v61 = vpop.eup %3145  ;;  %v2897_v30 = vmul.f32 -1.442695, %v1691_v0 }
 0x381   :  { %v3148_v14 = vpop.eup %3147  ;;  %v1628_v44 = vmul.f32 %v3146_v61, %v1622_v13 }
 0x382   :  { %v3150_v18 = vpop.eup %3149  ;;  %v1695_v59 = vadd.f32 1.0, %v3148_v14  ;;  %3151 = vpow2.f32 %v2897_v30 }
 0x383   :  { %v1714_v63 = vadd.f32 1.0, %v3150_v18  ;;  %v1755_v29 = vpack.c.bf16 %v1628_v44, %v1628_v44 }
 0x384   :  { %3153 = vrcp.f32 %v1695_v59  ;;  %v1707_v51 = vand.u32 2147483648, %v1695_v59  ;;  %v1705_v4 = vand.u32 2147483647, %v1695_v59  ;;  %vm1701_vm14 = vweird.f32 %v1695_v59 }
 0x385   :  { %3155 = vrcp.f32 %v1714_v63  ;;  %v1673_v50 = vpop.f32.mrf.mxu2  ;;  %v1686_v36 = vpop.f32.mrf.mxu3  ;;  %2898 = vst [vmem:[%s4280_s3 + $0x10] sm:$0xf] %v1755_v29  ;;  %1776 = vmatmul.bf16.vlgmr.msra.gmra.mxu0 %v1755_v29  ;;  %1789 = vmatmul.bf16.vlgmr.msra.gmra.mxu1 %v1755_v29  ;;  %v1726_v27 = vand.u32 2147483648, %v1714_v63  ;;  %v1724_v5 = vand.u32 2147483647, %v1714_v63  ;;  %vm1720_vm15 = vweird.f32 %v1714_v63 }
 0x386   :  { %1802 = vmatmul.bf16.vlgmr.msra.gmra.mxu2 %v1755_v29  ;;  %1815 = vmatmul.bf16.vlgmr.msra.gmra.mxu3 %v1755_v29  ;;  %v1708_v30 = vor.u32 1.1754944e-38, %v1707_v51  ;;  %vm1706_vm2 = vcmp.eq.f32.partialorder %v1705_v4, 8.507059e+37  ;;  %v4508_v4 = vld [vmem:[#allocation9_spill] sm:$0xff] }
 0x387   :  { %2026 = vmatpush.bf16.msra.mxu0 %v3317_v3  ;;  %2039 = vmatpush.bf16.msra.mxu1 %v3319_v7  ;;  %v1727_v44 = vor.u32 1.1754944e-38, %v1726_v27  ;;  %vm1725_vm3 = vcmp.eq.f32.partialorder %v1724_v5, 8.507059e+37  ;;  %v4510_v5 = vld [vmem:[#allocation12_spill] sm:$0xff] }
 0x388   :  { %v3152_v15 = vpop.eup %3151  ;;  %2052 = vmatpush.bf16.msra.mxu2 %v3332_v21  ;;  %2065 = vmatpush.bf16.msra.mxu3 %v3321_v8 }
 0x389   :  { %v4039_v11 = vadd.f32 1.0, %v3152_v15 }
 0x38a   :  { %v3154_v22 = vpop.eup %3153 }
 0x38b   :  { %v3156_v35 = vpop.eup %3155  ;;  %v1697_v43 = vmul.f32 %v3154_v22, %v1695_v59  ;;  %3157 = vrcp.f32 %v4039_v11  ;;  %2027 = vmatpush.bf16.msra.mxu0 %v3324_v12  ;;  %2040 = vmatpush.bf16.msra.mxu1 %v3328_v16  ;;  %vm1702_vm12 = vweird.f32 %v3154_v22  ;;  %vm1740_vm5 = vweird.f32 %v4039_v11 }
 0x38c   :  { %v1716_v24 = vmul.f32 %v3156_v35, %v1714_v63  ;;  %2053 = vmatpush.bf16.msra.mxu2 %v3344_v34  ;;  %2066 = vmatpush.bf16.msra.mxu3 %v3330_v17  ;;  %3159 = vtanh.f32 %v1690_v31  ;;  %vm1721_vm13 = vweird.f32 %v3156_v35  ;;  %vm1703_vm0 = vmor %vm1701_vm14, %vm1702_vm12 }
 0x38d   :  { %v1698_v37 = vsub.f32 1.0, %v1697_v43  ;;  %vm1722_vm1 = vmor %vm1720_vm15, %vm1721_vm13  ;;  %v1746_v43 = vand.u32 2147483648, %v4039_v11 }
 0x38e   :  { %v1717_v56 = vsub.f32 1.0, %v1716_v24 }
 0x38f   :  { %v1699_v39 = vmul.f32 %v3154_v22, %v1698_v37  ;;  %2028 = vmatpush.bf16.msra.mxu0 %v3336_v28  ;;  %2041 = vmatpush.bf16.msra.mxu1 %v3340_v32  ;;  %v1747_v37 = vor.u32 1.1754944e-38, %v1746_v43  ;;  %v4527_v43 = vld [vmem:[#allocation30_spill] sm:$0xff] }
 0x390   :  { %v1718_v0 = vmul.f32 %v3156_v35, %v1717_v56  ;;  %2054 = vmatpush.bf16.msra.mxu2 %v3350_v42  ;;  %2067 = vmatpush.bf16.msra.mxu3 %v3342_v33 }
 0x391   :  { %v3158_v62 = vpop.eup %3157  ;;  %v1700_v61 = vadd.f32 %v3154_v22, %v1699_v39  ;;  %v4507_v39 = vld [vmem:[#allocation10_spill] sm:$0xff] }
 0x392   :  { %v1719_v13 = vadd.f32 %v3156_v35, %v1718_v0  ;;  %v1736_v14 = vmul.f32 %v3158_v62, %v4039_v11  ;;  %v3160_v29 = vpop.eup %3159  ;;  %vm1741_vm4 = vweird.f32 %v3158_v62  ;;  %v4509_v0 = vld [vmem:[#allocation11_spill] sm:$0xff] }
 0x393   :  { %v1704_v18 = vsel %vm1703_vm0, %v3154_v22, %v1700_v61  ;;  %2029 = vmatpush.bf16.msra.mxu0 %v3348_v41  ;;  %2042 = vmatpush.bf16.msra.mxu1 %v3354_v45  ;;  %vm1742_vm6 = vmor %vm1740_vm5, %vm1741_vm4  ;;  %v4512_v61 = vld [vmem:[#allocation13_spill] sm:$0xff] }
 0x394   :  { %v1709_v50 = vsel %vm1706_vm2, %v1708_v30, %v1704_v18  ;;  %v1723_v36 = vsel %vm1722_vm1, %v3156_v35, %v1719_v13  ;;  %v1737_v38 = vsub.f32 1.0, %v1736_v14  ;;  %2055 = vmatpush.bf16.msra.mxu2 %v3362_v54  ;;  %2068 = vmatpush.bf16.msra.mxu3 %v3356_v46  ;;  %v4513_v30 = vld [vmem:[#allocation15_spill] sm:$0xff]  ;;  %v4514_v13 = vld [vmem:[#allocation16_spill] sm:$0xff]  ;;  %v4515_v14 = vld [vmem:[#allocation18_spill] sm:$0xff] }
 0x395   :  { %v1728_v59 = vsel %vm1725_vm3, %v1727_v44, %v1723_v36  ;;  %v1751_v63 = vmul.f32 %v3160_v29, %v1709_v50  ;;  %v4516_v44 = vld [vmem:[#allocation17_spill] sm:$0xff]  ;;  %v4517_v18 = vld [vmem:[#allocation19_spill] sm:$0xff]  ;;  %v4518_v29 = vld [vmem:[#allocation20_spill] sm:$0xff] }
 0x396   :  { %v1750_v15 = vmul.f32 %v1728_v59, %v3954_v60  ;;  %v1738_v31 = vmul.f32 %v3158_v62, %v1737_v38  ;;  %v1744_v60 = vand.u32 2147483647, %v4039_v11  ;;  %v4519_v50 = vld [vmem:[#allocation22_spill] sm:$0xff]  ;;  %v4520_v36 = vld [vmem:[#allocation21_spill] sm:$0xff]  ;;  %v4521_v38 = vld [vmem:[#allocation23_spill] sm:$0xff] }
 0x397   :  { %2030 = vmatpush.bf16.msra.mxu0 %v3360_v53  ;;  %2043 = vmatpush.bf16.msra.mxu1 %v3366_v57  ;;  %v4522_v59 = vld [vmem:[#allocation24_spill] sm:$0xff] }
 0x398   :  { %v4058_v22 = vadd.f32 %v1751_v63, %v1750_v15  ;;  %2056 = vmatpush.bf16.msra.mxu2 %v3374_v2  ;;  %2069 = vmatpush.bf16.msra.mxu3 %v3368_v58  ;;  %v1739_v35 = vadd.f32 %v3158_v62, %v1738_v31  ;;  %vm1745_vm7 = vcmp.eq.f32.partialorder %v1744_v60, 8.507059e+37  ;;  %v4523_v63 = vld [vmem:[#allocation26_spill] sm:$0xff]  ;;  %v4524_v15 = vld [vmem:[#allocation25_spill] sm:$0xff]  ;;  %v4525_v31 = vld [vmem:[#allocation27_spill] sm:$0xff] }
 0x399   :  { %v4528_v60 = vld [vmem:[#allocation29_spill] sm:$0xff] }
 0x39a   :  { %3161 = vtanh.f32 %v4058_v22  ;;  %v1743_v24 = vsel %vm1742_vm6, %v3158_v62, %v1739_v35  ;;  %v4511_v62 = vld [vmem:[#allocation14_spill] sm:$0xff]  ;;  %v4526_v35 = vld [vmem:[#allocation28_spill] sm:$0xff] }
 0x39b   :  { %2031 = vmatpush.bf16.msra.mxu0 %v3372_v1  ;;  %2044 = vmatpush.bf16.msra.mxu1 %v3378_v6  ;;  %v1748_v51 = vsel %vm1745_vm7, %v1747_v37, %v1743_v24  ;;  %v4529_v24 = vld [vmem:[#allocation31_spill] sm:$0xff]  ;;  %v4530_v37 = vld [vmem:[#allocation32_spill] sm:$0xff] }
 0x39c   :  { %2057 = vmatpush.bf16.msra.mxu2 %v3386_v20  ;;  %2070 = vmatpush.bf16.msra.mxu3 %v3380_v9 }
 0x39f   :  { %2032 = vmatpush.bf16.msra.mxu0 %v3384_v19  ;;  %2045 = vmatpush.bf16.msra.mxu1 %v3390_v25 }
 0x3a0   :  { %v3162_v56 = vpop.eup %3161  ;;  %2058 = vmatpush.bf16.msra.mxu2 %v3398_v47  ;;  %2071 = vmatpush.bf16.msra.mxu3 %v3392_v26 }
 0x3a1   :  { %v1754_v11 = vmul.f32 %v3162_v56, %v1748_v51  ;;  %v4531_v56 = vld [vmem:[#allocation34_spill] sm:$0xff]  ;;  %v4532_v51 = vld [vmem:[#allocation33_spill] sm:$0xff] }
 0x3a3   :  { %v1758_v27 = vpack.c.bf16 %v1754_v11, %v1754_v11  ;;  %2033 = vmatpush.bf16.msra.mxu0 %v3396_v40  ;;  %2046 = vmatpush.bf16.msra.mxu1 %v3402_v48  ;;  %v4533_v11 = vld [vmem:[#allocation35_spill] sm:$0xff] }
 0x3a4   :  { %2059 = vmatpush.bf16.msra.mxu2 %v3414_v10  ;;  %2072 = vmatpush.bf16.msra.mxu3 %v3404_v49 }
 0x3a5   :  { %2899 = vst [vmem:[%s4281_s4 + $0xc] sm:$0xf] %v1758_v27  ;;  %1902 = vmatmul.bf16.vlgmr.msrb.gmra.mxu0 %v1758_v27  ;;  %1915 = vmatmul.bf16.vlgmr.msrb.gmra.mxu1 %v1758_v27 }
 0x3a6   :  { %1928 = vmatmul.bf16.vlgmr.msrb.gmra.mxu2 %v1758_v27  ;;  %1941 = vmatmul.bf16.vlgmr.msrb.gmra.mxu3 %v1758_v27  ;;  %v4534_v27 = vld [vmem:[#allocation36_spill] sm:$0xff] }
 0x3a7   :  { %2152 = vmatpush.bf16.msrb.mxu0 %v3406_v52  ;;  %2165 = vmatpush.bf16.msrb.mxu1 %v3408_v55 }
 0x3a8   :  { %2178 = vmatpush.bf16.msrb.mxu2 %v4507_v39  ;;  %2191 = vmatpush.bf16.msrb.mxu3 %v4508_v4 }
 0x3ab   :  { %2153 = vmatpush.bf16.msrb.mxu0 %v4509_v0  ;;  %2166 = vmatpush.bf16.msrb.mxu1 %v4510_v5 }
 0x3ac   :  { %2179 = vmatpush.bf16.msrb.mxu2 %v4511_v62  ;;  %2192 = vmatpush.bf16.msrb.mxu3 %v4512_v61 }
 0x3af   :  { %2154 = vmatpush.bf16.msrb.mxu0 %v4513_v30  ;;  %2167 = vmatpush.bf16.msrb.mxu1 %v4514_v13 }
 0x3b0   :  { %2180 = vmatpush.bf16.msrb.mxu2 %v4515_v14  ;;  %2193 = vmatpush.bf16.msrb.mxu3 %v4516_v44 }
 0x3b3   :  { %2155 = vmatpush.bf16.msrb.mxu0 %v4517_v18  ;;  %2168 = vmatpush.bf16.msrb.mxu1 %v4518_v29 }
 0x3b4   :  { %2181 = vmatpush.bf16.msrb.mxu2 %v4519_v50  ;;  %2194 = vmatpush.bf16.msrb.mxu3 %v4520_v36 }
 0x3b7   :  { %2156 = vmatpush.bf16.msrb.mxu0 %v4521_v38  ;;  %2169 = vmatpush.bf16.msrb.mxu1 %v4522_v59 }
 0x3b8   :  { %2182 = vmatpush.bf16.msrb.mxu2 %v4523_v63  ;;  %2195 = vmatpush.bf16.msrb.mxu3 %v4524_v15  ;;  %v4535_v15 = vld [vmem:[#allocation38_spill] sm:$0xff] }
 0x3bb   :  { %2157 = vmatpush.bf16.msrb.mxu0 %v4525_v31  ;;  %2170 = vmatpush.bf16.msrb.mxu1 %v4526_v35  ;;  %v4536_v31 = vld [vmem:[#allocation37_spill] sm:$0xff] }
 0x3bc   :  { %2183 = vmatpush.bf16.msrb.mxu2 %v4527_v43  ;;  %2196 = vmatpush.bf16.msrb.mxu3 %v4528_v60  ;;  %v2900_v60 = vld [vmem:[%s4277_s0 + $0x50] sm:$0xff] }
 0x3bd   :  { %v1764_v43 = vunpack.c.l.bf16 %v2900_v60 }
 0x3bf   :  { %2158 = vmatpush.bf16.msrb.mxu0 %v4529_v24  ;;  %2171 = vmatpush.bf16.msrb.mxu1 %v4530_v37  ;;  %v1765_v24 = vunpack.c.h.bf16 %v2900_v60 }
 0x3c0   :  { %2184 = vmatpush.bf16.msrb.mxu2 %v4531_v56  ;;  %2197 = vmatpush.bf16.msrb.mxu3 %v4532_v51 }
 0x3c3   :  { %2159 = vmatpush.bf16.msrb.mxu0 %v4533_v11  ;;  %2172 = vmatpush.bf16.msrb.mxu1 %v4534_v27  ;;  %v2901_v11 = vld [vmem:[%s4277_s0 + $0x58] sm:$0xff] }
 0x3c4   :  { %2185 = vmatpush.bf16.msrb.mxu2 %v4535_v15  ;;  %2198 = vmatpush.bf16.msrb.mxu3 %v4536_v31  ;;  %v1767_v59 = vunpack.c.h.bf16 %v2901_v11 }
 0x402   :  { %v1777_v35 = vpop.f32.mrf.mxu0  ;;  %v1790_v37 = vpop.f32.mrf.mxu1 }
 0x403   :  { %v1820_v63 = vadd.f32 %v1777_v35, %v1764_v43  ;;  %v1821_v56 = vadd.f32 %v1790_v37, %v1765_v24 }
 0x405   :  { %v2902_v51 = vmul.f32 -1.442695, %v1820_v63  ;;  %v2903_v27 = vmul.f32 -1.442695, %v1821_v56  ;;  %v1766_v63 = vunpack.c.l.bf16 %v2901_v11 }
 0x407   :  { %3163 = vpow2.f32 %v2902_v51 }
 0x408   :  { %3165 = vpow2.f32 %v2903_v27 }
 0x409   :  { %v1803_v31 = vpop.f32.mrf.mxu2  ;;  %v1816_v15 = vpop.f32.mrf.mxu3 }
 0x40a   :  { %v1823_v38 = vadd.f32 %v1816_v15, %v1767_v59  ;;  %v1779_v36 = vpop.f32.mrf.mxu0  ;;  %v1792_v50 = vpop.f32.mrf.mxu1  ;;  %v1822_v27 = vadd.f32 %v1803_v31, %v1766_v63 }
 0x40c   :  { %v2904_v29 = vmul.f32 -1.442695, %v1823_v38 }
 0x40d   :  { %v3164_v60 = vpop.eup %3163 }
 0x40e   :  { %v3166_v18 = vpop.eup %3165  ;;  %v1827_v44 = vadd.f32 1.0, %v3164_v60  ;;  %3167 = vpow2.f32 %v2904_v29 }
 0x40f   :  { %v1846_v35 = vadd.f32 1.0, %v3166_v18  ;;  %v2905_v18 = vld [vmem:[%s4278_s1 + $0xa0] sm:$0xff] }
 0x410   :  { %3169 = vrcp.f32 %v1827_v44  ;;  %v1839_v15 = vand.u32 2147483648, %v1827_v44  ;;  %v1837_v60 = vand.u32 2147483647, %v1827_v44  ;;  %vm1833_vm10 = vweird.f32 %v1827_v44 }
 0x411   :  { %3171 = vrcp.f32 %v1846_v35  ;;  %v1805_v43 = vpop.f32.mrf.mxu2  ;;  %v1818_v24 = vpop.f32.mrf.mxu3  ;;  %v1858_v29 = vand.u32 2147483648, %v1846_v35  ;;  %v1856_v31 = vand.u32 2147483647, %v1846_v35  ;;  %vm1852_vm11 = vweird.f32 %v1846_v35 }
 0x412   :  { %vm1838_vm14 = vcmp.eq.f32.partialorder %v1837_v60, 8.507059e+37 }
 0x413   :  { %v1859_v13 = vor.u32 1.1754944e-38, %v1858_v29  ;;  %vm1857_vm15 = vcmp.eq.f32.partialorder %v1856_v31, 8.507059e+37 }
 0x414   :  { %v3168_v37 = vpop.eup %3167 }
 0x415   :  { %v4119_v56 = vadd.f32 1.0, %v3168_v37  ;;  %v1890_v37 = vunpack.c.l.bf16 %v2905_v18 }
 0x416   :  { %v3170_v51 = vpop.eup %3169 }
 0x417   :  { %v3172_v14 = vpop.eup %3171  ;;  %v1829_v59 = vmul.f32 %v3170_v51, %v1827_v44  ;;  %3173 = vrcp.f32 %v4119_v56  ;;  %vm1834_vm8 = vweird.f32 %v3170_v51  ;;  %vm1872_vm1 = vweird.f32 %v4119_v56 }
 0x418   :  { %v1848_v50 = vmul.f32 %v3172_v14, %v1846_v35  ;;  %3175 = vtanh.f32 %v1822_v27  ;;  %vm1853_vm9 = vweird.f32 %v3172_v14  ;;  %vm1835_vm12 = vmor %vm1833_vm10, %vm1834_vm8 }
 0x419   :  { %v1830_v36 = vsub.f32 1.0, %v1829_v59  ;;  %v1840_v59 = vor.u32 1.1754944e-38, %v1839_v15  ;;  %vm1854_vm13 = vmor %vm1852_vm11, %vm1853_vm9 }
 0x41a   :  { %v1849_v38 = vsub.f32 1.0, %v1848_v50 }
 0x41b   :  { %v1831_v11 = vmul.f32 %v3170_v51, %v1830_v36  ;;  %v1891_v36 = vunpack.c.h.bf16 %v2905_v18 }
 0x41c   :  { %v1850_v43 = vmul.f32 %v3172_v14, %v1849_v38 }
 0x41d   :  { %v3174_v24 = vpop.eup %3173  ;;  %v1832_v63 = vadd.f32 %v3170_v51, %v1831_v11 }
 0x41e   :  { %v1851_v50 = vadd.f32 %v3172_v14, %v1850_v43  ;;  %v1868_v27 = vmul.f32 %v3174_v24, %v4119_v56  ;;  %v3176_v61 = vpop.eup %3175  ;;  %vm1873_vm0 = vweird.f32 %v3174_v24 }
 0x41f   :  { %v1836_v30 = vsel %vm1835_vm12, %v3170_v51, %v1832_v63  ;;  %v2906_v51 = vld [vmem:[%s4278_s1 + $0xa8] sm:$0xff]  ;;  %vm1874_vm2 = vmor %vm1872_vm1, %vm1873_vm0 }
 0x420   :  { %v1841_v62 = vsel %vm1838_vm14, %v1840_v59, %v1836_v30  ;;  %v1855_v38 = vsel %vm1854_vm13, %v3172_v14, %v1851_v50  ;;  %v1869_v5 = vsub.f32 1.0, %v1868_v27 }
 0x421   :  { %v1860_v0 = vsel %vm1857_vm15, %v1859_v13, %v1855_v38  ;;  %v1883_v11 = vmul.f32 %v3176_v61, %v1841_v62  ;;  %v1878_v62 = vand.u32 2147483648, %v4119_v56 }
 0x422   :  { %v1882_v44 = vmul.f32 %v1860_v0, %v4026_v23  ;;  %v1870_v35 = vmul.f32 %v3174_v24, %v1869_v5  ;;  %v1903_v4 = vpop.f32.mrf.mxu0  ;;  %v1916_v15 = vpop.f32.mrf.mxu1  ;;  %v1893_v23 = vunpack.c.h.bf16 %v2906_v51 }
 0x423   :  { %v1946_v43 = vadd.f32 %v1903_v4, %v1890_v37  ;;  %v1947_v39 = vadd.f32 %v1916_v15, %v1891_v36  ;;  %v1876_v4 = vand.u32 2147483647, %v4119_v56  ;;  %v1879_v13 = vor.u32 1.1754944e-38, %v1878_v62 }
 0x424   :  { %v4130_v29 = vadd.f32 %v1883_v11, %v1882_v44  ;;  %v1871_v18 = vadd.f32 %v3174_v24, %v1870_v35 }
 0x425   :  { %v2907_v30 = vmul.f32 -1.442695, %v1946_v43  ;;  %v2908_v14 = vmul.f32 -1.442695, %v1947_v39  ;;  %vm1877_vm3 = vcmp.eq.f32.partialorder %v1876_v4, 8.507059e+37 }
 0x426   :  { %3177 = vtanh.f32 %v4130_v29  ;;  %v1875_v61 = vsel %vm1874_vm2, %v3174_v24, %v1871_v18  ;;  %v1892_v24 = vunpack.c.l.bf16 %v2906_v51 }
 0x427   :  { %3179 = vpow2.f32 %v2907_v30  ;;  %v1880_v59 = vsel %vm1877_vm3, %v1879_v13, %v1875_v61 }
 0x428   :  { %3181 = vpow2.f32 %v2908_v14 }
 0x429   :  { %v1929_v0 = vpop.f32.mrf.mxu2  ;;  %v1942_v5 = vpop.f32.mrf.mxu3 }
 0x42a   :  { %v1949_v60 = vadd.f32 %v1942_v5, %v1893_v23  ;;  %v1905_v31 = vpop.f32.mrf.mxu0  ;;  %v1918_v39 = vpop.f32.mrf.mxu1  ;;  %v1948_v14 = vadd.f32 %v1929_v0, %v1892_v24  ;;  %v4559_v24 = vld [vmem:[#allocation31_spill] sm:$0xff] }
 0x42c   :  { %v3178_v63 = vpop.eup %3177  ;;  %v2909_v37 = vmul.f32 -1.442695, %v1949_v60 }
 0x42d   :  { %v3180_v50 = vpop.eup %3179  ;;  %v1886_v27 = vmul.f32 %v3178_v63, %v1880_v59  ;;  %v4550_v59 = vld [vmem:[#allocation21_spill] sm:$0xff] }
 0x42e   :  { %v3182_v36 = vpop.eup %3181  ;;  %v1953_v38 = vadd.f32 1.0, %v3180_v50  ;;  %3183 = vpow2.f32 %v2909_v37  ;;  %v4551_v50 = vld [vmem:[#allocation23_spill] sm:$0xff] }
 0x42f   :  { %v1972_v56 = vadd.f32 1.0, %v3182_v36  ;;  %v2013_v11 = vpack.c.bf16 %v1886_v27, %v1886_v27  ;;  %v4552_v27 = vld [vmem:[#allocation24_spill] sm:$0xff]  ;;  %v4553_v36 = vld [vmem:[#allocation26_spill] sm:$0xff] }
 0x430   :  { %3185 = vrcp.f32 %v1953_v38  ;;  %v1963_v4 = vand.u32 2147483647, %v1953_v38  ;;  %vm1959_vm6 = vweird.f32 %v1953_v38 }
 0x431   :  { %3187 = vrcp.f32 %v1972_v56  ;;  %v1931_v44 = vpop.f32.mrf.mxu2  ;;  %v1944_v35 = vpop.f32.mrf.mxu3  ;;  %2910 = vst [vmem:[%s4280_s3 + $0x14] sm:$0xf] %v2013_v11  ;;  %2034 = vmatmul.bf16.vlgmr.msra.gmra.mxu0 %v2013_v11  ;;  %2047 = vmatmul.bf16.vlgmr.msra.gmra.mxu1 %v2013_v11  ;;  %v1984_v51 = vand.u32 2147483648, %v1972_v56  ;;  %vm1978_vm7 = vweird.f32 %v1972_v56 }
 0x432   :  { %2060 = vmatmul.bf16.vlgmr.msra.gmra.mxu2 %v2013_v11  ;;  %2073 = vmatmul.bf16.vlgmr.msra.gmra.mxu3 %v2013_v11  ;;  %vm1964_vm10 = vcmp.eq.f32.partialorder %v1963_v4, 8.507059e+37  ;;  %v4556_v11 = vld [vmem:[#allocation28_spill] sm:$0xff]  ;;  %v4557_v44 = vld [vmem:[#allocation30_spill] sm:$0xff]  ;;  %v4558_v35 = vld [vmem:[#allocation29_spill] sm:$0xff] }
 0x433   :  { %2284 = vmatpush.bf16.msra.mxu0 %v3317_v3  ;;  %2297 = vmatpush.bf16.msra.mxu1 %v3319_v7 }
 0x434   :  { %v3184_v15 = vpop.eup %3183  ;;  %2310 = vmatpush.bf16.msra.mxu2 %v3332_v21  ;;  %2323 = vmatpush.bf16.msra.mxu3 %v3321_v8  ;;  %v1965_v8 = vand.u32 2147483648, %v1953_v38 }
 0x435   :  { %v4143_v43 = vadd.f32 1.0, %v3184_v15  ;;  %v4560_v15 = vld [vmem:[#allocation32_spill] sm:$0xff] }
 0x436   :  { %v3186_v30 = vpop.eup %3185  ;;  %v1966_v0 = vor.u32 1.1754944e-38, %v1965_v8 }
 0x437   :  { %v3188_v18 = vpop.eup %3187  ;;  %v1955_v62 = vmul.f32 %v3186_v30, %v1953_v38  ;;  %3189 = vrcp.f32 %v4143_v43  ;;  %2285 = vmatpush.bf16.msra.mxu0 %v3324_v12  ;;  %2298 = vmatpush.bf16.msra.mxu1 %v3328_v16  ;;  %vm1960_vm4 = vweird.f32 %v3186_v30  ;;  %v1982_v16 = vand.u32 2147483647, %v1972_v56  ;;  %v4554_v38 = vld [vmem:[#allocation25_spill] sm:$0xff] }
 0x438   :  { %v1974_v3 = vmul.f32 %v3188_v18, %v1972_v56  ;;  %2311 = vmatpush.bf16.msra.mxu2 %v3344_v34  ;;  %2324 = vmatpush.bf16.msra.mxu3 %v3330_v17  ;;  %3191 = vtanh.f32 %v1948_v14  ;;  %vm1979_vm5 = vweird.f32 %v3188_v18  ;;  %vm1961_vm8 = vmor %vm1959_vm6, %vm1960_vm4  ;;  %vm1998_vm13 = vweird.f32 %v4143_v43  ;;  %v4555_v56 = vld [vmem:[#allocation27_spill] sm:$0xff] }
 0x439   :  { %v1956_v7 = vsub.f32 1.0, %v1955_v62  ;;  %vm1980_vm9 = vmor %vm1978_vm7, %vm1979_vm5  ;;  %vm1983_vm11 = vcmp.eq.f32.partialorder %v1982_v16, 8.507059e+37  ;;  %v4563_v14 = vld [vmem:[#allocation35_spill] sm:$0xff]  ;;  %v4565_v62 = vld [vmem:[#allocation38_spill] sm:$0xff] }
 0x43a   :  { %v1975_v21 = vsub.f32 1.0, %v1974_v3  ;;  %v4566_v3 = vld [vmem:[#allocation37_spill] sm:$0xff]  ;;  %v2913_v16 = vld [vmem:[%s4277_s0 + $0x68] sm:$0xff] }
 0x43b   :  { %v1957_v23 = vmul.f32 %v3186_v30, %v1956_v7  ;;  %2286 = vmatpush.bf16.msra.mxu0 %v3336_v28  ;;  %2299 = vmatpush.bf16.msra.mxu1 %v3340_v32  ;;  %v1985_v28 = vor.u32 1.1754944e-38, %v1984_v51  ;;  %v2912_v7 = vld [vmem:[%s4277_s0 + $0x60] sm:$0xff] }
 0x43c   :  { %v1976_v12 = vmul.f32 %v3188_v18, %v1975_v21  ;;  %2312 = vmatpush.bf16.msra.mxu2 %v3350_v42  ;;  %2325 = vmatpush.bf16.msra.mxu3 %v3342_v33  ;;  %v2022_v21 = vunpack.c.l.bf16 %v2912_v7  ;;  %v2023_v8 = vunpack.c.h.bf16 %v2912_v7 }
 0x43d   :  { %v3190_v17 = vpop.eup %3189  ;;  %v1958_v34 = vadd.f32 %v3186_v30, %v1957_v23 }
 0x43e   :  { %v1977_v5 = vadd.f32 %v3188_v18, %v1976_v12  ;;  %v1994_v61 = vmul.f32 %v3190_v17, %v4143_v43  ;;  %v3192_v32 = vpop.eup %3191  ;;  %vm1999_vm12 = vweird.f32 %v3190_v17 }
 0x43f   :  { %v1962_v13 = vsel %vm1961_vm8, %v3186_v30, %v1958_v34  ;;  %2287 = vmatpush.bf16.msra.mxu0 %v3348_v41  ;;  %2300 = vmatpush.bf16.msra.mxu1 %v3354_v45  ;;  %vm2000_vm14 = vmor %vm1998_vm13, %vm1999_vm12  ;;  %v4562_v30 = vld [vmem:[#allocation33_spill] sm:$0xff] }
 0x440   :  { %v1967_v42 = vsel %vm1964_vm10, %v1966_v0, %v1962_v13  ;;  %v1981_v33 = vsel %vm1980_vm9, %v3188_v18, %v1977_v5  ;;  %v1995_v60 = vsub.f32 1.0, %v1994_v61  ;;  %2313 = vmatpush.bf16.msra.mxu2 %v3362_v54  ;;  %2326 = vmatpush.bf16.msra.mxu3 %v3356_v46  ;;  %v2004_v46 = vand.u32 2147483648, %v4143_v43  ;;  %v4564_v18 = vld [vmem:[#allocation36_spill] sm:$0xff] }
 0x441   :  { %v1986_v31 = vsel %vm1983_vm11, %v1985_v28, %v1981_v33  ;;  %v2009_v39 = vmul.f32 %v3192_v32, %v1967_v42  ;;  %v2002_v54 = vand.u32 2147483647, %v4143_v43  ;;  %v4561_v43 = vld [vmem:[#allocation34_spill] sm:$0xff]  ;;  %v2025_v0 = vunpack.c.h.bf16 %v2913_v16 }
 0x442   :  { %v2008_v63 = vmul.f32 %v1986_v31, %v4058_v22  ;;  %v1996_v37 = vmul.f32 %v3190_v17, %v1995_v60  ;;  %v4549_v22 = vld [vmem:[#allocation22_spill] sm:$0xff] }
 0x443   :  { %2288 = vmatpush.bf16.msra.mxu0 %v3360_v53  ;;  %2301 = vmatpush.bf16.msra.mxu1 %v3366_v57  ;;  %v2005_v57 = vor.u32 1.1754944e-38, %v2004_v46  ;;  %vm2003_vm15 = vcmp.eq.f32.partialorder %v2002_v54, 8.507059e+37 }
 0x444   :  { %v4162_v41 = vadd.f32 %v2009_v39, %v2008_v63  ;;  %2314 = vmatpush.bf16.msra.mxu2 %v3374_v2  ;;  %2327 = vmatpush.bf16.msra.mxu3 %v3368_v58  ;;  %v1997_v45 = vadd.f32 %v3190_v17, %v1996_v37 }
 0x446   :  { %3193 = vtanh.f32 %v4162_v41  ;;  %v2001_v53 = vsel %vm2000_vm14, %v3190_v17, %v1997_v45  ;;  %v2024_v45 = vunpack.c.l.bf16 %v2913_v16 }
 0x447   :  { %2289 = vmatpush.bf16.msra.mxu0 %v3372_v1  ;;  %2302 = vmatpush.bf16.msra.mxu1 %v3378_v6  ;;  %v2006_v2 = vsel %vm2003_vm15, %v2005_v57, %v2001_v53 }
 0x448   :  { %2315 = vmatpush.bf16.msra.mxu2 %v3386_v20  ;;  %2328 = vmatpush.bf16.msra.mxu3 %v3380_v9  ;;  %v4537_v9 = vld [vmem:[#allocation10_spill] sm:$0xff]  ;;  %v4539_v20 = vld [vmem:[#allocation11_spill] sm:$0xff] }
 0x44b   :  { %2290 = vmatpush.bf16.msra.mxu0 %v3384_v19  ;;  %2303 = vmatpush.bf16.msra.mxu1 %v3390_v25  ;;  %v4538_v19 = vld [vmem:[#allocation9_spill] sm:$0xff]  ;;  %v4540_v25 = vld [vmem:[#allocation12_spill] sm:$0xff] }
 0x44c   :  { %v3194_v58 = vpop.eup %3193  ;;  %2316 = vmatpush.bf16.msra.mxu2 %v3398_v47  ;;  %2329 = vmatpush.bf16.msra.mxu3 %v3392_v26  ;;  %v4541_v26 = vld [vmem:[#allocation14_spill] sm:$0xff]  ;;  %v4543_v47 = vld [vmem:[#allocation15_spill] sm:$0xff] }
 0x44d   :  { %v2012_v1 = vmul.f32 %v3194_v58, %v2006_v2 }
 0x44f   :  { %v2016_v6 = vpack.c.bf16 %v2012_v1, %v2012_v1  ;;  %2291 = vmatpush.bf16.msra.mxu0 %v3396_v40  ;;  %2304 = vmatpush.bf16.msra.mxu1 %v3402_v48  ;;  %v4542_v40 = vld [vmem:[#allocation13_spill] sm:$0xff]  ;;  %v4544_v48 = vld [vmem:[#allocation16_spill] sm:$0xff] }
 0x450   :  { %2317 = vmatpush.bf16.msra.mxu2 %v3414_v10  ;;  %2330 = vmatpush.bf16.msra.mxu3 %v3404_v49  ;;  %v4545_v49 = vld [vmem:[#allocation18_spill] sm:$0xff]  ;;  %v4548_v10 = vld [vmem:[#allocation20_spill] sm:$0xff] }
 0x451   :  { %2911 = vst [vmem:[%s4281_s4 + $0x8] sm:$0xf] %v2016_v6  ;;  %2160 = vmatmul.bf16.vlgmr.msrb.gmra.mxu0 %v2016_v6  ;;  %2173 = vmatmul.bf16.vlgmr.msrb.gmra.mxu1 %v2016_v6 }
 0x452   :  { %2186 = vmatmul.bf16.vlgmr.msrb.gmra.mxu2 %v2016_v6  ;;  %2199 = vmatmul.bf16.vlgmr.msrb.gmra.mxu3 %v2016_v6 }
 0x453   :  { %2409 = vmatpush.bf16.msrb.mxu0 %v3406_v52  ;;  %2422 = vmatpush.bf16.msrb.mxu1 %v3408_v55  ;;  %v4546_v52 = vld [vmem:[#allocation17_spill] sm:$0xff]  ;;  %v4547_v55 = vld [vmem:[#allocation19_spill] sm:$0xff] }
 0x454   :  { %2435 = vmatpush.bf16.msrb.mxu2 %v4537_v9  ;;  %2448 = vmatpush.bf16.msrb.mxu3 %v4538_v19 }
 0x457   :  { %2410 = vmatpush.bf16.msrb.mxu0 %v4539_v20  ;;  %2423 = vmatpush.bf16.msrb.mxu1 %v4540_v25  ;;  %v2917_v20 = vld [vmem:[%s4278_s1 + $0x90] sm:$0xff] }
 0x458   :  { %2436 = vmatpush.bf16.msrb.mxu2 %v4541_v26  ;;  %2449 = vmatpush.bf16.msrb.mxu3 %v4542_v40 }
 0x45b   :  { %2411 = vmatpush.bf16.msrb.mxu0 %v4543_v47  ;;  %2424 = vmatpush.bf16.msrb.mxu1 %v4544_v48 }
 0x45c   :  { %2437 = vmatpush.bf16.msrb.mxu2 %v4545_v49  ;;  %2450 = vmatpush.bf16.msrb.mxu3 %v4546_v52 }
 0x45f   :  { %2412 = vmatpush.bf16.msrb.mxu0 %v4547_v55  ;;  %2425 = vmatpush.bf16.msrb.mxu1 %v4548_v10  ;;  %v2148_v55 = vunpack.c.l.bf16 %v2917_v20 }
 0x460   :  { %2438 = vmatpush.bf16.msrb.mxu2 %v4549_v22  ;;  %2451 = vmatpush.bf16.msrb.mxu3 %v4550_v59 }
 0x463   :  { %2413 = vmatpush.bf16.msrb.mxu0 %v4551_v50  ;;  %2426 = vmatpush.bf16.msrb.mxu1 %v4552_v27 }
 0x464   :  { %2439 = vmatpush.bf16.msrb.mxu2 %v4553_v36  ;;  %2452 = vmatpush.bf16.msrb.mxu3 %v4554_v38  ;;  %v2149_v36 = vunpack.c.h.bf16 %v2917_v20 }
 0x467   :  { %2414 = vmatpush.bf16.msrb.mxu0 %v4555_v56  ;;  %2427 = vmatpush.bf16.msrb.mxu1 %v4556_v11 }
 0x468   :  { %2440 = vmatpush.bf16.msrb.mxu2 %v4557_v44  ;;  %2453 = vmatpush.bf16.msrb.mxu3 %v4558_v35 }
 0x46b   :  { %2415 = vmatpush.bf16.msrb.mxu0 %v4559_v24  ;;  %2428 = vmatpush.bf16.msrb.mxu1 %v4560_v15 }
 0x46c   :  { %2441 = vmatpush.bf16.msrb.mxu2 %v4561_v43  ;;  %2454 = vmatpush.bf16.msrb.mxu3 %v4562_v30 }
 0x46f   :  { %2416 = vmatpush.bf16.msrb.mxu0 %v4563_v14  ;;  %2429 = vmatpush.bf16.msrb.mxu1 %v4564_v18 }
 0x470   :  { %2442 = vmatpush.bf16.msrb.mxu2 %v4565_v62  ;;  %2455 = vmatpush.bf16.msrb.mxu3 %v4566_v3  ;;  %v2918_v3 = vld [vmem:[%s4278_s1 + $0x98] sm:$0xff] }
 0x4ae   :  { %v2035_v51 = vpop.f32.mrf.mxu0  ;;  %v2048_v23 = vpop.f32.mrf.mxu1 }
 0x4af   :  { %v2078_v4 = vadd.f32 %v2035_v51, %v2022_v21  ;;  %v2079_v12 = vadd.f32 %v2048_v23, %v2023_v8 }
 0x4b1   :  { %v2914_v17 = vmul.f32 -1.442695, %v2078_v4  ;;  %v2915_v34 = vmul.f32 -1.442695, %v2079_v12 }
 0x4b3   :  { %3195 = vpow2.f32 %v2914_v17 }
 0x4b4   :  { %3197 = vpow2.f32 %v2915_v34 }
 0x4b5   :  { %v2061_v5 = vpop.f32.mrf.mxu2  ;;  %v2074_v61 = vpop.f32.mrf.mxu3 }
 0x4b6   :  { %v2081_v28 = vadd.f32 %v2074_v61, %v2025_v0  ;;  %v2037_v13 = vpop.f32.mrf.mxu0  ;;  %v2050_v32 = vpop.f32.mrf.mxu1  ;;  %v2080_v57 = vadd.f32 %v2061_v5, %v2024_v45 }
 0x4b8   :  { %v2916_v42 = vmul.f32 -1.442695, %v2081_v28 }
 0x4b9   :  { %v3196_v33 = vpop.eup %3195 }
 0x4ba   :  { %v3198_v60 = vpop.eup %3197  ;;  %v2085_v31 = vadd.f32 1.0, %v3196_v33  ;;  %3199 = vpow2.f32 %v2916_v42 }
 0x4bb   :  { %v2104_v39 = vadd.f32 1.0, %v3198_v60 }
 0x4bc   :  { %3201 = vrcp.f32 %v2085_v31  ;;  %v2097_v19 = vand.u32 2147483648, %v2085_v31  ;;  %v2095_v40 = vand.u32 2147483647, %v2085_v31  ;;  %vm2091_vm2 = vweird.f32 %v2085_v31 }
 0x4bd   :  { %3203 = vrcp.f32 %v2104_v39  ;;  %v2063_v63 = vpop.f32.mrf.mxu2  ;;  %v2076_v37 = vpop.f32.mrf.mxu3  ;;  %v2116_v25 = vand.u32 2147483648, %v2104_v39  ;;  %v2114_v48 = vand.u32 2147483647, %v2104_v39  ;;  %vm2110_vm3 = vweird.f32 %v2104_v39 }
 0x4be   :  { %v2098_v10 = vor.u32 1.1754944e-38, %v2097_v19  ;;  %vm2096_vm6 = vcmp.eq.f32.partialorder %v2095_v40, 8.507059e+37 }
 0x4bf   :  { %v2117_v50 = vor.u32 1.1754944e-38, %v2116_v25  ;;  %vm2115_vm7 = vcmp.eq.f32.partialorder %v2114_v48, 8.507059e+37 }
 0x4c0   :  { %v3200_v46 = vpop.eup %3199 }
 0x4c1   :  { %v4223_v54 = vadd.f32 1.0, %v3200_v46  ;;  %v2150_v46 = vunpack.c.l.bf16 %v2918_v3 }
 0x4c2   :  { %v3202_v53 = vpop.eup %3201 }
 0x4c3   :  { %v3204_v58 = vpop.eup %3203  ;;  %v2087_v2 = vmul.f32 %v3202_v53, %v2085_v31  ;;  %3205 = vrcp.f32 %v4223_v54  ;;  %vm2092_vm0 = vweird.f32 %v3202_v53  ;;  %v2136_v23 = vand.u32 2147483648, %v4223_v54 }
 0x4c4   :  { %v2106_v1 = vmul.f32 %v3204_v58, %v2104_v39  ;;  %3207 = vtanh.f32 %v2080_v57  ;;  %vm2111_vm1 = vweird.f32 %v3204_v58  ;;  %vm2093_vm4 = vmor %vm2091_vm2, %vm2092_vm0  ;;  %vm2130_vm9 = vweird.f32 %v4223_v54 }
 0x4c5   :  { %v2088_v6 = vsub.f32 1.0, %v2087_v2  ;;  %vm2112_vm5 = vmor %vm2110_vm3, %vm2111_vm1  ;;  %v2134_v4 = vand.u32 2147483647, %v4223_v54  ;;  %v2137_v34 = vor.u32 1.1754944e-38, %v2136_v23 }
 0x4c6   :  { %v2107_v9 = vsub.f32 1.0, %v2106_v1 }
 0x4c7   :  { %v2089_v26 = vmul.f32 %v3202_v53, %v2088_v6  ;;  %vm2135_vm11 = vcmp.eq.f32.partialorder %v2134_v4, 8.507059e+37 }
 0x4c8   :  { %v2108_v47 = vmul.f32 %v3204_v58, %v2107_v9 }
 0x4c9   :  { %v3206_v49 = vpop.eup %3205  ;;  %v2090_v52 = vadd.f32 %v3202_v53, %v2089_v26 }
 0x4ca   :  { %v2109_v22 = vadd.f32 %v3204_v58, %v2108_v47  ;;  %v2126_v59 = vmul.f32 %v3206_v49, %v4223_v54  ;;  %v3208_v38 = vpop.eup %3207  ;;  %vm2131_vm8 = vweird.f32 %v3206_v49 }
 0x4cb   :  { %v2094_v27 = vsel %vm2093_vm4, %v3202_v53, %v2090_v52  ;;  %vm2132_vm10 = vmor %vm2130_vm9, %vm2131_vm8 }
 0x4cc   :  { %v2099_v56 = vsel %vm2096_vm6, %v2098_v10, %v2094_v27  ;;  %v2113_v11 = vsel %vm2112_vm5, %v3204_v58, %v2109_v22  ;;  %v2127_v44 = vsub.f32 1.0, %v2126_v59 }
 0x4cd   :  { %v2118_v35 = vsel %vm2115_vm7, %v2117_v50, %v2113_v11  ;;  %v2141_v24 = vmul.f32 %v3208_v38, %v2099_v56 }
 0x4ce   :  { %v2140_v15 = vmul.f32 %v2118_v35, %v4130_v29  ;;  %v2128_v43 = vmul.f32 %v3206_v49, %v2127_v44  ;;  %v2161_v30 = vpop.f32.mrf.mxu0  ;;  %v2174_v14 = vpop.f32.mrf.mxu1  ;;  %v2151_v29 = vunpack.c.h.bf16 %v2918_v3 }
 0x4cf   :  { %v2204_v18 = vadd.f32 %v2161_v30, %v2148_v55  ;;  %v2205_v62 = vadd.f32 %v2174_v14, %v2149_v36 }
 0x4d0   :  { %v4234_v7 = vadd.f32 %v2141_v24, %v2140_v15  ;;  %v2129_v51 = vadd.f32 %v3206_v49, %v2128_v43 }
 0x4d1   :  { %v2919_v21 = vmul.f32 -1.442695, %v2204_v18  ;;  %v2920_v8 = vmul.f32 -1.442695, %v2205_v62 }
 0x4d2   :  { %3209 = vtanh.f32 %v4234_v7  ;;  %v2133_v17 = vsel %vm2132_vm10, %v3206_v49, %v2129_v51 }
 0x4d3   :  { %3211 = vpow2.f32 %v2919_v21  ;;  %v2138_v32 = vsel %vm2135_vm11, %v2137_v34, %v2133_v17  ;;  %v2925_v34 = vld [vmem:[%s4277_s0 + $0x78] sm:$0xff] }
 0x4d4   :  { %3213 = vpow2.f32 %v2920_v8 }
 0x4d5   :  { %v2187_v12 = vpop.f32.mrf.mxu2  ;;  %v2200_v16 = vpop.f32.mrf.mxu3 }
 0x4d6   :  { %v2207_v0 = vadd.f32 %v2200_v16, %v2151_v29  ;;  %v2163_v5 = vpop.f32.mrf.mxu0  ;;  %v2176_v61 = vpop.f32.mrf.mxu1  ;;  %v2206_v58 = vadd.f32 %v2187_v12, %v2150_v46 }
 0x4d7   :  { %v2283_v61 = vunpack.c.h.bf16 %v2925_v34 }
 0x4d8   :  { %v3210_v28 = vpop.eup %3209  ;;  %v2921_v13 = vmul.f32 -1.442695, %v2207_v0 }
 0x4d9   :  { %v3212_v42 = vpop.eup %3211  ;;  %v2144_v33 = vmul.f32 %v3210_v28, %v2138_v32 }
 0x4da   :  { %v3214_v60 = vpop.eup %3213  ;;  %v2211_v31 = vadd.f32 1.0, %v3212_v42  ;;  %3215 = vpow2.f32 %v2921_v13 }
 0x4db   :  { %v2230_v39 = vadd.f32 1.0, %v3214_v60  ;;  %v2271_v63 = vpack.c.bf16 %v2144_v33, %v2144_v33 }
 0x4dc   :  { %3217 = vrcp.f32 %v2211_v31  ;;  %v2223_v20 = vand.u32 2147483648, %v2211_v31  ;;  %v2221_v40 = vand.u32 2147483647, %v2211_v31  ;;  %vm2217_vm14 = vweird.f32 %v2211_v31 }
 0x4dd   :  { %3219 = vrcp.f32 %v2230_v39  ;;  %v2189_v37 = vpop.f32.mrf.mxu2  ;;  %v2202_v45 = vpop.f32.mrf.mxu3  ;;  %2922 = vst [vmem:[%s4280_s3 + $0x18] sm:$0xf] %v2271_v63  ;;  %2292 = vmatmul.bf16.vlgmr.msra.gmra.mxu0 %v2271_v63  ;;  %2305 = vmatmul.bf16.vlgmr.msra.gmra.mxu1 %v2271_v63  ;;  %v2242_v25 = vand.u32 2147483648, %v2230_v39  ;;  %v2240_v48 = vand.u32 2147483647, %v2230_v39  ;;  %vm2236_vm15 = vweird.f32 %v2230_v39 }
 0x4de   :  { %2318 = vmatmul.bf16.vlgmr.msra.gmra.mxu2 %v2271_v63  ;;  %2331 = vmatmul.bf16.vlgmr.msra.gmra.mxu3 %v2271_v63  ;;  %v2224_v55 = vor.u32 1.1754944e-38, %v2223_v20  ;;  %vm2222_vm2 = vcmp.eq.f32.partialorder %v2221_v40, 8.507059e+37 }
 0x4df   :  { %v2243_v59 = vor.u32 1.1754944e-38, %v2242_v25  ;;  %vm2241_vm3 = vcmp.eq.f32.partialorder %v2240_v48, 8.507059e+37 }
 0x4e0   :  { %v3216_v54 = vpop.eup %3215 }
 0x4e1   :  { %v2250_v53 = vadd.f32 1.0, %v3216_v54  ;;  %v2282_v54 = vunpack.c.l.bf16 %v2925_v34 }
 0x4e2   :  { %v3218_v57 = vpop.eup %3217 }
 0x4e3   :  { %v3220_v2 = vpop.eup %3219  ;;  %v2213_v1 = vmul.f32 %v3218_v57, %v2211_v31  ;;  %3221 = vrcp.f32 %v2250_v53  ;;  %vm2218_vm12 = vweird.f32 %v3218_v57  ;;  %v2262_v30 = vand.u32 2147483648, %v2250_v53 }
 0x4e4   :  { %v2232_v6 = vmul.f32 %v3220_v2, %v2230_v39  ;;  %3223 = vtanh.f32 %v2206_v58  ;;  %vm2237_vm13 = vweird.f32 %v3220_v2  ;;  %vm2219_vm0 = vmor %vm2217_vm14, %vm2218_vm12  ;;  %vm2256_vm5 = vweird.f32 %v2250_v53 }
 0x4e5   :  { %v2214_v9 = vsub.f32 1.0, %v2213_v1  ;;  %vm2238_vm1 = vmor %vm2236_vm15, %vm2237_vm13  ;;  %v2260_v14 = vand.u32 2147483647, %v2250_v53  ;;  %v2263_v62 = vor.u32 1.1754944e-38, %v2262_v30 }
 0x4e6   :  { %v2233_v19 = vsub.f32 1.0, %v2232_v6 }
 0x4e7   :  { %v2215_v26 = vmul.f32 %v3218_v57, %v2214_v9  ;;  %vm2261_vm7 = vcmp.eq.f32.partialorder %v2260_v14, 8.507059e+37 }
 0x4e8   :  { %v2234_v47 = vmul.f32 %v3220_v2, %v2233_v19 }
 0x4e9   :  { %v3222_v49 = vpop.eup %3221  ;;  %v2216_v52 = vadd.f32 %v3218_v57, %v2215_v26  ;;  %v2929_v26 = vld [vmem:[%s4278_s1 + $0x80] sm:$0xff] }
 0x4ea   :  { %v2235_v10 = vadd.f32 %v3220_v2, %v2234_v47  ;;  %v2252_v22 = vmul.f32 %v3222_v49, %v2250_v53  ;;  %v3224_v27 = vpop.eup %3223  ;;  %vm2257_vm4 = vweird.f32 %v3222_v49 }
 0x4eb   :  { %v2220_v50 = vsel %vm2219_vm0, %v3218_v57, %v2216_v52  ;;  %vm2258_vm6 = vmor %vm2256_vm5, %vm2257_vm4 }
 0x4ec   :  { %v2225_v36 = vsel %vm2222_vm2, %v2224_v55, %v2220_v50  ;;  %v2239_v38 = vsel %vm2238_vm1, %v3220_v2, %v2235_v10  ;;  %v2253_v56 = vsub.f32 1.0, %v2252_v22  ;;  %v2405_v22 = vunpack.c.l.bf16 %v2929_v26 }
 0x4ed   :  { %v2244_v11 = vsel %vm2241_vm3, %v2243_v59, %v2239_v38  ;;  %v2267_v44 = vmul.f32 %v3224_v27, %v2225_v36 }
 0x4ee   :  { %v2266_v35 = vmul.f32 %v2244_v11, %v4162_v41  ;;  %v2254_v24 = vmul.f32 %v3222_v49, %v2253_v56  ;;  %v2924_v41 = vld [vmem:[%s4277_s0 + $0x70] sm:$0xff]  ;;  %v2406_v56 = vunpack.c.h.bf16 %v2929_v26 }
 0x4ef   :  { %v2280_v23 = vunpack.c.l.bf16 %v2924_v41  ;;  %v2281_v29 = vunpack.c.h.bf16 %v2924_v41 }
 0x4f0   :  { %v4244_v15 = vadd.f32 %v2267_v44, %v2266_v35  ;;  %v2255_v43 = vadd.f32 %v3222_v49, %v2254_v24 }
 0x4f2   :  { %3225 = vtanh.f32 %v4244_v15  ;;  %v2259_v18 = vsel %vm2258_vm6, %v3222_v49, %v2255_v43 }
 0x4f3   :  { %v2264_v21 = vsel %vm2261_vm7, %v2263_v62, %v2259_v18 }
 0x4f8   :  { %v3226_v3 = vpop.eup %3225 }
 0x4f9   :  { %v2270_v8 = vmul.f32 %v3226_v3, %v2264_v21 }
 0x4fb   :  { %v2274_v51 = vpack.c.bf16 %v2270_v8, %v2270_v8 }
 0x4fd   :  { %2923 = vst [vmem:[%s4281_s4 + $0x4] sm:$0xf] %v2274_v51  ;;  %2417 = vmatmul.bf16.vlgmr.msrb.gmra.mxu0 %v2274_v51  ;;  %2430 = vmatmul.bf16.vlgmr.msrb.gmra.mxu1 %v2274_v51 }
 0x4fe   :  { %2443 = vmatmul.bf16.vlgmr.msrb.gmra.mxu2 %v2274_v51  ;;  %2456 = vmatmul.bf16.vlgmr.msrb.gmra.mxu3 %v2274_v51  ;;  %v2930_v51 = vld [vmem:[%s4278_s1 + $0x88] sm:$0xff] }
 0x55a   :  { %v2293_v4 = vpop.f32.mrf.mxu0  ;;  %v2306_v12 = vpop.f32.mrf.mxu1 }
 0x55b   :  { %v2336_v16 = vadd.f32 %v2293_v4, %v2280_v23  ;;  %v2337_v17 = vadd.f32 %v2306_v12, %v2281_v29 }
 0x55d   :  { %v2926_v0 = vmul.f32 -1.442695, %v2336_v16  ;;  %v2927_v5 = vmul.f32 -1.442695, %v2337_v17  ;;  %v2408_v16 = vunpack.c.h.bf16 %v2930_v51 }
 0x55f   :  { %3227 = vpow2.f32 %v2926_v0 }
 0x560   :  { %3229 = vpow2.f32 %v2927_v5 }
 0x561   :  { %v2319_v28 = vpop.f32.mrf.mxu2  ;;  %v2332_v13 = vpop.f32.mrf.mxu3 }
 0x562   :  { %v2339_v32 = vadd.f32 %v2332_v13, %v2283_v61  ;;  %v2295_v42 = vpop.f32.mrf.mxu0  ;;  %v2308_v33 = vpop.f32.mrf.mxu1  ;;  %v2338_v2 = vadd.f32 %v2319_v28, %v2282_v54 }
 0x564   :  { %v2928_v60 = vmul.f32 -1.442695, %v2339_v32 }
 0x565   :  { %v3228_v31 = vpop.eup %3227 }
 0x566   :  { %v3230_v39 = vpop.eup %3229  ;;  %v2343_v63 = vadd.f32 1.0, %v3228_v31  ;;  %3231 = vpow2.f32 %v2928_v60 }
 0x567   :  { %v2362_v37 = vadd.f32 1.0, %v3230_v39 }
 0x568   :  { %3233 = vrcp.f32 %v2343_v63  ;;  %v2355_v25 = vand.u32 2147483648, %v2343_v63  ;;  %v2353_v48 = vand.u32 2147483647, %v2343_v63  ;;  %vm2349_vm10 = vweird.f32 %v2343_v63 }
 0x569   :  { %3235 = vrcp.f32 %v2362_v37  ;;  %v2321_v45 = vpop.f32.mrf.mxu2  ;;  %v2334_v46 = vpop.f32.mrf.mxu3  ;;  %v2374_v40 = vand.u32 2147483648, %v2362_v37  ;;  %v2372_v52 = vand.u32 2147483647, %v2362_v37  ;;  %vm2368_vm11 = vweird.f32 %v2362_v37 }
 0x56a   :  { %v2356_v59 = vor.u32 1.1754944e-38, %v2355_v25  ;;  %vm2354_vm14 = vcmp.eq.f32.partialorder %v2353_v48, 8.507059e+37 }
 0x56b   :  { %v2375_v36 = vor.u32 1.1754944e-38, %v2374_v40  ;;  %vm2373_vm15 = vcmp.eq.f32.partialorder %v2372_v52, 8.507059e+37 }
 0x56c   :  { %v3232_v53 = vpop.eup %3231 }
 0x56d   :  { %v4256_v57 = vadd.f32 1.0, %v3232_v53  ;;  %v2407_v53 = vunpack.c.l.bf16 %v2930_v51 }
 0x56e   :  { %v3234_v58 = vpop.eup %3233 }
 0x56f   :  { %v3236_v1 = vpop.eup %3235  ;;  %v2345_v6 = vmul.f32 %v3234_v58, %v2343_v63  ;;  %3237 = vrcp.f32 %v4256_v57  ;;  %vm2350_vm8 = vweird.f32 %v3234_v58  ;;  %v2394_v12 = vand.u32 2147483648, %v4256_v57 }
 0x570   :  { %v2364_v9 = vmul.f32 %v3236_v1, %v2362_v37  ;;  %3239 = vtanh.f32 %v2338_v2  ;;  %vm2369_vm9 = vweird.f32 %v3236_v1  ;;  %vm2351_vm12 = vmor %vm2349_vm10, %vm2350_vm8  ;;  %vm2388_vm1 = vweird.f32 %v4256_v57 }
 0x571   :  { %v2346_v19 = vsub.f32 1.0, %v2345_v6  ;;  %vm2370_vm13 = vmor %vm2368_vm11, %vm2369_vm9  ;;  %v2395_v5 = vor.u32 1.1754944e-38, %v2394_v12 }
 0x572   :  { %v2365_v20 = vsub.f32 1.0, %v2364_v9 }
 0x573   :  { %v2347_v47 = vmul.f32 %v3234_v58, %v2346_v19 }
 0x574   :  { %v2366_v49 = vmul.f32 %v3236_v1, %v2365_v20 }
 0x575   :  { %v3238_v55 = vpop.eup %3237  ;;  %v2348_v10 = vadd.f32 %v3234_v58, %v2347_v47 }
 0x576   :  { %v2367_v50 = vadd.f32 %v3236_v1, %v2366_v49  ;;  %v2384_v27 = vmul.f32 %v3238_v55, %v4256_v57  ;;  %v3240_v11 = vpop.eup %3239  ;;  %vm2389_vm0 = vweird.f32 %v3238_v55 }
 0x577   :  { %v2352_v38 = vsel %vm2351_vm12, %v3234_v58, %v2348_v10  ;;  %vm2390_vm2 = vmor %vm2388_vm1, %vm2389_vm0 }
 0x578   :  { %v2357_v44 = vsel %vm2354_vm14, %v2356_v59, %v2352_v38  ;;  %v2371_v35 = vsel %vm2370_vm13, %v3236_v1, %v2367_v50  ;;  %v2385_v24 = vsub.f32 1.0, %v2384_v27 }
 0x579   :  { %v2376_v43 = vsel %vm2373_vm15, %v2375_v36, %v2371_v35  ;;  %v2399_v30 = vmul.f32 %v3240_v11, %v2357_v44 }
 0x57a   :  { %v2398_v14 = vmul.f32 %v2376_v43, %v4234_v7  ;;  %v2386_v18 = vmul.f32 %v3238_v55, %v2385_v24  ;;  %v2418_v62 = vpop.f32.mrf.mxu0  ;;  %v2431_v3 = vpop.f32.mrf.mxu1  ;;  %v2392_v7 = vand.u32 2147483647, %v4256_v57 }
 0x57b   :  { %v2461_v21 = vadd.f32 %v2418_v62, %v2405_v22  ;;  %v2462_v8 = vadd.f32 %v2431_v3, %v2406_v56 }
 0x57c   :  { %v2400_v41 = vadd.f32 %v2399_v30, %v2398_v14  ;;  %v2387_v23 = vadd.f32 %v3238_v55, %v2386_v18  ;;  %vm2393_vm3 = vcmp.eq.f32.partialorder %v2392_v7, 8.507059e+37 }
 0x57d   :  { %v2931_v29 = vmul.f32 -1.442695, %v2461_v21  ;;  %v2932_v4 = vmul.f32 -1.442695, %v2462_v8 }
 0x57e   :  { %3241 = vtanh.f32 %v2400_v41  ;;  %v2391_v17 = vsel %vm2390_vm2, %v3238_v55, %v2387_v23 }
 0x57f   :  { %3243 = vpow2.f32 %v2931_v29  ;;  %v2396_v42 = vsel %vm2393_vm3, %v2395_v5, %v2391_v17 }
 0x580   :  { %3245 = vpow2.f32 %v2932_v4 }
 0x581   :  { %v2444_v34 = vpop.f32.mrf.mxu2  ;;  %v2457_v0 = vpop.f32.mrf.mxu3 }
 0x582   :  { %v2464_v61 = vadd.f32 %v2457_v0, %v2408_v16  ;;  %v2420_v28 = vpop.f32.mrf.mxu0  ;;  %v2433_v13 = vpop.f32.mrf.mxu1  ;;  %v2463_v1 = vadd.f32 %v2444_v34, %v2407_v53 }
 0x584   :  { %v3242_v32 = vpop.eup %3241  ;;  %v2933_v33 = vmul.f32 -1.442695, %v2464_v61 }
 0x585   :  { %v3244_v60 = vpop.eup %3243  ;;  %v2402_v31 = vmul.f32 %v3242_v32, %v2396_v42 }
 0x586   :  { %v3246_v39 = vpop.eup %3245  ;;  %v2468_v63 = vadd.f32 1.0, %v3244_v60  ;;  %3247 = vpow2.f32 %v2933_v33 }
 0x587   :  { %v2528_v37 = vpack.c.bf16 %v2402_v31, %v2402_v31  ;;  %v2487_v45 = vadd.f32 1.0, %v3246_v39 }
 0x588   :  { %3249 = vrcp.f32 %v2468_v63  ;;  %v2480_v26 = vand.u32 2147483648, %v2468_v63  ;;  %v2478_v48 = vand.u32 2147483647, %v2468_v63  ;;  %vm2474_vm6 = vweird.f32 %v2468_v63 }
 0x589   :  { %2934 = vst [vmem:[%s4280_s3 + $0x1c] sm:$0xf] %v2528_v37  ;;  %3251 = vrcp.f32 %v2487_v45  ;;  %v2446_v46 = vpop.f32.mrf.mxu2  ;;  %v2459_v54 = vpop.f32.mrf.mxu3  ;;  %v2499_v40 = vand.u32 2147483648, %v2487_v45  ;;  %v2497_v52 = vand.u32 2147483647, %v2487_v45  ;;  %vm2493_vm7 = vweird.f32 %v2487_v45 }
 0x58a   :  { %v2481_v22 = vor.u32 1.1754944e-38, %v2480_v26  ;;  %vm2479_vm10 = vcmp.eq.f32.partialorder %v2478_v48, 8.507059e+37 }
 0x58b   :  { %v2500_v27 = vor.u32 1.1754944e-38, %v2499_v40  ;;  %vm2498_vm11 = vcmp.eq.f32.partialorder %v2497_v52, 8.507059e+37 }
 0x58c   :  { %v3248_v57 = vpop.eup %3247 }
 0x58d   :  { %v2507_v58 = vadd.f32 1.0, %v3248_v57 }
 0x58e   :  { %v3250_v2 = vpop.eup %3249 }
 0x58f   :  { %v3252_v6 = vpop.eup %3251  ;;  %v2470_v9 = vmul.f32 %v3250_v2, %v2468_v63  ;;  %3253 = vrcp.f32 %v2507_v58  ;;  %vm2475_vm4 = vweird.f32 %v3250_v2  ;;  %v2519_v62 = vand.u32 2147483648, %v2507_v58 }
 0x590   :  { %v2489_v19 = vmul.f32 %v3252_v6, %v2487_v45  ;;  %3255 = vtanh.f32 %v2463_v1  ;;  %vm2494_vm5 = vweird.f32 %v3252_v6  ;;  %vm2476_vm8 = vmor %vm2474_vm6, %vm2475_vm4  ;;  %vm2513_vm13 = vweird.f32 %v2507_v58 }
 0x591   :  { %v2471_v20 = vsub.f32 1.0, %v2470_v9  ;;  %vm2495_vm9 = vmor %vm2493_vm7, %vm2494_vm5  ;;  %v2517_v3 = vand.u32 2147483647, %v2507_v58  ;;  %v2520_v8 = vor.u32 1.1754944e-38, %v2519_v62 }
 0x592   :  { %v2490_v25 = vsub.f32 1.0, %v2489_v19 }
 0x593   :  { %v2472_v47 = vmul.f32 %v3250_v2, %v2471_v20  ;;  %vm2518_vm15 = vcmp.eq.f32.partialorder %v2517_v3, 8.507059e+37 }
 0x594   :  { %v2491_v49 = vmul.f32 %v3252_v6, %v2490_v25 }
 0x595   :  { %v3254_v55 = vpop.eup %3253  ;;  %v2473_v10 = vadd.f32 %v3250_v2, %v2472_v47 }
 0x596   :  { %v2492_v59 = vadd.f32 %v3252_v6, %v2491_v49  ;;  %v2509_v50 = vmul.f32 %v3254_v55, %v2507_v58  ;;  %v3256_v38 = vpop.eup %3255  ;;  %vm2514_vm12 = vweird.f32 %v3254_v55 }
 0x597   :  { %v2477_v36 = vsel %vm2476_vm8, %v3250_v2, %v2473_v10  ;;  %vm2515_vm14 = vmor %vm2513_vm13, %vm2514_vm12 }
 0x598   :  { %v2482_v56 = vsel %vm2479_vm10, %v2481_v22, %v2477_v36  ;;  %v2496_v11 = vsel %vm2495_vm9, %v3252_v6, %v2492_v59  ;;  %v2510_v44 = vsub.f32 1.0, %v2509_v50 }
 0x599   :  { %v2501_v35 = vsel %vm2498_vm11, %v2500_v27, %v2496_v11  ;;  %v2524_v24 = vmul.f32 %v3256_v38, %v2482_v56 }
 0x59a   :  { %v2523_v43 = vmul.f32 %v2501_v35, %v4244_v15  ;;  %v2511_v30 = vmul.f32 %v3254_v55, %v2510_v44 }
 0x59c   :  { %v2525_v14 = vadd.f32 %v2524_v24, %v2523_v43  ;;  %v2512_v18 = vadd.f32 %v3254_v55, %v2511_v30 }
 0x59e   :  { %3257 = vtanh.f32 %v2525_v14  ;;  %v2516_v21 = vsel %vm2515_vm14, %v3254_v55, %v2512_v18 }
 0x59f   :  { %v2521_v41 = vsel %vm2518_vm15, %v2520_v8, %v2516_v21 }
 0x5a4   :  { %v3258_v51 = vpop.eup %3257 }
 0x5a5   :  { %v2527_v23 = vmul.f32 %v3258_v51, %v2521_v41 }
 0x5a7   :  { %v2531_v29 = vpack.c.bf16 %v2527_v23, %v2527_v23 }
 0x5a9   :  { %2532 = vst [vmem:[%s4281_s4] sm:$0xf] %v2531_v29 }
 0x5aa   :  { %2559 = vsyncpa [#allocation7], 1 }

// kernel: rnn_forward.3
= control target key start
LH: loop header
LB: loop body
LE: loop exit
PB: predicated region body
PF: predicated region fallthrough
CT: control target
= control target key end

     0   :  { %s4649_s2 = inlined_call_operand.vmem [shape: bf16[2,128,512], index: 2, kind: input, shape index: {}]   ;;  %s4650_s0 = inlined_call_operand.vmem [shape: bf16[2,8,8,512], index: 0, kind: input, shape index: {}, may-alias: {0,1}]   ;;  %s4651_s1 = inlined_call_operand.vmem [shape: bf16[2,8,8,512], index: 1, kind: input, shape index: {}, may-alias: {0,1}]   ;;  %s4652_s3 = inlined_call_operand.vmem [shape: bf16[8,8,128], index: 3, kind: output, shape index: {0}]   ;;  %s4653_s4 = inlined_call_operand.vmem [shape: bf16[8,8,128], index: 4, kind: output, shape index: {1}]  }
   0x1   :  { %v2716_v0 = vld [vmem:[%s4649_s2 + $0xe0] sm:$0xf]  ;;  %v2980_v1 = vld [vmem:[%s4649_s2 + $0xec] sm:$0xf0]  ;;  %v2978_v2 = vld [vmem:[%s4649_s2 + $0xe4] sm:$0xf] }
   0x2   :  { %v3306_v3 = vor.u32 %v2980_v1, %v2716_v0  ;;  %v2718_v4 = vld [vmem:[%s4649_s2 + $0xf0] sm:$0xf0]  ;;  %v2979_v5 = vld [vmem:[%s4649_s2 + $0xec] sm:$0xf]  ;;  %v2726_v6 = vld [vmem:[%s4649_s2 + $0xf8] sm:$0xf0] }
   0x3   :  { %v3317_v7 = vor.u32 %v2978_v2, %v2718_v4  ;;  %v3319_v8 = vor.u32 %v2979_v5, %v2726_v6  ;;  %v2700_v9 = vld [vmem:[%s4649_s2 + $0xc0] sm:$0xf]  ;;  %v2976_v10 = vld [vmem:[%s4649_s2 + $0xcc] sm:$0xf0]  ;;  %v2974_v11 = vld [vmem:[%s4649_s2 + $0xc4] sm:$0xf] }
   0x4   :  { %302 = vmatpush.bf16.msra.mxu0 %v3306_v3  ;;  %v3331_v12 = vor.u32 %v2976_v10, %v2700_v9  ;;  %v2702_v13 = vld [vmem:[%s4649_s2 + $0xd0] sm:$0xf0]  ;;  %v2975_v14 = vld [vmem:[%s4649_s2 + $0xcc] sm:$0xf]  ;;  %v2710_v15 = vld [vmem:[%s4649_s2 + $0xd8] sm:$0xf0] }
   0x5   :  { %315 = vmatpush.bf16.msra.mxu1 %v3317_v7  ;;  %341 = vmatpush.bf16.msra.mxu3 %v3319_v8  ;;  %v3344_v16 = vor.u32 %v2974_v11, %v2702_v13  ;;  %v3346_v17 = vor.u32 %v2975_v14, %v2710_v15  ;;  %v2724_v18 = vld [vmem:[%s4649_s2 + $0xe8] sm:$0xf]  ;;  %v2981_v19 = vld [vmem:[%s4649_s2 + $0xf4] sm:$0xf0]  ;;  %v2684_v20 = vld [vmem:[%s4649_s2 + $0xa0] sm:$0xf] }
   0x6   :  { %v3357_v21 = vor.u32 %v2981_v19, %v2724_v18  ;;  %v2972_v22 = vld [vmem:[%s4649_s2 + $0xac] sm:$0xf0]  ;;  %v2970_v23 = vld [vmem:[%s4649_s2 + $0xa4] sm:$0xf]  ;;  %v2686_v24 = vld [vmem:[%s4649_s2 + $0xb0] sm:$0xf0] }
   0x7   :  { %v2971_v25 = vld [vmem:[%s4649_s2 + $0xac] sm:$0xf]  ;;  %v2694_v26 = vld [vmem:[%s4649_s2 + $0xb8] sm:$0xf0]  ;;  %v2708_v27 = vld [vmem:[%s4649_s2 + $0xc8] sm:$0xf]  ;;  %v3379_v28 = vor.u32 %v2972_v22, %v2684_v20  ;;  %v3392_v32 = vor.u32 %v2970_v23, %v2686_v24 }
   0x8   :  { %303 = vmatpush.bf16.msra.mxu0 %v3331_v12  ;;  %328 = vmatpush.bf16.msra.mxu2 %v3357_v21  ;;  %v2977_v29 = vld [vmem:[%s4649_s2 + $0xd4] sm:$0xf0]  ;;  %v2668_v30 = vld [vmem:[%s4649_s2 + $0x80] sm:$0xf]  ;;  %v2968_v31 = vld [vmem:[%s4649_s2 + $0x8c] sm:$0xf0]  ;;  %v3394_v33 = vor.u32 %v2971_v25, %v2694_v26 }
   0x9   :  { %316 = vmatpush.bf16.msra.mxu1 %v3344_v16  ;;  %342 = vmatpush.bf16.msra.mxu3 %v3346_v17  ;;  %v3396_v34 = vor.u32 %v2977_v29, %v2708_v27  ;;  %v2966_v35 = vld [vmem:[%s4649_s2 + $0x84] sm:$0xf]  ;;  %v2670_v36 = vld [vmem:[%s4649_s2 + $0x90] sm:$0xf0]  ;;  %v2967_v37 = vld [vmem:[%s4649_s2 + $0x8c] sm:$0xf]  ;;  %v3418_v41 = vor.u32 %v2968_v31, %v2668_v30 }
   0xa   :  { %v2678_v38 = vld [vmem:[%s4649_s2 + $0x98] sm:$0xf0]  ;;  %v2692_v39 = vld [vmem:[%s4649_s2 + $0xa8] sm:$0xf]  ;;  %v2973_v40 = vld [vmem:[%s4649_s2 + $0xb4] sm:$0xf0]  ;;  %v3430_v45 = vor.u32 %v2966_v35, %v2670_v36 }
   0xb   :  { %v3420_v42 = vor.u32 %v2973_v40, %v2692_v39  ;;  %v2652_v43 = vld [vmem:[%s4649_s2 + $0x60] sm:$0xf]  ;;  %v2964_v44 = vld [vmem:[%s4649_s2 + $0x6c] sm:$0xf0]  ;;  %v3432_v46 = vor.u32 %v2967_v37, %v2678_v38  ;;  %v2962_v47 = vld [vmem:[%s4649_s2 + $0x64] sm:$0xf] }
   0xc   :  { %304 = vmatpush.bf16.msra.mxu0 %v3379_v28  ;;  %329 = vmatpush.bf16.msra.mxu2 %v3396_v34  ;;  %v2676_v48 = vld [vmem:[%s4649_s2 + $0x88] sm:$0xf]  ;;  %v2969_v49 = vld [vmem:[%s4649_s2 + $0x94] sm:$0xf0]  ;;  %v2654_v50 = vld [vmem:[%s4649_s2 + $0x70] sm:$0xf0]  ;;  %v3454_v53 = vor.u32 %v2964_v44, %v2652_v43 }
   0xd   :  { %317 = vmatpush.bf16.msra.mxu1 %v3392_v32  ;;  %343 = vmatpush.bf16.msra.mxu3 %v3394_v33  ;;  %v2963_v51 = vld [vmem:[%s4649_s2 + $0x6c] sm:$0xf]  ;;  %v2662_v52 = vld [vmem:[%s4649_s2 + $0x78] sm:$0xf0]  ;;  %v3456_v54 = vor.u32 %v2969_v49, %v2676_v48  ;;  %v2636_v55 = vld [vmem:[%s4649_s2 + $0x40] sm:$0xf]  ;;  %v3466_v57 = vor.u32 %v2962_v47, %v2654_v50 }
   0xe   :  { %v2960_v56 = vld [vmem:[%s4649_s2 + $0x4c] sm:$0xf0]  ;;  %v3468_v58 = vor.u32 %v2963_v51, %v2662_v52  ;;  %v2958_v59 = vld [vmem:[%s4649_s2 + $0x44] sm:$0xf]  ;;  %v2660_v60 = vld [vmem:[%s4649_s2 + $0x68] sm:$0xf] }
   0xf   :  { %v2965_v61 = vld [vmem:[%s4649_s2 + $0x74] sm:$0xf0]  ;;  %v2638_v62 = vld [vmem:[%s4649_s2 + $0x50] sm:$0xf0]  ;;  %v2959_v63 = vld [vmem:[%s4649_s2 + $0x4c] sm:$0xf]  ;;  %v3490_v1 = vor.u32 %v2960_v56, %v2636_v55 }
  0x10   :  { %305 = vmatpush.bf16.msra.mxu0 %v3418_v41  ;;  %330 = vmatpush.bf16.msra.mxu2 %v3420_v42  ;;  %v2646_v0 = vld [vmem:[%s4649_s2 + $0x58] sm:$0xf0]  ;;  %v3492_v2 = vor.u32 %v2965_v61, %v2660_v60  ;;  %v2620_v4 = vld [vmem:[%s4649_s2 + $0x20] sm:$0xf]  ;;  %v2956_v5 = vld [vmem:[%s4649_s2 + $0x2c] sm:$0xf0]  ;;  %v3502_v6 = vor.u32 %v2958_v59, %v2638_v62 }
  0x11   :  { %318 = vmatpush.bf16.msra.mxu1 %v3430_v45  ;;  %344 = vmatpush.bf16.msra.mxu3 %v3432_v46  ;;  %v3504_v9 = vor.u32 %v2959_v63, %v2646_v0  ;;  %v2954_v10 = vld [vmem:[%s4649_s2 + $0x24] sm:$0xf]  ;;  %v2644_v11 = vld [vmem:[%s4649_s2 + $0x48] sm:$0xf]  ;;  %v2961_v13 = vld [vmem:[%s4649_s2 + $0x54] sm:$0xf0]  ;;  %v3526_v19 = vor.u32 %v2956_v5, %v2620_v4 }
  0x12   :  { %v2622_v14 = vld [vmem:[%s4649_s2 + $0x30] sm:$0xf0]  ;;  %v2955_v15 = vld [vmem:[%s4649_s2 + $0x2c] sm:$0xf]  ;;  %v2630_v18 = vld [vmem:[%s4649_s2 + $0x38] sm:$0xf0]  ;;  %v3528_v20 = vor.u32 %v2961_v13, %v2644_v11 }
  0x13   :  { %v2604_v22 = vld [vmem:[%s4649_s2] sm:$0xf]  ;;  %v2952_v23 = vld [vmem:[%s4649_s2 + $0xc] sm:$0xf0]  ;;  %v2950_v24 = vld [vmem:[%s4649_s2 + $0x4] sm:$0xf]  ;;  %v3541_v25 = vor.u32 %v2954_v10, %v2622_v14  ;;  %v3543_v26 = vor.u32 %v2955_v15, %v2630_v18 }
  0x14   :  { %306 = vmatpush.bf16.msra.mxu0 %v3454_v53  ;;  %331 = vmatpush.bf16.msra.mxu2 %v3456_v54  ;;  %v2606_v27 = vld [vmem:[%s4649_s2 + $0x10] sm:$0xf0]  ;;  %v2628_v29 = vld [vmem:[%s4649_s2 + $0x28] sm:$0xf]  ;;  %v2957_v30 = vld [vmem:[%s4649_s2 + $0x34] sm:$0xf0]  ;;  %v3574_v40 = vor.u32 %v2952_v23, %v2604_v22 }
  0x15   :  { %319 = vmatpush.bf16.msra.mxu1 %v3466_v57  ;;  %345 = vmatpush.bf16.msra.mxu3 %v3468_v58  ;;  %v2951_v31 = vld [vmem:[%s4649_s2 + $0xc] sm:$0xf]  ;;  %v2614_v35 = vld [vmem:[%s4649_s2 + $0x18] sm:$0xf0]  ;;  %v2849_v36 = vld [vmem:[%s4649_s2 + $0x1e0] sm:$0xf]  ;;  %v3582_v47 = vor.u32 %v2957_v30, %v2628_v29  ;;  %v3586_v48 = vor.u32 %v2950_v24, %v2606_v27 }
  0x16   :  { %v3012_v37 = vld [vmem:[%s4649_s2 + $0x1ec] sm:$0xf0]  ;;  %v3010_v38 = vld [vmem:[%s4649_s2 + $0x1e4] sm:$0xf]  ;;  %v2851_v39 = vld [vmem:[%s4649_s2 + $0x1f0] sm:$0xf0]  ;;  %v3588_v49 = vor.u32 %v2951_v31, %v2614_v35 }
  0x17   :  { %v3011_v43 = vld [vmem:[%s4649_s2 + $0x1ec] sm:$0xf]  ;;  %v2859_v44 = vld [vmem:[%s4649_s2 + $0x1f8] sm:$0xf0]  ;;  %v2612_v50 = vld [vmem:[%s4649_s2 + $0x8] sm:$0xf]  ;;  %v3596_v52 = vor.u32 %v3012_v37, %v2849_v36  ;;  %v3598_v55 = vor.u32 %v3010_v38, %v2851_v39 }
  0x18   :  { %307 = vmatpush.bf16.msra.mxu0 %v3490_v1  ;;  %332 = vmatpush.bf16.msra.mxu2 %v3492_v2  ;;  %v2953_v51 = vld [vmem:[%s4649_s2 + $0x14] sm:$0xf0]  ;;  %v2833_v56 = vld [vmem:[%s4649_s2 + $0x1c0] sm:$0xf]  ;;  %v2857_v59 = vld [vmem:[%s4649_s2 + $0x1e8] sm:$0xf]  ;;  %v3609_v61 = vor.u32 %v3011_v43, %v2859_v44 }
  0x19   :  { %320 = vmatpush.bf16.msra.mxu1 %v3502_v6  ;;  %346 = vmatpush.bf16.msra.mxu3 %v3504_v9  ;;  %v3013_v60 = vld [vmem:[%s4649_s2 + $0x1f4] sm:$0xf0]  ;;  %v3008_v62 = vld [vmem:[%s4649_s2 + $0x1cc] sm:$0xf0]  ;;  %v3006_v63 = vld [vmem:[%s4649_s2 + $0x1c4] sm:$0xf]  ;;  %v3628_v10 = vor.u32 %v2953_v51, %v2612_v50 }
  0x1a   :  { %4716 = vst [vmem:[#allocation6_spill] sm:$0xff] %v3609_v61  ;;  %v2835_v0 = vld [vmem:[%s4649_s2 + $0x1d0] sm:$0xf0]  ;;  %v3007_v4 = vld [vmem:[%s4649_s2 + $0x1cc] sm:$0xf]  ;;  %v3632_v11 = vor.u32 %v3013_v60, %v2857_v59  ;;  %v3636_v13 = vor.u32 %v3008_v62, %v2833_v56  ;;  %v4654_v23 = vmov 0.0|0.0  }
  0x1b   :  { %v2843_v5 = vld [vmem:[%s4649_s2 + $0x1d8] sm:$0xf0]  ;;  %v3638_v14 = vor.u32 %v3006_v63, %v2835_v0  ;;  %v2817_v15 = vld [vmem:[%s4649_s2 + $0x1a0] sm:$0xf]  ;;  %v2841_v18 = vld [vmem:[%s4649_s2 + $0x1c8] sm:$0xf] }
  0x1c   :  { %308 = vmatpush.bf16.msra.mxu0 %v3526_v19  ;;  %333 = vmatpush.bf16.msra.mxu2 %v3528_v20  ;;  %4717 = vst [vmem:[#allocation7_spill] sm:$0xff] %v3632_v11  ;;  %v3009_v22 = vld [vmem:[%s4649_s2 + $0x1d4] sm:$0xf0]  ;;  %v3651_v24 = vor.u32 %v3007_v4, %v2843_v5  ;;  %v3004_v27 = vld [vmem:[%s4649_s2 + $0x1ac] sm:$0xf0] }
  0x1d   :  { %321 = vmatpush.bf16.msra.mxu1 %v3541_v25  ;;  %347 = vmatpush.bf16.msra.mxu3 %v3543_v26  ;;  %4718 = vst [vmem:[#allocation8_spill] sm:$0xff] %v3636_v13  ;;  %v3002_v29 = vld [vmem:[%s4649_s2 + $0x1a4] sm:$0xf]  ;;  %v2819_v30 = vld [vmem:[%s4649_s2 + $0x1b0] sm:$0xf0]  ;;  %v3672_v36 = vor.u32 %v3009_v22, %v2841_v18  ;;  %v3676_v37 = vor.u32 %v3004_v27, %v2817_v15 }
  0x1e   :  { %4719 = vst [vmem:[#allocation9_spill] sm:$0xff] %v3638_v14  ;;  %v3003_v31 = vld [vmem:[%s4649_s2 + $0x1ac] sm:$0xf]  ;;  %v2827_v35 = vld [vmem:[%s4649_s2 + $0x1b8] sm:$0xf0]  ;;  %v3678_v38 = vor.u32 %v3002_v29, %v2819_v30 }
  0x1f   :  { %4720 = vst [vmem:[#allocation10_spill] sm:$0xff] %v3651_v24  ;;  %v2801_v39 = vld [vmem:[%s4649_s2 + $0x180] sm:$0xf]  ;;  %v2825_v43 = vld [vmem:[%s4649_s2 + $0x1a8] sm:$0xf]  ;;  %v3690_v50 = vor.u32 %v3003_v31, %v2827_v35 }
  0x20   :  { %309 = vmatpush.bf16.msra.mxu0 %v3574_v40  ;;  %334 = vmatpush.bf16.msra.mxu2 %v3582_v47  ;;  %4721 = vst [vmem:[#allocation11_spill] sm:$0xff] %v3672_v36  ;;  %v3005_v44 = vld [vmem:[%s4649_s2 + $0x1b4] sm:$0xf0]  ;;  %v3000_v51 = vld [vmem:[%s4649_s2 + $0x18c] sm:$0xf0] }
  0x21   :  { %322 = vmatpush.bf16.msra.mxu1 %v3586_v48  ;;  %348 = vmatpush.bf16.msra.mxu3 %v3588_v49  ;;  %4722 = vst [vmem:[#allocation12_spill] sm:$0xff] %v3676_v37  ;;  %v2998_v56 = vld [vmem:[%s4649_s2 + $0x184] sm:$0xf]  ;;  %v2803_v59 = vld [vmem:[%s4649_s2 + $0x190] sm:$0xf0]  ;;  %v3709_v63 = vor.u32 %v3005_v44, %v2825_v43  ;;  %v3713_v0 = vor.u32 %v3000_v51, %v2801_v39 }
  0x22   :  { %4723 = vst [vmem:[#allocation13_spill] sm:$0xff] %v3678_v38  ;;  %v2999_v60 = vld [vmem:[%s4649_s2 + $0x18c] sm:$0xf]  ;;  %v2811_v62 = vld [vmem:[%s4649_s2 + $0x198] sm:$0xf0]  ;;  %v3715_v4 = vor.u32 %v2998_v56, %v2803_v59 }
  0x23   :  { %310 = vmatmul.bf16.vlgmr.msra.gmra.mxu0 %v4654_v23  ;;  %4724 = vst [vmem:[#allocation14_spill] sm:$0xff] %v3690_v50  ;;  %v2785_v5 = vld [vmem:[%s4649_s2 + $0x160] sm:$0xf]  ;;  %v2809_v15 = vld [vmem:[%s4649_s2 + $0x188] sm:$0xf]  ;;  %v3727_v22 = vor.u32 %v2999_v60, %v2811_v62 }
  0x24   :  { %589 = vmatpush.bf16.msrb.mxu0 %v3596_v52  ;;  %323 = vmatmul.bf16.vlgmr.msra.gmra.mxu1 %v4654_v23  ;;  %4725 = vst [vmem:[#allocation15_spill] sm:$0xff] %v3709_v63  ;;  %v3001_v18 = vld [vmem:[%s4649_s2 + $0x194] sm:$0xf0]  ;;  %v2996_v27 = vld [vmem:[%s4649_s2 + $0x16c] sm:$0xf0] }
  0x25   :  { %602 = vmatpush.bf16.msrb.mxu1 %v3598_v55  ;;  %628 = vmatpush.bf16.msrb.mxu3 %v3609_v61  ;;  %4726 = vst [vmem:[#allocation16_spill] sm:$0xff] %v3713_v0  ;;  %v2994_v29 = vld [vmem:[%s4649_s2 + $0x164] sm:$0xf]  ;;  %v2787_v30 = vld [vmem:[%s4649_s2 + $0x170] sm:$0xf0]  ;;  %v3745_v39 = vor.u32 %v3001_v18, %v2809_v15  ;;  %v3749_v43 = vor.u32 %v2996_v27, %v2785_v5 }
  0x26   :  { %335 = vmatpush.bf16.msra.mxu2 %v3628_v10  ;;  %349 = vmatmul.bf16.vlgmr.msra.gmra.mxu3 %v4654_v23  ;;  %4727 = vst [vmem:[#allocation17_spill] sm:$0xff] %v3715_v4  ;;  %v2995_v31 = vld [vmem:[%s4649_s2 + $0x16c] sm:$0xf]  ;;  %v2795_v35 = vld [vmem:[%s4649_s2 + $0x178] sm:$0xf0]  ;;  %v3751_v44 = vor.u32 %v2994_v29, %v2787_v30 }
  0x27   :  { %4728 = vst [vmem:[#allocation18_spill] sm:$0xff] %v3727_v22  ;;  %v2769_v51 = vld [vmem:[%s4649_s2 + $0x140] sm:$0xf]  ;;  %v2793_v56 = vld [vmem:[%s4649_s2 + $0x168] sm:$0xf]  ;;  %v3763_v60 = vor.u32 %v2995_v31, %v2795_v35 }
  0x28   :  { %590 = vmatpush.bf16.msrb.mxu0 %v3636_v13  ;;  %4729 = vst [vmem:[#allocation19_spill] sm:$0xff] %v3745_v39  ;;  %v2997_v59 = vld [vmem:[%s4649_s2 + $0x174] sm:$0xf0]  ;;  %v2992_v62 = vld [vmem:[%s4649_s2 + $0x14c] sm:$0xf0] }
  0x29   :  { %603 = vmatpush.bf16.msrb.mxu1 %v3638_v14  ;;  %629 = vmatpush.bf16.msrb.mxu3 %v3651_v24  ;;  %4730 = vst [vmem:[#allocation20_spill] sm:$0xff] %v3749_v43  ;;  %v2990_v5 = vld [vmem:[%s4649_s2 + $0x144] sm:$0xf]  ;;  %v2771_v15 = vld [vmem:[%s4649_s2 + $0x150] sm:$0xf0]  ;;  %v3781_v29 = vor.u32 %v2997_v59, %v2793_v56  ;;  %v3785_v30 = vor.u32 %v2992_v62, %v2769_v51 }
  0x2a   :  { %615 = vmatpush.bf16.msrb.mxu2 %v3632_v11  ;;  %4731 = vst [vmem:[#allocation21_spill] sm:$0xff] %v3751_v44  ;;  %v2991_v18 = vld [vmem:[%s4649_s2 + $0x14c] sm:$0xf]  ;;  %v2779_v27 = vld [vmem:[%s4649_s2 + $0x158] sm:$0xf0]  ;;  %v3787_v31 = vor.u32 %v2990_v5, %v2771_v15 }
  0x2b   :  { %336 = vmatmul.bf16.vlgmr.msra.gmra.mxu2 %v4654_v23  ;;  %4732 = vst [vmem:[#allocation22_spill] sm:$0xff] %v3763_v60  ;;  %v2753_v35 = vld [vmem:[%s4649_s2 + $0x120] sm:$0xf]  ;;  %v2777_v23 = vld [vmem:[%s4649_s2 + $0x148] sm:$0xf]  ;;  %v3799_v59 = vor.u32 %v2991_v18, %v2779_v27 }
  0x2c   :  { %591 = vmatpush.bf16.msrb.mxu0 %v3676_v37  ;;  %4733 = vst [vmem:[#allocation23_spill] sm:$0xff] %v3781_v29  ;;  %v2993_v56 = vld [vmem:[%s4649_s2 + $0x154] sm:$0xf0]  ;;  %v2988_v51 = vld [vmem:[%s4649_s2 + $0x12c] sm:$0xf0] }
  0x2d   :  { %604 = vmatpush.bf16.msrb.mxu1 %v3678_v38  ;;  %630 = vmatpush.bf16.msrb.mxu3 %v3690_v50  ;;  %4734 = vst [vmem:[#allocation24_spill] sm:$0xff] %v3785_v30  ;;  %v2986_v62 = vld [vmem:[%s4649_s2 + $0x124] sm:$0xf]  ;;  %v2755_v5 = vld [vmem:[%s4649_s2 + $0x130] sm:$0xf0]  ;;  %v3817_v27 = vor.u32 %v2993_v56, %v2777_v23 }
  0x2e   :  { %616 = vmatpush.bf16.msrb.mxu2 %v3672_v36  ;;  %4735 = vst [vmem:[#allocation25_spill] sm:$0xff] %v3787_v31  ;;  %v2987_v15 = vld [vmem:[%s4649_s2 + $0x12c] sm:$0xf]  ;;  %v2763_v18 = vld [vmem:[%s4649_s2 + $0x138] sm:$0xf0] }
  0x2f   :  { %4736 = vst [vmem:[#allocation26_spill] sm:$0xff] %v3799_v59  ;;  %v2989_v23 = vld [vmem:[%s4649_s2 + $0x134] sm:$0xf0]  ;;  %v3835_v56 = vor.u32 %v2987_v15, %v2763_v18  ;;  %v2747_v15 = vld [vmem:[%s4649_s2 + $0x118] sm:$0xf0] }
  0x30   :  { %592 = vmatpush.bf16.msrb.mxu0 %v3713_v0  ;;  %4737 = vst [vmem:[#allocation27_spill] sm:$0xff] %v3817_v27 }
  0x31   :  { %605 = vmatpush.bf16.msrb.mxu1 %v3715_v4  ;;  %631 = vmatpush.bf16.msrb.mxu3 %v3727_v22  ;;  %4740 = vst [vmem:[#allocation30_spill] sm:$0xff] %v3835_v56 }
  0x32   :  { %617 = vmatpush.bf16.msrb.mxu2 %v3709_v63 }
  0x34   :  { %593 = vmatpush.bf16.msrb.mxu0 %v3749_v43  ;;  %v2737_v43 = vld [vmem:[%s4649_s2 + $0x100] sm:$0xf] }
  0x35   :  { %606 = vmatpush.bf16.msrb.mxu1 %v3751_v44  ;;  %632 = vmatpush.bf16.msrb.mxu3 %v3763_v60  ;;  %v3821_v60 = vor.u32 %v2988_v51, %v2753_v35  ;;  %v3823_v44 = vor.u32 %v2986_v62, %v2755_v5  ;;  %v2984_v35 = vld [vmem:[%s4649_s2 + $0x10c] sm:$0xf0]  ;;  %v2982_v51 = vld [vmem:[%s4649_s2 + $0x104] sm:$0xf]  ;;  %v2739_v62 = vld [vmem:[%s4649_s2 + $0x110] sm:$0xf0] }
  0x36   :  { %618 = vmatpush.bf16.msrb.mxu2 %v3745_v39  ;;  %v2761_v39 = vld [vmem:[%s4649_s2 + $0x128] sm:$0xf]  ;;  %v2983_v5 = vld [vmem:[%s4649_s2 + $0x10c] sm:$0xf] }
  0x37   :  { %4738 = vst [vmem:[#allocation28_spill] sm:$0xff] %v3821_v60  ;;  %v3853_v18 = vor.u32 %v2989_v23, %v2761_v39  ;;  %v2985_v39 = vld [vmem:[%s4649_s2 + $0x114] sm:$0xf0]  ;;  %v4746_v23 = vmov 0.0|0.0  }
  0x38   :  { %594 = vmatpush.bf16.msrb.mxu0 %v3785_v30  ;;  %4739 = vst [vmem:[#allocation29_spill] sm:$0xff] %v3823_v44  ;;  %v3862_v30 = vor.u32 %v2983_v5, %v2747_v15  ;;  %v4751_v5 = vld [vmem:[#allocation23_spill] sm:$0xff]  ;;  %v4752_v15 = vld [vmem:[#allocation24_spill] sm:$0xff] }
  0x39   :  { %607 = vmatpush.bf16.msrb.mxu1 %v3787_v31  ;;  %633 = vmatpush.bf16.msrb.mxu3 %v3799_v59  ;;  %4741 = vst [vmem:[#allocation31_spill] sm:$0xff] %v3853_v18  ;;  %v3857_v59 = vor.u32 %v2984_v35, %v2737_v43  ;;  %v3859_v31 = vor.u32 %v2982_v51, %v2739_v62  ;;  %v4748_v35 = vld [vmem:[#allocation20_spill] sm:$0xff]  ;;  %v4749_v51 = vld [vmem:[#allocation21_spill] sm:$0xff]  ;;  %v4750_v62 = vld [vmem:[#allocation22_spill] sm:$0xff] }
  0x3a   :  { %619 = vmatpush.bf16.msrb.mxu2 %v3781_v29  ;;  %4744 = vst [vmem:[#allocation34_spill] sm:$0xff] %v3862_v30  ;;  %v2745_v29 = vld [vmem:[%s4649_s2 + $0x108] sm:$0xf] }
  0x3b   :  { %4742 = vst [vmem:[#allocation32_spill] sm:$0xff] %v3857_v59  ;;  %v3873_v43 = vor.u32 %v2985_v39, %v2745_v29  ;;  %v4747_v29 = vld [vmem:[#allocation19_spill] sm:$0xff]  ;;  %v4753_v39 = vld [vmem:[#allocation25_spill] sm:$0xff] }
  0x3c   :  { %595 = vmatpush.bf16.msrb.mxu0 %v3821_v60  ;;  %4743 = vst [vmem:[#allocation33_spill] sm:$0xff] %v3859_v31 }
  0x3d   :  { %608 = vmatpush.bf16.msrb.mxu1 %v3823_v44  ;;  %634 = vmatpush.bf16.msrb.mxu3 %v3835_v56  ;;  %4745 = vst [vmem:[#allocation35_spill] sm:$0xff] %v3873_v43 }
  0x3e   :  { %620 = vmatpush.bf16.msrb.mxu2 %v3817_v27 }
  0x40   :  { %596 = vmatpush.bf16.msrb.mxu0 %v3857_v59 }
  0x41   :  { %609 = vmatpush.bf16.msrb.mxu1 %v3859_v31  ;;  %635 = vmatpush.bf16.msrb.mxu3 %v3862_v30 }
  0x42   :  { %621 = vmatpush.bf16.msrb.mxu2 %v3853_v18 }
  0x43   :  { %597 = vmatmul.bf16.vlgmr.msrb.gmra.mxu0 %v4746_v23 }
  0x44   :  { %720 = vmatpush.bf16.msra.mxu0 %v3306_v3  ;;  %610 = vmatmul.bf16.vlgmr.msrb.gmra.mxu1 %v4746_v23 }
  0x45   :  { %733 = vmatpush.bf16.msra.mxu1 %v3317_v7  ;;  %759 = vmatpush.bf16.msra.mxu3 %v3319_v8 }
  0x46   :  { %636 = vmatmul.bf16.vlgmr.msrb.gmra.mxu3 %v4746_v23  ;;  %622 = vmatpush.bf16.msrb.mxu2 %v3873_v43 }
  0x48   :  { %721 = vmatpush.bf16.msra.mxu0 %v3331_v12 }
  0x49   :  { %734 = vmatpush.bf16.msra.mxu1 %v3344_v16  ;;  %760 = vmatpush.bf16.msra.mxu3 %v3346_v17 }
  0x4a   :  { %746 = vmatpush.bf16.msra.mxu2 %v3357_v21 }
  0x4b   :  { %623 = vmatmul.bf16.vlgmr.msrb.gmra.mxu2 %v4746_v23  ;;  %v4754_v23 = vld [vmem:[#allocation26_spill] sm:$0xff] }
  0x4c   :  { %722 = vmatpush.bf16.msra.mxu0 %v3379_v28 }
  0x4d   :  { %735 = vmatpush.bf16.msra.mxu1 %v3392_v32  ;;  %761 = vmatpush.bf16.msra.mxu3 %v3394_v33 }
  0x4e   :  { %747 = vmatpush.bf16.msra.mxu2 %v3396_v34 }
  0x50   :  { %723 = vmatpush.bf16.msra.mxu0 %v3418_v41 }
  0x51   :  { %736 = vmatpush.bf16.msra.mxu1 %v3430_v45  ;;  %762 = vmatpush.bf16.msra.mxu3 %v3432_v46 }
  0x52   :  { %748 = vmatpush.bf16.msra.mxu2 %v3420_v42 }
  0x54   :  { %724 = vmatpush.bf16.msra.mxu0 %v3454_v53 }
  0x55   :  { %737 = vmatpush.bf16.msra.mxu1 %v3466_v57  ;;  %763 = vmatpush.bf16.msra.mxu3 %v3468_v58 }
  0x56   :  { %749 = vmatpush.bf16.msra.mxu2 %v3456_v54 }
  0x58   :  { %725 = vmatpush.bf16.msra.mxu0 %v3490_v1 }
  0x59   :  { %738 = vmatpush.bf16.msra.mxu1 %v3502_v6  ;;  %764 = vmatpush.bf16.msra.mxu3 %v3504_v9 }
  0x5a   :  { %750 = vmatpush.bf16.msra.mxu2 %v3492_v2 }
  0x5c   :  { %726 = vmatpush.bf16.msra.mxu0 %v3526_v19 }
  0x5d   :  { %739 = vmatpush.bf16.msra.mxu1 %v3541_v25  ;;  %765 = vmatpush.bf16.msra.mxu3 %v3543_v26 }
  0x5e   :  { %751 = vmatpush.bf16.msra.mxu2 %v3528_v20 }
  0x60   :  { %727 = vmatpush.bf16.msra.mxu0 %v3574_v40 }
  0x61   :  { %740 = vmatpush.bf16.msra.mxu1 %v3586_v48  ;;  %766 = vmatpush.bf16.msra.mxu3 %v3588_v49 }
  0x62   :  { %752 = vmatpush.bf16.msra.mxu2 %v3582_v47 }
  0x64   :  { %846 = vmatpush.bf16.msrb.mxu0 %v3596_v52 }
  0x65   :  { %859 = vmatpush.bf16.msrb.mxu1 %v3598_v55  ;;  %885 = vmatpush.bf16.msrb.mxu3 %v3609_v61 }
  0x66   :  { %753 = vmatpush.bf16.msra.mxu2 %v3628_v10 }
  0x68   :  { %847 = vmatpush.bf16.msrb.mxu0 %v3636_v13 }
  0x69   :  { %860 = vmatpush.bf16.msrb.mxu1 %v3638_v14  ;;  %886 = vmatpush.bf16.msrb.mxu3 %v3651_v24 }
  0x6a   :  { %872 = vmatpush.bf16.msrb.mxu2 %v3632_v11 }
  0x6c   :  { %848 = vmatpush.bf16.msrb.mxu0 %v3676_v37 }
  0x6d   :  { %861 = vmatpush.bf16.msrb.mxu1 %v3678_v38  ;;  %887 = vmatpush.bf16.msrb.mxu3 %v3690_v50 }
  0x6e   :  { %873 = vmatpush.bf16.msrb.mxu2 %v3672_v36 }
  0x70   :  { %849 = vmatpush.bf16.msrb.mxu0 %v3713_v0 }
  0x71   :  { %862 = vmatpush.bf16.msrb.mxu1 %v3715_v4  ;;  %888 = vmatpush.bf16.msrb.mxu3 %v3727_v22 }
  0x72   :  { %874 = vmatpush.bf16.msrb.mxu2 %v3709_v63 }
  0x74   :  { %850 = vmatpush.bf16.msrb.mxu0 %v4748_v35 }
  0x75   :  { %863 = vmatpush.bf16.msrb.mxu1 %v4749_v51  ;;  %889 = vmatpush.bf16.msrb.mxu3 %v4750_v62 }
  0x76   :  { %875 = vmatpush.bf16.msrb.mxu2 %v4747_v29 }
  0x78   :  { %851 = vmatpush.bf16.msrb.mxu0 %v4752_v15 }
  0x79   :  { %864 = vmatpush.bf16.msrb.mxu1 %v4753_v39  ;;  %890 = vmatpush.bf16.msrb.mxu3 %v4754_v23  ;;  %v135_v23 = vld [vmem:[%s4650_s0] sm:$0xff] }
  0x7a   :  { %876 = vmatpush.bf16.msrb.mxu2 %v4751_v5 }
  0x7c   :  { %852 = vmatpush.bf16.msrb.mxu0 %v3821_v60  ;;  %v138_v60 = vunpack.c.h.bf16 %v135_v23 }
  0x7d   :  { %865 = vmatpush.bf16.msrb.mxu1 %v3823_v44  ;;  %891 = vmatpush.bf16.msrb.mxu3 %v3835_v56 }
  0x7e   :  { %877 = vmatpush.bf16.msrb.mxu2 %v3817_v27  ;;  %v137_v27 = vunpack.c.l.bf16 %v135_v23 }
  0x80   :  { %853 = vmatpush.bf16.msrb.mxu0 %v3857_v59  ;;  %v136_v59 = vld [vmem:[%s4650_s0 + $0x8] sm:$0xff] }
  0x81   :  { %866 = vmatpush.bf16.msrb.mxu1 %v3859_v31  ;;  %892 = vmatpush.bf16.msrb.mxu3 %v3862_v30  ;;  %v140_v30 = vunpack.c.h.bf16 %v136_v59 }
  0x82   :  { %878 = vmatpush.bf16.msrb.mxu2 %v3853_v18 }
  0x86   :  { %879 = vmatpush.bf16.msrb.mxu2 %v3873_v43 }
  0xa0   :  { %v311_v39 = vpop.f32.mrf.mxu0 }
  0xa1   :  { %v354_v44 = vadd.f32 %v311_v39, %v137_v27  ;;  %v324_v15 = vpop.f32.mrf.mxu1 }
  0xa2   :  { %v355_v56 = vadd.f32 %v324_v15, %v138_v60  ;;  %v139_v60 = vunpack.c.l.bf16 %v136_v59 }
  0xa3   :  { %v2730_v18 = vmul.f32 -1.442695, %v354_v44 }
  0xa4   :  { %v2731_v31 = vmul.f32 -1.442695, %v355_v56 }
  0xa5   :  { %3015 = vpow2.f32 %v2730_v18 }
  0xa6   :  { %3017 = vpow2.f32 %v2731_v31 }
  0xa8   :  { %v313_v62 = vpop.f32.mrf.mxu0 }
  0xa9   :  { %v350_v43 = vpop.f32.mrf.mxu3  ;;  %v326_v51 = vpop.f32.mrf.mxu1 }
  0xaa   :  { %v357_v5 = vadd.f32 %v350_v43, %v140_v30 }
  0xab   :  { %v3016_v22 = vpop.eup %3015 }
  0xac   :  { %v2732_v23 = vmul.f32 -1.442695, %v357_v5  ;;  %v3018_v29 = vpop.eup %3017  ;;  %v361_v27 = vadd.f32 1.0, %v3016_v22 }
  0xad   :  { %v380_v39 = vadd.f32 1.0, %v3018_v29 }
  0xae   :  { %v337_v35 = vpop.f32.mrf.mxu2  ;;  %3019 = vpow2.f32 %v2732_v23  ;;  %vm367_vm0 = vweird.f32 %v361_v27  ;;  %v373_v22 = vand.u32 2147483648, %v361_v27  ;;  %v371_v59 = vand.u32 2147483647, %v361_v27  ;;  %v2733_v23 = vld [vmem:[%s4651_s1 + $0xf0] sm:$0xff] }
  0xaf   :  { %3021 = vrcp.f32 %v361_v27  ;;  %v356_v44 = vadd.f32 %v337_v35, %v139_v60  ;;  %v392_v51 = vand.u32 2147483648, %v380_v39  ;;  %vm386_vm2 = vweird.f32 %v380_v39 }
  0xb0   :  { %3023 = vrcp.f32 %v380_v39  ;;  %v390_v35 = vand.u32 2147483647, %v380_v39  ;;  %vm372_vm5 = vcmp.eq.f32.partialorder %v371_v59, 8.507059e+37  ;;  %v425_v63 = vunpack.c.h.bf16 %v2733_v23 }
  0xb1   :  { %v352_v15 = vpop.f32.mrf.mxu3  ;;  %3025 = vtanh.f32 %v356_v44 }
  0xb2   :  { %vm391_vm7 = vcmp.eq.f32.partialorder %v390_v35, 8.507059e+37  ;;  %v2734_v35 = vld [vmem:[%s4651_s1 + $0xf8] sm:$0xff] }
  0xb4   :  { %v3020_v18 = vpop.eup %3019 }
  0xb5   :  { %v3022_v4 = vpop.eup %3021  ;;  %v3951_v31 = vadd.f32 1.0, %v3020_v18 }
  0xb6   :  { %v339_v56 = vpop.f32.mrf.mxu2  ;;  %v3024_v62 = vpop.eup %3023  ;;  %v363_v30 = vmul.f32 %v3022_v4, %v361_v27  ;;  %vm368_vm1 = vweird.f32 %v3022_v4 }
  0xb7   :  { %v382_v43 = vmul.f32 %v3024_v62, %v380_v39  ;;  %3027 = vrcp.f32 %v3951_v31  ;;  %vm387_vm3 = vweird.f32 %v3024_v62  ;;  %vm3957_vm4 = vmor %vm367_vm0, %vm368_vm1  ;;  %v374_v56 = vor.u32 1.1754944e-38, %v373_v22  ;;  %v3026_v18 = vpop.eup %3025 }
  0xb8   :  { %v364_v29 = vsub.f32 1.0, %v363_v30  ;;  %v393_v30 = vor.u32 1.1754944e-38, %v392_v51  ;;  %vm3961_vm6 = vmor %vm386_vm2, %vm387_vm3  ;;  %v424_v39 = vunpack.c.l.bf16 %v2733_v23  ;;  %vm406_vm8 = vweird.f32 %v3951_v31 }
  0xb9   :  { %v383_v5 = vsub.f32 1.0, %v382_v43  ;;  %v412_v23 = vand.u32 2147483648, %v3951_v31 }
  0xba   :  { %v365_v60 = vmul.f32 %v3022_v4, %v364_v29 }
  0xbb   :  { %v384_v15 = vmul.f32 %v3024_v62, %v383_v5 }
  0xbc   :  { %v366_v0 = vadd.f32 %v3022_v4, %v365_v60 }
  0xbd   :  { %v3028_v43 = vpop.eup %3027  ;;  %v385_v50 = vadd.f32 %v3024_v62, %v384_v15 }
  0xbe   :  { %v402_v29 = vmul.f32 %v3028_v43, %v3951_v31  ;;  %v370_v5 = vsel %vm3957_vm4, %v3022_v4, %v366_v0  ;;  %vm407_vm9 = vweird.f32 %v3028_v43 }
  0xbf   :  { %v375_v22 = vsel %vm372_vm5, %v374_v56, %v370_v5  ;;  %v389_v51 = vsel %vm3961_vm6, %v3024_v62, %v385_v50  ;;  %v410_v56 = vand.u32 2147483647, %v3951_v31  ;;  %vm3979_vm10 = vmor %vm406_vm8, %vm407_vm9 }
  0xc0   :  { %v598_v59 = vpop.f32.mrf.mxu0  ;;  %v403_v38 = vsub.f32 1.0, %v402_v29  ;;  %v394_v37 = vsel %vm391_vm7, %v393_v30, %v389_v51  ;;  %v417_v24 = vmul.f32 %v3026_v18, %v375_v22  ;;  %v427_v30 = vunpack.c.h.bf16 %v2734_v35 }
  0xc1   :  { %v611_v60 = vpop.f32.mrf.mxu1  ;;  %v641_v15 = vadd.f32 %v598_v59, %v424_v39  ;;  %v416_v0 = vmul.f32 0.0, %v394_v37  ;;  %v413_v39 = vor.u32 1.1754944e-38, %v412_v23  ;;  %vm411_vm11 = vcmp.eq.f32.partialorder %v410_v56, 8.507059e+37 }
  0xc2   :  { %v642_v4 = vadd.f32 %v611_v60, %v425_v63  ;;  %v404_v44 = vmul.f32 %v3028_v43, %v403_v38 }
  0xc3   :  { %v2863_v5 = vmul.f32 -1.442695, %v641_v15  ;;  %v3983_v62 = vadd.f32 %v417_v24, %v416_v0 }
  0xc4   :  { %v2864_v18 = vmul.f32 -1.442695, %v642_v4  ;;  %v405_v27 = vadd.f32 %v3028_v43, %v404_v44  ;;  %v426_v44 = vunpack.c.l.bf16 %v2734_v35 }
  0xc5   :  { %3029 = vpow2.f32 %v2863_v5 }
  0xc6   :  { %3031 = vtanh.f32 %v3983_v62  ;;  %v409_v38 = vsel %vm3979_vm10, %v3028_v43, %v405_v27 }
  0xc7   :  { %3033 = vpow2.f32 %v2864_v18  ;;  %v414_v24 = vsel %vm411_vm11, %v413_v39, %v409_v38 }
  0xc8   :  { %v600_v31 = vpop.f32.mrf.mxu0 }
  0xc9   :  { %v637_v37 = vpop.f32.mrf.mxu3  ;;  %v613_v29 = vpop.f32.mrf.mxu1 }
  0xca   :  { %v644_v63 = vadd.f32 %v637_v37, %v427_v30 }
  0xcb   :  { %v3030_v59 = vpop.eup %3029 }
  0xcc   :  { %v2865_v22 = vmul.f32 -1.442695, %v644_v63  ;;  %v3032_v60 = vpop.eup %3031  ;;  %v648_v15 = vadd.f32 1.0, %v3030_v59 }
  0xcd   :  { %v3034_v0 = vpop.eup %3033  ;;  %v420_v23 = vmul.f32 %v3032_v60, %v414_v24 }
  0xce   :  { %v624_v51 = vpop.f32.mrf.mxu2  ;;  %3035 = vpow2.f32 %v2865_v22  ;;  %v667_v4 = vadd.f32 1.0, %v3034_v0  ;;  %v660_v63 = vand.u32 2147483648, %v648_v15  ;;  %v658_v22 = vand.u32 2147483647, %v648_v15 }
  0xcf   :  { %3037 = vrcp.f32 %v648_v15  ;;  %v708_v18 = vpack.c.bf16 %v420_v23, %v420_v23  ;;  %v643_v56 = vadd.f32 %v624_v51, %v426_v44  ;;  %vm654_vm13 = vweird.f32 %v648_v15 }
  0xd0   :  { %3039 = vrcp.f32 %v667_v4  ;;  %v679_v51 = vand.u32 2147483648, %v667_v4  ;;  %v677_v0 = vand.u32 2147483647, %v667_v4  ;;  %vm673_vm0 = vweird.f32 %v667_v4 }
  0xd1   :  { %v639_v5 = vpop.f32.mrf.mxu3  ;;  %709 = vst [vmem:[%s4652_s3] sm:$0xf] %v708_v18  ;;  %728 = vmatmul.bf16.vlgmr.msra.gmra.mxu0 %v708_v18  ;;  %741 = vmatmul.bf16.vlgmr.msra.gmra.mxu1 %v708_v18  ;;  %vm659_vm1 = vcmp.eq.f32.partialorder %v658_v22, 8.507059e+37 }
  0xd2   :  { %754 = vmatmul.bf16.vlgmr.msra.gmra.mxu2 %v708_v18  ;;  %767 = vmatmul.bf16.vlgmr.msra.gmra.mxu3 %v708_v18  ;;  %v661_v5 = vor.u32 1.1754944e-38, %v660_v63  ;;  %vm678_vm3 = vcmp.eq.f32.partialorder %v677_v0, 8.507059e+37 }
  0xd3   :  { %978 = vmatpush.bf16.msra.mxu0 %v3306_v3  ;;  %991 = vmatpush.bf16.msra.mxu1 %v3317_v7 }
  0xd4   :  { %v3036_v43 = vpop.eup %3035  ;;  %1004 = vmatpush.bf16.msra.mxu2 %v3357_v21  ;;  %1017 = vmatpush.bf16.msra.mxu3 %v3319_v8 }
  0xd5   :  { %v3991_v30 = vadd.f32 1.0, %v3036_v43  ;;  %v3038_v35 = vpop.eup %3037  ;;  %v680_v43 = vor.u32 1.1754944e-38, %v679_v51 }
  0xd6   :  { %v626_v50 = vpop.f32.mrf.mxu2  ;;  %v650_v27 = vmul.f32 %v3038_v35, %v648_v15  ;;  %v3040_v39 = vpop.eup %3039  ;;  %vm655_vm12 = vweird.f32 %v3038_v35 }
  0xd7   :  { %3041 = vrcp.f32 %v3991_v30  ;;  %v669_v38 = vmul.f32 %v3040_v39, %v667_v4  ;;  %979 = vmatpush.bf16.msra.mxu0 %v3331_v12  ;;  %992 = vmatpush.bf16.msra.mxu1 %v3344_v16  ;;  %vm674_vm14 = vweird.f32 %v3040_v39  ;;  %vm656_vm15 = vmor %vm654_vm13, %vm655_vm12  ;;  %vm693_vm5 = vweird.f32 %v3991_v30 }
  0xd8   :  { %3043 = vtanh.f32 %v643_v56  ;;  %v651_v37 = vsub.f32 1.0, %v650_v27  ;;  %1005 = vmatpush.bf16.msra.mxu2 %v3396_v34  ;;  %1018 = vmatpush.bf16.msra.mxu3 %v3346_v17  ;;  %vm675_vm2 = vmor %vm673_vm0, %vm674_vm14 }
  0xd9   :  { %v670_v31 = vsub.f32 1.0, %v669_v38 }
  0xda   :  { %v652_v29 = vmul.f32 %v3038_v35, %v651_v37 }
  0xdb   :  { %v671_v59 = vmul.f32 %v3040_v39, %v670_v31  ;;  %980 = vmatpush.bf16.msra.mxu0 %v3379_v28  ;;  %993 = vmatpush.bf16.msra.mxu1 %v3392_v32  ;;  %v699_v31 = vand.u32 2147483648, %v3991_v30 }
  0xdc   :  { %v653_v60 = vadd.f32 %v3038_v35, %v652_v29  ;;  %1006 = vmatpush.bf16.msra.mxu2 %v3420_v42  ;;  %1019 = vmatpush.bf16.msra.mxu3 %v3394_v33  ;;  %v697_v29 = vand.u32 2147483647, %v3991_v30 }
  0xdd   :  { %v3042_v24 = vpop.eup %3041  ;;  %v672_v18 = vadd.f32 %v3040_v39, %v671_v59  ;;  %v700_v51 = vor.u32 1.1754944e-38, %v699_v31  ;;  %v4776_v31 = vld [vmem:[#allocation27_spill] sm:$0xff] }
  0xde   :  { %v3044_v23 = vpop.eup %3043  ;;  %v689_v44 = vmul.f32 %v3042_v24, %v3991_v30  ;;  %v657_v15 = vsel %vm656_vm15, %v3038_v35, %v653_v60  ;;  %vm694_vm4 = vweird.f32 %v3042_v24  ;;  %vm698_vm7 = vcmp.eq.f32.partialorder %v697_v29, 8.507059e+37  ;;  %v4777_v29 = vld [vmem:[#allocation26_spill] sm:$0xff] }
  0xdf   :  { %v662_v50 = vsel %vm659_vm1, %v661_v5, %v657_v15  ;;  %v676_v27 = vsel %vm675_vm2, %v3040_v39, %v672_v18  ;;  %981 = vmatpush.bf16.msra.mxu0 %v3418_v41  ;;  %994 = vmatpush.bf16.msra.mxu1 %v3430_v45  ;;  %vm695_vm6 = vmor %vm693_vm5, %vm694_vm4  ;;  %v4764_v5 = vld [vmem:[#allocation15_spill] sm:$0xff]  ;;  %v4765_v15 = vld [vmem:[#allocation14_spill] sm:$0xff] }
  0xe0   :  { %v690_v56 = vsub.f32 1.0, %v689_v44  ;;  %v704_v37 = vmul.f32 %v3044_v23, %v662_v50  ;;  %v681_v63 = vsel %vm678_vm3, %v680_v43, %v676_v27  ;;  %1007 = vmatpush.bf16.msra.mxu2 %v3456_v54  ;;  %1020 = vmatpush.bf16.msra.mxu3 %v3432_v46  ;;  %v4762_v23 = vld [vmem:[#allocation12_spill] sm:$0xff]  ;;  %v4763_v44 = vld [vmem:[#allocation13_spill] sm:$0xff]  ;;  %v4769_v50 = vld [vmem:[#allocation18_spill] sm:$0xff] }
  0xe1   :  { %v703_v4 = vmul.f32 0.0, %v681_v63  ;;  %v4766_v18 = vld [vmem:[#allocation16_spill] sm:$0xff]  ;;  %v4767_v43 = vld [vmem:[#allocation17_spill] sm:$0xff]  ;;  %v4773_v63 = vld [vmem:[#allocation22_spill] sm:$0xff] }
  0xe2   :  { %v691_v38 = vmul.f32 %v3042_v24, %v690_v56  ;;  %v4768_v56 = vld [vmem:[#allocation19_spill] sm:$0xff]  ;;  %v4770_v27 = vld [vmem:[#allocation20_spill] sm:$0xff] }
  0xe3   :  { %v4012_v35 = vadd.f32 %v704_v37, %v703_v4  ;;  %982 = vmatpush.bf16.msra.mxu0 %v3454_v53  ;;  %995 = vmatpush.bf16.msra.mxu1 %v3466_v57  ;;  %v4771_v37 = vld [vmem:[#allocation21_spill] sm:$0xff]  ;;  %v4774_v4 = vld [vmem:[#allocation24_spill] sm:$0xff] }
  0xe4   :  { %v692_v39 = vadd.f32 %v3042_v24, %v691_v38  ;;  %1008 = vmatpush.bf16.msra.mxu2 %v3492_v2  ;;  %1021 = vmatpush.bf16.msra.mxu3 %v3468_v58  ;;  %v4772_v38 = vld [vmem:[#allocation23_spill] sm:$0xff] }
  0xe5   :  { %3045 = vtanh.f32 %v4012_v35 }
  0xe6   :  { %v696_v22 = vsel %vm695_vm6, %v3042_v24, %v692_v39  ;;  %v4761_v24 = vld [vmem:[#allocation10_spill] sm:$0xff]  ;;  %v4775_v39 = vld [vmem:[#allocation25_spill] sm:$0xff] }
  0xe7   :  { %983 = vmatpush.bf16.msra.mxu0 %v3490_v1  ;;  %996 = vmatpush.bf16.msra.mxu1 %v3502_v6  ;;  %v701_v60 = vsel %vm698_vm7, %v700_v51, %v696_v22  ;;  %v4778_v22 = vld [vmem:[#allocation28_spill] sm:$0xff]  ;;  %v4779_v51 = vld [vmem:[#allocation29_spill] sm:$0xff] }
  0xe8   :  { %1009 = vmatpush.bf16.msra.mxu2 %v3528_v20  ;;  %1022 = vmatpush.bf16.msra.mxu3 %v3504_v9 }
  0xeb   :  { %v3046_v59 = vpop.eup %3045  ;;  %984 = vmatpush.bf16.msra.mxu0 %v3526_v19  ;;  %997 = vmatpush.bf16.msra.mxu1 %v3541_v25 }
  0xec   :  { %v707_v0 = vmul.f32 %v3046_v59, %v701_v60  ;;  %1010 = vmatpush.bf16.msra.mxu2 %v3582_v47  ;;  %1023 = vmatpush.bf16.msra.mxu3 %v3543_v26  ;;  %v4780_v59 = vld [vmem:[#allocation31_spill] sm:$0xff]  ;;  %v4781_v60 = vld [vmem:[#allocation30_spill] sm:$0xff] }
  0xee   :  { %v710_v30 = vpack.c.bf16 %v707_v0, %v707_v0  ;;  %v4782_v0 = vld [vmem:[#allocation32_spill] sm:$0xff] }
  0xef   :  { %985 = vmatpush.bf16.msra.mxu0 %v3574_v40  ;;  %998 = vmatpush.bf16.msra.mxu1 %v3586_v48 }
  0xf0   :  { %2866 = vst [vmem:[%s4653_s4 + $0x1c] sm:$0xf] %v710_v30  ;;  %854 = vmatmul.bf16.vlgmr.msrb.gmra.mxu0 %v710_v30  ;;  %867 = vmatmul.bf16.vlgmr.msrb.gmra.mxu1 %v710_v30 }
  0xf1   :  { %880 = vmatmul.bf16.vlgmr.msrb.gmra.mxu2 %v710_v30  ;;  %893 = vmatmul.bf16.vlgmr.msrb.gmra.mxu3 %v710_v30  ;;  %v4783_v30 = vld [vmem:[#allocation33_spill] sm:$0xff] }
  0xf2   :  { %1011 = vmatpush.bf16.msra.mxu2 %v3628_v10  ;;  %1024 = vmatpush.bf16.msra.mxu3 %v3588_v49 }
  0xf3   :  { %1104 = vmatpush.bf16.msrb.mxu0 %v3596_v52  ;;  %1117 = vmatpush.bf16.msrb.mxu1 %v3598_v55 }
  0xf6   :  { %1130 = vmatpush.bf16.msrb.mxu2 %v3632_v11  ;;  %1143 = vmatpush.bf16.msrb.mxu3 %v3609_v61 }
  0xf7   :  { %1105 = vmatpush.bf16.msrb.mxu0 %v3636_v13  ;;  %1118 = vmatpush.bf16.msrb.mxu1 %v3638_v14 }
  0xfa   :  { %1131 = vmatpush.bf16.msrb.mxu2 %v3672_v36  ;;  %1144 = vmatpush.bf16.msrb.mxu3 %v4761_v24 }
  0xfb   :  { %1106 = vmatpush.bf16.msrb.mxu0 %v4762_v23  ;;  %1119 = vmatpush.bf16.msrb.mxu1 %v4763_v44 }
  0xfe   :  { %1132 = vmatpush.bf16.msrb.mxu2 %v4764_v5  ;;  %1145 = vmatpush.bf16.msrb.mxu3 %v4765_v15 }
  0xff   :  { %1107 = vmatpush.bf16.msrb.mxu0 %v4766_v18  ;;  %1120 = vmatpush.bf16.msrb.mxu1 %v4767_v43 }
 0x102   :  { %1133 = vmatpush.bf16.msrb.mxu2 %v4768_v56  ;;  %1146 = vmatpush.bf16.msrb.mxu3 %v4769_v50 }
 0x103   :  { %1108 = vmatpush.bf16.msrb.mxu0 %v4770_v27  ;;  %1121 = vmatpush.bf16.msrb.mxu1 %v4771_v37 }
 0x106   :  { %1134 = vmatpush.bf16.msrb.mxu2 %v4772_v38  ;;  %1147 = vmatpush.bf16.msrb.mxu3 %v4773_v63  ;;  %v4784_v63 = vld [vmem:[#allocation35_spill] sm:$0xff] }
 0x107   :  { %1109 = vmatpush.bf16.msrb.mxu0 %v4774_v4  ;;  %1122 = vmatpush.bf16.msrb.mxu1 %v4775_v39  ;;  %v4785_v4 = vld [vmem:[#allocation34_spill] sm:$0xff] }
 0x10a   :  { %1135 = vmatpush.bf16.msrb.mxu2 %v4776_v31  ;;  %1148 = vmatpush.bf16.msrb.mxu3 %v4777_v29  ;;  %v2867_v29 = vld [vmem:[%s4650_s0 + $0x10] sm:$0xff] }
 0x10b   :  { %1110 = vmatpush.bf16.msrb.mxu0 %v4778_v22  ;;  %1123 = vmatpush.bf16.msrb.mxu1 %v4779_v51  ;;  %v716_v31 = vunpack.c.l.bf16 %v2867_v29  ;;  %v717_v22 = vunpack.c.h.bf16 %v2867_v29 }
 0x10e   :  { %1136 = vmatpush.bf16.msrb.mxu2 %v4780_v59  ;;  %1149 = vmatpush.bf16.msrb.mxu3 %v4781_v60 }
 0x10f   :  { %1111 = vmatpush.bf16.msrb.mxu0 %v4782_v0  ;;  %1124 = vmatpush.bf16.msrb.mxu1 %v4783_v30  ;;  %v2868_v0 = vld [vmem:[%s4650_s0 + $0x18] sm:$0xff] }
 0x110   :  { %v719_v37 = vunpack.c.h.bf16 %v2868_v0 }
 0x112   :  { %1137 = vmatpush.bf16.msrb.mxu2 %v4784_v63  ;;  %1150 = vmatpush.bf16.msrb.mxu3 %v4785_v4 }
 0x14e   :  { %v729_v39 = vpop.f32.mrf.mxu0  ;;  %v742_v51 = vpop.f32.mrf.mxu1 }
 0x14f   :  { %v772_v38 = vadd.f32 %v729_v39, %v716_v31  ;;  %v773_v59 = vadd.f32 %v742_v51, %v717_v22 }
 0x151   :  { %v2869_v60 = vmul.f32 -1.442695, %v772_v38  ;;  %v2870_v30 = vmul.f32 -1.442695, %v773_v59  ;;  %v718_v38 = vunpack.c.l.bf16 %v2868_v0 }
 0x153   :  { %3047 = vpow2.f32 %v2869_v60 }
 0x154   :  { %3049 = vpow2.f32 %v2870_v30 }
 0x155   :  { %v755_v4 = vpop.f32.mrf.mxu2  ;;  %v768_v63 = vpop.f32.mrf.mxu3 }
 0x156   :  { %v775_v27 = vadd.f32 %v768_v63, %v719_v37  ;;  %v731_v50 = vpop.f32.mrf.mxu0  ;;  %v744_v56 = vpop.f32.mrf.mxu1  ;;  %v774_v30 = vadd.f32 %v755_v4, %v718_v38 }
 0x158   :  { %v2871_v43 = vmul.f32 -1.442695, %v775_v27 }
 0x159   :  { %v3048_v29 = vpop.eup %3047 }
 0x15a   :  { %v3050_v18 = vpop.eup %3049  ;;  %v779_v15 = vadd.f32 1.0, %v3048_v29  ;;  %3051 = vpow2.f32 %v2871_v43 }
 0x15b   :  { %v798_v39 = vadd.f32 1.0, %v3050_v18  ;;  %v2872_v18 = vld [vmem:[%s4651_s1 + $0xe0] sm:$0xff] }
 0x15c   :  { %3053 = vrcp.f32 %v779_v15  ;;  %v791_v63 = vand.u32 2147483648, %v779_v15  ;;  %v789_v29 = vand.u32 2147483647, %v779_v15  ;;  %vm785_vm10 = vweird.f32 %v779_v15 }
 0x15d   :  { %3055 = vrcp.f32 %v798_v39  ;;  %v757_v31 = vpop.f32.mrf.mxu2  ;;  %v770_v22 = vpop.f32.mrf.mxu3  ;;  %v810_v43 = vand.u32 2147483648, %v798_v39  ;;  %v808_v4 = vand.u32 2147483647, %v798_v39  ;;  %v843_v44 = vunpack.c.h.bf16 %v2872_v18 }
 0x15e   :  { %vm804_vm11 = vweird.f32 %v798_v39  ;;  %vm790_vm14 = vcmp.eq.f32.partialorder %v789_v29, 8.507059e+37 }
 0x15f   :  { %v811_v23 = vor.u32 1.1754944e-38, %v810_v43  ;;  %vm809_vm15 = vcmp.eq.f32.partialorder %v808_v4, 8.507059e+37  ;;  %v2873_v43 = vld [vmem:[%s4651_s1 + $0xe8] sm:$0xff] }
 0x160   :  { %v3052_v51 = vpop.eup %3051 }
 0x161   :  { %v4075_v59 = vadd.f32 1.0, %v3052_v51  ;;  %v842_v51 = vunpack.c.l.bf16 %v2872_v18 }
 0x162   :  { %v3054_v60 = vpop.eup %3053 }
 0x163   :  { %v3056_v5 = vpop.eup %3055  ;;  %v781_v37 = vmul.f32 %v3054_v60, %v779_v15  ;;  %3057 = vrcp.f32 %v4075_v59  ;;  %vm786_vm8 = vweird.f32 %v3054_v60  ;;  %vm824_vm1 = vweird.f32 %v4075_v59 }
 0x164   :  { %v800_v56 = vmul.f32 %v3056_v5, %v798_v39  ;;  %3059 = vtanh.f32 %v774_v30  ;;  %vm805_vm9 = vweird.f32 %v3056_v5  ;;  %vm787_vm12 = vmor %vm785_vm10, %vm786_vm8 }
 0x165   :  { %v782_v50 = vsub.f32 1.0, %v781_v37  ;;  %v792_v37 = vor.u32 1.1754944e-38, %v791_v63  ;;  %vm806_vm13 = vmor %vm804_vm11, %vm805_vm9 }
 0x166   :  { %v801_v27 = vsub.f32 1.0, %v800_v56 }
 0x167   :  { %v783_v0 = vmul.f32 %v3054_v60, %v782_v50 }
 0x168   :  { %v802_v31 = vmul.f32 %v3056_v5, %v801_v27 }
 0x169   :  { %v3058_v22 = vpop.eup %3057  ;;  %v784_v38 = vadd.f32 %v3054_v60, %v783_v0 }
 0x16a   :  { %v803_v30 = vadd.f32 %v3056_v5, %v802_v31  ;;  %v820_v56 = vmul.f32 %v3058_v22, %v4075_v59  ;;  %v3060_v50 = vpop.eup %3059  ;;  %vm825_vm0 = vweird.f32 %v3058_v22 }
 0x16b   :  { %v788_v24 = vsel %vm787_vm12, %v3054_v60, %v784_v38  ;;  %vm826_vm2 = vmor %vm824_vm1, %vm825_vm0 }
 0x16c   :  { %v793_v36 = vsel %vm790_vm14, %v792_v37, %v788_v24  ;;  %v807_v27 = vsel %vm806_vm13, %v3056_v5, %v803_v30  ;;  %v821_v14 = vsub.f32 1.0, %v820_v56  ;;  %v845_v5 = vunpack.c.h.bf16 %v2873_v43 }
 0x16d   :  { %v812_v13 = vsel %vm809_vm15, %v811_v23, %v807_v27  ;;  %v835_v0 = vmul.f32 %v3060_v50, %v793_v36  ;;  %v855_v15 = vpop.f32.mrf.mxu0  ;;  %v868_v61 = vpop.f32.mrf.mxu1  ;;  %v830_v36 = vand.u32 2147483648, %v4075_v59 }
 0x16e   :  { %v834_v39 = vmul.f32 %v812_v13, %v3983_v62  ;;  %v822_v18 = vmul.f32 %v3058_v22, %v821_v14  ;;  %v898_v63 = vadd.f32 %v855_v15, %v842_v51  ;;  %v899_v31 = vadd.f32 %v868_v61, %v843_v44 }
 0x16f   :  { %v828_v13 = vand.u32 2147483647, %v4075_v59  ;;  %v831_v51 = vor.u32 1.1754944e-38, %v830_v36 }
 0x170   :  { %v4086_v60 = vadd.f32 %v835_v0, %v834_v39  ;;  %v2874_v29 = vmul.f32 -1.442695, %v898_v63  ;;  %v2875_v24 = vmul.f32 -1.442695, %v899_v31  ;;  %v823_v4 = vadd.f32 %v3058_v22, %v822_v18 }
 0x171   :  { %vm829_vm3 = vcmp.eq.f32.partialorder %v828_v13, 8.507059e+37 }
 0x172   :  { %3061 = vtanh.f32 %v4086_v60  ;;  %v827_v38 = vsel %vm826_vm2, %v3058_v22, %v823_v4  ;;  %v844_v22 = vunpack.c.l.bf16 %v2873_v43 }
 0x173   :  { %3063 = vpow2.f32 %v2874_v29  ;;  %v832_v56 = vsel %vm829_vm3, %v831_v51, %v827_v38 }
 0x174   :  { %3065 = vpow2.f32 %v2875_v24  ;;  %v881_v61 = vpop.f32.mrf.mxu2  ;;  %v894_v14 = vpop.f32.mrf.mxu3 }
 0x175   :  { %v901_v62 = vadd.f32 %v894_v14, %v845_v5  ;;  %v857_v23 = vpop.f32.mrf.mxu0  ;;  %v870_v44 = vpop.f32.mrf.mxu1  ;;  %v900_v5 = vadd.f32 %v881_v61, %v844_v22 }
 0x177   :  { %v2876_v37 = vmul.f32 -1.442695, %v901_v62 }
 0x178   :  { %v3062_v30 = vpop.eup %3061 }
 0x179   :  { %v3064_v50 = vpop.eup %3063  ;;  %3067 = vpow2.f32 %v2876_v37  ;;  %v838_v27 = vmul.f32 %v3062_v30, %v832_v56 }
 0x17a   :  { %v3066_v0 = vpop.eup %3065  ;;  %v905_v15 = vadd.f32 1.0, %v3064_v50 }
 0x17b   :  { %v924_v59 = vadd.f32 1.0, %v3066_v0  ;;  %v965_v39 = vpack.c.bf16 %v838_v27, %v838_v27 }
 0x17c   :  { %3069 = vrcp.f32 %v905_v15  ;;  %v883_v18 = vpop.f32.mrf.mxu2  ;;  %v896_v63 = vpop.f32.mrf.mxu3  ;;  %v917_v62 = vand.u32 2147483648, %v905_v15  ;;  %v915_v61 = vand.u32 2147483647, %v905_v15  ;;  %vm911_vm6 = vweird.f32 %v905_v15 }
 0x17d   :  { %3071 = vrcp.f32 %v924_v59  ;;  %2877 = vst [vmem:[%s4652_s3 + $0x4] sm:$0xf] %v965_v39  ;;  %986 = vmatmul.bf16.vlgmr.msra.gmra.mxu0 %v965_v39  ;;  %999 = vmatmul.bf16.vlgmr.msra.gmra.mxu1 %v965_v39  ;;  %v936_v23 = vand.u32 2147483648, %v924_v59  ;;  %v934_v37 = vand.u32 2147483647, %v924_v59  ;;  %vm930_vm7 = vweird.f32 %v924_v59 }
 0x17e   :  { %1012 = vmatmul.bf16.vlgmr.msra.gmra.mxu2 %v965_v39  ;;  %1025 = vmatmul.bf16.vlgmr.msra.gmra.mxu3 %v965_v39  ;;  %v918_v50 = vor.u32 1.1754944e-38, %v917_v62  ;;  %vm916_vm10 = vcmp.eq.f32.partialorder %v915_v61, 8.507059e+37  ;;  %v4786_v61 = vld [vmem:[#allocation6_spill] sm:$0xff] }
 0x17f   :  { %v3068_v31 = vpop.eup %3067  ;;  %1236 = vmatpush.bf16.msra.mxu0 %v3306_v3  ;;  %1249 = vmatpush.bf16.msra.mxu1 %v3317_v7  ;;  %v937_v0 = vor.u32 1.1754944e-38, %v936_v23  ;;  %vm935_vm11 = vcmp.eq.f32.partialorder %v934_v37, 8.507059e+37  ;;  %v4789_v37 = vld [vmem:[#allocation11_spill] sm:$0xff] }
 0x180   :  { %v4097_v29 = vadd.f32 1.0, %v3068_v31  ;;  %1262 = vmatpush.bf16.msra.mxu2 %v3357_v21  ;;  %1275 = vmatpush.bf16.msra.mxu3 %v3319_v8 }
 0x182   :  { %v3070_v24 = vpop.eup %3069  ;;  %3073 = vrcp.f32 %v4097_v29  ;;  %vm950_vm13 = vweird.f32 %v4097_v29 }
 0x183   :  { %v3072_v4 = vpop.eup %3071  ;;  %v907_v36 = vmul.f32 %v3070_v24, %v905_v15  ;;  %1237 = vmatpush.bf16.msra.mxu0 %v3331_v12  ;;  %1250 = vmatpush.bf16.msra.mxu1 %v3344_v16  ;;  %3075 = vtanh.f32 %v900_v5  ;;  %vm912_vm4 = vweird.f32 %v3070_v24 }
 0x184   :  { %v926_v43 = vmul.f32 %v3072_v4, %v924_v59  ;;  %1263 = vmatpush.bf16.msra.mxu2 %v3396_v34  ;;  %1276 = vmatpush.bf16.msra.mxu3 %v3346_v17  ;;  %vm931_vm5 = vweird.f32 %v3072_v4  ;;  %vm913_vm8 = vmor %vm911_vm6, %vm912_vm4 }
 0x185   :  { %v908_v13 = vsub.f32 1.0, %v907_v36  ;;  %vm932_vm9 = vmor %vm930_vm7, %vm931_vm5 }
 0x186   :  { %v927_v14 = vsub.f32 1.0, %v926_v43  ;;  %v956_v43 = vand.u32 2147483648, %v4097_v29 }
 0x187   :  { %v909_v44 = vmul.f32 %v3070_v24, %v908_v13  ;;  %1238 = vmatpush.bf16.msra.mxu0 %v3379_v28  ;;  %1251 = vmatpush.bf16.msra.mxu1 %v3392_v32 }
 0x188   :  { %v3074_v38 = vpop.eup %3073  ;;  %v928_v51 = vmul.f32 %v3072_v4, %v927_v14  ;;  %1264 = vmatpush.bf16.msra.mxu2 %v3420_v42  ;;  %1277 = vmatpush.bf16.msra.mxu3 %v3394_v33  ;;  %v957_v14 = vor.u32 1.1754944e-38, %v956_v43  ;;  %v4805_v43 = vld [vmem:[#allocation27_spill] sm:$0xff] }
 0x189   :  { %v910_v30 = vadd.f32 %v3070_v24, %v909_v44  ;;  %v946_v56 = vmul.f32 %v3074_v38, %v4097_v29  ;;  %v3076_v63 = vpop.eup %3075  ;;  %vm951_vm12 = vweird.f32 %v3074_v38 }
 0x18a   :  { %v929_v27 = vadd.f32 %v3072_v4, %v928_v51  ;;  %vm952_vm14 = vmor %vm950_vm13, %vm951_vm12  ;;  %v4788_v51 = vld [vmem:[#allocation9_spill] sm:$0xff] }
 0x18b   :  { %v914_v39 = vsel %vm913_vm8, %v3070_v24, %v910_v30  ;;  %v947_v18 = vsub.f32 1.0, %v946_v56  ;;  %1239 = vmatpush.bf16.msra.mxu0 %v3418_v41  ;;  %1252 = vmatpush.bf16.msra.mxu1 %v3430_v45  ;;  %v4790_v30 = vld [vmem:[#allocation10_spill] sm:$0xff]  ;;  %v4791_v56 = vld [vmem:[#allocation12_spill] sm:$0xff] }
 0x18c   :  { %v919_v22 = vsel %vm916_vm10, %v918_v50, %v914_v39  ;;  %v933_v31 = vsel %vm932_vm9, %v3072_v4, %v929_v27  ;;  %1265 = vmatpush.bf16.msra.mxu2 %v3456_v54  ;;  %1278 = vmatpush.bf16.msra.mxu3 %v3432_v46  ;;  %v4792_v50 = vld [vmem:[#allocation13_spill] sm:$0xff]  ;;  %v4793_v27 = vld [vmem:[#allocation15_spill] sm:$0xff]  ;;  %v4795_v39 = vld [vmem:[#allocation16_spill] sm:$0xff] }
 0x18d   :  { %v938_v15 = vsel %vm935_vm11, %v937_v0, %v933_v31  ;;  %v961_v59 = vmul.f32 %v3076_v63, %v919_v22  ;;  %v948_v5 = vmul.f32 %v3074_v38, %v947_v18  ;;  %v4794_v0 = vld [vmem:[#allocation14_spill] sm:$0xff]  ;;  %v4796_v18 = vld [vmem:[#allocation17_spill] sm:$0xff]  ;;  %v4797_v63 = vld [vmem:[#allocation19_spill] sm:$0xff] }
 0x18e   :  { %v960_v36 = vmul.f32 %v938_v15, %v4012_v35  ;;  %v954_v35 = vand.u32 2147483647, %v4097_v29  ;;  %v4798_v22 = vld [vmem:[#allocation18_spill] sm:$0xff]  ;;  %v4799_v31 = vld [vmem:[#allocation20_spill] sm:$0xff]  ;;  %v4800_v15 = vld [vmem:[#allocation21_spill] sm:$0xff] }
 0x18f   :  { %1240 = vmatpush.bf16.msra.mxu0 %v3454_v53  ;;  %1253 = vmatpush.bf16.msra.mxu1 %v3466_v57  ;;  %v949_v4 = vadd.f32 %v3074_v38, %v948_v5  ;;  %v4802_v5 = vld [vmem:[#allocation22_spill] sm:$0xff] }
 0x190   :  { %v4118_v24 = vadd.f32 %v961_v59, %v960_v36  ;;  %1266 = vmatpush.bf16.msra.mxu2 %v3492_v2  ;;  %1279 = vmatpush.bf16.msra.mxu3 %v3468_v58  ;;  %vm955_vm15 = vcmp.eq.f32.partialorder %v954_v35, 8.507059e+37  ;;  %v4801_v59 = vld [vmem:[#allocation23_spill] sm:$0xff]  ;;  %v4803_v36 = vld [vmem:[#allocation24_spill] sm:$0xff]  ;;  %v4806_v35 = vld [vmem:[#allocation26_spill] sm:$0xff] }
 0x191   :  { %v953_v13 = vsel %vm952_vm14, %v3074_v38, %v949_v4  ;;  %v4787_v38 = vld [vmem:[#allocation8_spill] sm:$0xff]  ;;  %v4804_v4 = vld [vmem:[#allocation25_spill] sm:$0xff] }
 0x192   :  { %3077 = vtanh.f32 %v4118_v24  ;;  %v958_v23 = vsel %vm955_vm15, %v957_v14, %v953_v13  ;;  %v4807_v13 = vld [vmem:[#allocation28_spill] sm:$0xff]  ;;  %v4808_v14 = vld [vmem:[#allocation29_spill] sm:$0xff] }
 0x193   :  { %1241 = vmatpush.bf16.msra.mxu0 %v3490_v1  ;;  %1254 = vmatpush.bf16.msra.mxu1 %v3502_v6 }
 0x194   :  { %1267 = vmatpush.bf16.msra.mxu2 %v3528_v20  ;;  %1280 = vmatpush.bf16.msra.mxu3 %v3504_v9 }
 0x197   :  { %1242 = vmatpush.bf16.msra.mxu0 %v3526_v19  ;;  %1255 = vmatpush.bf16.msra.mxu1 %v3541_v25 }
 0x198   :  { %v3078_v62 = vpop.eup %3077  ;;  %1268 = vmatpush.bf16.msra.mxu2 %v3582_v47  ;;  %1281 = vmatpush.bf16.msra.mxu3 %v3543_v26 }
 0x199   :  { %v964_v29 = vmul.f32 %v3078_v62, %v958_v23  ;;  %v4809_v62 = vld [vmem:[#allocation31_spill] sm:$0xff]  ;;  %v4810_v23 = vld [vmem:[#allocation30_spill] sm:$0xff] }
 0x19b   :  { %v968_v44 = vpack.c.bf16 %v964_v29, %v964_v29  ;;  %1243 = vmatpush.bf16.msra.mxu0 %v3574_v40  ;;  %1256 = vmatpush.bf16.msra.mxu1 %v3586_v48  ;;  %v4811_v29 = vld [vmem:[#allocation32_spill] sm:$0xff] }
 0x19c   :  { %1269 = vmatpush.bf16.msra.mxu2 %v3628_v10  ;;  %1282 = vmatpush.bf16.msra.mxu3 %v3588_v49 }
 0x19d   :  { %2878 = vst [vmem:[%s4653_s4 + $0x18] sm:$0xf] %v968_v44  ;;  %1112 = vmatmul.bf16.vlgmr.msrb.gmra.mxu0 %v968_v44  ;;  %1125 = vmatmul.bf16.vlgmr.msrb.gmra.mxu1 %v968_v44 }
 0x19e   :  { %1138 = vmatmul.bf16.vlgmr.msrb.gmra.mxu2 %v968_v44  ;;  %1151 = vmatmul.bf16.vlgmr.msrb.gmra.mxu3 %v968_v44  ;;  %v4812_v44 = vld [vmem:[#allocation33_spill] sm:$0xff] }
 0x19f   :  { %1362 = vmatpush.bf16.msrb.mxu0 %v3596_v52  ;;  %1375 = vmatpush.bf16.msrb.mxu1 %v3598_v55 }
 0x1a0   :  { %1388 = vmatpush.bf16.msrb.mxu2 %v3632_v11  ;;  %1401 = vmatpush.bf16.msrb.mxu3 %v4786_v61 }
 0x1a3   :  { %1363 = vmatpush.bf16.msrb.mxu0 %v4787_v38  ;;  %1376 = vmatpush.bf16.msrb.mxu1 %v4788_v51 }
 0x1a4   :  { %1389 = vmatpush.bf16.msrb.mxu2 %v4789_v37  ;;  %1402 = vmatpush.bf16.msrb.mxu3 %v4790_v30 }
 0x1a7   :  { %1364 = vmatpush.bf16.msrb.mxu0 %v4791_v56  ;;  %1377 = vmatpush.bf16.msrb.mxu1 %v4792_v50 }
 0x1a8   :  { %1390 = vmatpush.bf16.msrb.mxu2 %v4793_v27  ;;  %1403 = vmatpush.bf16.msrb.mxu3 %v4794_v0 }
 0x1ab   :  { %1365 = vmatpush.bf16.msrb.mxu0 %v4795_v39  ;;  %1378 = vmatpush.bf16.msrb.mxu1 %v4796_v18 }
 0x1ac   :  { %1391 = vmatpush.bf16.msrb.mxu2 %v4797_v63  ;;  %1404 = vmatpush.bf16.msrb.mxu3 %v4798_v22 }
 0x1af   :  { %1366 = vmatpush.bf16.msrb.mxu0 %v4799_v31  ;;  %1379 = vmatpush.bf16.msrb.mxu1 %v4800_v15 }
 0x1b0   :  { %1392 = vmatpush.bf16.msrb.mxu2 %v4801_v59  ;;  %1405 = vmatpush.bf16.msrb.mxu3 %v4802_v5  ;;  %v4813_v5 = vld [vmem:[#allocation35_spill] sm:$0xff] }
 0x1b3   :  { %1367 = vmatpush.bf16.msrb.mxu0 %v4803_v36  ;;  %1380 = vmatpush.bf16.msrb.mxu1 %v4804_v4  ;;  %v4814_v36 = vld [vmem:[#allocation34_spill] sm:$0xff] }
 0x1b4   :  { %1393 = vmatpush.bf16.msrb.mxu2 %v4805_v43  ;;  %1406 = vmatpush.bf16.msrb.mxu3 %v4806_v35  ;;  %v2879_v35 = vld [vmem:[%s4650_s0 + $0x20] sm:$0xff] }
 0x1b5   :  { %v974_v43 = vunpack.c.l.bf16 %v2879_v35 }
 0x1b7   :  { %1368 = vmatpush.bf16.msrb.mxu0 %v4807_v13  ;;  %1381 = vmatpush.bf16.msrb.mxu1 %v4808_v14  ;;  %v975_v13 = vunpack.c.h.bf16 %v2879_v35 }
 0x1b8   :  { %1394 = vmatpush.bf16.msrb.mxu2 %v4809_v62  ;;  %1407 = vmatpush.bf16.msrb.mxu3 %v4810_v23 }
 0x1bb   :  { %1369 = vmatpush.bf16.msrb.mxu0 %v4811_v29  ;;  %1382 = vmatpush.bf16.msrb.mxu1 %v4812_v44  ;;  %v2880_v29 = vld [vmem:[%s4650_s0 + $0x28] sm:$0xff] }
 0x1bc   :  { %1395 = vmatpush.bf16.msrb.mxu2 %v4813_v5  ;;  %1408 = vmatpush.bf16.msrb.mxu3 %v4814_v36  ;;  %v977_v15 = vunpack.c.h.bf16 %v2880_v29 }
 0x1fa   :  { %v987_v4 = vpop.f32.mrf.mxu0  ;;  %v1000_v14 = vpop.f32.mrf.mxu1 }
 0x1fb   :  { %v1030_v59 = vadd.f32 %v987_v4, %v974_v43  ;;  %v1031_v62 = vadd.f32 %v1000_v14, %v975_v13 }
 0x1fd   :  { %v2881_v23 = vmul.f32 -1.442695, %v1030_v59  ;;  %v2882_v44 = vmul.f32 -1.442695, %v1031_v62  ;;  %v976_v59 = vunpack.c.l.bf16 %v2880_v29 }
 0x1ff   :  { %3079 = vpow2.f32 %v2881_v23 }
 0x200   :  { %3081 = vpow2.f32 %v2882_v44 }
 0x201   :  { %v1013_v36 = vpop.f32.mrf.mxu2  ;;  %v1026_v5 = vpop.f32.mrf.mxu3 }
 0x202   :  { %v1033_v31 = vadd.f32 %v1026_v5, %v977_v15  ;;  %v989_v22 = vpop.f32.mrf.mxu0  ;;  %v1002_v63 = vpop.f32.mrf.mxu1  ;;  %v1032_v44 = vadd.f32 %v1013_v36, %v976_v59 }
 0x204   :  { %v2883_v18 = vmul.f32 -1.442695, %v1033_v31 }
 0x205   :  { %v3080_v35 = vpop.eup %3079 }
 0x206   :  { %v3082_v39 = vpop.eup %3081  ;;  %v1037_v0 = vadd.f32 1.0, %v3080_v35  ;;  %3083 = vpow2.f32 %v2883_v18 }
 0x207   :  { %v1056_v4 = vadd.f32 1.0, %v3082_v39  ;;  %v2884_v39 = vld [vmem:[%s4651_s1 + $0xd0] sm:$0xff] }
 0x208   :  { %3085 = vrcp.f32 %v1037_v0  ;;  %v1049_v5 = vand.u32 2147483648, %v1037_v0  ;;  %v1047_v35 = vand.u32 2147483647, %v1037_v0  ;;  %vm1043_vm2 = vweird.f32 %v1037_v0 }
 0x209   :  { %3087 = vrcp.f32 %v1056_v4  ;;  %v1015_v43 = vpop.f32.mrf.mxu2  ;;  %v1028_v13 = vpop.f32.mrf.mxu3  ;;  %v1068_v18 = vand.u32 2147483648, %v1056_v4  ;;  %v1066_v36 = vand.u32 2147483647, %v1056_v4  ;;  %vm1062_vm3 = vweird.f32 %v1056_v4 }
 0x20a   :  { %vm1048_vm6 = vcmp.eq.f32.partialorder %v1047_v35, 8.507059e+37 }
 0x20b   :  { %v1069_v50 = vor.u32 1.1754944e-38, %v1068_v18  ;;  %vm1067_vm7 = vcmp.eq.f32.partialorder %v1066_v36, 8.507059e+37 }
 0x20c   :  { %v3084_v14 = vpop.eup %3083 }
 0x20d   :  { %v4179_v62 = vadd.f32 1.0, %v3084_v14  ;;  %v1100_v14 = vunpack.c.l.bf16 %v2884_v39 }
 0x20e   :  { %v3086_v23 = vpop.eup %3085 }
 0x20f   :  { %v3088_v27 = vpop.eup %3087  ;;  %v1039_v15 = vmul.f32 %v3086_v23, %v1037_v0  ;;  %3089 = vrcp.f32 %v4179_v62  ;;  %vm1044_vm0 = vweird.f32 %v3086_v23  ;;  %vm1082_vm9 = vweird.f32 %v4179_v62 }
 0x210   :  { %v1058_v63 = vmul.f32 %v3088_v27, %v1056_v4  ;;  %3091 = vtanh.f32 %v1032_v44  ;;  %vm1063_vm1 = vweird.f32 %v3088_v27  ;;  %vm1045_vm4 = vmor %vm1043_vm2, %vm1044_vm0 }
 0x211   :  { %v1040_v22 = vsub.f32 1.0, %v1039_v15  ;;  %v1050_v15 = vor.u32 1.1754944e-38, %v1049_v5  ;;  %vm1064_vm5 = vmor %vm1062_vm3, %vm1063_vm1 }
 0x212   :  { %v1059_v31 = vsub.f32 1.0, %v1058_v63 }
 0x213   :  { %v1041_v29 = vmul.f32 %v3086_v23, %v1040_v22  ;;  %v1101_v22 = vunpack.c.h.bf16 %v2884_v39 }
 0x214   :  { %v1060_v43 = vmul.f32 %v3088_v27, %v1059_v31 }
 0x215   :  { %v3090_v13 = vpop.eup %3089  ;;  %v1042_v59 = vadd.f32 %v3086_v23, %v1041_v29 }
 0x216   :  { %v1061_v63 = vadd.f32 %v3088_v27, %v1060_v43  ;;  %v1078_v44 = vmul.f32 %v3090_v13, %v4179_v62  ;;  %v3092_v30 = vpop.eup %3091  ;;  %vm1083_vm8 = vweird.f32 %v3090_v13 }
 0x217   :  { %v1046_v56 = vsel %vm1045_vm4, %v3086_v23, %v1042_v59  ;;  %v2885_v23 = vld [vmem:[%s4651_s1 + $0xd8] sm:$0xff]  ;;  %vm1084_vm10 = vmor %vm1082_vm9, %vm1083_vm8 }
 0x218   :  { %v1051_v37 = vsel %vm1048_vm6, %v1050_v15, %v1046_v56  ;;  %v1065_v31 = vsel %vm1064_vm5, %v3088_v27, %v1061_v63  ;;  %v1079_v51 = vsub.f32 1.0, %v1078_v44 }
 0x219   :  { %v1070_v38 = vsel %vm1067_vm7, %v1069_v50, %v1065_v31  ;;  %v1093_v29 = vmul.f32 %v3092_v30, %v1051_v37  ;;  %v1088_v37 = vand.u32 2147483648, %v4179_v62 }
 0x21a   :  { %v1092_v0 = vmul.f32 %v1070_v38, %v4086_v60  ;;  %v1080_v4 = vmul.f32 %v3090_v13, %v1079_v51  ;;  %v1113_v61 = vpop.f32.mrf.mxu0  ;;  %v1126_v5 = vpop.f32.mrf.mxu1  ;;  %v1103_v60 = vunpack.c.h.bf16 %v2885_v23 }
 0x21b   :  { %v1156_v43 = vadd.f32 %v1113_v61, %v1100_v14  ;;  %v1157_v11 = vadd.f32 %v1126_v5, %v1101_v22  ;;  %v1086_v61 = vand.u32 2147483647, %v4179_v62  ;;  %v1089_v50 = vor.u32 1.1754944e-38, %v1088_v37 }
 0x21c   :  { %v4190_v18 = vadd.f32 %v1093_v29, %v1092_v0  ;;  %v1081_v39 = vadd.f32 %v3090_v13, %v1080_v4 }
 0x21d   :  { %v2886_v56 = vmul.f32 -1.442695, %v1156_v43  ;;  %v2887_v27 = vmul.f32 -1.442695, %v1157_v11  ;;  %vm1087_vm11 = vcmp.eq.f32.partialorder %v1086_v61, 8.507059e+37 }
 0x21e   :  { %3093 = vtanh.f32 %v4190_v18  ;;  %v1085_v30 = vsel %vm1084_vm10, %v3090_v13, %v1081_v39  ;;  %v1102_v13 = vunpack.c.l.bf16 %v2885_v23 }
 0x21f   :  { %3095 = vpow2.f32 %v2886_v56  ;;  %v1090_v15 = vsel %vm1087_vm11, %v1089_v50, %v1085_v30 }
 0x220   :  { %3097 = vpow2.f32 %v2887_v27 }
 0x221   :  { %v1139_v38 = vpop.f32.mrf.mxu2  ;;  %v1152_v51 = vpop.f32.mrf.mxu3 }
 0x222   :  { %v1159_v35 = vadd.f32 %v1152_v51, %v1103_v60  ;;  %v1115_v36 = vpop.f32.mrf.mxu0  ;;  %v1128_v11 = vpop.f32.mrf.mxu1  ;;  %v1158_v27 = vadd.f32 %v1139_v38, %v1102_v13 }
 0x224   :  { %v3094_v59 = vpop.eup %3093  ;;  %v2888_v14 = vmul.f32 -1.442695, %v1159_v35 }
 0x225   :  { %v3096_v63 = vpop.eup %3095  ;;  %v1096_v44 = vmul.f32 %v3094_v59, %v1090_v15 }
 0x226   :  { %v3098_v22 = vpop.eup %3097  ;;  %v1163_v31 = vadd.f32 1.0, %v3096_v63  ;;  %3099 = vpow2.f32 %v2888_v14 }
 0x227   :  { %v1182_v62 = vadd.f32 1.0, %v3098_v22  ;;  %v1223_v29 = vpack.c.bf16 %v1096_v44, %v1096_v44 }
 0x228   :  { %3101 = vrcp.f32 %v1163_v31  ;;  %v1175_v51 = vand.u32 2147483648, %v1163_v31  ;;  %v1173_v38 = vand.u32 2147483647, %v1163_v31  ;;  %vm1169_vm14 = vweird.f32 %v1163_v31 }
 0x229   :  { %3103 = vrcp.f32 %v1182_v62  ;;  %v1141_v0 = vpop.f32.mrf.mxu2  ;;  %v1154_v4 = vpop.f32.mrf.mxu3  ;;  %2889 = vst [vmem:[%s4652_s3 + $0x8] sm:$0xf] %v1223_v29  ;;  %1244 = vmatmul.bf16.vlgmr.msra.gmra.mxu0 %v1223_v29  ;;  %1257 = vmatmul.bf16.vlgmr.msra.gmra.mxu1 %v1223_v29  ;;  %v1194_v30 = vand.u32 2147483648, %v1182_v62  ;;  %v1192_v36 = vand.u32 2147483647, %v1182_v62  ;;  %vm1188_vm15 = vweird.f32 %v1182_v62 }
 0x22a   :  { %1270 = vmatmul.bf16.vlgmr.msra.gmra.mxu2 %v1223_v29  ;;  %1283 = vmatmul.bf16.vlgmr.msra.gmra.mxu3 %v1223_v29  ;;  %v1176_v14 = vor.u32 1.1754944e-38, %v1175_v51  ;;  %vm1174_vm2 = vcmp.eq.f32.partialorder %v1173_v38, 8.507059e+37  ;;  %v4816_v38 = vld [vmem:[#allocation6_spill] sm:$0xff] }
 0x22b   :  { %1494 = vmatpush.bf16.msra.mxu0 %v3306_v3  ;;  %1507 = vmatpush.bf16.msra.mxu1 %v3317_v7  ;;  %v1195_v44 = vor.u32 1.1754944e-38, %v1194_v30  ;;  %vm1193_vm3 = vcmp.eq.f32.partialorder %v1192_v36, 8.507059e+37  ;;  %v4818_v36 = vld [vmem:[#allocation9_spill] sm:$0xff] }
 0x22c   :  { %v3100_v5 = vpop.eup %3099  ;;  %1520 = vmatpush.bf16.msra.mxu2 %v3357_v21  ;;  %1533 = vmatpush.bf16.msra.mxu3 %v3319_v8 }
 0x22d   :  { %v4203_v43 = vadd.f32 1.0, %v3100_v5 }
 0x22e   :  { %v3102_v56 = vpop.eup %3101 }
 0x22f   :  { %v3104_v39 = vpop.eup %3103  ;;  %v1165_v37 = vmul.f32 %v3102_v56, %v1163_v31  ;;  %3105 = vrcp.f32 %v4203_v43  ;;  %1495 = vmatpush.bf16.msra.mxu0 %v3331_v12  ;;  %1508 = vmatpush.bf16.msra.mxu1 %v3344_v16  ;;  %vm1170_vm12 = vweird.f32 %v3102_v56  ;;  %vm1208_vm5 = vweird.f32 %v4203_v43 }
 0x230   :  { %v1184_v23 = vmul.f32 %v3104_v39, %v1182_v62  ;;  %1521 = vmatpush.bf16.msra.mxu2 %v3396_v34  ;;  %1534 = vmatpush.bf16.msra.mxu3 %v3346_v17  ;;  %3107 = vtanh.f32 %v1158_v27  ;;  %vm1189_vm13 = vweird.f32 %v3104_v39  ;;  %vm1171_vm0 = vmor %vm1169_vm14, %vm1170_vm12 }
 0x231   :  { %v1166_v60 = vsub.f32 1.0, %v1165_v37  ;;  %vm1190_vm1 = vmor %vm1188_vm15, %vm1189_vm13  ;;  %v1214_v37 = vand.u32 2147483648, %v4203_v43 }
 0x232   :  { %v1185_v61 = vsub.f32 1.0, %v1184_v23 }
 0x233   :  { %v1167_v50 = vmul.f32 %v3102_v56, %v1166_v60  ;;  %1496 = vmatpush.bf16.msra.mxu0 %v3379_v28  ;;  %1509 = vmatpush.bf16.msra.mxu1 %v3392_v32  ;;  %v1215_v60 = vor.u32 1.1754944e-38, %v1214_v37  ;;  %v4835_v37 = vld [vmem:[#allocation27_spill] sm:$0xff] }
 0x234   :  { %v1186_v35 = vmul.f32 %v3104_v39, %v1185_v61  ;;  %1522 = vmatpush.bf16.msra.mxu2 %v3420_v42  ;;  %1535 = vmatpush.bf16.msra.mxu3 %v3394_v33 }
 0x235   :  { %v3106_v11 = vpop.eup %3105  ;;  %v1168_v59 = vadd.f32 %v3102_v56, %v1167_v50  ;;  %v4815_v50 = vld [vmem:[#allocation7_spill] sm:$0xff] }
 0x236   :  { %v1187_v15 = vadd.f32 %v3104_v39, %v1186_v35  ;;  %v1204_v63 = vmul.f32 %v3106_v11, %v4203_v43  ;;  %v3108_v29 = vpop.eup %3107  ;;  %vm1209_vm4 = vweird.f32 %v3106_v11  ;;  %v4817_v35 = vld [vmem:[#allocation8_spill] sm:$0xff] }
 0x237   :  { %v1172_v22 = vsel %vm1171_vm0, %v3102_v56, %v1168_v59  ;;  %1497 = vmatpush.bf16.msra.mxu0 %v3418_v41  ;;  %1510 = vmatpush.bf16.msra.mxu1 %v3430_v45  ;;  %vm1210_vm6 = vmor %vm1208_vm5, %vm1209_vm4  ;;  %v4820_v59 = vld [vmem:[#allocation10_spill] sm:$0xff] }
 0x238   :  { %v1177_v0 = vsel %vm1174_vm2, %v1176_v14, %v1172_v22  ;;  %v1191_v4 = vsel %vm1190_vm1, %v3104_v39, %v1187_v15  ;;  %v1205_v13 = vsub.f32 1.0, %v1204_v63  ;;  %1523 = vmatpush.bf16.msra.mxu2 %v3456_v54  ;;  %1536 = vmatpush.bf16.msra.mxu3 %v3432_v46  ;;  %v4821_v14 = vld [vmem:[#allocation12_spill] sm:$0xff]  ;;  %v4822_v15 = vld [vmem:[#allocation13_spill] sm:$0xff]  ;;  %v4823_v63 = vld [vmem:[#allocation15_spill] sm:$0xff] }
 0x239   :  { %v1196_v31 = vsel %vm1193_vm3, %v1195_v44, %v1191_v4  ;;  %v1219_v62 = vmul.f32 %v3108_v29, %v1177_v0  ;;  %v4824_v44 = vld [vmem:[#allocation14_spill] sm:$0xff]  ;;  %v4825_v22 = vld [vmem:[#allocation16_spill] sm:$0xff]  ;;  %v4826_v29 = vld [vmem:[#allocation17_spill] sm:$0xff] }
 0x23a   :  { %v1218_v5 = vmul.f32 %v1196_v31, %v4118_v24  ;;  %v1206_v27 = vmul.f32 %v3106_v11, %v1205_v13  ;;  %v1212_v24 = vand.u32 2147483647, %v4203_v43  ;;  %v4827_v0 = vld [vmem:[#allocation19_spill] sm:$0xff]  ;;  %v4828_v4 = vld [vmem:[#allocation18_spill] sm:$0xff]  ;;  %v4829_v13 = vld [vmem:[#allocation20_spill] sm:$0xff] }
 0x23b   :  { %1498 = vmatpush.bf16.msra.mxu0 %v3454_v53  ;;  %1511 = vmatpush.bf16.msra.mxu1 %v3466_v57  ;;  %v4830_v31 = vld [vmem:[#allocation21_spill] sm:$0xff] }
 0x23c   :  { %v4222_v56 = vadd.f32 %v1219_v62, %v1218_v5  ;;  %1524 = vmatpush.bf16.msra.mxu2 %v3492_v2  ;;  %1537 = vmatpush.bf16.msra.mxu3 %v3468_v58  ;;  %v1207_v39 = vadd.f32 %v3106_v11, %v1206_v27  ;;  %vm1213_vm7 = vcmp.eq.f32.partialorder %v1212_v24, 8.507059e+37  ;;  %v4831_v62 = vld [vmem:[#allocation23_spill] sm:$0xff]  ;;  %v4832_v5 = vld [vmem:[#allocation22_spill] sm:$0xff]  ;;  %v4833_v27 = vld [vmem:[#allocation24_spill] sm:$0xff] }
 0x23d   :  { %v4836_v24 = vld [vmem:[#allocation26_spill] sm:$0xff] }
 0x23e   :  { %3109 = vtanh.f32 %v4222_v56  ;;  %v1211_v23 = vsel %vm1210_vm6, %v3106_v11, %v1207_v39  ;;  %v4819_v11 = vld [vmem:[#allocation11_spill] sm:$0xff]  ;;  %v4834_v39 = vld [vmem:[#allocation25_spill] sm:$0xff] }
 0x23f   :  { %1499 = vmatpush.bf16.msra.mxu0 %v3490_v1  ;;  %1512 = vmatpush.bf16.msra.mxu1 %v3502_v6  ;;  %v1216_v51 = vsel %vm1213_vm7, %v1215_v60, %v1211_v23  ;;  %v4837_v23 = vld [vmem:[#allocation28_spill] sm:$0xff]  ;;  %v4838_v60 = vld [vmem:[#allocation29_spill] sm:$0xff] }
 0x240   :  { %1525 = vmatpush.bf16.msra.mxu2 %v3528_v20  ;;  %1538 = vmatpush.bf16.msra.mxu3 %v3504_v9 }
 0x243   :  { %1500 = vmatpush.bf16.msra.mxu0 %v3526_v19  ;;  %1513 = vmatpush.bf16.msra.mxu1 %v3541_v25 }
 0x244   :  { %v3110_v61 = vpop.eup %3109  ;;  %1526 = vmatpush.bf16.msra.mxu2 %v3582_v47  ;;  %1539 = vmatpush.bf16.msra.mxu3 %v3543_v26 }
 0x245   :  { %v1222_v43 = vmul.f32 %v3110_v61, %v1216_v51  ;;  %v4839_v61 = vld [vmem:[#allocation31_spill] sm:$0xff]  ;;  %v4840_v51 = vld [vmem:[#allocation30_spill] sm:$0xff] }
 0x247   :  { %v1226_v30 = vpack.c.bf16 %v1222_v43, %v1222_v43  ;;  %1501 = vmatpush.bf16.msra.mxu0 %v3574_v40  ;;  %1514 = vmatpush.bf16.msra.mxu1 %v3586_v48  ;;  %v4841_v43 = vld [vmem:[#allocation32_spill] sm:$0xff] }
 0x248   :  { %1527 = vmatpush.bf16.msra.mxu2 %v3628_v10  ;;  %1540 = vmatpush.bf16.msra.mxu3 %v3588_v49 }
 0x249   :  { %2890 = vst [vmem:[%s4653_s4 + $0x14] sm:$0xf] %v1226_v30  ;;  %1370 = vmatmul.bf16.vlgmr.msrb.gmra.mxu0 %v1226_v30  ;;  %1383 = vmatmul.bf16.vlgmr.msrb.gmra.mxu1 %v1226_v30 }
 0x24a   :  { %1396 = vmatmul.bf16.vlgmr.msrb.gmra.mxu2 %v1226_v30  ;;  %1409 = vmatmul.bf16.vlgmr.msrb.gmra.mxu3 %v1226_v30  ;;  %v4842_v30 = vld [vmem:[#allocation33_spill] sm:$0xff] }
 0x24b   :  { %1620 = vmatpush.bf16.msrb.mxu0 %v3596_v52  ;;  %1633 = vmatpush.bf16.msrb.mxu1 %v3598_v55 }
 0x24c   :  { %1646 = vmatpush.bf16.msrb.mxu2 %v4815_v50  ;;  %1659 = vmatpush.bf16.msrb.mxu3 %v4816_v38 }
 0x24f   :  { %1621 = vmatpush.bf16.msrb.mxu0 %v4817_v35  ;;  %1634 = vmatpush.bf16.msrb.mxu1 %v4818_v36 }
 0x250   :  { %1647 = vmatpush.bf16.msrb.mxu2 %v4819_v11  ;;  %1660 = vmatpush.bf16.msrb.mxu3 %v4820_v59 }
 0x253   :  { %1622 = vmatpush.bf16.msrb.mxu0 %v4821_v14  ;;  %1635 = vmatpush.bf16.msrb.mxu1 %v4822_v15 }
 0x254   :  { %1648 = vmatpush.bf16.msrb.mxu2 %v4823_v63  ;;  %1661 = vmatpush.bf16.msrb.mxu3 %v4824_v44 }
 0x257   :  { %1623 = vmatpush.bf16.msrb.mxu0 %v4825_v22  ;;  %1636 = vmatpush.bf16.msrb.mxu1 %v4826_v29 }
 0x258   :  { %1649 = vmatpush.bf16.msrb.mxu2 %v4827_v0  ;;  %1662 = vmatpush.bf16.msrb.mxu3 %v4828_v4 }
 0x25b   :  { %1624 = vmatpush.bf16.msrb.mxu0 %v4829_v13  ;;  %1637 = vmatpush.bf16.msrb.mxu1 %v4830_v31 }
 0x25c   :  { %1650 = vmatpush.bf16.msrb.mxu2 %v4831_v62  ;;  %1663 = vmatpush.bf16.msrb.mxu3 %v4832_v5  ;;  %v4843_v5 = vld [vmem:[#allocation35_spill] sm:$0xff] }
 0x25f   :  { %1625 = vmatpush.bf16.msrb.mxu0 %v4833_v27  ;;  %1638 = vmatpush.bf16.msrb.mxu1 %v4834_v39  ;;  %v4844_v27 = vld [vmem:[#allocation34_spill] sm:$0xff] }
 0x260   :  { %1651 = vmatpush.bf16.msrb.mxu2 %v4835_v37  ;;  %1664 = vmatpush.bf16.msrb.mxu3 %v4836_v24  ;;  %v2891_v24 = vld [vmem:[%s4650_s0 + $0x30] sm:$0xff] }
 0x261   :  { %v1232_v37 = vunpack.c.l.bf16 %v2891_v24 }
 0x263   :  { %1626 = vmatpush.bf16.msrb.mxu0 %v4837_v23  ;;  %1639 = vmatpush.bf16.msrb.mxu1 %v4838_v60  ;;  %v1233_v23 = vunpack.c.h.bf16 %v2891_v24 }
 0x264   :  { %1652 = vmatpush.bf16.msrb.mxu2 %v4839_v61  ;;  %1665 = vmatpush.bf16.msrb.mxu3 %v4840_v51 }
 0x267   :  { %1627 = vmatpush.bf16.msrb.mxu0 %v4841_v43  ;;  %1640 = vmatpush.bf16.msrb.mxu1 %v4842_v30  ;;  %v2892_v43 = vld [vmem:[%s4650_s0 + $0x38] sm:$0xff] }
 0x268   :  { %1653 = vmatpush.bf16.msrb.mxu2 %v4843_v5  ;;  %1666 = vmatpush.bf16.msrb.mxu3 %v4844_v27  ;;  %v1235_v31 = vunpack.c.h.bf16 %v2892_v43 }
 0x2a6   :  { %v1245_v39 = vpop.f32.mrf.mxu0  ;;  %v1258_v60 = vpop.f32.mrf.mxu1 }
 0x2a7   :  { %v1288_v62 = vadd.f32 %v1245_v39, %v1232_v37  ;;  %v1289_v61 = vadd.f32 %v1258_v60, %v1233_v23 }
 0x2a9   :  { %v2893_v51 = vmul.f32 -1.442695, %v1288_v62  ;;  %v2894_v30 = vmul.f32 -1.442695, %v1289_v61  ;;  %v1234_v62 = vunpack.c.l.bf16 %v2892_v43 }
 0x2ab   :  { %3111 = vpow2.f32 %v2893_v51 }
 0x2ac   :  { %3113 = vpow2.f32 %v2894_v30 }
 0x2ad   :  { %v1271_v27 = vpop.f32.mrf.mxu2  ;;  %v1284_v5 = vpop.f32.mrf.mxu3 }
 0x2ae   :  { %v1291_v13 = vadd.f32 %v1284_v5, %v1235_v31  ;;  %v1247_v4 = vpop.f32.mrf.mxu0  ;;  %v1260_v0 = vpop.f32.mrf.mxu1  ;;  %v1290_v30 = vadd.f32 %v1271_v27, %v1234_v62 }
 0x2b0   :  { %v2895_v29 = vmul.f32 -1.442695, %v1291_v13 }
 0x2b1   :  { %v3112_v24 = vpop.eup %3111 }
 0x2b2   :  { %v3114_v22 = vpop.eup %3113  ;;  %v1295_v44 = vadd.f32 1.0, %v3112_v24  ;;  %3115 = vpow2.f32 %v2895_v29 }
 0x2b3   :  { %v1314_v39 = vadd.f32 1.0, %v3114_v22  ;;  %v2896_v22 = vld [vmem:[%s4651_s1 + $0xc0] sm:$0xff] }
 0x2b4   :  { %3117 = vrcp.f32 %v1295_v44  ;;  %v1307_v5 = vand.u32 2147483648, %v1295_v44  ;;  %v1305_v24 = vand.u32 2147483647, %v1295_v44  ;;  %vm1301_vm10 = vweird.f32 %v1295_v44 }
 0x2b5   :  { %3119 = vrcp.f32 %v1314_v39  ;;  %v1273_v37 = vpop.f32.mrf.mxu2  ;;  %v1286_v23 = vpop.f32.mrf.mxu3  ;;  %v1326_v29 = vand.u32 2147483648, %v1314_v39  ;;  %v1324_v27 = vand.u32 2147483647, %v1314_v39  ;;  %vm1320_vm11 = vweird.f32 %v1314_v39 }
 0x2b6   :  { %vm1306_vm14 = vcmp.eq.f32.partialorder %v1305_v24, 8.507059e+37 }
 0x2b7   :  { %v1327_v15 = vor.u32 1.1754944e-38, %v1326_v29  ;;  %vm1325_vm15 = vcmp.eq.f32.partialorder %v1324_v27, 8.507059e+37 }
 0x2b8   :  { %v3116_v60 = vpop.eup %3115 }
 0x2b9   :  { %v4283_v61 = vadd.f32 1.0, %v3116_v60  ;;  %v1358_v60 = vunpack.c.l.bf16 %v2896_v22 }
 0x2ba   :  { %v3118_v51 = vpop.eup %3117 }
 0x2bb   :  { %v3120_v63 = vpop.eup %3119  ;;  %v1297_v31 = vmul.f32 %v3118_v51, %v1295_v44  ;;  %3121 = vrcp.f32 %v4283_v61  ;;  %vm1302_vm8 = vweird.f32 %v3118_v51  ;;  %vm1340_vm1 = vweird.f32 %v4283_v61 }
 0x2bc   :  { %v1316_v0 = vmul.f32 %v3120_v63, %v1314_v39  ;;  %3123 = vtanh.f32 %v1290_v30  ;;  %vm1321_vm9 = vweird.f32 %v3120_v63  ;;  %vm1303_vm12 = vmor %vm1301_vm10, %vm1302_vm8 }
 0x2bd   :  { %v1298_v4 = vsub.f32 1.0, %v1297_v31  ;;  %v1308_v31 = vor.u32 1.1754944e-38, %v1307_v5  ;;  %vm1322_vm13 = vmor %vm1320_vm11, %vm1321_vm9 }
 0x2be   :  { %v1317_v13 = vsub.f32 1.0, %v1316_v0 }
 0x2bf   :  { %v1299_v43 = vmul.f32 %v3118_v51, %v1298_v4  ;;  %v1359_v4 = vunpack.c.h.bf16 %v2896_v22 }
 0x2c0   :  { %v1318_v37 = vmul.f32 %v3120_v63, %v1317_v13 }
 0x2c1   :  { %v3122_v23 = vpop.eup %3121  ;;  %v1300_v62 = vadd.f32 %v3118_v51, %v1299_v43 }
 0x2c2   :  { %v1319_v0 = vadd.f32 %v3120_v63, %v1318_v37  ;;  %v1336_v30 = vmul.f32 %v3122_v23, %v4283_v61  ;;  %v3124_v59 = vpop.eup %3123  ;;  %vm1341_vm0 = vweird.f32 %v3122_v23 }
 0x2c3   :  { %v1304_v14 = vsel %vm1303_vm12, %v3118_v51, %v1300_v62  ;;  %v2897_v51 = vld [vmem:[%s4651_s1 + $0xc8] sm:$0xff]  ;;  %vm1342_vm2 = vmor %vm1340_vm1, %vm1341_vm0 }
 0x2c4   :  { %v1309_v11 = vsel %vm1306_vm14, %v1308_v31, %v1304_v14  ;;  %v1323_v13 = vsel %vm1322_vm13, %v3120_v63, %v1319_v0  ;;  %v1337_v36 = vsub.f32 1.0, %v1336_v30 }
 0x2c5   :  { %v1328_v35 = vsel %vm1325_vm15, %v1327_v15, %v1323_v13  ;;  %v1351_v43 = vmul.f32 %v3124_v59, %v1309_v11  ;;  %v1346_v11 = vand.u32 2147483648, %v4283_v61 }
 0x2c6   :  { %v1350_v44 = vmul.f32 %v1328_v35, %v4190_v18  ;;  %v1338_v39 = vmul.f32 %v3122_v23, %v1337_v36  ;;  %v1371_v38 = vpop.f32.mrf.mxu0  ;;  %v1384_v5 = vpop.f32.mrf.mxu1  ;;  %v1361_v18 = vunpack.c.h.bf16 %v2897_v51 }
 0x2c7   :  { %v1414_v37 = vadd.f32 %v1371_v38, %v1358_v60  ;;  %v1415_v50 = vadd.f32 %v1384_v5, %v1359_v4  ;;  %v1344_v38 = vand.u32 2147483647, %v4283_v61  ;;  %v1347_v15 = vor.u32 1.1754944e-38, %v1346_v11 }
 0x2c8   :  { %v4294_v29 = vadd.f32 %v1351_v43, %v1350_v44  ;;  %v1339_v22 = vadd.f32 %v3122_v23, %v1338_v39 }
 0x2c9   :  { %v2898_v14 = vmul.f32 -1.442695, %v1414_v37  ;;  %v2899_v63 = vmul.f32 -1.442695, %v1415_v50  ;;  %vm1345_vm3 = vcmp.eq.f32.partialorder %v1344_v38, 8.507059e+37 }
 0x2ca   :  { %3125 = vtanh.f32 %v4294_v29  ;;  %v1343_v59 = vsel %vm1342_vm2, %v3122_v23, %v1339_v22  ;;  %v1360_v23 = vunpack.c.l.bf16 %v2897_v51 }
 0x2cb   :  { %3127 = vpow2.f32 %v2898_v14  ;;  %v1348_v31 = vsel %vm1345_vm3, %v1347_v15, %v1343_v59 }
 0x2cc   :  { %3129 = vpow2.f32 %v2899_v63 }
 0x2cd   :  { %v1397_v35 = vpop.f32.mrf.mxu2  ;;  %v1410_v36 = vpop.f32.mrf.mxu3 }
 0x2ce   :  { %v1417_v24 = vadd.f32 %v1410_v36, %v1361_v18  ;;  %v1373_v27 = vpop.f32.mrf.mxu0  ;;  %v1386_v50 = vpop.f32.mrf.mxu1  ;;  %v1416_v63 = vadd.f32 %v1397_v35, %v1360_v23 }
 0x2d0   :  { %v3126_v62 = vpop.eup %3125  ;;  %v2900_v60 = vmul.f32 -1.442695, %v1417_v24 }
 0x2d1   :  { %v3128_v0 = vpop.eup %3127  ;;  %v1354_v30 = vmul.f32 %v3126_v62, %v1348_v31 }
 0x2d2   :  { %v3130_v4 = vpop.eup %3129  ;;  %v1421_v13 = vadd.f32 1.0, %v3128_v0  ;;  %3131 = vpow2.f32 %v2900_v60 }
 0x2d3   :  { %v1440_v61 = vadd.f32 1.0, %v3130_v4  ;;  %v1481_v43 = vpack.c.bf16 %v1354_v30, %v1354_v30 }
 0x2d4   :  { %3133 = vrcp.f32 %v1421_v13  ;;  %v1433_v36 = vand.u32 2147483648, %v1421_v13  ;;  %v1431_v35 = vand.u32 2147483647, %v1421_v13  ;;  %vm1427_vm6 = vweird.f32 %v1421_v13 }
 0x2d5   :  { %3135 = vrcp.f32 %v1440_v61  ;;  %v1399_v44 = vpop.f32.mrf.mxu2  ;;  %v1412_v39 = vpop.f32.mrf.mxu3  ;;  %2901 = vst [vmem:[%s4652_s3 + $0xc] sm:$0xf] %v1481_v43  ;;  %1502 = vmatmul.bf16.vlgmr.msra.gmra.mxu0 %v1481_v43  ;;  %1515 = vmatmul.bf16.vlgmr.msra.gmra.mxu1 %v1481_v43  ;;  %v1452_v59 = vand.u32 2147483648, %v1440_v61  ;;  %v1450_v27 = vand.u32 2147483647, %v1440_v61  ;;  %vm1446_vm7 = vweird.f32 %v1440_v61 }
 0x2d6   :  { %1528 = vmatmul.bf16.vlgmr.msra.gmra.mxu2 %v1481_v43  ;;  %1541 = vmatmul.bf16.vlgmr.msra.gmra.mxu3 %v1481_v43  ;;  %v1434_v60 = vor.u32 1.1754944e-38, %v1433_v36  ;;  %vm1432_vm10 = vcmp.eq.f32.partialorder %v1431_v35, 8.507059e+37  ;;  %v4846_v35 = vld [vmem:[#allocation6_spill] sm:$0xff] }
 0x2d7   :  { %1752 = vmatpush.bf16.msra.mxu0 %v3306_v3  ;;  %1765 = vmatpush.bf16.msra.mxu1 %v3317_v7  ;;  %v1453_v30 = vor.u32 1.1754944e-38, %v1452_v59  ;;  %vm1451_vm11 = vcmp.eq.f32.partialorder %v1450_v27, 8.507059e+37  ;;  %v4848_v27 = vld [vmem:[#allocation9_spill] sm:$0xff] }
 0x2d8   :  { %v3132_v5 = vpop.eup %3131  ;;  %1778 = vmatpush.bf16.msra.mxu2 %v3357_v21  ;;  %1791 = vmatpush.bf16.msra.mxu3 %v3319_v8 }
 0x2d9   :  { %v4307_v37 = vadd.f32 1.0, %v3132_v5 }
 0x2da   :  { %v3134_v14 = vpop.eup %3133 }
 0x2db   :  { %v3136_v22 = vpop.eup %3135  ;;  %v1423_v11 = vmul.f32 %v3134_v14, %v1421_v13  ;;  %3137 = vrcp.f32 %v4307_v37  ;;  %1753 = vmatpush.bf16.msra.mxu0 %v3331_v12  ;;  %1766 = vmatpush.bf16.msra.mxu1 %v3344_v16  ;;  %vm1428_vm4 = vweird.f32 %v3134_v14  ;;  %vm1466_vm13 = vweird.f32 %v4307_v37 }
 0x2dc   :  { %v1442_v51 = vmul.f32 %v3136_v22, %v1440_v61  ;;  %1779 = vmatpush.bf16.msra.mxu2 %v3396_v34  ;;  %1792 = vmatpush.bf16.msra.mxu3 %v3346_v17  ;;  %3139 = vtanh.f32 %v1416_v63  ;;  %vm1447_vm5 = vweird.f32 %v3136_v22  ;;  %vm1429_vm8 = vmor %vm1427_vm6, %vm1428_vm4 }
 0x2dd   :  { %v1424_v18 = vsub.f32 1.0, %v1423_v11  ;;  %vm1448_vm9 = vmor %vm1446_vm7, %vm1447_vm5  ;;  %v1472_v11 = vand.u32 2147483648, %v4307_v37 }
 0x2de   :  { %v1443_v38 = vsub.f32 1.0, %v1442_v51 }
 0x2df   :  { %v1425_v15 = vmul.f32 %v3134_v14, %v1424_v18  ;;  %1754 = vmatpush.bf16.msra.mxu0 %v3379_v28  ;;  %1767 = vmatpush.bf16.msra.mxu1 %v3392_v32  ;;  %v1473_v18 = vor.u32 1.1754944e-38, %v1472_v11  ;;  %v4865_v11 = vld [vmem:[#allocation27_spill] sm:$0xff] }
 0x2e0   :  { %v1444_v24 = vmul.f32 %v3136_v22, %v1443_v38  ;;  %1780 = vmatpush.bf16.msra.mxu2 %v3420_v42  ;;  %1793 = vmatpush.bf16.msra.mxu3 %v3394_v33 }
 0x2e1   :  { %v3138_v50 = vpop.eup %3137  ;;  %v1426_v62 = vadd.f32 %v3134_v14, %v1425_v15  ;;  %v4845_v15 = vld [vmem:[#allocation7_spill] sm:$0xff] }
 0x2e2   :  { %v1445_v31 = vadd.f32 %v3136_v22, %v1444_v24  ;;  %v1462_v0 = vmul.f32 %v3138_v50, %v4307_v37  ;;  %v3140_v43 = vpop.eup %3139  ;;  %vm1467_vm12 = vweird.f32 %v3138_v50  ;;  %v4847_v24 = vld [vmem:[#allocation8_spill] sm:$0xff] }
 0x2e3   :  { %v1430_v4 = vsel %vm1429_vm8, %v3134_v14, %v1426_v62  ;;  %1755 = vmatpush.bf16.msra.mxu0 %v3418_v41  ;;  %1768 = vmatpush.bf16.msra.mxu1 %v3430_v45  ;;  %vm1468_vm14 = vmor %vm1466_vm13, %vm1467_vm12  ;;  %v4850_v62 = vld [vmem:[#allocation10_spill] sm:$0xff] }
 0x2e4   :  { %v1435_v44 = vsel %vm1432_vm10, %v1434_v60, %v1430_v4  ;;  %v1449_v39 = vsel %vm1448_vm9, %v3136_v22, %v1445_v31  ;;  %v1463_v23 = vsub.f32 1.0, %v1462_v0  ;;  %1781 = vmatpush.bf16.msra.mxu2 %v3456_v54  ;;  %1794 = vmatpush.bf16.msra.mxu3 %v3432_v46  ;;  %v4851_v60 = vld [vmem:[#allocation12_spill] sm:$0xff]  ;;  %v4852_v31 = vld [vmem:[#allocation13_spill] sm:$0xff]  ;;  %v4853_v0 = vld [vmem:[#allocation15_spill] sm:$0xff] }
 0x2e5   :  { %v1454_v13 = vsel %vm1451_vm11, %v1453_v30, %v1449_v39  ;;  %v1477_v61 = vmul.f32 %v3140_v43, %v1435_v44  ;;  %v4854_v30 = vld [vmem:[#allocation14_spill] sm:$0xff]  ;;  %v4855_v4 = vld [vmem:[#allocation16_spill] sm:$0xff]  ;;  %v4856_v43 = vld [vmem:[#allocation17_spill] sm:$0xff] }
 0x2e6   :  { %v1476_v5 = vmul.f32 %v1454_v13, %v4222_v56  ;;  %v1464_v63 = vmul.f32 %v3138_v50, %v1463_v23  ;;  %v1470_v56 = vand.u32 2147483647, %v4307_v37  ;;  %v4857_v44 = vld [vmem:[#allocation19_spill] sm:$0xff]  ;;  %v4858_v39 = vld [vmem:[#allocation18_spill] sm:$0xff]  ;;  %v4859_v23 = vld [vmem:[#allocation20_spill] sm:$0xff] }
 0x2e7   :  { %1756 = vmatpush.bf16.msra.mxu0 %v3454_v53  ;;  %1769 = vmatpush.bf16.msra.mxu1 %v3466_v57  ;;  %v4860_v13 = vld [vmem:[#allocation21_spill] sm:$0xff] }
 0x2e8   :  { %v4326_v14 = vadd.f32 %v1477_v61, %v1476_v5  ;;  %1782 = vmatpush.bf16.msra.mxu2 %v3492_v2  ;;  %1795 = vmatpush.bf16.msra.mxu3 %v3468_v58  ;;  %v1465_v22 = vadd.f32 %v3138_v50, %v1464_v63  ;;  %vm1471_vm15 = vcmp.eq.f32.partialorder %v1470_v56, 8.507059e+37  ;;  %v4861_v61 = vld [vmem:[#allocation23_spill] sm:$0xff]  ;;  %v4862_v5 = vld [vmem:[#allocation22_spill] sm:$0xff]  ;;  %v4863_v63 = vld [vmem:[#allocation24_spill] sm:$0xff] }
 0x2e9   :  { %v4866_v56 = vld [vmem:[#allocation26_spill] sm:$0xff] }
 0x2ea   :  { %3141 = vtanh.f32 %v4326_v14  ;;  %v1469_v51 = vsel %vm1468_vm14, %v3138_v50, %v1465_v22  ;;  %v4849_v50 = vld [vmem:[#allocation11_spill] sm:$0xff]  ;;  %v4864_v22 = vld [vmem:[#allocation25_spill] sm:$0xff] }
 0x2eb   :  { %1757 = vmatpush.bf16.msra.mxu0 %v3490_v1  ;;  %1770 = vmatpush.bf16.msra.mxu1 %v3502_v6  ;;  %v1474_v36 = vsel %vm1471_vm15, %v1473_v18, %v1469_v51  ;;  %v4867_v51 = vld [vmem:[#allocation28_spill] sm:$0xff]  ;;  %v4868_v18 = vld [vmem:[#allocation29_spill] sm:$0xff] }
 0x2ec   :  { %1783 = vmatpush.bf16.msra.mxu2 %v3528_v20  ;;  %1796 = vmatpush.bf16.msra.mxu3 %v3504_v9 }
 0x2ef   :  { %1758 = vmatpush.bf16.msra.mxu0 %v3526_v19  ;;  %1771 = vmatpush.bf16.msra.mxu1 %v3541_v25 }
 0x2f0   :  { %v3142_v38 = vpop.eup %3141  ;;  %1784 = vmatpush.bf16.msra.mxu2 %v3582_v47  ;;  %1797 = vmatpush.bf16.msra.mxu3 %v3543_v26 }
 0x2f1   :  { %v1480_v37 = vmul.f32 %v3142_v38, %v1474_v36  ;;  %v4869_v38 = vld [vmem:[#allocation31_spill] sm:$0xff]  ;;  %v4870_v36 = vld [vmem:[#allocation30_spill] sm:$0xff] }
 0x2f3   :  { %v1484_v59 = vpack.c.bf16 %v1480_v37, %v1480_v37  ;;  %1759 = vmatpush.bf16.msra.mxu0 %v3574_v40  ;;  %1772 = vmatpush.bf16.msra.mxu1 %v3586_v48  ;;  %v4871_v37 = vld [vmem:[#allocation32_spill] sm:$0xff] }
 0x2f4   :  { %1785 = vmatpush.bf16.msra.mxu2 %v3628_v10  ;;  %1798 = vmatpush.bf16.msra.mxu3 %v3588_v49 }
 0x2f5   :  { %2902 = vst [vmem:[%s4653_s4 + $0x10] sm:$0xf] %v1484_v59  ;;  %1628 = vmatmul.bf16.vlgmr.msrb.gmra.mxu0 %v1484_v59  ;;  %1641 = vmatmul.bf16.vlgmr.msrb.gmra.mxu1 %v1484_v59 }
 0x2f6   :  { %1654 = vmatmul.bf16.vlgmr.msrb.gmra.mxu2 %v1484_v59  ;;  %1667 = vmatmul.bf16.vlgmr.msrb.gmra.mxu3 %v1484_v59  ;;  %v4872_v59 = vld [vmem:[#allocation33_spill] sm:$0xff] }
 0x2f7   :  { %1878 = vmatpush.bf16.msrb.mxu0 %v3596_v52  ;;  %1891 = vmatpush.bf16.msrb.mxu1 %v3598_v55 }
 0x2f8   :  { %1904 = vmatpush.bf16.msrb.mxu2 %v4845_v15  ;;  %1917 = vmatpush.bf16.msrb.mxu3 %v4846_v35 }
 0x2fb   :  { %1879 = vmatpush.bf16.msrb.mxu0 %v4847_v24  ;;  %1892 = vmatpush.bf16.msrb.mxu1 %v4848_v27 }
 0x2fc   :  { %1905 = vmatpush.bf16.msrb.mxu2 %v4849_v50  ;;  %1918 = vmatpush.bf16.msrb.mxu3 %v4850_v62 }
 0x2ff   :  { %1880 = vmatpush.bf16.msrb.mxu0 %v4851_v60  ;;  %1893 = vmatpush.bf16.msrb.mxu1 %v4852_v31 }
 0x300   :  { %1906 = vmatpush.bf16.msrb.mxu2 %v4853_v0  ;;  %1919 = vmatpush.bf16.msrb.mxu3 %v4854_v30 }
 0x303   :  { %1881 = vmatpush.bf16.msrb.mxu0 %v4855_v4  ;;  %1894 = vmatpush.bf16.msrb.mxu1 %v4856_v43 }
 0x304   :  { %1907 = vmatpush.bf16.msrb.mxu2 %v4857_v44  ;;  %1920 = vmatpush.bf16.msrb.mxu3 %v4858_v39 }
 0x307   :  { %1882 = vmatpush.bf16.msrb.mxu0 %v4859_v23  ;;  %1895 = vmatpush.bf16.msrb.mxu1 %v4860_v13 }
 0x308   :  { %1908 = vmatpush.bf16.msrb.mxu2 %v4861_v61  ;;  %1921 = vmatpush.bf16.msrb.mxu3 %v4862_v5  ;;  %v4873_v5 = vld [vmem:[#allocation35_spill] sm:$0xff] }
 0x30b   :  { %1883 = vmatpush.bf16.msrb.mxu0 %v4863_v63  ;;  %1896 = vmatpush.bf16.msrb.mxu1 %v4864_v22  ;;  %v4874_v63 = vld [vmem:[#allocation34_spill] sm:$0xff] }
 0x30c   :  { %1909 = vmatpush.bf16.msrb.mxu2 %v4865_v11  ;;  %1922 = vmatpush.bf16.msrb.mxu3 %v4866_v56  ;;  %v2903_v56 = vld [vmem:[%s4650_s0 + $0x40] sm:$0xff] }
 0x30d   :  { %v1490_v11 = vunpack.c.l.bf16 %v2903_v56 }
 0x30f   :  { %1884 = vmatpush.bf16.msrb.mxu0 %v4867_v51  ;;  %1897 = vmatpush.bf16.msrb.mxu1 %v4868_v18  ;;  %v1491_v51 = vunpack.c.h.bf16 %v2903_v56 }
 0x310   :  { %1910 = vmatpush.bf16.msrb.mxu2 %v4869_v38  ;;  %1923 = vmatpush.bf16.msrb.mxu3 %v4870_v36 }
 0x313   :  { %1885 = vmatpush.bf16.msrb.mxu0 %v4871_v37  ;;  %1898 = vmatpush.bf16.msrb.mxu1 %v4872_v59  ;;  %v2904_v37 = vld [vmem:[%s4650_s0 + $0x48] sm:$0xff] }
 0x314   :  { %1911 = vmatpush.bf16.msrb.mxu2 %v4873_v5  ;;  %1924 = vmatpush.bf16.msrb.mxu3 %v4874_v63  ;;  %v1493_v13 = vunpack.c.h.bf16 %v2904_v37 }
 0x352   :  { %v1503_v22 = vpop.f32.mrf.mxu0  ;;  %v1516_v18 = vpop.f32.mrf.mxu1 }
 0x353   :  { %v1546_v61 = vadd.f32 %v1503_v22, %v1490_v11  ;;  %v1547_v38 = vadd.f32 %v1516_v18, %v1491_v51 }
 0x355   :  { %v2905_v36 = vmul.f32 -1.442695, %v1546_v61  ;;  %v2906_v59 = vmul.f32 -1.442695, %v1547_v38  ;;  %v1492_v61 = vunpack.c.l.bf16 %v2904_v37 }
 0x357   :  { %3143 = vpow2.f32 %v2905_v36 }
 0x358   :  { %3145 = vpow2.f32 %v2906_v59 }
 0x359   :  { %v1529_v63 = vpop.f32.mrf.mxu2  ;;  %v1542_v5 = vpop.f32.mrf.mxu3 }
 0x35a   :  { %v1549_v23 = vadd.f32 %v1542_v5, %v1493_v13  ;;  %v1505_v39 = vpop.f32.mrf.mxu0  ;;  %v1518_v44 = vpop.f32.mrf.mxu1  ;;  %v1548_v59 = vadd.f32 %v1529_v63, %v1492_v61 }
 0x35c   :  { %v2907_v43 = vmul.f32 -1.442695, %v1549_v23 }
 0x35d   :  { %v3144_v56 = vpop.eup %3143 }
 0x35e   :  { %v3146_v4 = vpop.eup %3145  ;;  %v1553_v30 = vadd.f32 1.0, %v3144_v56  ;;  %3147 = vpow2.f32 %v2907_v43 }
 0x35f   :  { %v1572_v22 = vadd.f32 1.0, %v3146_v4  ;;  %v2908_v4 = vld [vmem:[%s4651_s1 + $0xb0] sm:$0xff] }
 0x360   :  { %3149 = vrcp.f32 %v1553_v30  ;;  %v1565_v5 = vand.u32 2147483648, %v1553_v30  ;;  %v1563_v56 = vand.u32 2147483647, %v1553_v30  ;;  %vm1559_vm2 = vweird.f32 %v1553_v30 }
 0x361   :  { %3151 = vrcp.f32 %v1572_v22  ;;  %v1531_v11 = vpop.f32.mrf.mxu2  ;;  %v1544_v51 = vpop.f32.mrf.mxu3  ;;  %v1584_v43 = vand.u32 2147483648, %v1572_v22  ;;  %v1582_v63 = vand.u32 2147483647, %v1572_v22  ;;  %vm1578_vm3 = vweird.f32 %v1572_v22 }
 0x362   :  { %vm1564_vm6 = vcmp.eq.f32.partialorder %v1563_v56, 8.507059e+37 }
 0x363   :  { %v1585_v31 = vor.u32 1.1754944e-38, %v1584_v43  ;;  %vm1583_vm7 = vcmp.eq.f32.partialorder %v1582_v63, 8.507059e+37 }
 0x364   :  { %v3148_v18 = vpop.eup %3147 }
 0x365   :  { %v4387_v38 = vadd.f32 1.0, %v3148_v18  ;;  %v1616_v18 = vunpack.c.l.bf16 %v2908_v4 }
 0x366   :  { %v3150_v36 = vpop.eup %3149 }
 0x367   :  { %v3152_v0 = vpop.eup %3151  ;;  %v1555_v13 = vmul.f32 %v3150_v36, %v1553_v30  ;;  %3153 = vrcp.f32 %v4387_v38  ;;  %vm1560_vm0 = vweird.f32 %v3150_v36  ;;  %vm1598_vm9 = vweird.f32 %v4387_v38 }
 0x368   :  { %v1574_v44 = vmul.f32 %v3152_v0, %v1572_v22  ;;  %3155 = vtanh.f32 %v1548_v59  ;;  %vm1579_vm1 = vweird.f32 %v3152_v0  ;;  %vm1561_vm4 = vmor %vm1559_vm2, %vm1560_vm0 }
 0x369   :  { %v1556_v39 = vsub.f32 1.0, %v1555_v13  ;;  %v1566_v13 = vor.u32 1.1754944e-38, %v1565_v5  ;;  %vm1580_vm5 = vmor %vm1578_vm3, %vm1579_vm1 }
 0x36a   :  { %v1575_v23 = vsub.f32 1.0, %v1574_v44 }
 0x36b   :  { %v1557_v37 = vmul.f32 %v3150_v36, %v1556_v39  ;;  %v1617_v39 = vunpack.c.h.bf16 %v2908_v4 }
 0x36c   :  { %v1576_v11 = vmul.f32 %v3152_v0, %v1575_v23 }
 0x36d   :  { %v3154_v51 = vpop.eup %3153  ;;  %v1558_v61 = vadd.f32 %v3150_v36, %v1557_v37 }
 0x36e   :  { %v1577_v44 = vadd.f32 %v3152_v0, %v1576_v11  ;;  %v1594_v59 = vmul.f32 %v3154_v51, %v4387_v38  ;;  %v3156_v62 = vpop.eup %3155  ;;  %vm1599_vm8 = vweird.f32 %v3154_v51 }
 0x36f   :  { %v1562_v60 = vsel %vm1561_vm4, %v3150_v36, %v1558_v61  ;;  %v2909_v36 = vld [vmem:[%s4651_s1 + $0xb8] sm:$0xff]  ;;  %vm1600_vm10 = vmor %vm1598_vm9, %vm1599_vm8 }
 0x370   :  { %v1567_v50 = vsel %vm1564_vm6, %v1566_v13, %v1562_v60  ;;  %v1581_v23 = vsel %vm1580_vm5, %v3152_v0, %v1577_v44  ;;  %v1595_v27 = vsub.f32 1.0, %v1594_v59 }
 0x371   :  { %v1586_v24 = vsel %vm1583_vm7, %v1585_v31, %v1581_v23  ;;  %v1609_v37 = vmul.f32 %v3156_v62, %v1567_v50  ;;  %v1604_v50 = vand.u32 2147483648, %v4387_v38 }
 0x372   :  { %v1608_v30 = vmul.f32 %v1586_v24, %v4294_v29  ;;  %v1596_v22 = vmul.f32 %v3154_v51, %v1595_v27  ;;  %v1629_v35 = vpop.f32.mrf.mxu0  ;;  %v1642_v5 = vpop.f32.mrf.mxu1  ;;  %v1619_v29 = vunpack.c.h.bf16 %v2909_v36 }
 0x373   :  { %v1672_v11 = vadd.f32 %v1629_v35, %v1616_v18  ;;  %v1673_v15 = vadd.f32 %v1642_v5, %v1617_v39  ;;  %v1602_v35 = vand.u32 2147483647, %v4387_v38  ;;  %v1605_v31 = vor.u32 1.1754944e-38, %v1604_v50 }
 0x374   :  { %v4398_v43 = vadd.f32 %v1609_v37, %v1608_v30  ;;  %v1597_v4 = vadd.f32 %v3154_v51, %v1596_v22 }
 0x375   :  { %v2910_v60 = vmul.f32 -1.442695, %v1672_v11  ;;  %v2911_v0 = vmul.f32 -1.442695, %v1673_v15  ;;  %vm1603_vm11 = vcmp.eq.f32.partialorder %v1602_v35, 8.507059e+37 }
 0x376   :  { %3157 = vtanh.f32 %v4398_v43  ;;  %v1601_v62 = vsel %vm1600_vm10, %v3154_v51, %v1597_v4  ;;  %v1618_v51 = vunpack.c.l.bf16 %v2909_v36 }
 0x377   :  { %3159 = vpow2.f32 %v2910_v60  ;;  %v1606_v13 = vsel %vm1603_vm11, %v1605_v31, %v1601_v62 }
 0x378   :  { %3161 = vpow2.f32 %v2911_v0 }
 0x379   :  { %v1655_v24 = vpop.f32.mrf.mxu2  ;;  %v1668_v27 = vpop.f32.mrf.mxu3 }
 0x37a   :  { %v1675_v56 = vadd.f32 %v1668_v27, %v1619_v29  ;;  %v1631_v63 = vpop.f32.mrf.mxu0  ;;  %v1644_v15 = vpop.f32.mrf.mxu1  ;;  %v1674_v0 = vadd.f32 %v1655_v24, %v1618_v51 }
 0x37c   :  { %v3158_v61 = vpop.eup %3157  ;;  %v2912_v18 = vmul.f32 -1.442695, %v1675_v56 }
 0x37d   :  { %v3160_v44 = vpop.eup %3159  ;;  %v1612_v59 = vmul.f32 %v3158_v61, %v1606_v13 }
 0x37e   :  { %v3162_v39 = vpop.eup %3161  ;;  %v1679_v23 = vadd.f32 1.0, %v3160_v44  ;;  %3163 = vpow2.f32 %v2912_v18 }
 0x37f   :  { %v1698_v38 = vadd.f32 1.0, %v3162_v39  ;;  %v1739_v37 = vpack.c.bf16 %v1612_v59, %v1612_v59 }
 0x380   :  { %3165 = vrcp.f32 %v1679_v23  ;;  %v1691_v27 = vand.u32 2147483648, %v1679_v23  ;;  %v1689_v24 = vand.u32 2147483647, %v1679_v23  ;;  %vm1685_vm14 = vweird.f32 %v1679_v23 }
 0x381   :  { %3167 = vrcp.f32 %v1698_v38  ;;  %v1657_v30 = vpop.f32.mrf.mxu2  ;;  %v1670_v22 = vpop.f32.mrf.mxu3  ;;  %2913 = vst [vmem:[%s4652_s3 + $0x10] sm:$0xf] %v1739_v37  ;;  %1760 = vmatmul.bf16.vlgmr.msra.gmra.mxu0 %v1739_v37  ;;  %1773 = vmatmul.bf16.vlgmr.msra.gmra.mxu1 %v1739_v37  ;;  %v1710_v62 = vand.u32 2147483648, %v1698_v38  ;;  %v1708_v63 = vand.u32 2147483647, %v1698_v38  ;;  %vm1704_vm15 = vweird.f32 %v1698_v38 }
 0x382   :  { %1786 = vmatmul.bf16.vlgmr.msra.gmra.mxu2 %v1739_v37  ;;  %1799 = vmatmul.bf16.vlgmr.msra.gmra.mxu3 %v1739_v37  ;;  %v1692_v18 = vor.u32 1.1754944e-38, %v1691_v27  ;;  %vm1690_vm2 = vcmp.eq.f32.partialorder %v1689_v24, 8.507059e+37  ;;  %v4876_v24 = vld [vmem:[#allocation6_spill] sm:$0xff] }
 0x383   :  { %2010 = vmatpush.bf16.msra.mxu0 %v3306_v3  ;;  %2023 = vmatpush.bf16.msra.mxu1 %v3317_v7  ;;  %v1711_v59 = vor.u32 1.1754944e-38, %v1710_v62  ;;  %vm1709_vm3 = vcmp.eq.f32.partialorder %v1708_v63, 8.507059e+37  ;;  %v4878_v63 = vld [vmem:[#allocation9_spill] sm:$0xff] }
 0x384   :  { %v3164_v5 = vpop.eup %3163  ;;  %2036 = vmatpush.bf16.msra.mxu2 %v3357_v21  ;;  %2049 = vmatpush.bf16.msra.mxu3 %v3319_v8 }
 0x385   :  { %v4411_v11 = vadd.f32 1.0, %v3164_v5 }
 0x386   :  { %v3166_v60 = vpop.eup %3165 }
 0x387   :  { %v3168_v4 = vpop.eup %3167  ;;  %v1681_v50 = vmul.f32 %v3166_v60, %v1679_v23  ;;  %3169 = vrcp.f32 %v4411_v11  ;;  %2011 = vmatpush.bf16.msra.mxu0 %v3331_v12  ;;  %2024 = vmatpush.bf16.msra.mxu1 %v3344_v16  ;;  %vm1686_vm12 = vweird.f32 %v3166_v60  ;;  %vm1724_vm5 = vweird.f32 %v4411_v11 }
 0x388   :  { %v1700_v36 = vmul.f32 %v3168_v4, %v1698_v38  ;;  %2037 = vmatpush.bf16.msra.mxu2 %v3396_v34  ;;  %2050 = vmatpush.bf16.msra.mxu3 %v3346_v17  ;;  %3171 = vtanh.f32 %v1674_v0  ;;  %vm1705_vm13 = vweird.f32 %v3168_v4  ;;  %vm1687_vm0 = vmor %vm1685_vm14, %vm1686_vm12 }
 0x389   :  { %v1682_v29 = vsub.f32 1.0, %v1681_v50  ;;  %vm1706_vm1 = vmor %vm1704_vm15, %vm1705_vm13  ;;  %v1730_v50 = vand.u32 2147483648, %v4411_v11 }
 0x38a   :  { %v1701_v35 = vsub.f32 1.0, %v1700_v36 }
 0x38b   :  { %v1683_v31 = vmul.f32 %v3166_v60, %v1682_v29  ;;  %2012 = vmatpush.bf16.msra.mxu0 %v3379_v28  ;;  %2025 = vmatpush.bf16.msra.mxu1 %v3392_v32  ;;  %v1731_v29 = vor.u32 1.1754944e-38, %v1730_v50  ;;  %v4895_v50 = vld [vmem:[#allocation27_spill] sm:$0xff] }
 0x38c   :  { %v1702_v56 = vmul.f32 %v3168_v4, %v1701_v35  ;;  %2038 = vmatpush.bf16.msra.mxu2 %v3420_v42  ;;  %2051 = vmatpush.bf16.msra.mxu3 %v3394_v33 }
 0x38d   :  { %v3170_v15 = vpop.eup %3169  ;;  %v1684_v61 = vadd.f32 %v3166_v60, %v1683_v31  ;;  %v4875_v31 = vld [vmem:[#allocation7_spill] sm:$0xff] }
 0x38e   :  { %v1703_v13 = vadd.f32 %v3168_v4, %v1702_v56  ;;  %v1720_v44 = vmul.f32 %v3170_v15, %v4411_v11  ;;  %v3172_v37 = vpop.eup %3171  ;;  %vm1725_vm4 = vweird.f32 %v3170_v15  ;;  %v4877_v56 = vld [vmem:[#allocation8_spill] sm:$0xff] }
 0x38f   :  { %v1688_v39 = vsel %vm1687_vm0, %v3166_v60, %v1684_v61  ;;  %2013 = vmatpush.bf16.msra.mxu0 %v3418_v41  ;;  %2026 = vmatpush.bf16.msra.mxu1 %v3430_v45  ;;  %vm1726_vm6 = vmor %vm1724_vm5, %vm1725_vm4  ;;  %v4880_v61 = vld [vmem:[#allocation10_spill] sm:$0xff] }
 0x390   :  { %v1693_v30 = vsel %vm1690_vm2, %v1692_v18, %v1688_v39  ;;  %v1707_v22 = vsel %vm1706_vm1, %v3168_v4, %v1703_v13  ;;  %v1721_v51 = vsub.f32 1.0, %v1720_v44  ;;  %2039 = vmatpush.bf16.msra.mxu2 %v3456_v54  ;;  %2052 = vmatpush.bf16.msra.mxu3 %v3432_v46  ;;  %v4881_v18 = vld [vmem:[#allocation12_spill] sm:$0xff]  ;;  %v4882_v13 = vld [vmem:[#allocation13_spill] sm:$0xff]  ;;  %v4883_v44 = vld [vmem:[#allocation15_spill] sm:$0xff] }
 0x391   :  { %v1712_v23 = vsel %vm1709_vm3, %v1711_v59, %v1707_v22  ;;  %v1735_v38 = vmul.f32 %v3172_v37, %v1693_v30  ;;  %v4884_v59 = vld [vmem:[#allocation14_spill] sm:$0xff]  ;;  %v4885_v39 = vld [vmem:[#allocation16_spill] sm:$0xff]  ;;  %v4886_v37 = vld [vmem:[#allocation17_spill] sm:$0xff] }
 0x392   :  { %v1734_v5 = vmul.f32 %v1712_v23, %v4326_v14  ;;  %v1722_v0 = vmul.f32 %v3170_v15, %v1721_v51  ;;  %v1728_v14 = vand.u32 2147483647, %v4411_v11  ;;  %v4887_v30 = vld [vmem:[#allocation19_spill] sm:$0xff]  ;;  %v4888_v22 = vld [vmem:[#allocation18_spill] sm:$0xff]  ;;  %v4889_v51 = vld [vmem:[#allocation20_spill] sm:$0xff] }
 0x393   :  { %2014 = vmatpush.bf16.msra.mxu0 %v3454_v53  ;;  %2027 = vmatpush.bf16.msra.mxu1 %v3466_v57  ;;  %v4890_v23 = vld [vmem:[#allocation21_spill] sm:$0xff] }
 0x394   :  { %v4430_v60 = vadd.f32 %v1735_v38, %v1734_v5  ;;  %2040 = vmatpush.bf16.msra.mxu2 %v3492_v2  ;;  %2053 = vmatpush.bf16.msra.mxu3 %v3468_v58  ;;  %v1723_v4 = vadd.f32 %v3170_v15, %v1722_v0  ;;  %vm1729_vm7 = vcmp.eq.f32.partialorder %v1728_v14, 8.507059e+37  ;;  %v4891_v38 = vld [vmem:[#allocation23_spill] sm:$0xff]  ;;  %v4892_v5 = vld [vmem:[#allocation22_spill] sm:$0xff]  ;;  %v4893_v0 = vld [vmem:[#allocation24_spill] sm:$0xff] }
 0x395   :  { %v4896_v14 = vld [vmem:[#allocation26_spill] sm:$0xff] }
 0x396   :  { %3173 = vtanh.f32 %v4430_v60  ;;  %v1727_v36 = vsel %vm1726_vm6, %v3170_v15, %v1723_v4  ;;  %v4879_v15 = vld [vmem:[#allocation11_spill] sm:$0xff]  ;;  %v4894_v4 = vld [vmem:[#allocation25_spill] sm:$0xff] }
 0x397   :  { %2015 = vmatpush.bf16.msra.mxu0 %v3490_v1  ;;  %2028 = vmatpush.bf16.msra.mxu1 %v3502_v6  ;;  %v1732_v27 = vsel %vm1729_vm7, %v1731_v29, %v1727_v36  ;;  %v4897_v36 = vld [vmem:[#allocation28_spill] sm:$0xff]  ;;  %v4898_v29 = vld [vmem:[#allocation29_spill] sm:$0xff] }
 0x398   :  { %2041 = vmatpush.bf16.msra.mxu2 %v3528_v20  ;;  %2054 = vmatpush.bf16.msra.mxu3 %v3504_v9 }
 0x39b   :  { %2016 = vmatpush.bf16.msra.mxu0 %v3526_v19  ;;  %2029 = vmatpush.bf16.msra.mxu1 %v3541_v25 }
 0x39c   :  { %v3174_v35 = vpop.eup %3173  ;;  %2042 = vmatpush.bf16.msra.mxu2 %v3582_v47  ;;  %2055 = vmatpush.bf16.msra.mxu3 %v3543_v26 }
 0x39d   :  { %v1738_v11 = vmul.f32 %v3174_v35, %v1732_v27  ;;  %v4899_v35 = vld [vmem:[#allocation31_spill] sm:$0xff]  ;;  %v4900_v27 = vld [vmem:[#allocation30_spill] sm:$0xff] }
 0x39f   :  { %v1742_v62 = vpack.c.bf16 %v1738_v11, %v1738_v11  ;;  %2017 = vmatpush.bf16.msra.mxu0 %v3574_v40  ;;  %2030 = vmatpush.bf16.msra.mxu1 %v3586_v48  ;;  %v4901_v11 = vld [vmem:[#allocation32_spill] sm:$0xff] }
 0x3a0   :  { %2043 = vmatpush.bf16.msra.mxu2 %v3628_v10  ;;  %2056 = vmatpush.bf16.msra.mxu3 %v3588_v49 }
 0x3a1   :  { %2914 = vst [vmem:[%s4653_s4 + $0xc] sm:$0xf] %v1742_v62  ;;  %1886 = vmatmul.bf16.vlgmr.msrb.gmra.mxu0 %v1742_v62  ;;  %1899 = vmatmul.bf16.vlgmr.msrb.gmra.mxu1 %v1742_v62 }
 0x3a2   :  { %1912 = vmatmul.bf16.vlgmr.msrb.gmra.mxu2 %v1742_v62  ;;  %1925 = vmatmul.bf16.vlgmr.msrb.gmra.mxu3 %v1742_v62  ;;  %v4902_v62 = vld [vmem:[#allocation33_spill] sm:$0xff] }
 0x3a3   :  { %2136 = vmatpush.bf16.msrb.mxu0 %v3596_v52  ;;  %2149 = vmatpush.bf16.msrb.mxu1 %v3598_v55 }
 0x3a4   :  { %2162 = vmatpush.bf16.msrb.mxu2 %v4875_v31  ;;  %2175 = vmatpush.bf16.msrb.mxu3 %v4876_v24 }
 0x3a7   :  { %2137 = vmatpush.bf16.msrb.mxu0 %v4877_v56  ;;  %2150 = vmatpush.bf16.msrb.mxu1 %v4878_v63 }
 0x3a8   :  { %2163 = vmatpush.bf16.msrb.mxu2 %v4879_v15  ;;  %2176 = vmatpush.bf16.msrb.mxu3 %v4880_v61 }
 0x3ab   :  { %2138 = vmatpush.bf16.msrb.mxu0 %v4881_v18  ;;  %2151 = vmatpush.bf16.msrb.mxu1 %v4882_v13 }
 0x3ac   :  { %2164 = vmatpush.bf16.msrb.mxu2 %v4883_v44  ;;  %2177 = vmatpush.bf16.msrb.mxu3 %v4884_v59 }
 0x3af   :  { %2139 = vmatpush.bf16.msrb.mxu0 %v4885_v39  ;;  %2152 = vmatpush.bf16.msrb.mxu1 %v4886_v37 }
 0x3b0   :  { %2165 = vmatpush.bf16.msrb.mxu2 %v4887_v30  ;;  %2178 = vmatpush.bf16.msrb.mxu3 %v4888_v22 }
 0x3b3   :  { %2140 = vmatpush.bf16.msrb.mxu0 %v4889_v51  ;;  %2153 = vmatpush.bf16.msrb.mxu1 %v4890_v23 }
 0x3b4   :  { %2166 = vmatpush.bf16.msrb.mxu2 %v4891_v38  ;;  %2179 = vmatpush.bf16.msrb.mxu3 %v4892_v5  ;;  %v4903_v5 = vld [vmem:[#allocation35_spill] sm:$0xff] }
 0x3b7   :  { %2141 = vmatpush.bf16.msrb.mxu0 %v4893_v0  ;;  %2154 = vmatpush.bf16.msrb.mxu1 %v4894_v4  ;;  %v4904_v0 = vld [vmem:[#allocation34_spill] sm:$0xff] }
 0x3b8   :  { %2167 = vmatpush.bf16.msrb.mxu2 %v4895_v50  ;;  %2180 = vmatpush.bf16.msrb.mxu3 %v4896_v14  ;;  %v2915_v14 = vld [vmem:[%s4650_s0 + $0x50] sm:$0xff] }
 0x3b9   :  { %v1748_v50 = vunpack.c.l.bf16 %v2915_v14 }
 0x3bb   :  { %2142 = vmatpush.bf16.msrb.mxu0 %v4897_v36  ;;  %2155 = vmatpush.bf16.msrb.mxu1 %v4898_v29  ;;  %v1749_v36 = vunpack.c.h.bf16 %v2915_v14 }
 0x3bc   :  { %2168 = vmatpush.bf16.msrb.mxu2 %v4899_v35  ;;  %2181 = vmatpush.bf16.msrb.mxu3 %v4900_v27 }
 0x3bf   :  { %2143 = vmatpush.bf16.msrb.mxu0 %v4901_v11  ;;  %2156 = vmatpush.bf16.msrb.mxu1 %v4902_v62  ;;  %v2916_v11 = vld [vmem:[%s4650_s0 + $0x58] sm:$0xff] }
 0x3c0   :  { %2169 = vmatpush.bf16.msrb.mxu2 %v4903_v5  ;;  %2182 = vmatpush.bf16.msrb.mxu3 %v4904_v0  ;;  %v1751_v23 = vunpack.c.h.bf16 %v2916_v11 }
 0x3fe   :  { %v1761_v4 = vpop.f32.mrf.mxu0  ;;  %v1774_v29 = vpop.f32.mrf.mxu1 }
 0x3ff   :  { %v1804_v38 = vadd.f32 %v1761_v4, %v1748_v50  ;;  %v1805_v35 = vadd.f32 %v1774_v29, %v1749_v36 }
 0x401   :  { %v2917_v27 = vmul.f32 -1.442695, %v1804_v38  ;;  %v2918_v62 = vmul.f32 -1.442695, %v1805_v35  ;;  %v1750_v38 = vunpack.c.l.bf16 %v2916_v11 }
 0x403   :  { %3175 = vpow2.f32 %v2917_v27 }
 0x404   :  { %3177 = vpow2.f32 %v2918_v62 }
 0x405   :  { %v1787_v0 = vpop.f32.mrf.mxu2  ;;  %v1800_v5 = vpop.f32.mrf.mxu3 }
 0x406   :  { %v1807_v51 = vadd.f32 %v1800_v5, %v1751_v23  ;;  %v1763_v22 = vpop.f32.mrf.mxu0  ;;  %v1776_v30 = vpop.f32.mrf.mxu1  ;;  %v1806_v62 = vadd.f32 %v1787_v0, %v1750_v38 }
 0x408   :  { %v2919_v37 = vmul.f32 -1.442695, %v1807_v51 }
 0x409   :  { %v3176_v14 = vpop.eup %3175 }
 0x40a   :  { %v3178_v39 = vpop.eup %3177  ;;  %v1811_v59 = vadd.f32 1.0, %v3176_v14  ;;  %3179 = vpow2.f32 %v2919_v37 }
 0x40b   :  { %v1830_v4 = vadd.f32 1.0, %v3178_v39  ;;  %v2920_v39 = vld [vmem:[%s4651_s1 + $0xa0] sm:$0xff] }
 0x40c   :  { %3181 = vrcp.f32 %v1811_v59  ;;  %v1823_v5 = vand.u32 2147483648, %v1811_v59  ;;  %v1821_v14 = vand.u32 2147483647, %v1811_v59  ;;  %vm1817_vm10 = vweird.f32 %v1811_v59 }
 0x40d   :  { %3183 = vrcp.f32 %v1830_v4  ;;  %v1789_v50 = vpop.f32.mrf.mxu2  ;;  %v1802_v36 = vpop.f32.mrf.mxu3  ;;  %v1842_v37 = vand.u32 2147483648, %v1830_v4  ;;  %v1840_v0 = vand.u32 2147483647, %v1830_v4  ;;  %vm1836_vm11 = vweird.f32 %v1830_v4 }
 0x40e   :  { %vm1822_vm14 = vcmp.eq.f32.partialorder %v1821_v14, 8.507059e+37 }
 0x40f   :  { %v1843_v13 = vor.u32 1.1754944e-38, %v1842_v37  ;;  %vm1841_vm15 = vcmp.eq.f32.partialorder %v1840_v0, 8.507059e+37 }
 0x410   :  { %v3180_v29 = vpop.eup %3179 }
 0x411   :  { %v4491_v35 = vadd.f32 1.0, %v3180_v29  ;;  %v1874_v29 = vunpack.c.l.bf16 %v2920_v39 }
 0x412   :  { %v3182_v27 = vpop.eup %3181 }
 0x413   :  { %v3184_v44 = vpop.eup %3183  ;;  %v1813_v23 = vmul.f32 %v3182_v27, %v1811_v59  ;;  %3185 = vrcp.f32 %v4491_v35  ;;  %vm1818_vm8 = vweird.f32 %v3182_v27  ;;  %vm1856_vm1 = vweird.f32 %v4491_v35 }
 0x414   :  { %v1832_v30 = vmul.f32 %v3184_v44, %v1830_v4  ;;  %3187 = vtanh.f32 %v1806_v62  ;;  %vm1837_vm9 = vweird.f32 %v3184_v44  ;;  %vm1819_vm12 = vmor %vm1817_vm10, %vm1818_vm8 }
 0x415   :  { %v1814_v22 = vsub.f32 1.0, %v1813_v23  ;;  %v1824_v23 = vor.u32 1.1754944e-38, %v1823_v5  ;;  %vm1838_vm13 = vmor %vm1836_vm11, %vm1837_vm9 }
 0x416   :  { %v1833_v51 = vsub.f32 1.0, %v1832_v30 }
 0x417   :  { %v1815_v11 = vmul.f32 %v3182_v27, %v1814_v22  ;;  %v1875_v22 = vunpack.c.h.bf16 %v2920_v39 }
 0x418   :  { %v1834_v50 = vmul.f32 %v3184_v44, %v1833_v51 }
 0x419   :  { %v3186_v36 = vpop.eup %3185  ;;  %v1816_v38 = vadd.f32 %v3182_v27, %v1815_v11 }
 0x41a   :  { %v1835_v30 = vadd.f32 %v3184_v44, %v1834_v50  ;;  %v1852_v62 = vmul.f32 %v3186_v36, %v4491_v35  ;;  %v3188_v61 = vpop.eup %3187  ;;  %vm1857_vm0 = vweird.f32 %v3186_v36 }
 0x41b   :  { %v1820_v18 = vsel %vm1819_vm12, %v3182_v27, %v1816_v38  ;;  %v2921_v27 = vld [vmem:[%s4651_s1 + $0xa8] sm:$0xff]  ;;  %vm1858_vm2 = vmor %vm1856_vm1, %vm1857_vm0 }
 0x41c   :  { %v1825_v15 = vsel %vm1822_vm14, %v1824_v23, %v1820_v18  ;;  %v1839_v51 = vsel %vm1838_vm13, %v3184_v44, %v1835_v30  ;;  %v1853_v63 = vsub.f32 1.0, %v1852_v62 }
 0x41d   :  { %v1844_v56 = vsel %vm1841_vm15, %v1843_v13, %v1839_v51  ;;  %v1867_v11 = vmul.f32 %v3188_v61, %v1825_v15  ;;  %v1862_v15 = vand.u32 2147483648, %v4491_v35 }
 0x41e   :  { %v1866_v59 = vmul.f32 %v1844_v56, %v4398_v43  ;;  %v1854_v4 = vmul.f32 %v3186_v36, %v1853_v63  ;;  %v1887_v24 = vpop.f32.mrf.mxu0  ;;  %v1900_v5 = vpop.f32.mrf.mxu1  ;;  %v1877_v43 = vunpack.c.h.bf16 %v2921_v27 }
 0x41f   :  { %v1930_v50 = vadd.f32 %v1887_v24, %v1874_v29  ;;  %v1931_v31 = vadd.f32 %v1900_v5, %v1875_v22  ;;  %v1860_v24 = vand.u32 2147483647, %v4491_v35  ;;  %v1863_v13 = vor.u32 1.1754944e-38, %v1862_v15 }
 0x420   :  { %v4502_v37 = vadd.f32 %v1867_v11, %v1866_v59  ;;  %v1855_v39 = vadd.f32 %v3186_v36, %v1854_v4 }
 0x421   :  { %v2922_v18 = vmul.f32 -1.442695, %v1930_v50  ;;  %v2923_v44 = vmul.f32 -1.442695, %v1931_v31  ;;  %vm1861_vm3 = vcmp.eq.f32.partialorder %v1860_v24, 8.507059e+37 }
 0x422   :  { %3189 = vtanh.f32 %v4502_v37  ;;  %v1859_v61 = vsel %vm1858_vm2, %v3186_v36, %v1855_v39  ;;  %v1876_v36 = vunpack.c.l.bf16 %v2921_v27 }
 0x423   :  { %3191 = vpow2.f32 %v2922_v18  ;;  %v1864_v23 = vsel %vm1861_vm3, %v1863_v13, %v1859_v61 }
 0x424   :  { %3193 = vpow2.f32 %v2923_v44 }
 0x425   :  { %v1913_v56 = vpop.f32.mrf.mxu2  ;;  %v1926_v63 = vpop.f32.mrf.mxu3 }
 0x426   :  { %v1933_v14 = vadd.f32 %v1926_v63, %v1877_v43  ;;  %v1889_v0 = vpop.f32.mrf.mxu0  ;;  %v1902_v31 = vpop.f32.mrf.mxu1  ;;  %v1932_v44 = vadd.f32 %v1913_v56, %v1876_v36  ;;  %v4927_v36 = vld [vmem:[#allocation28_spill] sm:$0xff] }
 0x428   :  { %v3190_v38 = vpop.eup %3189  ;;  %v2924_v29 = vmul.f32 -1.442695, %v1933_v14 }
 0x429   :  { %v3192_v30 = vpop.eup %3191  ;;  %v1870_v62 = vmul.f32 %v3190_v38, %v1864_v23  ;;  %v4918_v23 = vld [vmem:[#allocation18_spill] sm:$0xff] }
 0x42a   :  { %v3194_v22 = vpop.eup %3193  ;;  %v1937_v51 = vadd.f32 1.0, %v3192_v30  ;;  %3195 = vpow2.f32 %v2924_v29  ;;  %v4919_v30 = vld [vmem:[#allocation20_spill] sm:$0xff] }
 0x42b   :  { %v1956_v35 = vadd.f32 1.0, %v3194_v22  ;;  %v1997_v11 = vpack.c.bf16 %v1870_v62, %v1870_v62  ;;  %v4920_v62 = vld [vmem:[#allocation21_spill] sm:$0xff]  ;;  %v4921_v22 = vld [vmem:[#allocation23_spill] sm:$0xff] }
 0x42c   :  { %3197 = vrcp.f32 %v1937_v51  ;;  %v1947_v24 = vand.u32 2147483647, %v1937_v51  ;;  %vm1943_vm6 = vweird.f32 %v1937_v51 }
 0x42d   :  { %3199 = vrcp.f32 %v1956_v35  ;;  %v1915_v59 = vpop.f32.mrf.mxu2  ;;  %v1928_v4 = vpop.f32.mrf.mxu3  ;;  %2925 = vst [vmem:[%s4652_s3 + $0x14] sm:$0xf] %v1997_v11  ;;  %2018 = vmatmul.bf16.vlgmr.msra.gmra.mxu0 %v1997_v11  ;;  %2031 = vmatmul.bf16.vlgmr.msra.gmra.mxu1 %v1997_v11  ;;  %v1968_v27 = vand.u32 2147483648, %v1956_v35  ;;  %vm1962_vm7 = vweird.f32 %v1956_v35 }
 0x42e   :  { %2044 = vmatmul.bf16.vlgmr.msra.gmra.mxu2 %v1997_v11  ;;  %2057 = vmatmul.bf16.vlgmr.msra.gmra.mxu3 %v1997_v11  ;;  %vm1948_vm10 = vcmp.eq.f32.partialorder %v1947_v24, 8.507059e+37  ;;  %v4924_v11 = vld [vmem:[#allocation25_spill] sm:$0xff]  ;;  %v4925_v59 = vld [vmem:[#allocation27_spill] sm:$0xff]  ;;  %v4926_v4 = vld [vmem:[#allocation26_spill] sm:$0xff] }
 0x42f   :  { %2268 = vmatpush.bf16.msra.mxu0 %v3306_v3  ;;  %2281 = vmatpush.bf16.msra.mxu1 %v3317_v7 }
 0x430   :  { %v3196_v5 = vpop.eup %3195  ;;  %2294 = vmatpush.bf16.msra.mxu2 %v3357_v21  ;;  %2307 = vmatpush.bf16.msra.mxu3 %v3319_v8  ;;  %v1949_v8 = vand.u32 2147483648, %v1937_v51 }
 0x431   :  { %v4515_v50 = vadd.f32 1.0, %v3196_v5  ;;  %v4928_v5 = vld [vmem:[#allocation29_spill] sm:$0xff] }
 0x432   :  { %v3198_v18 = vpop.eup %3197  ;;  %v1950_v56 = vor.u32 1.1754944e-38, %v1949_v8 }
 0x433   :  { %v3200_v39 = vpop.eup %3199  ;;  %v1939_v15 = vmul.f32 %v3198_v18, %v1937_v51  ;;  %3201 = vrcp.f32 %v4515_v50  ;;  %2269 = vmatpush.bf16.msra.mxu0 %v3331_v12  ;;  %2282 = vmatpush.bf16.msra.mxu1 %v3344_v16  ;;  %vm1944_vm4 = vweird.f32 %v3198_v18  ;;  %v1966_v16 = vand.u32 2147483647, %v1956_v35  ;;  %v4922_v51 = vld [vmem:[#allocation22_spill] sm:$0xff] }
 0x434   :  { %v1958_v3 = vmul.f32 %v3200_v39, %v1956_v35  ;;  %2295 = vmatpush.bf16.msra.mxu2 %v3396_v34  ;;  %2308 = vmatpush.bf16.msra.mxu3 %v3346_v17  ;;  %3203 = vtanh.f32 %v1932_v44  ;;  %vm1963_vm5 = vweird.f32 %v3200_v39  ;;  %vm1945_vm8 = vmor %vm1943_vm6, %vm1944_vm4  ;;  %vm1982_vm13 = vweird.f32 %v4515_v50  ;;  %v4923_v35 = vld [vmem:[#allocation24_spill] sm:$0xff] }
 0x435   :  { %v1940_v7 = vsub.f32 1.0, %v1939_v15  ;;  %vm1964_vm9 = vmor %vm1962_vm7, %vm1963_vm5  ;;  %vm1967_vm11 = vcmp.eq.f32.partialorder %v1966_v16, 8.507059e+37  ;;  %v4931_v44 = vld [vmem:[#allocation32_spill] sm:$0xff]  ;;  %v4933_v15 = vld [vmem:[#allocation35_spill] sm:$0xff] }
 0x436   :  { %v1959_v21 = vsub.f32 1.0, %v1958_v3  ;;  %v4934_v3 = vld [vmem:[#allocation34_spill] sm:$0xff]  ;;  %v2928_v16 = vld [vmem:[%s4650_s0 + $0x68] sm:$0xff] }
 0x437   :  { %v1941_v43 = vmul.f32 %v3198_v18, %v1940_v7  ;;  %2270 = vmatpush.bf16.msra.mxu0 %v3379_v28  ;;  %2283 = vmatpush.bf16.msra.mxu1 %v3392_v32  ;;  %v1969_v28 = vor.u32 1.1754944e-38, %v1968_v27  ;;  %v2927_v7 = vld [vmem:[%s4650_s0 + $0x60] sm:$0xff] }
 0x438   :  { %v1960_v12 = vmul.f32 %v3200_v39, %v1959_v21  ;;  %2296 = vmatpush.bf16.msra.mxu2 %v3420_v42  ;;  %2309 = vmatpush.bf16.msra.mxu3 %v3394_v33  ;;  %v2006_v21 = vunpack.c.l.bf16 %v2927_v7  ;;  %v2007_v8 = vunpack.c.h.bf16 %v2927_v7 }
 0x439   :  { %v3202_v17 = vpop.eup %3201  ;;  %v1942_v34 = vadd.f32 %v3198_v18, %v1941_v43 }
 0x43a   :  { %v1961_v63 = vadd.f32 %v3200_v39, %v1960_v12  ;;  %v1978_v61 = vmul.f32 %v3202_v17, %v4515_v50  ;;  %v3204_v32 = vpop.eup %3203  ;;  %vm1983_vm12 = vweird.f32 %v3202_v17 }
 0x43b   :  { %v1946_v13 = vsel %vm1945_vm8, %v3198_v18, %v1942_v34  ;;  %2271 = vmatpush.bf16.msra.mxu0 %v3418_v41  ;;  %2284 = vmatpush.bf16.msra.mxu1 %v3430_v45  ;;  %vm1984_vm14 = vmor %vm1982_vm13, %vm1983_vm12  ;;  %v4930_v18 = vld [vmem:[#allocation30_spill] sm:$0xff] }
 0x43c   :  { %v1951_v42 = vsel %vm1948_vm10, %v1950_v56, %v1946_v13  ;;  %v1965_v33 = vsel %vm1964_vm9, %v3200_v39, %v1961_v63  ;;  %v1979_v14 = vsub.f32 1.0, %v1978_v61  ;;  %2297 = vmatpush.bf16.msra.mxu2 %v3456_v54  ;;  %2310 = vmatpush.bf16.msra.mxu3 %v3432_v46  ;;  %v1988_v46 = vand.u32 2147483648, %v4515_v50  ;;  %v4932_v39 = vld [vmem:[#allocation33_spill] sm:$0xff] }
 0x43d   :  { %v1970_v0 = vsel %vm1967_vm11, %v1969_v28, %v1965_v33  ;;  %v1993_v31 = vmul.f32 %v3204_v32, %v1951_v42  ;;  %v1986_v54 = vand.u32 2147483647, %v4515_v50  ;;  %v4929_v50 = vld [vmem:[#allocation31_spill] sm:$0xff]  ;;  %v2009_v56 = vunpack.c.h.bf16 %v2928_v16 }
 0x43e   :  { %v1992_v38 = vmul.f32 %v1970_v0, %v4430_v60  ;;  %v1980_v29 = vmul.f32 %v3202_v17, %v1979_v14  ;;  %v4917_v60 = vld [vmem:[#allocation19_spill] sm:$0xff] }
 0x43f   :  { %2272 = vmatpush.bf16.msra.mxu0 %v3454_v53  ;;  %2285 = vmatpush.bf16.msra.mxu1 %v3466_v57  ;;  %v1989_v57 = vor.u32 1.1754944e-38, %v1988_v46  ;;  %vm1987_vm15 = vcmp.eq.f32.partialorder %v1986_v54, 8.507059e+37 }
 0x440   :  { %v4534_v41 = vadd.f32 %v1993_v31, %v1992_v38  ;;  %2298 = vmatpush.bf16.msra.mxu2 %v3492_v2  ;;  %2311 = vmatpush.bf16.msra.mxu3 %v3468_v58  ;;  %v1981_v45 = vadd.f32 %v3202_v17, %v1980_v29 }
 0x442   :  { %3205 = vtanh.f32 %v4534_v41  ;;  %v1985_v53 = vsel %vm1984_vm14, %v3202_v17, %v1981_v45  ;;  %v2008_v45 = vunpack.c.l.bf16 %v2928_v16 }
 0x443   :  { %2273 = vmatpush.bf16.msra.mxu0 %v3490_v1  ;;  %2286 = vmatpush.bf16.msra.mxu1 %v3502_v6  ;;  %v1990_v2 = vsel %vm1987_vm15, %v1989_v57, %v1985_v53 }
 0x444   :  { %2299 = vmatpush.bf16.msra.mxu2 %v3528_v20  ;;  %2312 = vmatpush.bf16.msra.mxu3 %v3504_v9  ;;  %v4905_v9 = vld [vmem:[#allocation7_spill] sm:$0xff]  ;;  %v4907_v20 = vld [vmem:[#allocation8_spill] sm:$0xff] }
 0x447   :  { %2274 = vmatpush.bf16.msra.mxu0 %v3526_v19  ;;  %2287 = vmatpush.bf16.msra.mxu1 %v3541_v25  ;;  %v4906_v19 = vld [vmem:[#allocation6_spill] sm:$0xff]  ;;  %v4908_v25 = vld [vmem:[#allocation9_spill] sm:$0xff] }
 0x448   :  { %v3206_v58 = vpop.eup %3205  ;;  %2300 = vmatpush.bf16.msra.mxu2 %v3582_v47  ;;  %2313 = vmatpush.bf16.msra.mxu3 %v3543_v26  ;;  %v4909_v26 = vld [vmem:[#allocation11_spill] sm:$0xff]  ;;  %v4911_v47 = vld [vmem:[#allocation12_spill] sm:$0xff] }
 0x449   :  { %v1996_v1 = vmul.f32 %v3206_v58, %v1990_v2 }
 0x44b   :  { %v2000_v6 = vpack.c.bf16 %v1996_v1, %v1996_v1  ;;  %2275 = vmatpush.bf16.msra.mxu0 %v3574_v40  ;;  %2288 = vmatpush.bf16.msra.mxu1 %v3586_v48  ;;  %v4910_v40 = vld [vmem:[#allocation10_spill] sm:$0xff]  ;;  %v4912_v48 = vld [vmem:[#allocation13_spill] sm:$0xff] }
 0x44c   :  { %2301 = vmatpush.bf16.msra.mxu2 %v3628_v10  ;;  %2314 = vmatpush.bf16.msra.mxu3 %v3588_v49  ;;  %v4913_v49 = vld [vmem:[#allocation15_spill] sm:$0xff]  ;;  %v4916_v10 = vld [vmem:[#allocation17_spill] sm:$0xff] }
 0x44d   :  { %2926 = vst [vmem:[%s4653_s4 + $0x8] sm:$0xf] %v2000_v6  ;;  %2144 = vmatmul.bf16.vlgmr.msrb.gmra.mxu0 %v2000_v6  ;;  %2157 = vmatmul.bf16.vlgmr.msrb.gmra.mxu1 %v2000_v6 }
 0x44e   :  { %2170 = vmatmul.bf16.vlgmr.msrb.gmra.mxu2 %v2000_v6  ;;  %2183 = vmatmul.bf16.vlgmr.msrb.gmra.mxu3 %v2000_v6 }
 0x44f   :  { %2393 = vmatpush.bf16.msrb.mxu0 %v3596_v52  ;;  %2406 = vmatpush.bf16.msrb.mxu1 %v3598_v55  ;;  %v4914_v52 = vld [vmem:[#allocation14_spill] sm:$0xff]  ;;  %v4915_v55 = vld [vmem:[#allocation16_spill] sm:$0xff] }
 0x450   :  { %2419 = vmatpush.bf16.msrb.mxu2 %v4905_v9  ;;  %2432 = vmatpush.bf16.msrb.mxu3 %v4906_v19 }
 0x453   :  { %2394 = vmatpush.bf16.msrb.mxu0 %v4907_v20  ;;  %2407 = vmatpush.bf16.msrb.mxu1 %v4908_v25  ;;  %v2932_v20 = vld [vmem:[%s4651_s1 + $0x90] sm:$0xff] }
 0x454   :  { %2420 = vmatpush.bf16.msrb.mxu2 %v4909_v26  ;;  %2433 = vmatpush.bf16.msrb.mxu3 %v4910_v40 }
 0x457   :  { %2395 = vmatpush.bf16.msrb.mxu0 %v4911_v47  ;;  %2408 = vmatpush.bf16.msrb.mxu1 %v4912_v48 }
 0x458   :  { %2421 = vmatpush.bf16.msrb.mxu2 %v4913_v49  ;;  %2434 = vmatpush.bf16.msrb.mxu3 %v4914_v52 }
 0x45b   :  { %2396 = vmatpush.bf16.msrb.mxu0 %v4915_v55  ;;  %2409 = vmatpush.bf16.msrb.mxu1 %v4916_v10  ;;  %v2132_v55 = vunpack.c.l.bf16 %v2932_v20 }
 0x45c   :  { %2422 = vmatpush.bf16.msrb.mxu2 %v4917_v60  ;;  %2435 = vmatpush.bf16.msrb.mxu3 %v4918_v23 }
 0x45f   :  { %2397 = vmatpush.bf16.msrb.mxu0 %v4919_v30  ;;  %2410 = vmatpush.bf16.msrb.mxu1 %v4920_v62 }
 0x460   :  { %2423 = vmatpush.bf16.msrb.mxu2 %v4921_v22  ;;  %2436 = vmatpush.bf16.msrb.mxu3 %v4922_v51  ;;  %v2133_v22 = vunpack.c.h.bf16 %v2932_v20 }
 0x463   :  { %2398 = vmatpush.bf16.msrb.mxu0 %v4923_v35  ;;  %2411 = vmatpush.bf16.msrb.mxu1 %v4924_v11 }
 0x464   :  { %2424 = vmatpush.bf16.msrb.mxu2 %v4925_v59  ;;  %2437 = vmatpush.bf16.msrb.mxu3 %v4926_v4 }
 0x467   :  { %2399 = vmatpush.bf16.msrb.mxu0 %v4927_v36  ;;  %2412 = vmatpush.bf16.msrb.mxu1 %v4928_v5 }
 0x468   :  { %2425 = vmatpush.bf16.msrb.mxu2 %v4929_v50  ;;  %2438 = vmatpush.bf16.msrb.mxu3 %v4930_v18 }
 0x46b   :  { %2400 = vmatpush.bf16.msrb.mxu0 %v4931_v44  ;;  %2413 = vmatpush.bf16.msrb.mxu1 %v4932_v39 }
 0x46c   :  { %2426 = vmatpush.bf16.msrb.mxu2 %v4933_v15  ;;  %2439 = vmatpush.bf16.msrb.mxu3 %v4934_v3  ;;  %v2933_v3 = vld [vmem:[%s4651_s1 + $0x98] sm:$0xff] }
 0x4aa   :  { %v2019_v27 = vpop.f32.mrf.mxu0  ;;  %v2032_v43 = vpop.f32.mrf.mxu1 }
 0x4ab   :  { %v2062_v24 = vadd.f32 %v2019_v27, %v2006_v21  ;;  %v2063_v12 = vadd.f32 %v2032_v43, %v2007_v8 }
 0x4ad   :  { %v2929_v17 = vmul.f32 -1.442695, %v2062_v24  ;;  %v2930_v34 = vmul.f32 -1.442695, %v2063_v12 }
 0x4af   :  { %3207 = vpow2.f32 %v2929_v17 }
 0x4b0   :  { %3209 = vpow2.f32 %v2930_v34 }
 0x4b1   :  { %v2045_v63 = vpop.f32.mrf.mxu2  ;;  %v2058_v61 = vpop.f32.mrf.mxu3 }
 0x4b2   :  { %v2065_v28 = vadd.f32 %v2058_v61, %v2009_v56  ;;  %v2021_v13 = vpop.f32.mrf.mxu0  ;;  %v2034_v32 = vpop.f32.mrf.mxu1  ;;  %v2064_v57 = vadd.f32 %v2045_v63, %v2008_v45 }
 0x4b4   :  { %v2931_v42 = vmul.f32 -1.442695, %v2065_v28 }
 0x4b5   :  { %v3208_v33 = vpop.eup %3207 }
 0x4b6   :  { %v3210_v14 = vpop.eup %3209  ;;  %v2069_v0 = vadd.f32 1.0, %v3208_v33  ;;  %3211 = vpow2.f32 %v2931_v42 }
 0x4b7   :  { %v2088_v31 = vadd.f32 1.0, %v3210_v14 }
 0x4b8   :  { %3213 = vrcp.f32 %v2069_v0  ;;  %v2081_v19 = vand.u32 2147483648, %v2069_v0  ;;  %v2079_v40 = vand.u32 2147483647, %v2069_v0  ;;  %vm2075_vm2 = vweird.f32 %v2069_v0 }
 0x4b9   :  { %3215 = vrcp.f32 %v2088_v31  ;;  %v2047_v38 = vpop.f32.mrf.mxu2  ;;  %v2060_v29 = vpop.f32.mrf.mxu3  ;;  %v2100_v25 = vand.u32 2147483648, %v2088_v31  ;;  %v2098_v48 = vand.u32 2147483647, %v2088_v31  ;;  %vm2094_vm3 = vweird.f32 %v2088_v31 }
 0x4ba   :  { %v2082_v10 = vor.u32 1.1754944e-38, %v2081_v19  ;;  %vm2080_vm6 = vcmp.eq.f32.partialorder %v2079_v40, 8.507059e+37 }
 0x4bb   :  { %v2101_v30 = vor.u32 1.1754944e-38, %v2100_v25  ;;  %vm2099_vm7 = vcmp.eq.f32.partialorder %v2098_v48, 8.507059e+37 }
 0x4bc   :  { %v3212_v46 = vpop.eup %3211 }
 0x4bd   :  { %v4595_v54 = vadd.f32 1.0, %v3212_v46  ;;  %v2134_v46 = vunpack.c.l.bf16 %v2933_v3 }
 0x4be   :  { %v3214_v53 = vpop.eup %3213 }
 0x4bf   :  { %v3216_v58 = vpop.eup %3215  ;;  %v2071_v2 = vmul.f32 %v3214_v53, %v2069_v0  ;;  %3217 = vrcp.f32 %v4595_v54  ;;  %vm2076_vm0 = vweird.f32 %v3214_v53  ;;  %v2120_v43 = vand.u32 2147483648, %v4595_v54 }
 0x4c0   :  { %v2090_v1 = vmul.f32 %v3216_v58, %v2088_v31  ;;  %3219 = vtanh.f32 %v2064_v57  ;;  %vm2095_vm1 = vweird.f32 %v3216_v58  ;;  %vm2077_vm4 = vmor %vm2075_vm2, %vm2076_vm0  ;;  %vm2114_vm9 = vweird.f32 %v4595_v54 }
 0x4c1   :  { %v2072_v6 = vsub.f32 1.0, %v2071_v2  ;;  %vm2096_vm5 = vmor %vm2094_vm3, %vm2095_vm1  ;;  %v2118_v24 = vand.u32 2147483647, %v4595_v54  ;;  %v2121_v34 = vor.u32 1.1754944e-38, %v2120_v43 }
 0x4c2   :  { %v2091_v9 = vsub.f32 1.0, %v2090_v1 }
 0x4c3   :  { %v2073_v26 = vmul.f32 %v3214_v53, %v2072_v6  ;;  %vm2119_vm11 = vcmp.eq.f32.partialorder %v2118_v24, 8.507059e+37 }
 0x4c4   :  { %v2092_v47 = vmul.f32 %v3216_v58, %v2091_v9 }
 0x4c5   :  { %v3218_v49 = vpop.eup %3217  ;;  %v2074_v52 = vadd.f32 %v3214_v53, %v2073_v26 }
 0x4c6   :  { %v2093_v60 = vadd.f32 %v3216_v58, %v2092_v47  ;;  %v2110_v23 = vmul.f32 %v3218_v49, %v4595_v54  ;;  %v3220_v51 = vpop.eup %3219  ;;  %vm2115_vm8 = vweird.f32 %v3218_v49 }
 0x4c7   :  { %v2078_v62 = vsel %vm2077_vm4, %v3214_v53, %v2074_v52  ;;  %vm2116_vm10 = vmor %vm2114_vm9, %vm2115_vm8 }
 0x4c8   :  { %v2083_v35 = vsel %vm2080_vm6, %v2082_v10, %v2078_v62  ;;  %v2097_v11 = vsel %vm2096_vm5, %v3216_v58, %v2093_v60  ;;  %v2111_v59 = vsub.f32 1.0, %v2110_v23 }
 0x4c9   :  { %v2102_v4 = vsel %vm2099_vm7, %v2101_v30, %v2097_v11  ;;  %v2125_v36 = vmul.f32 %v3220_v51, %v2083_v35 }
 0x4ca   :  { %v2124_v5 = vmul.f32 %v2102_v4, %v4502_v37  ;;  %v2112_v50 = vmul.f32 %v3218_v49, %v2111_v59  ;;  %v2145_v18 = vpop.f32.mrf.mxu0  ;;  %v2158_v44 = vpop.f32.mrf.mxu1  ;;  %v2135_v37 = vunpack.c.h.bf16 %v2933_v3 }
 0x4cb   :  { %v2188_v39 = vadd.f32 %v2145_v18, %v2132_v55  ;;  %v2189_v15 = vadd.f32 %v2158_v44, %v2133_v22 }
 0x4cc   :  { %v4606_v7 = vadd.f32 %v2125_v36, %v2124_v5  ;;  %v2113_v27 = vadd.f32 %v3218_v49, %v2112_v50 }
 0x4cd   :  { %v2934_v21 = vmul.f32 -1.442695, %v2188_v39  ;;  %v2935_v8 = vmul.f32 -1.442695, %v2189_v15 }
 0x4ce   :  { %3221 = vtanh.f32 %v4606_v7  ;;  %v2117_v17 = vsel %vm2116_vm10, %v3218_v49, %v2113_v27 }
 0x4cf   :  { %3223 = vpow2.f32 %v2934_v21  ;;  %v2122_v32 = vsel %vm2119_vm11, %v2121_v34, %v2117_v17  ;;  %v2940_v34 = vld [vmem:[%s4650_s0 + $0x78] sm:$0xff] }
 0x4d0   :  { %3225 = vpow2.f32 %v2935_v8 }
 0x4d1   :  { %v2171_v12 = vpop.f32.mrf.mxu2  ;;  %v2184_v16 = vpop.f32.mrf.mxu3 }
 0x4d2   :  { %v2191_v56 = vadd.f32 %v2184_v16, %v2135_v37  ;;  %v2147_v63 = vpop.f32.mrf.mxu0  ;;  %v2160_v61 = vpop.f32.mrf.mxu1  ;;  %v2190_v58 = vadd.f32 %v2171_v12, %v2134_v46 }
 0x4d3   :  { %v2267_v61 = vunpack.c.h.bf16 %v2940_v34 }
 0x4d4   :  { %v3222_v28 = vpop.eup %3221  ;;  %v2936_v13 = vmul.f32 -1.442695, %v2191_v56 }
 0x4d5   :  { %v3224_v42 = vpop.eup %3223  ;;  %v2128_v33 = vmul.f32 %v3222_v28, %v2122_v32 }
 0x4d6   :  { %v3226_v14 = vpop.eup %3225  ;;  %v2195_v0 = vadd.f32 1.0, %v3224_v42  ;;  %3227 = vpow2.f32 %v2936_v13 }
 0x4d7   :  { %v2214_v31 = vadd.f32 1.0, %v3226_v14  ;;  %v2255_v38 = vpack.c.bf16 %v2128_v33, %v2128_v33 }
 0x4d8   :  { %3229 = vrcp.f32 %v2195_v0  ;;  %v2207_v20 = vand.u32 2147483648, %v2195_v0  ;;  %v2205_v40 = vand.u32 2147483647, %v2195_v0  ;;  %vm2201_vm14 = vweird.f32 %v2195_v0 }
 0x4d9   :  { %3231 = vrcp.f32 %v2214_v31  ;;  %v2173_v29 = vpop.f32.mrf.mxu2  ;;  %v2186_v45 = vpop.f32.mrf.mxu3  ;;  %2937 = vst [vmem:[%s4652_s3 + $0x18] sm:$0xf] %v2255_v38  ;;  %2276 = vmatmul.bf16.vlgmr.msra.gmra.mxu0 %v2255_v38  ;;  %2289 = vmatmul.bf16.vlgmr.msra.gmra.mxu1 %v2255_v38  ;;  %v2226_v25 = vand.u32 2147483648, %v2214_v31  ;;  %v2224_v48 = vand.u32 2147483647, %v2214_v31  ;;  %vm2220_vm15 = vweird.f32 %v2214_v31 }
 0x4da   :  { %2302 = vmatmul.bf16.vlgmr.msra.gmra.mxu2 %v2255_v38  ;;  %2315 = vmatmul.bf16.vlgmr.msra.gmra.mxu3 %v2255_v38  ;;  %v2208_v55 = vor.u32 1.1754944e-38, %v2207_v20  ;;  %vm2206_vm2 = vcmp.eq.f32.partialorder %v2205_v40, 8.507059e+37 }
 0x4db   :  { %v2227_v23 = vor.u32 1.1754944e-38, %v2226_v25  ;;  %vm2225_vm3 = vcmp.eq.f32.partialorder %v2224_v48, 8.507059e+37 }
 0x4dc   :  { %v3228_v54 = vpop.eup %3227 }
 0x4dd   :  { %v2234_v53 = vadd.f32 1.0, %v3228_v54  ;;  %v2266_v54 = vunpack.c.l.bf16 %v2940_v34 }
 0x4de   :  { %v3230_v57 = vpop.eup %3229 }
 0x4df   :  { %v3232_v2 = vpop.eup %3231  ;;  %v2197_v1 = vmul.f32 %v3230_v57, %v2195_v0  ;;  %3233 = vrcp.f32 %v2234_v53  ;;  %vm2202_vm12 = vweird.f32 %v3230_v57  ;;  %v2246_v18 = vand.u32 2147483648, %v2234_v53 }
 0x4e0   :  { %v2216_v6 = vmul.f32 %v3232_v2, %v2214_v31  ;;  %3235 = vtanh.f32 %v2190_v58  ;;  %vm2221_vm13 = vweird.f32 %v3232_v2  ;;  %vm2203_vm0 = vmor %vm2201_vm14, %vm2202_vm12  ;;  %vm2240_vm5 = vweird.f32 %v2234_v53 }
 0x4e1   :  { %v2198_v9 = vsub.f32 1.0, %v2197_v1  ;;  %vm2222_vm1 = vmor %vm2220_vm15, %vm2221_vm13  ;;  %v2244_v44 = vand.u32 2147483647, %v2234_v53  ;;  %v2247_v15 = vor.u32 1.1754944e-38, %v2246_v18 }
 0x4e2   :  { %v2217_v19 = vsub.f32 1.0, %v2216_v6 }
 0x4e3   :  { %v2199_v26 = vmul.f32 %v3230_v57, %v2198_v9  ;;  %vm2245_vm7 = vcmp.eq.f32.partialorder %v2244_v44, 8.507059e+37 }
 0x4e4   :  { %v2218_v47 = vmul.f32 %v3232_v2, %v2217_v19 }
 0x4e5   :  { %v3234_v49 = vpop.eup %3233  ;;  %v2200_v52 = vadd.f32 %v3230_v57, %v2199_v26  ;;  %v2944_v26 = vld [vmem:[%s4651_s1 + $0x80] sm:$0xff] }
 0x4e6   :  { %v2219_v10 = vadd.f32 %v3232_v2, %v2218_v47  ;;  %v2236_v60 = vmul.f32 %v3234_v49, %v2234_v53  ;;  %v3236_v62 = vpop.eup %3235  ;;  %vm2241_vm4 = vweird.f32 %v3234_v49 }
 0x4e7   :  { %v2204_v30 = vsel %vm2203_vm0, %v3230_v57, %v2200_v52  ;;  %vm2242_vm6 = vmor %vm2240_vm5, %vm2241_vm4 }
 0x4e8   :  { %v2209_v22 = vsel %vm2206_vm2, %v2208_v55, %v2204_v30  ;;  %v2223_v51 = vsel %vm2222_vm1, %v3232_v2, %v2219_v10  ;;  %v2237_v35 = vsub.f32 1.0, %v2236_v60  ;;  %v2389_v60 = vunpack.c.l.bf16 %v2944_v26 }
 0x4e9   :  { %v2228_v11 = vsel %vm2225_vm3, %v2227_v23, %v2223_v51  ;;  %v2251_v59 = vmul.f32 %v3236_v62, %v2209_v22 }
 0x4ea   :  { %v2250_v4 = vmul.f32 %v2228_v11, %v4534_v41  ;;  %v2238_v36 = vmul.f32 %v3234_v49, %v2237_v35  ;;  %v2939_v41 = vld [vmem:[%s4650_s0 + $0x70] sm:$0xff]  ;;  %v2390_v35 = vunpack.c.h.bf16 %v2944_v26 }
 0x4eb   :  { %v2264_v43 = vunpack.c.l.bf16 %v2939_v41  ;;  %v2265_v37 = vunpack.c.h.bf16 %v2939_v41 }
 0x4ec   :  { %v4616_v5 = vadd.f32 %v2251_v59, %v2250_v4  ;;  %v2239_v50 = vadd.f32 %v3234_v49, %v2238_v36 }
 0x4ee   :  { %3237 = vtanh.f32 %v4616_v5  ;;  %v2243_v39 = vsel %vm2242_vm6, %v3234_v49, %v2239_v50 }
 0x4ef   :  { %v2248_v21 = vsel %vm2245_vm7, %v2247_v15, %v2243_v39 }
 0x4f4   :  { %v3238_v3 = vpop.eup %3237 }
 0x4f5   :  { %v2254_v8 = vmul.f32 %v3238_v3, %v2248_v21 }
 0x4f7   :  { %v2258_v27 = vpack.c.bf16 %v2254_v8, %v2254_v8 }
 0x4f9   :  { %2938 = vst [vmem:[%s4653_s4 + $0x4] sm:$0xf] %v2258_v27  ;;  %2401 = vmatmul.bf16.vlgmr.msrb.gmra.mxu0 %v2258_v27  ;;  %2414 = vmatmul.bf16.vlgmr.msrb.gmra.mxu1 %v2258_v27 }
 0x4fa   :  { %2427 = vmatmul.bf16.vlgmr.msrb.gmra.mxu2 %v2258_v27  ;;  %2440 = vmatmul.bf16.vlgmr.msrb.gmra.mxu3 %v2258_v27  ;;  %v2945_v27 = vld [vmem:[%s4651_s1 + $0x88] sm:$0xff] }
 0x556   :  { %v2277_v24 = vpop.f32.mrf.mxu0  ;;  %v2290_v12 = vpop.f32.mrf.mxu1 }
 0x557   :  { %v2320_v16 = vadd.f32 %v2277_v24, %v2264_v43  ;;  %v2321_v17 = vadd.f32 %v2290_v12, %v2265_v37 }
 0x559   :  { %v2941_v56 = vmul.f32 -1.442695, %v2320_v16  ;;  %v2942_v63 = vmul.f32 -1.442695, %v2321_v17  ;;  %v2392_v16 = vunpack.c.h.bf16 %v2945_v27 }
 0x55b   :  { %3239 = vpow2.f32 %v2941_v56 }
 0x55c   :  { %3241 = vpow2.f32 %v2942_v63 }
 0x55d   :  { %v2303_v28 = vpop.f32.mrf.mxu2  ;;  %v2316_v13 = vpop.f32.mrf.mxu3 }
 0x55e   :  { %v2323_v32 = vadd.f32 %v2316_v13, %v2267_v61  ;;  %v2279_v42 = vpop.f32.mrf.mxu0  ;;  %v2292_v33 = vpop.f32.mrf.mxu1  ;;  %v2322_v2 = vadd.f32 %v2303_v28, %v2266_v54 }
 0x560   :  { %v2943_v14 = vmul.f32 -1.442695, %v2323_v32 }
 0x561   :  { %v3240_v0 = vpop.eup %3239 }
 0x562   :  { %v3242_v31 = vpop.eup %3241  ;;  %v2327_v38 = vadd.f32 1.0, %v3240_v0  ;;  %3243 = vpow2.f32 %v2943_v14 }
 0x563   :  { %v2346_v29 = vadd.f32 1.0, %v3242_v31 }
 0x564   :  { %3245 = vrcp.f32 %v2327_v38  ;;  %v2339_v25 = vand.u32 2147483648, %v2327_v38  ;;  %v2337_v48 = vand.u32 2147483647, %v2327_v38  ;;  %vm2333_vm10 = vweird.f32 %v2327_v38 }
 0x565   :  { %3247 = vrcp.f32 %v2346_v29  ;;  %v2305_v45 = vpop.f32.mrf.mxu2  ;;  %v2318_v46 = vpop.f32.mrf.mxu3  ;;  %v2358_v40 = vand.u32 2147483648, %v2346_v29  ;;  %v2356_v52 = vand.u32 2147483647, %v2346_v29  ;;  %vm2352_vm11 = vweird.f32 %v2346_v29 }
 0x566   :  { %v2340_v23 = vor.u32 1.1754944e-38, %v2339_v25  ;;  %vm2338_vm14 = vcmp.eq.f32.partialorder %v2337_v48, 8.507059e+37 }
 0x567   :  { %v2359_v22 = vor.u32 1.1754944e-38, %v2358_v40  ;;  %vm2357_vm15 = vcmp.eq.f32.partialorder %v2356_v52, 8.507059e+37 }
 0x568   :  { %v3244_v53 = vpop.eup %3243 }
 0x569   :  { %v4628_v57 = vadd.f32 1.0, %v3244_v53  ;;  %v2391_v53 = vunpack.c.l.bf16 %v2945_v27 }
 0x56a   :  { %v3246_v58 = vpop.eup %3245 }
 0x56b   :  { %v3248_v1 = vpop.eup %3247  ;;  %v2329_v6 = vmul.f32 %v3246_v58, %v2327_v38  ;;  %3249 = vrcp.f32 %v4628_v57  ;;  %vm2334_vm8 = vweird.f32 %v3246_v58  ;;  %v2378_v12 = vand.u32 2147483648, %v4628_v57 }
 0x56c   :  { %v2348_v9 = vmul.f32 %v3248_v1, %v2346_v29  ;;  %3251 = vtanh.f32 %v2322_v2  ;;  %vm2353_vm9 = vweird.f32 %v3248_v1  ;;  %vm2335_vm12 = vmor %vm2333_vm10, %vm2334_vm8  ;;  %vm2372_vm1 = vweird.f32 %v4628_v57 }
 0x56d   :  { %v2330_v19 = vsub.f32 1.0, %v2329_v6  ;;  %vm2354_vm13 = vmor %vm2352_vm11, %vm2353_vm9  ;;  %v2379_v63 = vor.u32 1.1754944e-38, %v2378_v12 }
 0x56e   :  { %v2349_v20 = vsub.f32 1.0, %v2348_v9 }
 0x56f   :  { %v2331_v47 = vmul.f32 %v3246_v58, %v2330_v19 }
 0x570   :  { %v2350_v49 = vmul.f32 %v3248_v1, %v2349_v20 }
 0x571   :  { %v3250_v55 = vpop.eup %3249  ;;  %v2332_v10 = vadd.f32 %v3246_v58, %v2331_v47 }
 0x572   :  { %v2351_v30 = vadd.f32 %v3248_v1, %v2350_v49  ;;  %v2368_v62 = vmul.f32 %v3250_v55, %v4628_v57  ;;  %v3252_v11 = vpop.eup %3251  ;;  %vm2373_vm0 = vweird.f32 %v3250_v55 }
 0x573   :  { %v2336_v51 = vsel %vm2335_vm12, %v3246_v58, %v2332_v10  ;;  %vm2374_vm2 = vmor %vm2372_vm1, %vm2373_vm0 }
 0x574   :  { %v2341_v59 = vsel %vm2338_vm14, %v2340_v23, %v2336_v51  ;;  %v2355_v4 = vsel %vm2354_vm13, %v3248_v1, %v2351_v30  ;;  %v2369_v36 = vsub.f32 1.0, %v2368_v62 }
 0x575   :  { %v2360_v50 = vsel %vm2357_vm15, %v2359_v22, %v2355_v4  ;;  %v2383_v18 = vmul.f32 %v3252_v11, %v2341_v59 }
 0x576   :  { %v2382_v44 = vmul.f32 %v2360_v50, %v4606_v7  ;;  %v2370_v39 = vmul.f32 %v3250_v55, %v2369_v36  ;;  %v2402_v15 = vpop.f32.mrf.mxu0  ;;  %v2415_v3 = vpop.f32.mrf.mxu1  ;;  %v2376_v7 = vand.u32 2147483647, %v4628_v57 }
 0x577   :  { %v2445_v21 = vadd.f32 %v2402_v15, %v2389_v60  ;;  %v2446_v8 = vadd.f32 %v2415_v3, %v2390_v35 }
 0x578   :  { %v2384_v41 = vadd.f32 %v2383_v18, %v2382_v44  ;;  %v2371_v43 = vadd.f32 %v3250_v55, %v2370_v39  ;;  %vm2377_vm3 = vcmp.eq.f32.partialorder %v2376_v7, 8.507059e+37 }
 0x579   :  { %v2946_v37 = vmul.f32 -1.442695, %v2445_v21  ;;  %v2947_v24 = vmul.f32 -1.442695, %v2446_v8 }
 0x57a   :  { %3253 = vtanh.f32 %v2384_v41  ;;  %v2375_v17 = vsel %vm2374_vm2, %v3250_v55, %v2371_v43 }
 0x57b   :  { %3255 = vpow2.f32 %v2946_v37  ;;  %v2380_v42 = vsel %vm2377_vm3, %v2379_v63, %v2375_v17 }
 0x57c   :  { %3257 = vpow2.f32 %v2947_v24 }
 0x57d   :  { %v2428_v34 = vpop.f32.mrf.mxu2  ;;  %v2441_v56 = vpop.f32.mrf.mxu3 }
 0x57e   :  { %v2448_v61 = vadd.f32 %v2441_v56, %v2392_v16  ;;  %v2404_v28 = vpop.f32.mrf.mxu0  ;;  %v2417_v13 = vpop.f32.mrf.mxu1  ;;  %v2447_v1 = vadd.f32 %v2428_v34, %v2391_v53 }
 0x580   :  { %v3254_v32 = vpop.eup %3253  ;;  %v2948_v33 = vmul.f32 -1.442695, %v2448_v61 }
 0x581   :  { %v3256_v14 = vpop.eup %3255  ;;  %v2386_v0 = vmul.f32 %v3254_v32, %v2380_v42 }
 0x582   :  { %v3258_v31 = vpop.eup %3257  ;;  %v2452_v38 = vadd.f32 1.0, %v3256_v14  ;;  %3259 = vpow2.f32 %v2948_v33 }
 0x583   :  { %v2512_v29 = vpack.c.bf16 %v2386_v0, %v2386_v0  ;;  %v2471_v45 = vadd.f32 1.0, %v3258_v31 }
 0x584   :  { %3261 = vrcp.f32 %v2452_v38  ;;  %v2464_v26 = vand.u32 2147483648, %v2452_v38  ;;  %v2462_v48 = vand.u32 2147483647, %v2452_v38  ;;  %vm2458_vm6 = vweird.f32 %v2452_v38 }
 0x585   :  { %2949 = vst [vmem:[%s4652_s3 + $0x1c] sm:$0xf] %v2512_v29  ;;  %3263 = vrcp.f32 %v2471_v45  ;;  %v2430_v46 = vpop.f32.mrf.mxu2  ;;  %v2443_v54 = vpop.f32.mrf.mxu3  ;;  %v2483_v40 = vand.u32 2147483648, %v2471_v45  ;;  %v2481_v52 = vand.u32 2147483647, %v2471_v45  ;;  %vm2477_vm7 = vweird.f32 %v2471_v45 }
 0x586   :  { %v2465_v60 = vor.u32 1.1754944e-38, %v2464_v26  ;;  %vm2463_vm10 = vcmp.eq.f32.partialorder %v2462_v48, 8.507059e+37 }
 0x587   :  { %v2484_v62 = vor.u32 1.1754944e-38, %v2483_v40  ;;  %vm2482_vm11 = vcmp.eq.f32.partialorder %v2481_v52, 8.507059e+37 }
 0x588   :  { %v3260_v57 = vpop.eup %3259 }
 0x589   :  { %v2491_v58 = vadd.f32 1.0, %v3260_v57 }
 0x58a   :  { %v3262_v2 = vpop.eup %3261 }
 0x58b   :  { %v3264_v6 = vpop.eup %3263  ;;  %v2454_v9 = vmul.f32 %v3262_v2, %v2452_v38  ;;  %3265 = vrcp.f32 %v2491_v58  ;;  %vm2459_vm4 = vweird.f32 %v3262_v2  ;;  %v2503_v15 = vand.u32 2147483648, %v2491_v58 }
 0x58c   :  { %v2473_v19 = vmul.f32 %v3264_v6, %v2471_v45  ;;  %3267 = vtanh.f32 %v2447_v1  ;;  %vm2478_vm5 = vweird.f32 %v3264_v6  ;;  %vm2460_vm8 = vmor %vm2458_vm6, %vm2459_vm4  ;;  %vm2497_vm13 = vweird.f32 %v2491_v58 }
 0x58d   :  { %v2455_v20 = vsub.f32 1.0, %v2454_v9  ;;  %vm2479_vm9 = vmor %vm2477_vm7, %vm2478_vm5  ;;  %v2501_v3 = vand.u32 2147483647, %v2491_v58  ;;  %v2504_v8 = vor.u32 1.1754944e-38, %v2503_v15 }
 0x58e   :  { %v2474_v25 = vsub.f32 1.0, %v2473_v19 }
 0x58f   :  { %v2456_v47 = vmul.f32 %v3262_v2, %v2455_v20  ;;  %vm2502_vm15 = vcmp.eq.f32.partialorder %v2501_v3, 8.507059e+37 }
 0x590   :  { %v2475_v49 = vmul.f32 %v3264_v6, %v2474_v25 }
 0x591   :  { %v3266_v55 = vpop.eup %3265  ;;  %v2457_v10 = vadd.f32 %v3262_v2, %v2456_v47 }
 0x592   :  { %v2476_v23 = vadd.f32 %v3264_v6, %v2475_v49  ;;  %v2493_v30 = vmul.f32 %v3266_v55, %v2491_v58  ;;  %v3268_v51 = vpop.eup %3267  ;;  %vm2498_vm12 = vweird.f32 %v3266_v55 }
 0x593   :  { %v2461_v22 = vsel %vm2460_vm8, %v3262_v2, %v2457_v10  ;;  %vm2499_vm14 = vmor %vm2497_vm13, %vm2498_vm12 }
 0x594   :  { %v2466_v35 = vsel %vm2463_vm10, %v2465_v60, %v2461_v22  ;;  %v2480_v11 = vsel %vm2479_vm9, %v3264_v6, %v2476_v23  ;;  %v2494_v59 = vsub.f32 1.0, %v2493_v30 }
 0x595   :  { %v2485_v4 = vsel %vm2482_vm11, %v2484_v62, %v2480_v11  ;;  %v2508_v36 = vmul.f32 %v3268_v51, %v2466_v35 }
 0x596   :  { %v2507_v50 = vmul.f32 %v2485_v4, %v4616_v5  ;;  %v2495_v18 = vmul.f32 %v3266_v55, %v2494_v59 }
 0x598   :  { %v2509_v44 = vadd.f32 %v2508_v36, %v2507_v50  ;;  %v2496_v39 = vadd.f32 %v3266_v55, %v2495_v18 }
 0x59a   :  { %3269 = vtanh.f32 %v2509_v44  ;;  %v2500_v21 = vsel %vm2499_vm14, %v3266_v55, %v2496_v39 }
 0x59b   :  { %v2505_v41 = vsel %vm2502_vm15, %v2504_v8, %v2500_v21 }
 0x5a0   :  { %v3270_v27 = vpop.eup %3269 }
 0x5a1   :  { %v2511_v43 = vmul.f32 %v3270_v27, %v2505_v41 }
 0x5a3   :  { %v2515_v37 = vpack.c.bf16 %v2511_v43, %v2511_v43 }
 0x5a5   :  { %2516 = vst [vmem:[%s4653_s4] sm:$0xf] %v2515_v37 }

</bundles_post_ra>
